<compile_context>
chip_gen: v6e
topology: v6e:2x2x1
jax: 0.10.0
libtpu: 0.0.40
codegen_flags: <defaults>
</compile_context>

<pallas_src>
import functools

import jax
import jax.numpy as jnp
import numpy as np
from jax import lax
from jax.experimental import pallas as pl
from jax.experimental.pallas import tpu as pltpu


def _xunitd_kernel(x_ref, w1_ref, b1_ref, wdw_ref, o2_ref, out_ref,
                   h_ref, hsh_ref, *, H, W, C, K, compute_dtype):
    P = K // 2
    f32 = jnp.float32

    # ---- 1x1 conv (BN1 pre-folded into w1/b1) + ReLU : MXU matmul ----------
    x2 = x_ref[0].reshape(H * W, C).astype(compute_dtype)
    w1 = w1_ref[...].astype(compute_dtype)
    h = jnp.dot(x2, w1, preferred_element_type=f32) + b1_ref[...]
    h = jnp.maximum(h, 0.0)
    # Park h in VMEM so it does not stay live in vregs across the tap loop.
    h_ref[...] = h.reshape(H, W, C)

    # ---- depthwise KxK conv (BN2 scale pre-folded into wdw) ----------------
    # Scratch hsh_ref is padded only along H (major axis).  Zero just the
    # halo rows; they are never written inside the loop.  Done every grid
    # step (cheap: 2*P rows) so it is also correct under megacore splitting.
    if P > 0:
        hsh_ref[0:P, :, :] = jnp.zeros((P, W, C), f32)
        hsh_ref[H + P:H + 2 * P, :, :] = jnp.zeros((P, W, C), f32)

    acc = jnp.zeros((H, W, C), f32)
    for kx in range(K):
        dx = kx - P
        # One sublane (W-axis) shift with zero fill per kx, written into the
        # scratch interior; reused by all K ky taps below.
        if dx == 0:
            hsh_ref[P:P + H, :, :] = h_ref[...]
        elif dx > 0:
            hsh_ref[P:P + H, 0:W - dx, :] = h_ref[:, dx:W, :]
            hsh_ref[P:P + H, W - dx:W, :] = jnp.zeros((H, dx, C), f32)
        else:  # dx < 0
            hsh_ref[P:P + H, -dx:W, :] = h_ref[:, 0:W + dx, :]
            hsh_ref[P:P + H, 0:-dx, :] = jnp.zeros((H, -dx, C), f32)
        # ky slices are pure major-axis base-address offsets (aligned loads).
        for ky in range(K):
            acc = acc + wdw_ref[ky, kx, :] * hsh_ref[ky:ky + H, :, :]

    # ---- BN2 offset + Sigmoid gate; re-read x (short live range) -----------
    a = jax.nn.sigmoid(acc + o2_ref[...])
    out_ref[...] = (x_ref[0] * a)[None].astype(out_ref.dtype)


def _fold_params(params):
    """Fold eval-mode BatchNorms into the conv weights/biases."""
    w1, b1, s1, o1, wdw, s2, o2 = params
    C = w1.shape[1]
    s1v, o1v = s1.reshape(C), o1.reshape(C)
    s2v, o2v = s2.reshape(C), o2.reshape(C)
    w1f = w1 * s1v[None, :]                        # (C_in, C_out)
    b1f = (b1.reshape(C) * s1v + o1v).reshape(1, C)
    wdwf = wdw * s2v[None, None, :]                # (K, K, C)
    return w1f, b1f, wdwf, o2v.reshape(1, C)


def xunitd_pallas_nhwc(x_nhwc, params, *, compute_dtype=jnp.float32):
    """x_nhwc: (N, H, W, C) float32 -> (N, H, W, C). Transpose-free path."""
    w1f, b1f, wdwf, o2 = _fold_params(params)
    N, H, W, C = x_nhwc.shape
    K = wdwf.shape[0]

    kernel = functools.partial(_xunitd_kernel, H=H, W=W, C=C, K=K,
                               compute_dtype=compute_dtype)

    return pl.pallas_call(
        kernel,
        out_shape=jax.ShapeDtypeStruct((N, H, W, C), jnp.float32),
        grid_spec=pltpu.PrefetchScalarGridSpec(
            num_scalar_prefetch=0,
            grid=(N,),
            in_specs=[
                pl.BlockSpec((1, H, W, C), lambda n: (n, 0, 0, 0)),  # x
                pl.BlockSpec((C, C), lambda n: (0, 0)),              # w1 (folded)
                pl.BlockSpec((1, C), lambda n: (0, 0)),              # b1 (folded)
                pl.BlockSpec((K, K, C), lambda n: (0, 0, 0)),        # dw (folded)
                pl.BlockSpec((1, C), lambda n: (0, 0)),              # bn2 offset
            ],
            out_specs=pl.BlockSpec((1, H, W, C), lambda n: (n, 0, 0, 0)),
            scratch_shapes=[
                pltpu.VMEM((H, W, C), jnp.float32),          # h
                pltpu.VMEM((H + K - 1, W, C), jnp.float32),  # H-padded, shifted h
            ],
        ),
        compiler_params=pltpu.CompilerParams(
            dimension_semantics=("parallel",)),
    )(x_nhwc.astype(jnp.float32), w1f, b1f, wdwf, o2)


def xunitd_pallas_nchw(x_nchw, params, **kw):
    """PyTorch-layout convenience wrapper (adds HBM transposes; prefer NHWC)."""
    out = xunitd_pallas_nhwc(jnp.transpose(x_nchw, (0, 2, 3, 1)), params, **kw)
    return jnp.transpose(out, (0, 3, 1, 2))


def make_params(key, C, K):
    """Deterministic synthetic parameters (PyTorch-shape semantics)."""
    ks = jax.random.split(key, 8)
    # Conv2d 1x1: torch weight (C_out, C_in, 1, 1) -> (C_in, C_out) matrix
    w1_t = jax.random.normal(ks[0], (C, C), jnp.float32) * 0.2
    w1 = w1_t.T
    b1 = (jax.random.normal(ks[1], (C,), jnp.float32) * 0.1).reshape(1, C)
    # BatchNorm1 (eval mode) -> scale/offset
    g1 = 1.0 + 0.1 * jax.random.normal(ks[2], (C,), jnp.float32)
    be1 = 0.1 * jax.random.normal(ks[3], (C,), jnp.float32)
    rm1 = 0.05 * jax.random.normal(ks[4], (C,), jnp.float32)
    rv1 = 1.0 + 0.1 * jax.nn.softplus(jax.random.normal(ks[5], (C,), jnp.float32))
    eps = 1e-5
    s1 = (g1 / jnp.sqrt(rv1 + eps)).reshape(1, C)
    o1 = (be1 - rm1 * g1 / jnp.sqrt(rv1 + eps)).reshape(1, C)
    # Depthwise conv: torch weight (C, 1, K, K) -> (K, K, C)
    wdw_t = jax.random.normal(ks[6], (C, 1, K, K), jnp.float32) * 0.1
    wdw = jnp.transpose(wdw_t[:, 0], (1, 2, 0))
    # BatchNorm2 (eval mode) -> scale/offset
    g2 = 1.0 + 0.1 * jax.random.normal(ks[7], (C,), jnp.float32)
    be2 = jnp.zeros((C,), jnp.float32)
    rm2 = jnp.zeros((C,), jnp.float32)
    rv2 = jnp.ones((C,), jnp.float32)
    s2 = (g2 / jnp.sqrt(rv2 + eps)).reshape(1, C)
    o2 = (be2 - rm2 * g2 / jnp.sqrt(rv2 + eps)).reshape(1, C)
    return (w1, b1, s1, o1, wdw, s2, o2)


def xunitd_reference_nhwc(x_nhwc, params):
    """Pure-JAX reference (unfused math) for correctness check."""
    w1, b1, s1, o1, wdw, s2, o2 = params
    C = w1.shape[1]
    K = wdw.shape[0]
    h = jnp.einsum("nhwc,cd->nhwd", x_nhwc, w1) + b1.reshape(C)
    h = jnp.maximum(h * s1.reshape(C) + o1.reshape(C), 0.0)
    dw = wdw.reshape(K, K, 1, C)                               # HWIO, I=1
    h = lax.conv_general_dilated(
        h, dw, window_strides=(1, 1), padding="SAME",
        dimension_numbers=("NHWC", "HWIO", "NHWC"),
        feature_group_count=C)
    a = jax.nn.sigmoid(h * s2.reshape(C) + o2.reshape(C))
    return x_nhwc * a


if __name__ == "__main__":
    # Module default num_features=64, kernel_size=7; small spatial/batch.
    N, C, H, W, K = 2, 64, 16, 16, 7
    key = jax.random.PRNGKey(0)
    kx, kp = jax.random.split(key)
    x_nhwc = jax.random.normal(kx, (N, H, W, C), jnp.float32)
    params = make_params(kp, C, K)

    out = xunitd_pallas_nhwc(x_nhwc, params)          # transpose-free path
    out = jax.block_until_ready(out)

    ref = xunitd_reference_nhwc(x_nhwc, params)
    np.testing.assert_allclose(np.asarray(out), np.asarray(ref),
                               rtol=2e-4, atol=2e-4)
    print("KERNEL_OK")
</pallas_src>

<mosaic_0001>
module attributes {stable_mosaic.version = 11 : i64} {
  func.func @_xunitd_kernel(%arg0: i32, %arg1: memref<1x16x16x64xf32, #tpu.memory_space<vmem>>, %arg2: memref<64x64xf32, #tpu.memory_space<vmem>>, %arg3: memref<1x64xf32, #tpu.memory_space<vmem>>, %arg4: memref<7x7x64xf32, #tpu.memory_space<vmem>>, %arg5: memref<1x64xf32, #tpu.memory_space<vmem>>, %arg6: memref<1x16x16x64xf32, #tpu.memory_space<vmem>>, %arg7: memref<16x16x64xf32, #tpu.memory_space<vmem>>, %arg8: memref<22x16x64xf32, #tpu.memory_space<vmem>>) attributes {dimension_semantics = [#tpu.dimension_semantics<parallel>], iteration_bounds = array<i64: 2>, scalar_prefetch = 0 : i64, scratch_operands = 2 : i64, tpu.core_type = #tpu.core_type<tc>, window_params = [{transform_indices = @transform_0, window_bounds = array<i64: 1, 16, 16, 64>}, {pipeline_mode = #tpu.pipeline_mode<synchronous>, transform_indices = @transform_1, window_bounds = array<i64: 64, 64>}, {pipeline_mode = #tpu.pipeline_mode<synchronous>, transform_indices = @transform_2, window_bounds = array<i64: 1, 64>}, {pipeline_mode = #tpu.pipeline_mode<synchronous>, transform_indices = @transform_3, window_bounds = array<i64: 7, 7, 64>}, {pipeline_mode = #tpu.pipeline_mode<synchronous>, transform_indices = @transform_4, window_bounds = array<i64: 1, 64>}, {transform_indices = @transform_5, window_bounds = array<i64: 1, 16, 16, 64>}]} {
    %c0 = arith.constant 0 : index
    %c0_0 = arith.constant 0 : index
    %c0_1 = arith.constant 0 : index
    %c0_2 = arith.constant 0 : index
    %0 = vector.load %arg1[%c0, %c0_0, %c0_1, %c0_2] : memref<1x16x16x64xf32, #tpu.memory_space<vmem>>, vector<1x16x16x64xf32>
    %1 = vector.shape_cast %0 : vector<1x16x16x64xf32> to vector<16x16x64xf32>
    %2 = vector.shape_cast %1 : vector<16x16x64xf32> to vector<256x64xf32>
    %c0_3 = arith.constant 0 : index
    %c0_4 = arith.constant 0 : index
    %3 = vector.load %arg2[%c0_3, %c0_4] : memref<64x64xf32, #tpu.memory_space<vmem>>, vector<64x64xf32>
    %cst = arith.constant dense<0.000000e+00> : vector<256x64xf32>
    %4 = tpu.matmul %2, %3, %cst {dimension_numbers = #tpu.dot_dimension_numbers<[1], [0], [0], [1], [0, 0, 1, 1], [], []>} : vector<256x64xf32>, vector<64x64xf32>, vector<256x64xf32> -> vector<256x64xf32>
    %c0_5 = arith.constant 0 : index
    %c0_6 = arith.constant 0 : index
    %5 = vector.load %arg3[%c0_5, %c0_6] : memref<1x64xf32, #tpu.memory_space<vmem>>, vector<1x64xf32>
    %6 = vector.broadcast %5 : vector<1x64xf32> to vector<256x64xf32>
    %7 = arith.addf %4, %6 : vector<256x64xf32>
    %cst_7 = arith.constant 0.000000e+00 : f32
    %8 = vector.broadcast %cst_7 : f32 to vector<256x64xf32>
    %9 = arith.maximumf %7, %8 : vector<256x64xf32>
    %10 = vector.shape_cast %9 : vector<256x64xf32> to vector<16x16x64xf32>
    %c0_8 = arith.constant 0 : index
    %c0_9 = arith.constant 0 : index
    %c0_10 = arith.constant 0 : index
    %11 = vector.load %arg7[%c0_8, %c0_9, %c0_10] : memref<16x16x64xf32, #tpu.memory_space<vmem>>, vector<16x16x64xf32>
    tpu.vector_store %arg7[%c0_8, %c0_9, %c0_10], %10 {strides = array<i32>} : memref<16x16x64xf32, #tpu.memory_space<vmem>>, vector<16x16x64xf32>,
    %cst_11 = arith.constant 0.000000e+00 : f32
    %12 = vector.broadcast %cst_11 : f32 to vector<3x16x64xf32>
    %c0_12 = arith.constant 0 : index
    %c0_13 = arith.constant 0 : index
    %c0_14 = arith.constant 0 : index
    %13 = vector.load %arg8[%c0_12, %c0_13, %c0_14] : memref<22x16x64xf32, #tpu.memory_space<vmem>>, vector<3x16x64xf32>
    tpu.vector_store %arg8[%c0_12, %c0_13, %c0_14], %12 {strides = array<i32>} : memref<22x16x64xf32, #tpu.memory_space<vmem>>, vector<3x16x64xf32>,
    %cst_15 = arith.constant 0.000000e+00 : f32
    %14 = vector.broadcast %cst_15 : f32 to vector<3x16x64xf32>
    %c19 = arith.constant 19 : index
    %c0_16 = arith.constant 0 : index
    %c0_17 = arith.constant 0 : index
    %15 = vector.load %arg8[%c19, %c0_16, %c0_17] : memref<22x16x64xf32, #tpu.memory_space<vmem>>, vector<3x16x64xf32>
    tpu.vector_store %arg8[%c19, %c0_16, %c0_17], %14 {strides = array<i32>} : memref<22x16x64xf32, #tpu.memory_space<vmem>>, vector<3x16x64xf32>,
    %cst_18 = arith.constant 0.000000e+00 : f32
    %16 = vector.broadcast %cst_18 : f32 to vector<16x16x64xf32>
    %c0_19 = arith.constant 0 : index
    %c0_20 = arith.constant 0 : index
    %c0_21 = arith.constant 0 : index
    %17 = vector.load %arg7[%c0_19, %c0_20, %c0_21] : memref<16x16x64xf32, #tpu.memory_space<vmem>>, vector<16x13x64xf32>
    %c3 = arith.constant 3 : index
    %c3_22 = arith.constant 3 : index
    %c0_23 = arith.constant 0 : index
    %18 = vector.load %arg8[%c3, %c3_22, %c0_23] : memref<22x16x64xf32, #tpu.memory_space<vmem>>, vector<16x13x64xf32>
    tpu.vector_store %arg8[%c3, %c3_22, %c0_23], %17 {strides = array<i32>} : memref<22x16x64xf32, #tpu.memory_space<vmem>>, vector<16x13x64xf32>,
    %cst_24 = arith.constant 0.000000e+00 : f32
    %19 = vector.broadcast %cst_24 : f32 to vector<16x3x64xf32>
    %c3_25 = arith.constant 3 : index
    %c0_26 = arith.constant 0 : index
    %c0_27 = arith.constant 0 : index
    %20 = vector.load %arg8[%c3_25, %c0_26, %c0_27] : memref<22x16x64xf32, #tpu.memory_space<vmem>>, vector<16x3x64xf32>
    tpu.vector_store %arg8[%c3_25, %c0_26, %c0_27], %19 {strides = array<i32>} : memref<22x16x64xf32, #tpu.memory_space<vmem>>, vector<16x3x64xf32>,
    %c0_28 = arith.constant 0 : index
    %c0_29 = arith.constant 0 : index
    %c0_30 = arith.constant 0 : index
    %21 = vector.load %arg4[%c0_28, %c0_29, %c0_30] : memref<7x7x64xf32, #tpu.memory_space<vmem>>, vector<1x1x64xf32>
    %22 = vector.shape_cast %21 : vector<1x1x64xf32> to vector<64xf32>
    %c0_31 = arith.constant 0 : index
    %c0_32 = arith.constant 0 : index
    %c0_33 = arith.constant 0 : index
    %23 = vector.load %arg8[%c0_31, %c0_32, %c0_33] : memref<22x16x64xf32, #tpu.memory_space<vmem>>, vector<16x16x64xf32>
    %24 = vector.shape_cast %22 : vector<64xf32> to vector<1x1x64xf32>
    %25 = vector.broadcast %24 : vector<1x1x64xf32> to vector<16x16x64xf32>
    %26 = arith.mulf %25, %23 : vector<16x16x64xf32>
    %27 = arith.addf %16, %26 : vector<16x16x64xf32>
    %c1 = arith.constant 1 : index
    %c0_34 = arith.constant 0 : index
    %c0_35 = arith.constant 0 : index
    %28 = vector.load %arg4[%c1, %c0_34, %c0_35] : memref<7x7x64xf32, #tpu.memory_space<vmem>>, vector<1x1x64xf32>
    %29 = vector.shape_cast %28 : vector<1x1x64xf32> to vector<64xf32>
    %c1_36 = arith.constant 1 : index
    %c0_37 = arith.constant 0 : index
    %c0_38 = arith.constant 0 : index
    %30 = vector.load %arg8[%c1_36, %c0_37, %c0_38] : memref<22x16x64xf32, #tpu.memory_space<vmem>>, vector<16x16x64xf32>
    %31 = vector.shape_cast %29 : vector<64xf32> to vector<1x1x64xf32>
    %32 = vector.broadcast %31 : vector<1x1x64xf32> to vector<16x16x64xf32>
    %33 = arith.mulf %32, %30 : vector<16x16x64xf32>
    %34 = arith.addf %27, %33 : vector<16x16x64xf32>
    %c2 = arith.constant 2 : index
    %c0_39 = arith.constant 0 : index
    %c0_40 = arith.constant 0 : index
    %35 = vector.load %arg4[%c2, %c0_39, %c0_40] : memref<7x7x64xf32, #tpu.memory_space<vmem>>, vector<1x1x64xf32>
    %36 = vector.shape_cast %35 : vector<1x1x64xf32> to vector<64xf32>
    %c2_41 = arith.constant 2 : index
    %c0_42 = arith.constant 0 : index
    %c0_43 = arith.constant 0 : index
    %37 = vector.load %arg8[%c2_41, %c0_42, %c0_43] : memref<22x16x64xf32, #tpu.memory_space<vmem>>, vector<16x16x64xf32>
    %38 = vector.shape_cast %36 : vector<64xf32> to vector<1x1x64xf32>
    %39 = vector.broadcast %38 : vector<1x1x64xf32> to vector<16x16x64xf32>
    %40 = arith.mulf %39, %37 : vector<16x16x64xf32>
    %41 = arith.addf %34, %40 : vector<16x16x64xf32>
    %c3_44 = arith.constant 3 : index
    %c0_45 = arith.constant 0 : index
    %c0_46 = arith.constant 0 : index
    %42 = vector.load %arg4[%c3_44, %c0_45, %c0_46] : memref<7x7x64xf32, #tpu.memory_space<vmem>>, vector<1x1x64xf32>
    %43 = vector.shape_cast %42 : vector<1x1x64xf32> to vector<64xf32>
    %c3_47 = arith.constant 3 : index
    %c0_48 = arith.constant 0 : index
    %c0_49 = arith.constant 0 : index
    %44 = vector.load %arg8[%c3_47, %c0_48, %c0_49] : memref<22x16x64xf32, #tpu.memory_space<vmem>>, vector<16x16x64xf32>
    %45 = vector.shape_cast %43 : vector<64xf32> to vector<1x1x64xf32>
    %46 = vector.broadcast %45 : vector<1x1x64xf32> to vector<16x16x64xf32>
    %47 = arith.mulf %46, %44 : vector<16x16x64xf32>
    %48 = arith.addf %41, %47 : vector<16x16x64xf32>
    %c4 = arith.constant 4 : index
    %c0_50 = arith.constant 0 : index
    %c0_51 = arith.constant 0 : index
    %49 = vector.load %arg4[%c4, %c0_50, %c0_51] : memref<7x7x64xf32, #tpu.memory_space<vmem>>, vector<1x1x64xf32>
    %50 = vector.shape_cast %49 : vector<1x1x64xf32> to vector<64xf32>
    %c4_52 = arith.constant 4 : index
    %c0_53 = arith.constant 0 : index
    %c0_54 = arith.constant 0 : index
    %51 = vector.load %arg8[%c4_52, %c0_53, %c0_54] : memref<22x16x64xf32, #tpu.memory_space<vmem>>, vector<16x16x64xf32>
    %52 = vector.shape_cast %50 : vector<64xf32> to vector<1x1x64xf32>
    %53 = vector.broadcast %52 : vector<1x1x64xf32> to vector<16x16x64xf32>
    %54 = arith.mulf %53, %51 : vector<16x16x64xf32>
    %55 = arith.addf %48, %54 : vector<16x16x64xf32>
    %c5 = arith.constant 5 : index
    %c0_55 = arith.constant 0 : index
    %c0_56 = arith.constant 0 : index
    %56 = vector.load %arg4[%c5, %c0_55, %c0_56] : memref<7x7x64xf32, #tpu.memory_space<vmem>>, vector<1x1x64xf32>
    %57 = vector.shape_cast %56 : vector<1x1x64xf32> to vector<64xf32>
    %c5_57 = arith.constant 5 : index
    %c0_58 = arith.constant 0 : index
    %c0_59 = arith.constant 0 : index
    %58 = vector.load %arg8[%c5_57, %c0_58, %c0_59] : memref<22x16x64xf32, #tpu.memory_space<vmem>>, vector<16x16x64xf32>
    %59 = vector.shape_cast %57 : vector<64xf32> to vector<1x1x64xf32>
    %60 = vector.broadcast %59 : vector<1x1x64xf32> to vector<16x16x64xf32>
    %61 = arith.mulf %60, %58 : vector<16x16x64xf32>
    %62 = arith.addf %55, %61 : vector<16x16x64xf32>
    %c6 = arith.constant 6 : index
    %c0_60 = arith.constant 0 : index
    %c0_61 = arith.constant 0 : index
    %63 = vector.load %arg4[%c6, %c0_60, %c0_61] : memref<7x7x64xf32, #tpu.memory_space<vmem>>, vector<1x1x64xf32>
    %64 = vector.shape_cast %63 : vector<1x1x64xf32> to vector<64xf32>
    %c6_62 = arith.constant 6 : index
    %c0_63 = arith.constant 0 : index
    %c0_64 = arith.constant 0 : index
    %65 = vector.load %arg8[%c6_62, %c0_63, %c0_64] : memref<22x16x64xf32, #tpu.memory_space<vmem>>, vector<16x16x64xf32>
    %66 = vector.shape_cast %64 : vector<64xf32> to vector<1x1x64xf32>
    %67 = vector.broadcast %66 : vector<1x1x64xf32> to vector<16x16x64xf32>
    %68 = arith.mulf %67, %65 : vector<16x16x64xf32>
    %69 = arith.addf %62, %68 : vector<16x16x64xf32>
    %c0_65 = arith.constant 0 : index
    %c0_66 = arith.constant 0 : index
    %c0_67 = arith.constant 0 : index
    %70 = vector.load %arg7[%c0_65, %c0_66, %c0_67] : memref<16x16x64xf32, #tpu.memory_space<vmem>>, vector<16x14x64xf32>
    %c3_68 = arith.constant 3 : index
    %c2_69 = arith.constant 2 : index
    %c0_70 = arith.constant 0 : index
    %71 = vector.load %arg8[%c3_68, %c2_69, %c0_70] : memref<22x16x64xf32, #tpu.memory_space<vmem>>, vector<16x14x64xf32>
    tpu.vector_store %arg8[%c3_68, %c2_69, %c0_70], %70 {strides = array<i32>} : memref<22x16x64xf32, #tpu.memory_space<vmem>>, vector<16x14x64xf32>,
    %cst_71 = arith.constant 0.000000e+00 : f32
    %72 = vector.broadcast %cst_71 : f32 to vector<16x2x64xf32>
    %c3_72 = arith.constant 3 : index
    %c0_73 = arith.constant 0 : index
    %c0_74 = arith.constant 0 : index
    %73 = vector.load %arg8[%c3_72, %c0_73, %c0_74] : memref<22x16x64xf32, #tpu.memory_space<vmem>>, vector<16x2x64xf32>
    tpu.vector_store %arg8[%c3_72, %c0_73, %c0_74], %72 {strides = array<i32>} : memref<22x16x64xf32, #tpu.memory_space<vmem>>, vector<16x2x64xf32>,
    %c0_75 = arith.constant 0 : index
    %c1_76 = arith.constant 1 : index
    %c0_77 = arith.constant 0 : index
    %74 = vector.load %arg4[%c0_75, %c1_76, %c0_77] : memref<7x7x64xf32, #tpu.memory_space<vmem>>, vector<1x1x64xf32>
    %75 = vector.shape_cast %74 : vector<1x1x64xf32> to vector<64xf32>
    %c0_78 = arith.constant 0 : index
    %c0_79 = arith.constant 0 : index
    %c0_80 = arith.constant 0 : index
    %76 = vector.load %arg8[%c0_78, %c0_79, %c0_80] : memref<22x16x64xf32, #tpu.memory_space<vmem>>, vector<16x16x64xf32>
    %77 = vector.shape_cast %75 : vector<64xf32> to vector<1x1x64xf32>
    %78 = vector.broadcast %77 : vector<1x1x64xf32> to vector<16x16x64xf32>
    %79 = arith.mulf %78, %76 : vector<16x16x64xf32>
    %80 = arith.addf %69, %79 : vector<16x16x64xf32>
    %c1_81 = arith.constant 1 : index
    %c1_82 = arith.constant 1 : index
    %c0_83 = arith.constant 0 : index
    %81 = vector.load %arg4[%c1_81, %c1_82, %c0_83] : memref<7x7x64xf32, #tpu.memory_space<vmem>>, vector<1x1x64xf32>
    %82 = vector.shape_cast %81 : vector<1x1x64xf32> to vector<64xf32>
    %c1_84 = arith.constant 1 : index
    %c0_85 = arith.constant 0 : index
    %c0_86 = arith.constant 0 : index
    %83 = vector.load %arg8[%c1_84, %c0_85, %c0_86] : memref<22x16x64xf32, #tpu.memory_space<vmem>>, vector<16x16x64xf32>
    %84 = vector.shape_cast %82 : vector<64xf32> to vector<1x1x64xf32>
    %85 = vector.broadcast %84 : vector<1x1x64xf32> to vector<16x16x64xf32>
    %86 = arith.mulf %85, %83 : vector<16x16x64xf32>
    %87 = arith.addf %80, %86 : vector<16x16x64xf32>
    %c2_87 = arith.constant 2 : index
    %c1_88 = arith.constant 1 : index
    %c0_89 = arith.constant 0 : index
    %88 = vector.load %arg4[%c2_87, %c1_88, %c0_89] : memref<7x7x64xf32, #tpu.memory_space<vmem>>, vector<1x1x64xf32>
    %89 = vector.shape_cast %88 : vector<1x1x64xf32> to vector<64xf32>
    %c2_90 = arith.constant 2 : index
    %c0_91 = arith.constant 0 : index
    %c0_92 = arith.constant 0 : index
    %90 = vector.load %arg8[%c2_90, %c0_91, %c0_92] : memref<22x16x64xf32, #tpu.memory_space<vmem>>, vector<16x16x64xf32>
    %91 = vector.shape_cast %89 : vector<64xf32> to vector<1x1x64xf32>
    %92 = vector.broadcast %91 : vector<1x1x64xf32> to vector<16x16x64xf32>
    %93 = arith.mulf %92, %90 : vector<16x16x64xf32>
    %94 = arith.addf %87, %93 : vector<16x16x64xf32>
    %c3_93 = arith.constant 3 : index
    %c1_94 = arith.constant 1 : index
    %c0_95 = arith.constant 0 : index
    %95 = vector.load %arg4[%c3_93, %c1_94, %c0_95] : memref<7x7x64xf32, #tpu.memory_space<vmem>>, vector<1x1x64xf32>
    %96 = vector.shape_cast %95 : vector<1x1x64xf32> to vector<64xf32>
    %c3_96 = arith.constant 3 : index
    %c0_97 = arith.constant 0 : index
    %c0_98 = arith.constant 0 : index
    %97 = vector.load %arg8[%c3_96, %c0_97, %c0_98] : memref<22x16x64xf32, #tpu.memory_space<vmem>>, vector<16x16x64xf32>
    %98 = vector.shape_cast %96 : vector<64xf32> to vector<1x1x64xf32>
    %99 = vector.broadcast %98 : vector<1x1x64xf32> to vector<16x16x64xf32>
    %100 = arith.mulf %99, %97 : vector<16x16x64xf32>
    %101 = arith.addf %94, %100 : vector<16x16x64xf32>
    %c4_99 = arith.constant 4 : index
    %c1_100 = arith.constant 1 : index
    %c0_101 = arith.constant 0 : index
    %102 = vector.load %arg4[%c4_99, %c1_100, %c0_101] : memref<7x7x64xf32, #tpu.memory_space<vmem>>, vector<1x1x64xf32>
    %103 = vector.shape_cast %102 : vector<1x1x64xf32> to vector<64xf32>
    %c4_102 = arith.constant 4 : index
    %c0_103 = arith.constant 0 : index
    %c0_104 = arith.constant 0 : index
    %104 = vector.load %arg8[%c4_102, %c0_103, %c0_104] : memref<22x16x64xf32, #tpu.memory_space<vmem>>, vector<16x16x64xf32>
    %105 = vector.shape_cast %103 : vector<64xf32> to vector<1x1x64xf32>
    %106 = vector.broadcast %105 : vector<1x1x64xf32> to vector<16x16x64xf32>
    %107 = arith.mulf %106, %104 : vector<16x16x64xf32>
    %108 = arith.addf %101, %107 : vector<16x16x64xf32>
    %c5_105 = arith.constant 5 : index
    %c1_106 = arith.constant 1 : index
    %c0_107 = arith.constant 0 : index
    %109 = vector.load %arg4[%c5_105, %c1_106, %c0_107] : memref<7x7x64xf32, #tpu.memory_space<vmem>>, vector<1x1x64xf32>
    %110 = vector.shape_cast %109 : vector<1x1x64xf32> to vector<64xf32>
    %c5_108 = arith.constant 5 : index
    %c0_109 = arith.constant 0 : index
    %c0_110 = arith.constant 0 : index
    %111 = vector.load %arg8[%c5_108, %c0_109, %c0_110] : memref<22x16x64xf32, #tpu.memory_space<vmem>>, vector<16x16x64xf32>
    %112 = vector.shape_cast %110 : vector<64xf32> to vector<1x1x64xf32>
    %113 = vector.broadcast %112 : vector<1x1x64xf32> to vector<16x16x64xf32>
    %114 = arith.mulf %113, %111 : vector<16x16x64xf32>
    %115 = arith.addf %108, %114 : vector<16x16x64xf32>
    %c6_111 = arith.constant 6 : index
    %c1_112 = arith.constant 1 : index
    %c0_113 = arith.constant 0 : index
    %116 = vector.load %arg4[%c6_111, %c1_112, %c0_113] : memref<7x7x64xf32, #tpu.memory_space<vmem>>, vector<1x1x64xf32>
    %117 = vector.shape_cast %116 : vector<1x1x64xf32> to vector<64xf32>
    %c6_114 = arith.constant 6 : index
    %c0_115 = arith.constant 0 : index
    %c0_116 = arith.constant 0 : index
    %118 = vector.load %arg8[%c6_114, %c0_115, %c0_116] : memref<22x16x64xf32, #tpu.memory_space<vmem>>, vector<16x16x64xf32>
    %119 = vector.shape_cast %117 : vector<64xf32> to vector<1x1x64xf32>
    %120 = vector.broadcast %119 : vector<1x1x64xf32> to vector<16x16x64xf32>
    %121 = arith.mulf %120, %118 : vector<16x16x64xf32>
    %122 = arith.addf %115, %121 : vector<16x16x64xf32>
    %c0_117 = arith.constant 0 : index
    %c0_118 = arith.constant 0 : index
    %c0_119 = arith.constant 0 : index
    %123 = vector.load %arg7[%c0_117, %c0_118, %c0_119] : memref<16x16x64xf32, #tpu.memory_space<vmem>>, vector<16x15x64xf32>
    %c3_120 = arith.constant 3 : index
    %c1_121 = arith.constant 1 : index
    %c0_122 = arith.constant 0 : index
    %124 = vector.load %arg8[%c3_120, %c1_121, %c0_122] : memref<22x16x64xf32, #tpu.memory_space<vmem>>, vector<16x15x64xf32>
    tpu.vector_store %arg8[%c3_120, %c1_121, %c0_122], %123 {strides = array<i32>} : memref<22x16x64xf32, #tpu.memory_space<vmem>>, vector<16x15x64xf32>,
    %cst_123 = arith.constant 0.000000e+00 : f32
    %125 = vector.broadcast %cst_123 : f32 to vector<16x1x64xf32>
    %c3_124 = arith.constant 3 : index
    %c0_125 = arith.constant 0 : index
    %c0_126 = arith.constant 0 : index
    %126 = vector.load %arg8[%c3_124, %c0_125, %c0_126] : memref<22x16x64xf32, #tpu.memory_space<vmem>>, vector<16x1x64xf32>
    tpu.vector_store %arg8[%c3_124, %c0_125, %c0_126], %125 {strides = array<i32>} : memref<22x16x64xf32, #tpu.memory_space<vmem>>, vector<16x1x64xf32>,
    %c0_127 = arith.constant 0 : index
    %c2_128 = arith.constant 2 : index
    %c0_129 = arith.constant 0 : index
    %127 = vector.load %arg4[%c0_127, %c2_128, %c0_129] : memref<7x7x64xf32, #tpu.memory_space<vmem>>, vector<1x1x64xf32>
    %128 = vector.shape_cast %127 : vector<1x1x64xf32> to vector<64xf32>
    %c0_130 = arith.constant 0 : index
    %c0_131 = arith.constant 0 : index
    %c0_132 = arith.constant 0 : index
    %129 = vector.load %arg8[%c0_130, %c0_131, %c0_132] : memref<22x16x64xf32, #tpu.memory_space<vmem>>, vector<16x16x64xf32>
    %130 = vector.shape_cast %128 : vector<64xf32> to vector<1x1x64xf32>
    %131 = vector.broadcast %130 : vector<1x1x64xf32> to vector<16x16x64xf32>
    %132 = arith.mulf %131, %129 : vector<16x16x64xf32>
    %133 = arith.addf %122, %132 : vector<16x16x64xf32>
    %c1_133 = arith.constant 1 : index
    %c2_134 = arith.constant 2 : index
    %c0_135 = arith.constant 0 : index
    %134 = vector.load %arg4[%c1_133, %c2_134, %c0_135] : memref<7x7x64xf32, #tpu.memory_space<vmem>>, vector<1x1x64xf32>
    %135 = vector.shape_cast %134 : vector<1x1x64xf32> to vector<64xf32>
    %c1_136 = arith.constant 1 : index
    %c0_137 = arith.constant 0 : index
    %c0_138 = arith.constant 0 : index
    %136 = vector.load %arg8[%c1_136, %c0_137, %c0_138] : memref<22x16x64xf32, #tpu.memory_space<vmem>>, vector<16x16x64xf32>
    %137 = vector.shape_cast %135 : vector<64xf32> to vector<1x1x64xf32>
    %138 = vector.broadcast %137 : vector<1x1x64xf32> to vector<16x16x64xf32>
    %139 = arith.mulf %138, %136 : vector<16x16x64xf32>
    %140 = arith.addf %133, %139 : vector<16x16x64xf32>
    %c2_139 = arith.constant 2 : index
    %c2_140 = arith.constant 2 : index
    %c0_141 = arith.constant 0 : index
    %141 = vector.load %arg4[%c2_139, %c2_140, %c0_141] : memref<7x7x64xf32, #tpu.memory_space<vmem>>, vector<1x1x64xf32>
    %142 = vector.shape_cast %141 : vector<1x1x64xf32> to vector<64xf32>
    %c2_142 = arith.constant 2 : index
    %c0_143 = arith.constant 0 : index
    %c0_144 = arith.constant 0 : index
    %143 = vector.load %arg8[%c2_142, %c0_143, %c0_144] : memref<22x16x64xf32, #tpu.memory_space<vmem>>, vector<16x16x64xf32>
    %144 = vector.shape_cast %142 : vector<64xf32> to vector<1x1x64xf32>
    %145 = vector.broadcast %144 : vector<1x1x64xf32> to vector<16x16x64xf32>
    %146 = arith.mulf %145, %143 : vector<16x16x64xf32>
    %147 = arith.addf %140, %146 : vector<16x16x64xf32>
    %c3_145 = arith.constant 3 : index
    %c2_146 = arith.constant 2 : index
    %c0_147 = arith.constant 0 : index
    %148 = vector.load %arg4[%c3_145, %c2_146, %c0_147] : memref<7x7x64xf32, #tpu.memory_space<vmem>>, vector<1x1x64xf32>
    %149 = vector.shape_cast %148 : vector<1x1x64xf32> to vector<64xf32>
    %c3_148 = arith.constant 3 : index
    %c0_149 = arith.constant 0 : index
    %c0_150 = arith.constant 0 : index
    %150 = vector.load %arg8[%c3_148, %c0_149, %c0_150] : memref<22x16x64xf32, #tpu.memory_space<vmem>>, vector<16x16x64xf32>
    %151 = vector.shape_cast %149 : vector<64xf32> to vector<1x1x64xf32>
    %152 = vector.broadcast %151 : vector<1x1x64xf32> to vector<16x16x64xf32>
    %153 = arith.mulf %152, %150 : vector<16x16x64xf32>
    %154 = arith.addf %147, %153 : vector<16x16x64xf32>
    %c4_151 = arith.constant 4 : index
    %c2_152 = arith.constant 2 : index
    %c0_153 = arith.constant 0 : index
    %155 = vector.load %arg4[%c4_151, %c2_152, %c0_153] : memref<7x7x64xf32, #tpu.memory_space<vmem>>, vector<1x1x64xf32>
    %156 = vector.shape_cast %155 : vector<1x1x64xf32> to vector<64xf32>
    %c4_154 = arith.constant 4 : index
    %c0_155 = arith.constant 0 : index
    %c0_156 = arith.constant 0 : index
    %157 = vector.load %arg8[%c4_154, %c0_155, %c0_156] : memref<22x16x64xf32, #tpu.memory_space<vmem>>, vector<16x16x64xf32>
    %158 = vector.shape_cast %156 : vector<64xf32> to vector<1x1x64xf32>
    %159 = vector.broadcast %158 : vector<1x1x64xf32> to vector<16x16x64xf32>
    %160 = arith.mulf %159, %157 : vector<16x16x64xf32>
    %161 = arith.addf %154, %160 : vector<16x16x64xf32>
    %c5_157 = arith.constant 5 : index
    %c2_158 = arith.constant 2 : index
    %c0_159 = arith.constant 0 : index
    %162 = vector.load %arg4[%c5_157, %c2_158, %c0_159] : memref<7x7x64xf32, #tpu.memory_space<vmem>>, vector<1x1x64xf32>
    %163 = vector.shape_cast %162 : vector<1x1x64xf32> to vector<64xf32>
    %c5_160 = arith.constant 5 : index
    %c0_161 = arith.constant 0 : index
    %c0_162 = arith.constant 0 : index
    %164 = vector.load %arg8[%c5_160, %c0_161, %c0_162] : memref<22x16x64xf32, #tpu.memory_space<vmem>>, vector<16x16x64xf32>
    %165 = vector.shape_cast %163 : vector<64xf32> to vector<1x1x64xf32>
    %166 = vector.broadcast %165 : vector<1x1x64xf32> to vector<16x16x64xf32>
    %167 = arith.mulf %166, %164 : vector<16x16x64xf32>
    %168 = arith.addf %161, %167 : vector<16x16x64xf32>
    %c6_163 = arith.constant 6 : index
    %c2_164 = arith.constant 2 : index
    %c0_165 = arith.constant 0 : index
    %169 = vector.load %arg4[%c6_163, %c2_164, %c0_165] : memref<7x7x64xf32, #tpu.memory_space<vmem>>, vector<1x1x64xf32>
    %170 = vector.shape_cast %169 : vector<1x1x64xf32> to vector<64xf32>
    %c6_166 = arith.constant 6 : index
    %c0_167 = arith.constant 0 : index
    %c0_168 = arith.constant 0 : index
    %171 = vector.load %arg8[%c6_166, %c0_167, %c0_168] : memref<22x16x64xf32, #tpu.memory_space<vmem>>, vector<16x16x64xf32>
    %172 = vector.shape_cast %170 : vector<64xf32> to vector<1x1x64xf32>
    %173 = vector.broadcast %172 : vector<1x1x64xf32> to vector<16x16x64xf32>
    %174 = arith.mulf %173, %171 : vector<16x16x64xf32>
    %175 = arith.addf %168, %174 : vector<16x16x64xf32>
    %c0_169 = arith.constant 0 : index
    %c0_170 = arith.constant 0 : index
    %c0_171 = arith.constant 0 : index
    %176 = vector.load %arg7[%c0_169, %c0_170, %c0_171] : memref<16x16x64xf32, #tpu.memory_space<vmem>>, vector<16x16x64xf32>
    %c3_172 = arith.constant 3 : index
    %c0_173 = arith.constant 0 : index
    %c0_174 = arith.constant 0 : index
    %177 = vector.load %arg8[%c3_172, %c0_173, %c0_174] : memref<22x16x64xf32, #tpu.memory_space<vmem>>, vector<16x16x64xf32>
    tpu.vector_store %arg8[%c3_172, %c0_173, %c0_174], %176 {strides = array<i32>} : memref<22x16x64xf32, #tpu.memory_space<vmem>>, vector<16x16x64xf32>,
    %c0_175 = arith.constant 0 : index
    %c3_176 = arith.constant 3 : index
    %c0_177 = arith.constant 0 : index
    %178 = vector.load %arg4[%c0_175, %c3_176, %c0_177] : memref<7x7x64xf32, #tpu.memory_space<vmem>>, vector<1x1x64xf32>
    %179 = vector.shape_cast %178 : vector<1x1x64xf32> to vector<64xf32>
    %c0_178 = arith.constant 0 : index
    %c0_179 = arith.constant 0 : index
    %c0_180 = arith.constant 0 : index
    %180 = vector.load %arg8[%c0_178, %c0_179, %c0_180] : memref<22x16x64xf32, #tpu.memory_space<vmem>>, vector<16x16x64xf32>
    %181 = vector.shape_cast %179 : vector<64xf32> to vector<1x1x64xf32>
    %182 = vector.broadcast %181 : vector<1x1x64xf32> to vector<16x16x64xf32>
    %183 = arith.mulf %182, %180 : vector<16x16x64xf32>
    %184 = arith.addf %175, %183 : vector<16x16x64xf32>
    %c1_181 = arith.constant 1 : index
    %c3_182 = arith.constant 3 : index
    %c0_183 = arith.constant 0 : index
    %185 = vector.load %arg4[%c1_181, %c3_182, %c0_183] : memref<7x7x64xf32, #tpu.memory_space<vmem>>, vector<1x1x64xf32>
    %186 = vector.shape_cast %185 : vector<1x1x64xf32> to vector<64xf32>
    %c1_184 = arith.constant 1 : index
    %c0_185 = arith.constant 0 : index
    %c0_186 = arith.constant 0 : index
    %187 = vector.load %arg8[%c1_184, %c0_185, %c0_186] : memref<22x16x64xf32, #tpu.memory_space<vmem>>, vector<16x16x64xf32>
    %188 = vector.shape_cast %186 : vector<64xf32> to vector<1x1x64xf32>
    %189 = vector.broadcast %188 : vector<1x1x64xf32> to vector<16x16x64xf32>
    %190 = arith.mulf %189, %187 : vector<16x16x64xf32>
    %191 = arith.addf %184, %190 : vector<16x16x64xf32>
    %c2_187 = arith.constant 2 : index
    %c3_188 = arith.constant 3 : index
    %c0_189 = arith.constant 0 : index
    %192 = vector.load %arg4[%c2_187, %c3_188, %c0_189] : memref<7x7x64xf32, #tpu.memory_space<vmem>>, vector<1x1x64xf32>
    %193 = vector.shape_cast %192 : vector<1x1x64xf32> to vector<64xf32>
    %c2_190 = arith.constant 2 : index
    %c0_191 = arith.constant 0 : index
    %c0_192 = arith.constant 0 : index
    %194 = vector.load %arg8[%c2_190, %c0_191, %c0_192] : memref<22x16x64xf32, #tpu.memory_space<vmem>>, vector<16x16x64xf32>
    %195 = vector.shape_cast %193 : vector<64xf32> to vector<1x1x64xf32>
    %196 = vector.broadcast %195 : vector<1x1x64xf32> to vector<16x16x64xf32>
    %197 = arith.mulf %196, %194 : vector<16x16x64xf32>
    %198 = arith.addf %191, %197 : vector<16x16x64xf32>
    %c3_193 = arith.constant 3 : index
    %c3_194 = arith.constant 3 : index
    %c0_195 = arith.constant 0 : index
    %199 = vector.load %arg4[%c3_193, %c3_194, %c0_195] : memref<7x7x64xf32, #tpu.memory_space<vmem>>, vector<1x1x64xf32>
    %200 = vector.shape_cast %199 : vector<1x1x64xf32> to vector<64xf32>
    %c3_196 = arith.constant 3 : index
    %c0_197 = arith.constant 0 : index
    %c0_198 = arith.constant 0 : index
    %201 = vector.load %arg8[%c3_196, %c0_197, %c0_198] : memref<22x16x64xf32, #tpu.memory_space<vmem>>, vector<16x16x64xf32>
    %202 = vector.shape_cast %200 : vector<64xf32> to vector<1x1x64xf32>
    %203 = vector.broadcast %202 : vector<1x1x64xf32> to vector<16x16x64xf32>
    %204 = arith.mulf %203, %201 : vector<16x16x64xf32>
    %205 = arith.addf %198, %204 : vector<16x16x64xf32>
    %c4_199 = arith.constant 4 : index
    %c3_200 = arith.constant 3 : index
    %c0_201 = arith.constant 0 : index
    %206 = vector.load %arg4[%c4_199, %c3_200, %c0_201] : memref<7x7x64xf32, #tpu.memory_space<vmem>>, vector<1x1x64xf32>
    %207 = vector.shape_cast %206 : vector<1x1x64xf32> to vector<64xf32>
    %c4_202 = arith.constant 4 : index
    %c0_203 = arith.constant 0 : index
    %c0_204 = arith.constant 0 : index
    %208 = vector.load %arg8[%c4_202, %c0_203, %c0_204] : memref<22x16x64xf32, #tpu.memory_space<vmem>>, vector<16x16x64xf32>
    %209 = vector.shape_cast %207 : vector<64xf32> to vector<1x1x64xf32>
    %210 = vector.broadcast %209 : vector<1x1x64xf32> to vector<16x16x64xf32>
    %211 = arith.mulf %210, %208 : vector<16x16x64xf32>
    %212 = arith.addf %205, %211 : vector<16x16x64xf32>
    %c5_205 = arith.constant 5 : index
    %c3_206 = arith.constant 3 : index
    %c0_207 = arith.constant 0 : index
    %213 = vector.load %arg4[%c5_205, %c3_206, %c0_207] : memref<7x7x64xf32, #tpu.memory_space<vmem>>, vector<1x1x64xf32>
    %214 = vector.shape_cast %213 : vector<1x1x64xf32> to vector<64xf32>
    %c5_208 = arith.constant 5 : index
    %c0_209 = arith.constant 0 : index
    %c0_210 = arith.constant 0 : index
    %215 = vector.load %arg8[%c5_208, %c0_209, %c0_210] : memref<22x16x64xf32, #tpu.memory_space<vmem>>, vector<16x16x64xf32>
    %216 = vector.shape_cast %214 : vector<64xf32> to vector<1x1x64xf32>
    %217 = vector.broadcast %216 : vector<1x1x64xf32> to vector<16x16x64xf32>
    %218 = arith.mulf %217, %215 : vector<16x16x64xf32>
    %219 = arith.addf %212, %218 : vector<16x16x64xf32>
    %c6_211 = arith.constant 6 : index
    %c3_212 = arith.constant 3 : index
    %c0_213 = arith.constant 0 : index
    %220 = vector.load %arg4[%c6_211, %c3_212, %c0_213] : memref<7x7x64xf32, #tpu.memory_space<vmem>>, vector<1x1x64xf32>
    %221 = vector.shape_cast %220 : vector<1x1x64xf32> to vector<64xf32>
    %c6_214 = arith.constant 6 : index
    %c0_215 = arith.constant 0 : index
    %c0_216 = arith.constant 0 : index
    %222 = vector.load %arg8[%c6_214, %c0_215, %c0_216] : memref<22x16x64xf32, #tpu.memory_space<vmem>>, vector<16x16x64xf32>
    %223 = vector.shape_cast %221 : vector<64xf32> to vector<1x1x64xf32>
    %224 = vector.broadcast %223 : vector<1x1x64xf32> to vector<16x16x64xf32>
    %225 = arith.mulf %224, %222 : vector<16x16x64xf32>
    %226 = arith.addf %219, %225 : vector<16x16x64xf32>
    %c0_217 = arith.constant 0 : index
    %c1_218 = arith.constant 1 : index
    %c0_219 = arith.constant 0 : index
    %227 = vector.load %arg7[%c0_217, %c1_218, %c0_219] : memref<16x16x64xf32, #tpu.memory_space<vmem>>, vector<16x15x64xf32>
    %c3_220 = arith.constant 3 : index
    %c0_221 = arith.constant 0 : index
    %c0_222 = arith.constant 0 : index
    %228 = vector.load %arg8[%c3_220, %c0_221, %c0_222] : memref<22x16x64xf32, #tpu.memory_space<vmem>>, vector<16x15x64xf32>
    tpu.vector_store %arg8[%c3_220, %c0_221, %c0_222], %227 {strides = array<i32>} : memref<22x16x64xf32, #tpu.memory_space<vmem>>, vector<16x15x64xf32>,
    %cst_223 = arith.constant 0.000000e+00 : f32
    %229 = vector.broadcast %cst_223 : f32 to vector<16x1x64xf32>
    %c3_224 = arith.constant 3 : index
    %c15 = arith.constant 15 : index
    %c0_225 = arith.constant 0 : index
    %230 = vector.load %arg8[%c3_224, %c15, %c0_225] : memref<22x16x64xf32, #tpu.memory_space<vmem>>, vector<16x1x64xf32>
    tpu.vector_store %arg8[%c3_224, %c15, %c0_225], %229 {strides = array<i32>} : memref<22x16x64xf32, #tpu.memory_space<vmem>>, vector<16x1x64xf32>,
    %c0_226 = arith.constant 0 : index
    %c4_227 = arith.constant 4 : index
    %c0_228 = arith.constant 0 : index
    %231 = vector.load %arg4[%c0_226, %c4_227, %c0_228] : memref<7x7x64xf32, #tpu.memory_space<vmem>>, vector<1x1x64xf32>
    %232 = vector.shape_cast %231 : vector<1x1x64xf32> to vector<64xf32>
    %c0_229 = arith.constant 0 : index
    %c0_230 = arith.constant 0 : index
    %c0_231 = arith.constant 0 : index
    %233 = vector.load %arg8[%c0_229, %c0_230, %c0_231] : memref<22x16x64xf32, #tpu.memory_space<vmem>>, vector<16x16x64xf32>
    %234 = vector.shape_cast %232 : vector<64xf32> to vector<1x1x64xf32>
    %235 = vector.broadcast %234 : vector<1x1x64xf32> to vector<16x16x64xf32>
    %236 = arith.mulf %235, %233 : vector<16x16x64xf32>
    %237 = arith.addf %226, %236 : vector<16x16x64xf32>
    %c1_232 = arith.constant 1 : index
    %c4_233 = arith.constant 4 : index
    %c0_234 = arith.constant 0 : index
    %238 = vector.load %arg4[%c1_232, %c4_233, %c0_234] : memref<7x7x64xf32, #tpu.memory_space<vmem>>, vector<1x1x64xf32>
    %239 = vector.shape_cast %238 : vector<1x1x64xf32> to vector<64xf32>
    %c1_235 = arith.constant 1 : index
    %c0_236 = arith.constant 0 : index
    %c0_237 = arith.constant 0 : index
    %240 = vector.load %arg8[%c1_235, %c0_236, %c0_237] : memref<22x16x64xf32, #tpu.memory_space<vmem>>, vector<16x16x64xf32>
    %241 = vector.shape_cast %239 : vector<64xf32> to vector<1x1x64xf32>
    %242 = vector.broadcast %241 : vector<1x1x64xf32> to vector<16x16x64xf32>
    %243 = arith.mulf %242, %240 : vector<16x16x64xf32>
    %244 = arith.addf %237, %243 : vector<16x16x64xf32>
    %c2_238 = arith.constant 2 : index
    %c4_239 = arith.constant 4 : index
    %c0_240 = arith.constant 0 : index
    %245 = vector.load %arg4[%c2_238, %c4_239, %c0_240] : memref<7x7x64xf32, #tpu.memory_space<vmem>>, vector<1x1x64xf32>
    %246 = vector.shape_cast %245 : vector<1x1x64xf32> to vector<64xf32>
    %c2_241 = arith.constant 2 : index
    %c0_242 = arith.constant 0 : index
    %c0_243 = arith.constant 0 : index
    %247 = vector.load %arg8[%c2_241, %c0_242, %c0_243] : memref<22x16x64xf32, #tpu.memory_space<vmem>>, vector<16x16x64xf32>
    %248 = vector.shape_cast %246 : vector<64xf32> to vector<1x1x64xf32>
    %249 = vector.broadcast %248 : vector<1x1x64xf32> to vector<16x16x64xf32>
    %250 = arith.mulf %249, %247 : vector<16x16x64xf32>
    %251 = arith.addf %244, %250 : vector<16x16x64xf32>
    %c3_244 = arith.constant 3 : index
    %c4_245 = arith.constant 4 : index
    %c0_246 = arith.constant 0 : index
    %252 = vector.load %arg4[%c3_244, %c4_245, %c0_246] : memref<7x7x64xf32, #tpu.memory_space<vmem>>, vector<1x1x64xf32>
    %253 = vector.shape_cast %252 : vector<1x1x64xf32> to vector<64xf32>
    %c3_247 = arith.constant 3 : index
    %c0_248 = arith.constant 0 : index
    %c0_249 = arith.constant 0 : index
    %254 = vector.load %arg8[%c3_247, %c0_248, %c0_249] : memref<22x16x64xf32, #tpu.memory_space<vmem>>, vector<16x16x64xf32>
    %255 = vector.shape_cast %253 : vector<64xf32> to vector<1x1x64xf32>
    %256 = vector.broadcast %255 : vector<1x1x64xf32> to vector<16x16x64xf32>
    %257 = arith.mulf %256, %254 : vector<16x16x64xf32>
    %258 = arith.addf %251, %257 : vector<16x16x64xf32>
    %c4_250 = arith.constant 4 : index
    %c4_251 = arith.constant 4 : index
    %c0_252 = arith.constant 0 : index
    %259 = vector.load %arg4[%c4_250, %c4_251, %c0_252] : memref<7x7x64xf32, #tpu.memory_space<vmem>>, vector<1x1x64xf32>
    %260 = vector.shape_cast %259 : vector<1x1x64xf32> to vector<64xf32>
    %c4_253 = arith.constant 4 : index
    %c0_254 = arith.constant 0 : index
    %c0_255 = arith.constant 0 : index
    %261 = vector.load %arg8[%c4_253, %c0_254, %c0_255] : memref<22x16x64xf32, #tpu.memory_space<vmem>>, vector<16x16x64xf32>
    %262 = vector.shape_cast %260 : vector<64xf32> to vector<1x1x64xf32>
    %263 = vector.broadcast %262 : vector<1x1x64xf32> to vector<16x16x64xf32>
    %264 = arith.mulf %263, %261 : vector<16x16x64xf32>
    %265 = arith.addf %258, %264 : vector<16x16x64xf32>
    %c5_256 = arith.constant 5 : index
    %c4_257 = arith.constant 4 : index
    %c0_258 = arith.constant 0 : index
    %266 = vector.load %arg4[%c5_256, %c4_257, %c0_258] : memref<7x7x64xf32, #tpu.memory_space<vmem>>, vector<1x1x64xf32>
    %267 = vector.shape_cast %266 : vector<1x1x64xf32> to vector<64xf32>
    %c5_259 = arith.constant 5 : index
    %c0_260 = arith.constant 0 : index
    %c0_261 = arith.constant 0 : index
    %268 = vector.load %arg8[%c5_259, %c0_260, %c0_261] : memref<22x16x64xf32, #tpu.memory_space<vmem>>, vector<16x16x64xf32>
    %269 = vector.shape_cast %267 : vector<64xf32> to vector<1x1x64xf32>
    %270 = vector.broadcast %269 : vector<1x1x64xf32> to vector<16x16x64xf32>
    %271 = arith.mulf %270, %268 : vector<16x16x64xf32>
    %272 = arith.addf %265, %271 : vector<16x16x64xf32>
    %c6_262 = arith.constant 6 : index
    %c4_263 = arith.constant 4 : index
    %c0_264 = arith.constant 0 : index
    %273 = vector.load %arg4[%c6_262, %c4_263, %c0_264] : memref<7x7x64xf32, #tpu.memory_space<vmem>>, vector<1x1x64xf32>
    %274 = vector.shape_cast %273 : vector<1x1x64xf32> to vector<64xf32>
    %c6_265 = arith.constant 6 : index
    %c0_266 = arith.constant 0 : index
    %c0_267 = arith.constant 0 : index
    %275 = vector.load %arg8[%c6_265, %c0_266, %c0_267] : memref<22x16x64xf32, #tpu.memory_space<vmem>>, vector<16x16x64xf32>
    %276 = vector.shape_cast %274 : vector<64xf32> to vector<1x1x64xf32>
    %277 = vector.broadcast %276 : vector<1x1x64xf32> to vector<16x16x64xf32>
    %278 = arith.mulf %277, %275 : vector<16x16x64xf32>
    %279 = arith.addf %272, %278 : vector<16x16x64xf32>
    %c0_268 = arith.constant 0 : index
    %c2_269 = arith.constant 2 : index
    %c0_270 = arith.constant 0 : index
    %280 = vector.load %arg7[%c0_268, %c2_269, %c0_270] : memref<16x16x64xf32, #tpu.memory_space<vmem>>, vector<16x14x64xf32>
    %c3_271 = arith.constant 3 : index
    %c0_272 = arith.constant 0 : index
    %c0_273 = arith.constant 0 : index
    %281 = vector.load %arg8[%c3_271, %c0_272, %c0_273] : memref<22x16x64xf32, #tpu.memory_space<vmem>>, vector<16x14x64xf32>
    tpu.vector_store %arg8[%c3_271, %c0_272, %c0_273], %280 {strides = array<i32>} : memref<22x16x64xf32, #tpu.memory_space<vmem>>, vector<16x14x64xf32>,
    %cst_274 = arith.constant 0.000000e+00 : f32
    %282 = vector.broadcast %cst_274 : f32 to vector<16x2x64xf32>
    %c3_275 = arith.constant 3 : index
    %c14 = arith.constant 14 : index
    %c0_276 = arith.constant 0 : index
    %283 = vector.load %arg8[%c3_275, %c14, %c0_276] : memref<22x16x64xf32, #tpu.memory_space<vmem>>, vector<16x2x64xf32>
    tpu.vector_store %arg8[%c3_275, %c14, %c0_276], %282 {strides = array<i32>} : memref<22x16x64xf32, #tpu.memory_space<vmem>>, vector<16x2x64xf32>,
    %c0_277 = arith.constant 0 : index
    %c5_278 = arith.constant 5 : index
    %c0_279 = arith.constant 0 : index
    %284 = vector.load %arg4[%c0_277, %c5_278, %c0_279] : memref<7x7x64xf32, #tpu.memory_space<vmem>>, vector<1x1x64xf32>
    %285 = vector.shape_cast %284 : vector<1x1x64xf32> to vector<64xf32>
    %c0_280 = arith.constant 0 : index
    %c0_281 = arith.constant 0 : index
    %c0_282 = arith.constant 0 : index
    %286 = vector.load %arg8[%c0_280, %c0_281, %c0_282] : memref<22x16x64xf32, #tpu.memory_space<vmem>>, vector<16x16x64xf32>
    %287 = vector.shape_cast %285 : vector<64xf32> to vector<1x1x64xf32>
    %288 = vector.broadcast %287 : vector<1x1x64xf32> to vector<16x16x64xf32>
    %289 = arith.mulf %288, %286 : vector<16x16x64xf32>
    %290 = arith.addf %279, %289 : vector<16x16x64xf32>
    %c1_283 = arith.constant 1 : index
    %c5_284 = arith.constant 5 : index
    %c0_285 = arith.constant 0 : index
    %291 = vector.load %arg4[%c1_283, %c5_284, %c0_285] : memref<7x7x64xf32, #tpu.memory_space<vmem>>, vector<1x1x64xf32>
    %292 = vector.shape_cast %291 : vector<1x1x64xf32> to vector<64xf32>
    %c1_286 = arith.constant 1 : index
    %c0_287 = arith.constant 0 : index
    %c0_288 = arith.constant 0 : index
    %293 = vector.load %arg8[%c1_286, %c0_287, %c0_288] : memref<22x16x64xf32, #tpu.memory_space<vmem>>, vector<16x16x64xf32>
    %294 = vector.shape_cast %292 : vector<64xf32> to vector<1x1x64xf32>
    %295 = vector.broadcast %294 : vector<1x1x64xf32> to vector<16x16x64xf32>
    %296 = arith.mulf %295, %293 : vector<16x16x64xf32>
    %297 = arith.addf %290, %296 : vector<16x16x64xf32>
    %c2_289 = arith.constant 2 : index
    %c5_290 = arith.constant 5 : index
    %c0_291 = arith.constant 0 : index
    %298 = vector.load %arg4[%c2_289, %c5_290, %c0_291] : memref<7x7x64xf32, #tpu.memory_space<vmem>>, vector<1x1x64xf32>
    %299 = vector.shape_cast %298 : vector<1x1x64xf32> to vector<64xf32>
    %c2_292 = arith.constant 2 : index
    %c0_293 = arith.constant 0 : index
    %c0_294 = arith.constant 0 : index
    %300 = vector.load %arg8[%c2_292, %c0_293, %c0_294] : memref<22x16x64xf32, #tpu.memory_space<vmem>>, vector<16x16x64xf32>
    %301 = vector.shape_cast %299 : vector<64xf32> to vector<1x1x64xf32>
    %302 = vector.broadcast %301 : vector<1x1x64xf32> to vector<16x16x64xf32>
    %303 = arith.mulf %302, %300 : vector<16x16x64xf32>
    %304 = arith.addf %297, %303 : vector<16x16x64xf32>
    %c3_295 = arith.constant 3 : index
    %c5_296 = arith.constant 5 : index
    %c0_297 = arith.constant 0 : index
    %305 = vector.load %arg4[%c3_295, %c5_296, %c0_297] : memref<7x7x64xf32, #tpu.memory_space<vmem>>, vector<1x1x64xf32>
    %306 = vector.shape_cast %305 : vector<1x1x64xf32> to vector<64xf32>
    %c3_298 = arith.constant 3 : index
    %c0_299 = arith.constant 0 : index
    %c0_300 = arith.constant 0 : index
    %307 = vector.load %arg8[%c3_298, %c0_299, %c0_300] : memref<22x16x64xf32, #tpu.memory_space<vmem>>, vector<16x16x64xf32>
    %308 = vector.shape_cast %306 : vector<64xf32> to vector<1x1x64xf32>
    %309 = vector.broadcast %308 : vector<1x1x64xf32> to vector<16x16x64xf32>
    %310 = arith.mulf %309, %307 : vector<16x16x64xf32>
    %311 = arith.addf %304, %310 : vector<16x16x64xf32>
    %c4_301 = arith.constant 4 : index
    %c5_302 = arith.constant 5 : index
    %c0_303 = arith.constant 0 : index
    %312 = vector.load %arg4[%c4_301, %c5_302, %c0_303] : memref<7x7x64xf32, #tpu.memory_space<vmem>>, vector<1x1x64xf32>
    %313 = vector.shape_cast %312 : vector<1x1x64xf32> to vector<64xf32>
    %c4_304 = arith.constant 4 : index
    %c0_305 = arith.constant 0 : index
    %c0_306 = arith.constant 0 : index
    %314 = vector.load %arg8[%c4_304, %c0_305, %c0_306] : memref<22x16x64xf32, #tpu.memory_space<vmem>>, vector<16x16x64xf32>
    %315 = vector.shape_cast %313 : vector<64xf32> to vector<1x1x64xf32>
    %316 = vector.broadcast %315 : vector<1x1x64xf32> to vector<16x16x64xf32>
    %317 = arith.mulf %316, %314 : vector<16x16x64xf32>
    %318 = arith.addf %311, %317 : vector<16x16x64xf32>
    %c5_307 = arith.constant 5 : index
    %c5_308 = arith.constant 5 : index
    %c0_309 = arith.constant 0 : index
    %319 = vector.load %arg4[%c5_307, %c5_308, %c0_309] : memref<7x7x64xf32, #tpu.memory_space<vmem>>, vector<1x1x64xf32>
    %320 = vector.shape_cast %319 : vector<1x1x64xf32> to vector<64xf32>
    %c5_310 = arith.constant 5 : index
    %c0_311 = arith.constant 0 : index
    %c0_312 = arith.constant 0 : index
    %321 = vector.load %arg8[%c5_310, %c0_311, %c0_312] : memref<22x16x64xf32, #tpu.memory_space<vmem>>, vector<16x16x64xf32>
    %322 = vector.shape_cast %320 : vector<64xf32> to vector<1x1x64xf32>
    %323 = vector.broadcast %322 : vector<1x1x64xf32> to vector<16x16x64xf32>
    %324 = arith.mulf %323, %321 : vector<16x16x64xf32>
    %325 = arith.addf %318, %324 : vector<16x16x64xf32>
    %c6_313 = arith.constant 6 : index
    %c5_314 = arith.constant 5 : index
    %c0_315 = arith.constant 0 : index
    %326 = vector.load %arg4[%c6_313, %c5_314, %c0_315] : memref<7x7x64xf32, #tpu.memory_space<vmem>>, vector<1x1x64xf32>
    %327 = vector.shape_cast %326 : vector<1x1x64xf32> to vector<64xf32>
    %c6_316 = arith.constant 6 : index
    %c0_317 = arith.constant 0 : index
    %c0_318 = arith.constant 0 : index
    %328 = vector.load %arg8[%c6_316, %c0_317, %c0_318] : memref<22x16x64xf32, #tpu.memory_space<vmem>>, vector<16x16x64xf32>
    %329 = vector.shape_cast %327 : vector<64xf32> to vector<1x1x64xf32>
    %330 = vector.broadcast %329 : vector<1x1x64xf32> to vector<16x16x64xf32>
    %331 = arith.mulf %330, %328 : vector<16x16x64xf32>
    %332 = arith.addf %325, %331 : vector<16x16x64xf32>
    %c0_319 = arith.constant 0 : index
    %c3_320 = arith.constant 3 : index
    %c0_321 = arith.constant 0 : index
    %333 = vector.load %arg7[%c0_319, %c3_320, %c0_321] : memref<16x16x64xf32, #tpu.memory_space<vmem>>, vector<16x13x64xf32>
    %c3_322 = arith.constant 3 : index
    %c0_323 = arith.constant 0 : index
    %c0_324 = arith.constant 0 : index
    %334 = vector.load %arg8[%c3_322, %c0_323, %c0_324] : memref<22x16x64xf32, #tpu.memory_space<vmem>>, vector<16x13x64xf32>
    tpu.vector_store %arg8[%c3_322, %c0_323, %c0_324], %333 {strides = array<i32>} : memref<22x16x64xf32, #tpu.memory_space<vmem>>, vector<16x13x64xf32>,
    %cst_325 = arith.constant 0.000000e+00 : f32
    %335 = vector.broadcast %cst_325 : f32 to vector<16x3x64xf32>
    %c3_326 = arith.constant 3 : index
    %c13 = arith.constant 13 : index
    %c0_327 = arith.constant 0 : index
    %336 = vector.load %arg8[%c3_326, %c13, %c0_327] : memref<22x16x64xf32, #tpu.memory_space<vmem>>, vector<16x3x64xf32>
    tpu.vector_store %arg8[%c3_326, %c13, %c0_327], %335 {strides = array<i32>} : memref<22x16x64xf32, #tpu.memory_space<vmem>>, vector<16x3x64xf32>,
    %c0_328 = arith.constant 0 : index
    %c6_329 = arith.constant 6 : index
    %c0_330 = arith.constant 0 : index
    %337 = vector.load %arg4[%c0_328, %c6_329, %c0_330] : memref<7x7x64xf32, #tpu.memory_space<vmem>>, vector<1x1x64xf32>
    %338 = vector.shape_cast %337 : vector<1x1x64xf32> to vector<64xf32>
    %c0_331 = arith.constant 0 : index
    %c0_332 = arith.constant 0 : index
    %c0_333 = arith.constant 0 : index
    %339 = vector.load %arg8[%c0_331, %c0_332, %c0_333] : memref<22x16x64xf32, #tpu.memory_space<vmem>>, vector<16x16x64xf32>
    %340 = vector.shape_cast %338 : vector<64xf32> to vector<1x1x64xf32>
    %341 = vector.broadcast %340 : vector<1x1x64xf32> to vector<16x16x64xf32>
    %342 = arith.mulf %341, %339 : vector<16x16x64xf32>
    %343 = arith.addf %332, %342 : vector<16x16x64xf32>
    %c1_334 = arith.constant 1 : index
    %c6_335 = arith.constant 6 : index
    %c0_336 = arith.constant 0 : index
    %344 = vector.load %arg4[%c1_334, %c6_335, %c0_336] : memref<7x7x64xf32, #tpu.memory_space<vmem>>, vector<1x1x64xf32>
    %345 = vector.shape_cast %344 : vector<1x1x64xf32> to vector<64xf32>
    %c1_337 = arith.constant 1 : index
    %c0_338 = arith.constant 0 : index
    %c0_339 = arith.constant 0 : index
    %346 = vector.load %arg8[%c1_337, %c0_338, %c0_339] : memref<22x16x64xf32, #tpu.memory_space<vmem>>, vector<16x16x64xf32>
    %347 = vector.shape_cast %345 : vector<64xf32> to vector<1x1x64xf32>
    %348 = vector.broadcast %347 : vector<1x1x64xf32> to vector<16x16x64xf32>
    %349 = arith.mulf %348, %346 : vector<16x16x64xf32>
    %350 = arith.addf %343, %349 : vector<16x16x64xf32>
    %c2_340 = arith.constant 2 : index
    %c6_341 = arith.constant 6 : index
    %c0_342 = arith.constant 0 : index
    %351 = vector.load %arg4[%c2_340, %c6_341, %c0_342] : memref<7x7x64xf32, #tpu.memory_space<vmem>>, vector<1x1x64xf32>
    %352 = vector.shape_cast %351 : vector<1x1x64xf32> to vector<64xf32>
    %c2_343 = arith.constant 2 : index
    %c0_344 = arith.constant 0 : index
    %c0_345 = arith.constant 0 : index
    %353 = vector.load %arg8[%c2_343, %c0_344, %c0_345] : memref<22x16x64xf32, #tpu.memory_space<vmem>>, vector<16x16x64xf32>
    %354 = vector.shape_cast %352 : vector<64xf32> to vector<1x1x64xf32>
    %355 = vector.broadcast %354 : vector<1x1x64xf32> to vector<16x16x64xf32>
    %356 = arith.mulf %355, %353 : vector<16x16x64xf32>
    %357 = arith.addf %350, %356 : vector<16x16x64xf32>
    %c3_346 = arith.constant 3 : index
    %c6_347 = arith.constant 6 : index
    %c0_348 = arith.constant 0 : index
    %358 = vector.load %arg4[%c3_346, %c6_347, %c0_348] : memref<7x7x64xf32, #tpu.memory_space<vmem>>, vector<1x1x64xf32>
    %359 = vector.shape_cast %358 : vector<1x1x64xf32> to vector<64xf32>
    %c3_349 = arith.constant 3 : index
    %c0_350 = arith.constant 0 : index
    %c0_351 = arith.constant 0 : index
    %360 = vector.load %arg8[%c3_349, %c0_350, %c0_351] : memref<22x16x64xf32, #tpu.memory_space<vmem>>, vector<16x16x64xf32>
    %361 = vector.shape_cast %359 : vector<64xf32> to vector<1x1x64xf32>
    %362 = vector.broadcast %361 : vector<1x1x64xf32> to vector<16x16x64xf32>
    %363 = arith.mulf %362, %360 : vector<16x16x64xf32>
    %364 = arith.addf %357, %363 : vector<16x16x64xf32>
    %c4_352 = arith.constant 4 : index
    %c6_353 = arith.constant 6 : index
    %c0_354 = arith.constant 0 : index
    %365 = vector.load %arg4[%c4_352, %c6_353, %c0_354] : memref<7x7x64xf32, #tpu.memory_space<vmem>>, vector<1x1x64xf32>
    %366 = vector.shape_cast %365 : vector<1x1x64xf32> to vector<64xf32>
    %c4_355 = arith.constant 4 : index
    %c0_356 = arith.constant 0 : index
    %c0_357 = arith.constant 0 : index
    %367 = vector.load %arg8[%c4_355, %c0_356, %c0_357] : memref<22x16x64xf32, #tpu.memory_space<vmem>>, vector<16x16x64xf32>
    %368 = vector.shape_cast %366 : vector<64xf32> to vector<1x1x64xf32>
    %369 = vector.broadcast %368 : vector<1x1x64xf32> to vector<16x16x64xf32>
    %370 = arith.mulf %369, %367 : vector<16x16x64xf32>
    %371 = arith.addf %364, %370 : vector<16x16x64xf32>
    %c5_358 = arith.constant 5 : index
    %c6_359 = arith.constant 6 : index
    %c0_360 = arith.constant 0 : index
    %372 = vector.load %arg4[%c5_358, %c6_359, %c0_360] : memref<7x7x64xf32, #tpu.memory_space<vmem>>, vector<1x1x64xf32>
    %373 = vector.shape_cast %372 : vector<1x1x64xf32> to vector<64xf32>
    %c5_361 = arith.constant 5 : index
    %c0_362 = arith.constant 0 : index
    %c0_363 = arith.constant 0 : index
    %374 = vector.load %arg8[%c5_361, %c0_362, %c0_363] : memref<22x16x64xf32, #tpu.memory_space<vmem>>, vector<16x16x64xf32>
    %375 = vector.shape_cast %373 : vector<64xf32> to vector<1x1x64xf32>
    %376 = vector.broadcast %375 : vector<1x1x64xf32> to vector<16x16x64xf32>
    %377 = arith.mulf %376, %374 : vector<16x16x64xf32>
    %378 = arith.addf %371, %377 : vector<16x16x64xf32>
    %c6_364 = arith.constant 6 : index
    %c6_365 = arith.constant 6 : index
    %c0_366 = arith.constant 0 : index
    %379 = vector.load %arg4[%c6_364, %c6_365, %c0_366] : memref<7x7x64xf32, #tpu.memory_space<vmem>>, vector<1x1x64xf32>
    %380 = vector.shape_cast %379 : vector<1x1x64xf32> to vector<64xf32>
    %c6_367 = arith.constant 6 : index
    %c0_368 = arith.constant 0 : index
    %c0_369 = arith.constant 0 : index
    %381 = vector.load %arg8[%c6_367, %c0_368, %c0_369] : memref<22x16x64xf32, #tpu.memory_space<vmem>>, vector<16x16x64xf32>
    %382 = vector.shape_cast %380 : vector<64xf32> to vector<1x1x64xf32>
    %383 = vector.broadcast %382 : vector<1x1x64xf32> to vector<16x16x64xf32>
    %384 = arith.mulf %383, %381 : vector<16x16x64xf32>
    %385 = arith.addf %378, %384 : vector<16x16x64xf32>
    %c0_370 = arith.constant 0 : index
    %c0_371 = arith.constant 0 : index
    %386 = vector.load %arg5[%c0_370, %c0_371] : memref<1x64xf32, #tpu.memory_space<vmem>>, vector<1x64xf32>
    %387 = vector.shape_cast %386 : vector<1x64xf32> to vector<1x1x64xf32>
    %388 = vector.broadcast %387 : vector<1x1x64xf32> to vector<16x16x64xf32>
    %389 = arith.addf %385, %388 : vector<16x16x64xf32>
    %390 = arith.negf %389 : vector<16x16x64xf32>
    %391 = math.exp %390 : vector<16x16x64xf32>
    %cst_372 = arith.constant 1.000000e+00 : f32
    %392 = vector.broadcast %cst_372 : f32 to vector<16x16x64xf32>
    %393 = arith.addf %392, %391 : vector<16x16x64xf32>
    %394 = arith.divf %392, %393 : vector<16x16x64xf32>
    %c0_373 = arith.constant 0 : index
    %c0_374 = arith.constant 0 : index
    %c0_375 = arith.constant 0 : index
    %c0_376 = arith.constant 0 : index
    %395 = vector.load %arg1[%c0_373, %c0_374, %c0_375, %c0_376] : memref<1x16x16x64xf32, #tpu.memory_space<vmem>>, vector<1x16x16x64xf32>
    %396 = vector.shape_cast %395 : vector<1x16x16x64xf32> to vector<16x16x64xf32>
    %397 = arith.mulf %396, %394 : vector<16x16x64xf32>
    %398 = vector.shape_cast %397 : vector<16x16x64xf32> to vector<1x16x16x64xf32>
    %c0_377 = arith.constant 0 : index
    %c0_378 = arith.constant 0 : index
    %c0_379 = arith.constant 0 : index
    %c0_380 = arith.constant 0 : index
    %399 = vector.load %arg6[%c0_377, %c0_378, %c0_379, %c0_380] : memref<1x16x16x64xf32, #tpu.memory_space<vmem>>, vector<1x16x16x64xf32>
    tpu.vector_store %arg6[%c0_377, %c0_378, %c0_379, %c0_380], %398 {strides = array<i32>} : memref<1x16x16x64xf32, #tpu.memory_space<vmem>>, vector<1x16x16x64xf32>,
    return
  }
  func.func @transform_0(%arg0: i32) -> (i32, i32, i32, i32) {
    %c0_i32 = arith.constant 0 : i32
    %c0_i32_0 = arith.constant 0 : i32
    %c0_i32_1 = arith.constant 0 : i32
    %c0_i32_2 = arith.constant 0 : i32
    return %arg0, %c0_i32, %c0_i32_0, %c0_i32_1 : i32, i32, i32, i32
  }
  func.func @transform_1(%arg0: i32) -> (i32, i32) {
    %c0_i32 = arith.constant 0 : i32
    %c0_i32_0 = arith.constant 0 : i32
    %c0_i32_1 = arith.constant 0 : i32
    return %c0_i32, %c0_i32_0 : i32, i32
  }
  func.func @transform_2(%arg0: i32) -> (i32, i32) {
    %c0_i32 = arith.constant 0 : i32
    %c0_i32_0 = arith.constant 0 : i32
    %c0_i32_1 = arith.constant 0 : i32
    return %c0_i32, %c0_i32_0 : i32, i32
  }
  func.func @transform_3(%arg0: i32) -> (i32, i32, i32) {
    %c0_i32 = arith.constant 0 : i32
    %c0_i32_0 = arith.constant 0 : i32
    %c0_i32_1 = arith.constant 0 : i32
    %c0_i32_2 = arith.constant 0 : i32
    return %c0_i32, %c0_i32_0, %c0_i32_1 : i32, i32, i32
  }
  func.func @transform_4(%arg0: i32) -> (i32, i32) {
    %c0_i32 = arith.constant 0 : i32
    %c0_i32_0 = arith.constant 0 : i32
    %c0_i32_1 = arith.constant 0 : i32
    return %c0_i32, %c0_i32_0 : i32, i32
  }
  func.func @transform_5(%arg0: i32) -> (i32, i32, i32, i32) {
    %c0_i32 = arith.constant 0 : i32
    %c0_i32_0 = arith.constant 0 : i32
    %c0_i32_1 = arith.constant 0 : i32
    %c0_i32_2 = arith.constant 0 : i32
    return %arg0, %c0_i32, %c0_i32_0, %c0_i32_1 : i32, i32, i32, i32
  }
}

</mosaic_0001>

<bundles_post_ra>
// kernel: tpu_custom_call.1
= control target key start
LH: loop header
LB: loop body
LE: loop exit
PB: predicated region body
PF: predicated region fallthrough
CT: control target
= control target key end

     0   :  { %10 = vsyncpa [#allocation5], 0  ;;  %s13110_s0 = inlined_call_operand.hbm [shape: f32[2,16,16,64], index: 0, kind: input, shape index: {}]   ;;  %s13111_s1 = inlined_call_operand.hbm [shape: f32[64,64], index: 1, kind: input, shape index: {}]   ;;  %s13112_s2 = inlined_call_operand.vmem [shape: f32[1,64], index: 2, kind: input, shape index: {}]   ;;  %s13113_s3 = inlined_call_operand.hbm [shape: f32[7,7,64], index: 3, kind: input, shape index: {}]   ;;  %s13114_s4 = inlined_call_operand.vmem [shape: f32[1,64], index: 4, kind: input, shape index: {}]   ;;  %s13115_s5 = inlined_call_operand.hbm [shape: f32[2,16,16,64], index: 5, kind: output, shape index: {}]  }
   0x1   :  { %12 = vsyncpa [#allocation5 + $0x1], 0 }
   0x2   :  { %13 = vsyncpa [#allocation8], 0 }
   0x3   :  { %14 = vsyncpa [#allocation6], 0 }
   0x4   :  { %16 = vsyncpa [#allocation6 + $0x1], 0  ;;  %s7464_s18 = smov 0   ;;  %s7466_s19 = smov 0  }
   0x5   :  { %s7468_s20 = smov 0   ;;  %s7470_s21 = smov 0  }
   0x6 LB: > { %s7485_s22 = sadd.s32 4294967295, %s7423_s21   ;;  %s6662_s23 = sadd.s32 4294967294, %s7423_s21   ;;  %s7423_s21 = sphi %s7470_s21, %s14867_s21   ;;  %s7419_s20 = sphi %s7468_s20, %s14866_s20   ;;  %s7415_s19 = sphi %s7466_s19, %s14865_s19   ;;  %s7411_s18 = sphi %s7464_s18, %s14864_s18  }
   0x7   : > { %p42_p0 = scmp.ne.s32.totalorder %s7415_s19, %s7411_s18  ;;  %p13116_p1 = scmp.eq.s32.totalorder %s7485_s22, 0 }
   0x8   : > { %p150_p2 = scmp.eq.s32.totalorder %s7485_s22, 1  ;;  %p156_p3 = scmp.eq.s32.totalorder %s6662_s23, 1 }
   0x9   : > { %p7494_p4 = por %p13116_p1, %p42_p0  ;;  %p6663_p5 = scmp.ge.s32.totalorder %s7423_s21, 1 }
   0xa   : > { %p7499_p6 = por %p156_p3, %p42_p0  ;;  %p163_p7 = scmp.lt.s32.totalorder %s7423_s21, 3 }
   0xb   : > { %s13419_s24 = scalar_select %p7494_p4, 1, 0 }
   0xc   : > { %s13420_s25 = scalar_select %p7499_p6, 1, 0 }
   0xd   : > { %p7504_p8 = pnand %p6663_p5, %p163_p7  ;;  %s7425_s27 = smov [#allocation7]  }
   0xe   : > { %s175_s28 = sshll.u32 %s7425_s27, 4  ;;  %s7426_s30 = smov [#allocation9]   ;;  %s176_s28 = int_to_ptr.vmem [resolvable:$true] %s175_s28 }
   0xf   : > { %s13421_s26 = scalar_select %p7504_p8, 1, 0 }
  0x10   : > { %p6929_p9 = pneg %p7504_p8  ;;  %s191_s6 = sshll.u32 %s7426_s30, 4  ;;  %s192_s6 = int_to_ptr.vmem [resolvable:$true] %s191_s6 }
  0x11   : > { %s7286_s7 = scalar_lea.vmem %s176_s28, 1024  ;;  %p7294_p5 = scmp.lt.s32.totalorder %s176_s28, %s176_s28 }
  0x12   : > { %p7513_p11 = pnand %p6929_p9, %p13116_p1  ;;  %p7287_p13 = scmp.ne.s32.totalorder %s176_s28, %s7286_s7 }
  0x13   : > { %p7295_p7 = scmp.lt.s32.totalorder %s7286_s7, %s7286_s7 }
  0x14   : > { %p7277_p12 = pneg %p7513_p11 }
  0x15   : > { %p7296_p10 = por %p7295_p7, %p7294_p5 }
  0x16   : > { %p7289_p0 = pnand %p7287_p13, %p7277_p12 }
  0x18   : > { %p7290_p3 = pneg %p7289_p0 }
  0x1a   : > { %p7297_p9 = pnand %p7296_p10, %p7290_p3 }
  0x1c   : > { %7300 = shalt.err (!%p7297_p9)
}
  0x1d   : > { %s13117_s8 = smov 128   ;;  %s7428_s9 = smov 8  }
  0x1e   : > { %6932 = dma.hbm_to_vmem [thread:$0]  (!%p7513_p11), %s13111_s1, 1024, %s176_s28, [#allocation8], %s13117_s8, %s13117_s8, %s7428_s9  }
  0x1f   : > { %s7312_s12 = scalar_lea.vmem %s192_s6, 896  ;;  %p7320_p10 = scmp.lt.s32.totalorder %s192_s6, %s192_s6 }
  0x20   : > { %p7313_p13 = scmp.ne.s32.totalorder %s192_s6, %s7312_s12  ;;  %p7321_p3 = scmp.lt.s32.totalorder %s7312_s12, %s7312_s12 }
  0x22   : > { %p7315_p0 = pnand %p7313_p13, %p7277_p12  ;;  %p7322_p7 = por %p7321_p3, %p7320_p10 }
  0x24   : > { %p7316_p5 = pneg %p7315_p0 }
  0x26   : > { %p7323_p9 = pnand %p7322_p7, %p7316_p5 }
  0x28   : > { %7326 = shalt.err (!%p7323_p9)
}
  0x29   : > { %6935 = dma.hbm_to_vmem [thread:$0]  (!%p7513_p11), %s13113_s3, 896, %s192_s6, [#allocation8], %s13117_s8, %s13117_s8, %s7428_s9  }
  0x2a   : > { %s7542_s15 = sadd.s32 1, %s7423_s21   ;;  %s29_s16 = sadd.s32 1, %s7419_s20 }
  0x2b   : > { %s26_s17 = ssub.s32 %s7423_s21, %s7542_s15  ;;  %p36_p12 = scmp.ne.s32.totalorder %s7419_s20, %s7415_s19 }
  0x2c   : > { %p27_p13 = scmp.eq.s32.totalorder %s26_s17, 0  ;;  %p37_p0 = scmp.eq.s32.totalorder %s7423_s21, 0 }
  0x2d   : > { %p7552_p5 = por %p150_p2, %p36_p12  ;;  %p6946_p10 = scmp.lt.s32.totalorder %s7423_s21, 2 }
  0x2e   : > { %s7558_s27 = scalar_select %p27_p13, %s7419_s20, %s29_s16  }
  0x2f   : > { %s13423_s23 = scalar_select %p7552_p5, 1, 0 }
  0x30   : > { %p38_p3 = por %p37_p0, %p36_p12  ;;  %s208_s28 = sand.u32 1, %s7419_s20  }
  0x31   : > { %s6667_s29 = sshll.u32 %s208_s28, 8  ;;  %s6795_s30 = sshll.u32 %s7423_s21, 12 }
  0x32   : > { %s7565_s10 = scalar_lea.hbm %s13110_s0, %s6795_s30  ;;  %s212_s11 = scalar_lea.vmem [#allocation4], %s6667_s29 }
  0x33   : > { %s219_s12 = sshll.u32 %s212_s11, 4  ;;  %p7569_p2 = pnand %p6946_p10, %p38_p3  ;;  %s7567_s12 = int_to_ptr.vmem [resolvable:$true] %s219_s12 }
  0x34   : > { %s7573_s14 = scalar_lea.sflag [#allocation5], %s208_s28  ;;  %s7327_s16 = scalar_lea.hbm %s7565_s10, 4096 }
  0x35   : > { %p7328_p11 = scmp.ne.s32.totalorder %s7565_s10, %s7327_s16  ;;  %p7329_p7 = pneg %p7569_p2 }
  0x36   : > { %s7332_s29 = scalar_lea.hbm %s13110_s0, 8192  ;;  %p7333_p13 = scmp.lt.s32.totalorder %s7565_s10, %s13110_s0 }
  0x37   : > { %p7330_p9 = pnand %p7329_p7, %p7328_p11  ;;  %p7334_p0 = scmp.lt.s32.totalorder %s7332_s29, %s7327_s16 }
  0x39   : > { %p7331_p12 = pneg %p7330_p9  ;;  %p7335_p10 = por %p7334_p0, %p7333_p13 }
  0x3b   : > { %p7336_p3 = pnand %p7335_p10, %p7331_p12 }
  0x3d   : > { %7339 = shalt.err (!%p7336_p3)
}
  0x3e   : > { %s7340_s28 = scalar_lea.vmem %s7567_s12, 4096  ;;  %s7429_s11 = smov [#allocation4]  }
  0x3f   : > { %p7341_p1 = scmp.ne.s32.totalorder %s7567_s12, %s7340_s28  ;;  %s7345_s8 = sshll.u32 %s7429_s11, 4  ;;  %s7346_s8 = int_to_ptr.vmem [resolvable:$false] %s7345_s8 }
  0x40   : > { %s7347_s17 = scalar_lea.vmem %s7346_s8, 8192  ;;  %p7348_p9 = scmp.lt.s32.totalorder %s7567_s12, %s7346_s8 }
  0x41   : > { %p7343_p6 = pnand %p7341_p1, %p7329_p7  ;;  %p7349_p5 = scmp.lt.s32.totalorder %s7347_s17, %s7340_s28 }
  0x43   : > { %p7344_p11 = pneg %p7343_p6  ;;  %p7350_p4 = por %p7349_p5, %p7348_p9 }
  0x45   : > { %p7351_p8 = pnand %p7350_p4, %p7344_p11 }
  0x47   : > { %7354 = shalt.err (!%p7351_p8)
}
  0x48   : > { %s13425_s16 = smov 128   ;;  %p13426_p1 = scmp.ne.s32.totalorder %s13421_s26, 0 }
  0x49   : > { %6939 = dma.hbm_to_vmem [thread:$0]  (!%p7569_p2), %s7565_s10, 4096, %s7567_s12, %s7573_s14, %s13425_s16, %s13425_s16, %s7428_s9  }
  0x4a   : > { %231 = sbr.rel (%p13426_p1) target bundleno = 1401 (0x579), region = 40 }
  0x4f   : > { %s7600_s30 = sand.u32 1, %s7415_s19   ;;  %p13427_p4 = scmp.ne.s32.totalorder %s13419_s24, 0 }
  0x50   : > { %s6671_s8 = sshll.u32 %s7600_s30, 8  ;;  %s234_s29 = scalar_lea.sflag [#allocation5], %s7600_s30 }
  0x51   : > { %s7606_s13 = scalar_lea.vmem [#allocation4], %s6671_s8 }
  0x52   : > { %7398 = dma.done.wait (%p13427_p4), %s234_s29, 4096  }
  0x53   : > { %7400 = vsyncadd (%p13427_p4), %s234_s29, 4294963200  ;;  %p13428_p6 = scmp.eq.s32.totalorder %s7485_s22, 0 }
  0x55   : > { %7402 = dma.done.wait (%p13428_p6), [#allocation8], 1920   ;;  %p13429_p8 = pmov %p13428_p6 }
  0x56   : > { %v311_v0 = vld [vmem:[#allocation7 + $0x38] sm:$0xff]  ;;  %v310_v1 = vld [vmem:[#allocation7 + $0x30] sm:$0xff]  ;;  %v309_v2 = vld [vmem:[#allocation7 + $0x28] sm:$0xff]  ;;  %vm319_vm0 = vcmask 523264   ;;  %v13121_v40 = vmov 0.0   ;;  %vm784_vm1 = vcmask 518144  }
  0x57   : > { %7404 = vsyncadd (%p13429_p8), [#allocation8], 4294965376  ;;  %6837 = vmatprep.subr.mxu0 %v311_v0  ;;  %6901 = vmatprep.subr.mxu1 %v311_v0  ;;  %v308_v3 = vld [vmem:[#allocation7 + $0x20] sm:$0xff]  ;;  %v307_v4 = vld [vmem:[#allocation7 + $0x18] sm:$0xff]  ;;  %705 = vst.msk [vmem:[#allocation3] sm:$0xff] %vm319_vm0, %v13121_v40  ;;  %vm752_vm2 = vcmask 520192  }
  0x58   : > { %6838 = vmatpush3.msra.mxu0 %v311_v0  ;;  %6909 = vmatpush3.msra.mxu1 %v311_v0  ;;  %v306_v5 = vld [vmem:[#allocation7 + $0x10] sm:$0xff]  ;;  %v305_v6 = vld [vmem:[#allocation7 + $0x8] sm:$0xff]  ;;  %v304_v7 = vld [vmem:[#allocation7] sm:$0xff]  ;;  %706 = vst.msk [vmem:[#allocation3 + $0x8] sm:$0xff] %vm319_vm0, %v13121_v40  ;;  %vm1552_vm3 = vcmask 521216   ;;  %vm1584_vm4 = vcmask 517120  }
  0x59   : > { %6839 = vmatprep.subr.mxu0 %v310_v1  ;;  %6902 = vmatprep.subr.mxu1 %v310_v1  ;;  %v272_v8 = vld [vmem:[%s7606_s13] sm:$0xff]  ;;  %v273_v10 = vld [vmem:[%s7606_s13 + $0x8] sm:$0xff]  ;;  %v274_v12 = vld [vmem:[%s7606_s13 + $0x10] sm:$0xff]  ;;  %707 = vst.msk [vmem:[#allocation3 + $0x10] sm:$0xff] %vm319_vm0, %v13121_v40  ;;  %vm2341_vm5 = vcmask 522240   ;;  %vm2373_vm6 = vcmask 516096  }
  0x5a   : > { %6840 = vmatpush3.msra.mxu0 %v310_v1  ;;  %6910 = vmatpush3.msra.mxu1 %v310_v1  ;;  %v288_v9 = vld [vmem:[%s7606_s13 + $0x80] sm:$0xff]  ;;  %v289_v11 = vld [vmem:[%s7606_s13 + $0x88] sm:$0xff]  ;;  %v290_v13 = vld [vmem:[%s7606_s13 + $0x90] sm:$0xff]  ;;  %708 = vst.msk [vmem:[#allocation3 + $0x18] sm:$0xff] %vm319_vm0, %v13121_v40  ;;  %s11238_s6 = scalar_lea.vmem [#allocation10], %s6671_s8  ;;  %s6796_s29 = sshll.u32 %s7485_s22, 12 }
  0x5b   : > { %6841 = vmatprep.subr.mxu0 %v309_v2  ;;  %6903 = vmatprep.subr.mxu1 %v309_v2  ;;  %v275_v14 = vld [vmem:[%s7606_s13 + $0x18] sm:$0xff]  ;;  %v276_v16 = vld [vmem:[%s7606_s13 + $0x20] sm:$0xff]  ;;  %v277_v18 = vld [vmem:[%s7606_s13 + $0x28] sm:$0xff]  ;;  %709 = vst.msk [vmem:[#allocation3 + $0x20] sm:$0xff] %vm319_vm0, %v13121_v40  ;;  %s6570_s24 = sshll.u32 %s11238_s6, 4  ;;  %s13059_s9 = scalar_lea.hbm %s13115_s5, %s6796_s29  ;;  %s13061_s24 = int_to_ptr.vmem [resolvable:$true] %s6570_s24 }
  0x5c   : > { %6842 = vmatpush3.msra.mxu0 %v309_v2  ;;  %6911 = vmatpush3.msra.mxu1 %v309_v2  ;;  %v291_v15 = vld [vmem:[%s7606_s13 + $0x98] sm:$0xff]  ;;  %v292_v17 = vld [vmem:[%s7606_s13 + $0xa0] sm:$0xff]  ;;  %v293_v19 = vld [vmem:[%s7606_s13 + $0xa8] sm:$0xff]  ;;  %710 = vst.msk [vmem:[#allocation3 + $0x28] sm:$0xff] %vm319_vm0, %v13121_v40  ;;  %s7355_s10 = scalar_lea.vmem %s13061_s24, 4096  ;;  %p14861_p2 = scmp.ne.s32.totalorder %s13423_s23, 0 }
  0x5d   : > { %6843 = vmatprep.subr.mxu0 %v308_v3  ;;  %6904 = vmatprep.subr.mxu1 %v308_v3  ;;  %v278_v20 = vld [vmem:[%s7606_s13 + $0x30] sm:$0xff]  ;;  %v279_v22 = vld [vmem:[%s7606_s13 + $0x38] sm:$0xff]  ;;  %v280_v24 = vld [vmem:[%s7606_s13 + $0x40] sm:$0xff]  ;;  %712 = vst.msk [vmem:[#allocation3 + $0x130] sm:$0xff] %vm319_vm0, %v13121_v40  ;;  %p7356_p5 = scmp.ne.s32.totalorder %s13061_s24, %s7355_s10  ;;  %s7431_s12 = smov [#allocation10]  }
  0x5e   : > { %6844 = vmatpush3.msra.mxu0 %v308_v3  ;;  %6912 = vmatpush3.msra.mxu1 %v308_v3  ;;  %v294_v21 = vld [vmem:[%s7606_s13 + $0xb0] sm:$0xff]  ;;  %v295_v23 = vld [vmem:[%s7606_s13 + $0xb8] sm:$0xff]  ;;  %v296_v25 = vld [vmem:[%s7606_s13 + $0xc0] sm:$0xff]  ;;  %713 = vst.msk [vmem:[#allocation3 + $0x138] sm:$0xff] %vm319_vm0, %v13121_v40  ;;  %s7359_s14 = sshll.u32 %s7431_s12, 4  ;;  %s7360_s14 = int_to_ptr.vmem [resolvable:$false] %s7359_s14 }
  0x5f   : > { %6845 = vmatprep.subr.mxu0 %v307_v4  ;;  %6905 = vmatprep.subr.mxu1 %v307_v4  ;;  %v281_v26 = vld [vmem:[%s7606_s13 + $0x48] sm:$0xff]  ;;  %v282_v28 = vld [vmem:[%s7606_s13 + $0x50] sm:$0xff]  ;;  %v283_v30 = vld [vmem:[%s7606_s13 + $0x58] sm:$0xff]  ;;  %714 = vst.msk [vmem:[#allocation3 + $0x140] sm:$0xff] %vm319_vm0, %v13121_v40  ;;  %p7357_p7 = pnand %p7356_p5, %p14861_p2  ;;  %s7361_s7 = scalar_lea.vmem %s7360_s14, 8192 }
  0x60   : > { %6846 = vmatpush3.msra.mxu0 %v307_v4  ;;  %6913 = vmatpush3.msra.mxu1 %v307_v4  ;;  %v297_v27 = vld [vmem:[%s7606_s13 + $0xc8] sm:$0xff]  ;;  %v298_v29 = vld [vmem:[%s7606_s13 + $0xd0] sm:$0xff]  ;;  %v299_v31 = vld [vmem:[%s7606_s13 + $0xd8] sm:$0xff]  ;;  %715 = vst.msk [vmem:[#allocation3 + $0x148] sm:$0xff] %vm319_vm0, %v13121_v40  ;;  %p7362_p13 = scmp.lt.s32.totalorder %s13061_s24, %s7360_s14  ;;  %p7363_p0 = scmp.lt.s32.totalorder %s7361_s7, %s7355_s10 }
  0x61   : > { %6847 = vmatprep.subr.mxu0 %v306_v5  ;;  %6906 = vmatprep.subr.mxu1 %v306_v5  ;;  %v284_v32 = vld [vmem:[%s7606_s13 + $0x60] sm:$0xff]  ;;  %v285_v34 = vld [vmem:[%s7606_s13 + $0x68] sm:$0xff]  ;;  %v286_v36 = vld [vmem:[%s7606_s13 + $0x70] sm:$0xff]  ;;  %716 = vst.msk [vmem:[#allocation3 + $0x150] sm:$0xff] %vm319_vm0, %v13121_v40  ;;  %p7358_p12 = pneg %p7357_p7 }
  0x62   : > { %6848 = vmatpush3.msra.mxu0 %v306_v5  ;;  %6914 = vmatpush3.msra.mxu1 %v306_v5  ;;  %v300_v33 = vld [vmem:[%s7606_s13 + $0xe0] sm:$0xff]  ;;  %v301_v35 = vld [vmem:[%s7606_s13 + $0xe8] sm:$0xff]  ;;  %v302_v37 = vld [vmem:[%s7606_s13 + $0xf0] sm:$0xff]  ;;  %717 = vst.msk [vmem:[#allocation3 + $0x158] sm:$0xff] %vm319_vm0, %v13121_v40  ;;  %p7364_p10 = por %p7363_p0, %p7362_p13 }
  0x63   : > { %6849 = vmatprep.subr.mxu0 %v305_v6  ;;  %6907 = vmatprep.subr.mxu1 %v305_v6  ;;  %v287_v38 = vld [vmem:[%s7606_s13 + $0x78] sm:$0xff]  ;;  %785 = vst.msk [vmem:[#allocation3 + $0x30] sm:$0x7] %vm784_vm1, %v13121_v40  ;;  %786 = vst.msk [vmem:[#allocation3 + $0x40] sm:$0x7] %vm784_vm1, %v13121_v40  ;;  %v7743_v45 = vld [vmem:[#allocation3] sm:$0xff] }
  0x64   : > { %6850 = vmatpush3.msra.mxu0 %v305_v6  ;;  %6915 = vmatpush3.msra.mxu1 %v305_v6  ;;  %v303_v39 = vld [vmem:[%s7606_s13 + $0xf8] sm:$0xff]  ;;  %787 = vst.msk [vmem:[#allocation3 + $0x50] sm:$0x7] %vm784_vm1, %v13121_v40  ;;  %788 = vst.msk [vmem:[#allocation3 + $0x60] sm:$0x7] %vm784_vm1, %v13121_v40  ;;  %v7745_v46 = vld [vmem:[#allocation3 + $0x8] sm:$0xff]  ;;  %p7365_p3 = pnand %p7364_p10, %p7358_p12 }
  0x65   : > { %6851 = vmatprep.subr.mxu0 %v304_v7  ;;  %6908 = vmatprep.subr.mxu1 %v304_v7  ;;  %789 = vst.msk [vmem:[#allocation3 + $0x70] sm:$0x7] %vm784_vm1, %v13121_v40  ;;  %790 = vst.msk [vmem:[#allocation3 + $0x80] sm:$0x7] %vm784_vm1, %v13121_v40  ;;  %v7739_v41 = vld [vmem:[%s13112_s2] ss:$0 sm:$0xff] }
  0x66   : > { %6852 = vmatpush3.msra.mxu0 %v304_v7  ;;  %6916 = vmatpush3.msra.mxu1 %v304_v7  ;;  %791 = vst.msk [vmem:[#allocation3 + $0x90] sm:$0x7] %vm784_vm1, %v13121_v40  ;;  %792 = vst.msk [vmem:[#allocation3 + $0xa0] sm:$0x7] %vm784_vm1, %v13121_v40  ;;  %v7741_v44 = vld [vmem:[#allocation9] ss:$0 sm:$0xff] }
  0x67   : > { %6853 = vmatprep.mubr.msk.f32.mxu0 %vm319_vm0, %v272_v8  ;;  %6877 = vmatprep.mubr.msk.f32.mxu1 %vm319_vm0, %v288_v9  ;;  %793 = vst.msk [vmem:[#allocation3 + $0xb0] sm:$0x7] %vm784_vm1, %v13121_v40  ;;  %794 = vst.msk [vmem:[#allocation3 + $0xc0] sm:$0x7] %vm784_vm1, %v13121_v40  ;;  %v804_v49 = vld [vmem:[#allocation3 + $0x10] sm:$0xff]  ;;  %v7749_v50 = vld [vmem:[#allocation3 + $0x18] sm:$0xff]  ;;  %v838_v60 = vmul.f32 %v7741_v44, %v7743_v45  ;;  %v839_v61 = vmul.f32 %v7741_v44, %v7745_v46 }
  0x68   : > { %6854 = vmatmul.mubr.msk.f32.vlgmr.msra.gmra.mxu0 %vm319_vm0, %v273_v10  ;;  %6878 = vmatmul.mubr.msk.f32.vlgmr.msra.gmra.mxu1 %vm319_vm0, %v289_v11  ;;  %795 = vst.msk [vmem:[#allocation3 + $0xd0] sm:$0x7] %vm784_vm1, %v13121_v40  ;;  %796 = vst.msk [vmem:[#allocation3 + $0xe0] sm:$0x7] %vm784_vm1, %v13121_v40  ;;  %v7751_v51 = vld [vmem:[#allocation9 + $0x8] ss:$0 sm:$0xff]  ;;  %v840_v7 = vmul.f32 %v7741_v44, %v804_v49  ;;  %v841_v8 = vmul.f32 %v7741_v44, %v7749_v50 }
  0x69   : > { %6856 = vmatprep.mubr.msk.f32.mxu0 %vm319_vm0, %v274_v12  ;;  %6880 = vmatprep.mubr.msk.f32.mxu1 %vm319_vm0, %v290_v13  ;;  %797 = vst.msk [vmem:[#allocation3 + $0xf0] sm:$0x7] %vm784_vm1, %v13121_v40  ;;  %798 = vst.msk [vmem:[#allocation3 + $0x100] sm:$0x7] %vm784_vm1, %v13121_v40  ;;  %v806_v57 = vld [vmem:[#allocation3 + $0x20] sm:$0xff]  ;;  %v807_v58 = vld [vmem:[#allocation3 + $0x28] sm:$0xff]  ;;  %v941_v62 = vmul.f32 %v7751_v51, %v804_v49  ;;  %v942_v63 = vmul.f32 %v7751_v51, %v7749_v50 }
  0x6a   : > { %799 = vst.msk [vmem:[#allocation3 + $0x110] sm:$0x7] %vm784_vm1, %v13121_v40  ;;  %800 = vst.msk [vmem:[#allocation3 + $0x120] sm:$0x7] %vm784_vm1, %v13121_v40  ;;  %v7764_v3 = vld [vmem:[#allocation9 + $0x10] ss:$0 sm:$0xff]  ;;  %v943_v9 = vmul.f32 %v7751_v51, %v806_v57  ;;  %v944_v10 = vmul.f32 %v7751_v51, %v807_v58 }
  0x6c   : > { %6857 = vmatmul.mubr.msk.f32.gmra.mxu0 %vm319_vm0, %v275_v14  ;;  %6881 = vmatmul.mubr.msk.f32.gmra.mxu1 %vm319_vm0, %v291_v15 }
  0x6d   : > { %6859 = vmatprep.mubr.msk.f32.mxu0 %vm319_vm0, %v276_v16  ;;  %6883 = vmatprep.mubr.msk.f32.mxu1 %vm319_vm0, %v292_v17  ;;  %v973_v17 = vadd.f32 %v941_v62, %v838_v60 }
  0x70   : > { %6860 = vmatmul.mubr.msk.f32.gmra.mxu0 %vm319_vm0, %v277_v18  ;;  %6884 = vmatmul.mubr.msk.f32.gmra.mxu1 %vm319_vm0, %v293_v19  ;;  %v974_v18 = vadd.f32 %v942_v63, %v839_v61  ;;  %v1044_v19 = vmul.f32 %v7764_v3, %v806_v57  ;;  %v7840_v63 = vld [vmem:[#allocation9 + $0xc] ss:$0 sm:$0xff] }
  0x71   : > { %6862 = vmatprep.mubr.msk.f32.mxu0 %vm319_vm0, %v278_v20  ;;  %6886 = vmatprep.mubr.msk.f32.mxu1 %vm319_vm0, %v294_v21  ;;  %v1045_v20 = vmul.f32 %v7764_v3, %v807_v58 }
  0x74   : > { %6863 = vmatmul.mubr.msk.f32.gmra.mxu0 %vm319_vm0, %v279_v22  ;;  %6887 = vmatmul.mubr.msk.f32.gmra.mxu1 %vm319_vm0, %v295_v23 }
  0x75   : > { %6865 = vmatprep.mubr.msk.f32.mxu0 %vm319_vm0, %v280_v24  ;;  %6889 = vmatprep.mubr.msk.f32.mxu1 %vm319_vm0, %v296_v25 }
  0x78   : > { %6866 = vmatmul.mubr.msk.f32.gmra.mxu0 %vm319_vm0, %v281_v26  ;;  %6890 = vmatmul.mubr.msk.f32.gmra.mxu1 %vm319_vm0, %v297_v27  ;;  %v7784_v27 = vmul.f32 %v7741_v44, %v806_v57 }
  0x79   : > { %6868 = vmatprep.mubr.msk.f32.mxu0 %vm319_vm0, %v282_v28  ;;  %6892 = vmatprep.mubr.msk.f32.mxu1 %vm319_vm0, %v298_v29  ;;  %v7787_v28 = vmul.f32 %v7741_v44, %v807_v58  ;;  %v7789_v29 = vadd.f32 %v943_v9, %v840_v7 }
  0x7c   : > { %6869 = vmatmul.mubr.msk.f32.gmra.mxu0 %vm319_vm0, %v283_v30  ;;  %6893 = vmatmul.mubr.msk.f32.gmra.mxu1 %vm319_vm0, %v299_v31  ;;  %v7791_v30 = vadd.f32 %v944_v10, %v841_v8 }
  0x7d   : > { %6871 = vmatprep.mubr.msk.f32.mxu0 %vm319_vm0, %v284_v32  ;;  %6895 = vmatprep.mubr.msk.f32.mxu1 %vm319_vm0, %v300_v33  ;;  %v7793_v33 = vld [vmem:[#allocation9 + $0x3] ss:$0 sm:$0xff] }
  0x80   : > { %6872 = vmatmul.mubr.msk.f32.gmra.mxu0 %vm319_vm0, %v285_v34  ;;  %6896 = vmatmul.mubr.msk.f32.gmra.mxu1 %vm319_vm0, %v301_v35 }
  0x81   : > { %6874 = vmatprep.mubr.msk.f32.mxu0 %vm319_vm0, %v286_v36  ;;  %6898 = vmatprep.mubr.msk.f32.mxu1 %vm319_vm0, %v302_v37 }
  0x84   : > { %6875 = vmatmul.mubr.msk.f32.gmra.mxu0 %vm319_vm0, %v287_v38  ;;  %6899 = vmatmul.mubr.msk.f32.gmra.mxu1 %vm319_vm0, %v303_v39  ;;  %v7799_v39 = vadd.f32 %v1044_v19, %v973_v17  ;;  %v7872_v19 = vld [vmem:[#allocation9 + $0xe] ss:$0 sm:$0xff] }
 0x128   : > { %v6855_v42 = vpop.f32.mrf.mxu0  ;;  %v6879_v43 = vpop.f32.mrf.mxu1 }
 0x129   : > { %v488_v47 = vadd.f32 %v6855_v42, %v7739_v41  ;;  %v568_v48 = vadd.f32 %v6879_v43, %v7739_v41  ;;  %v7801_v42 = vadd.f32 %v1045_v20, %v974_v18  ;;  %v7805_v43 = vmul.f32 %v7793_v33, %v7743_v45 }
 0x12a   : > { %v482_v52 = vpop.f32.mrf.mxu0  ;;  %v562_v53 = vpop.f32.mrf.mxu1 }
 0x12b   : > { %v642_v54 = vmax.f32 %v488_v47, 0.0  ;;  %v658_v55 = vmax.f32 %v568_v48, 0.0  ;;  %v483_v56 = vadd.f32 %v7739_v41, %v482_v52  ;;  %v563_v59 = vadd.f32 %v7739_v41, %v562_v53  ;;  %13430 = vst [vmem:[#allocation14_spill] sm:$0xff] %v7805_v43  ;;  %v7816_v53 = vld [vmem:[#allocation9 + $0xb] ss:$0 sm:$0xff] }
 0x12c   : > { %v6858_v0 = vpop.f32.mrf.mxu0  ;;  %v6882_v1 = vpop.f32.mrf.mxu1  ;;  %v7809_v47 = vmul.f32 %v7793_v33, %v7745_v46  ;;  %v7814_v52 = vmul.f32 %v7793_v33, %v7749_v50 }
 0x12d   : > { %674 = vst.msk [vmem:[#allocation2 + $0x8] sm:$0xff] %vm319_vm0, %v642_v54  ;;  %690 = vst.msk [vmem:[#allocation2 + $0x88] sm:$0xff] %vm319_vm0, %v658_v55  ;;  %v641_v2 = vmax.f32 %v483_v56, 0.0  ;;  %v657_v4 = vmax.f32 %v563_v59, 0.0  ;;  %v498_v5 = vadd.f32 %v6858_v0, %v7739_v41  ;;  %v578_v6 = vadd.f32 %v6882_v1, %v7739_v41  ;;  %v7818_v54 = vld [vmem:[#allocation9 + $0x4] ss:$0 sm:$0xff] }
 0x12e   : > { %v492_v11 = vpop.f32.mrf.mxu0  ;;  %v572_v12 = vpop.f32.mrf.mxu1  ;;  %13431 = vst [vmem:[#allocation15_spill] sm:$0xff] %v7809_v47  ;;  %13432 = vst [vmem:[#allocation16_spill] sm:$0xff] %v7814_v52  ;;  %v7826_v59 = vmul.f32 %v7816_v53, %v7749_v50  ;;  %v7830_v60 = vmul.f32 %v7818_v54, %v7743_v45  ;;  %v7834_v61 = vmul.f32 %v7818_v54, %v7745_v46  ;;  %v7842_v0 = vld [vmem:[#allocation9 + $0x5] ss:$0 sm:$0xff] }
 0x12f   : > { %673 = vst.msk [vmem:[#allocation2] sm:$0xff] %vm319_vm0, %v641_v2  ;;  %689 = vst.msk [vmem:[#allocation2 + $0x80] sm:$0xff] %vm319_vm0, %v657_v4  ;;  %v644_v13 = vmax.f32 %v498_v5, 0.0  ;;  %v660_v14 = vmax.f32 %v578_v6, 0.0  ;;  %v493_v15 = vadd.f32 %v7739_v41, %v492_v11  ;;  %v573_v16 = vadd.f32 %v7739_v41, %v572_v12  ;;  %v7849_v5 = vld [vmem:[#allocation9 + $0xd] ss:$0 sm:$0xff] }
 0x130   : > { %v6861_v21 = vpop.f32.mrf.mxu0  ;;  %v6885_v22 = vpop.f32.mrf.mxu1  ;;  %13433 = vst [vmem:[#allocation17_spill] sm:$0xff] %v7826_v59  ;;  %13434 = vst [vmem:[#allocation18_spill] sm:$0xff] %v7830_v60  ;;  %v7838_v62 = vmul.f32 %v7818_v54, %v7749_v50  ;;  %v7847_v4 = vmul.f32 %v7840_v63, %v7749_v50  ;;  %v6750_v6 = vld [vmem:[#allocation9 + $0x6] ss:$0 sm:$0xff]  ;;  %v7858_v11 = vmul.f32 %v7842_v0, %v7743_v45 }
 0x131   : > { %676 = vst.msk [vmem:[#allocation2 + $0x18] sm:$0xff] %vm319_vm0, %v644_v13  ;;  %692 = vst.msk [vmem:[#allocation2 + $0x98] sm:$0xff] %vm319_vm0, %v660_v14  ;;  %v643_v23 = vmax.f32 %v493_v15, 0.0  ;;  %v659_v24 = vmax.f32 %v573_v16, 0.0  ;;  %v508_v25 = vadd.f32 %v6861_v21, %v7739_v41  ;;  %v588_v26 = vadd.f32 %v6885_v22, %v7739_v41  ;;  %v7868_v15 = vld [vmem:[#allocation9 + $0x1] ss:$0 sm:$0xff] }
 0x132   : > { %v502_v31 = vpop.f32.mrf.mxu0  ;;  %v582_v32 = vpop.f32.mrf.mxu1  ;;  %13435 = vst [vmem:[#allocation19_spill] sm:$0xff] %v7834_v61  ;;  %13436 = vst [vmem:[#allocation20_spill] sm:$0xff] %v7838_v62  ;;  %v7862_v12 = vmul.f32 %v7842_v0, %v7745_v46  ;;  %v7866_v13 = vmul.f32 %v7842_v0, %v7749_v50  ;;  %v1602_v16 = vld [vmem:[#allocation3] sm:$0xff]  ;;  %v1603_v22 = vld [vmem:[#allocation3 + $0x8] sm:$0xff] }
 0x133   : > { %675 = vst.msk [vmem:[#allocation2 + $0x10] sm:$0xff] %vm319_vm0, %v643_v23  ;;  %691 = vst.msk [vmem:[#allocation2 + $0x90] sm:$0xff] %vm319_vm0, %v659_v24  ;;  %v646_v34 = vmax.f32 %v508_v25, 0.0  ;;  %v662_v35 = vmax.f32 %v588_v26, 0.0  ;;  %v503_v36 = vadd.f32 %v7739_v41, %v502_v31  ;;  %v583_v37 = vadd.f32 %v7739_v41, %v582_v32 }
 0x134   : > { %v719_v38 = vld [vmem:[#allocation2 + $0x8] sm:$0x1f]  ;;  %v6864_v48 = vpop.f32.mrf.mxu0  ;;  %v6888_v49 = vpop.f32.mrf.mxu1  ;;  %13437 = vst [vmem:[#allocation21_spill] sm:$0xff] %v7847_v4  ;;  %13438 = vst [vmem:[#allocation22_spill] sm:$0xff] %v7858_v11  ;;  %v7878_v25 = vmul.f32 %v7849_v5, %v7749_v50  ;;  %v7881_v26 = vmul.f32 %v6750_v6, %v7743_v45  ;;  %v7884_v31 = vmul.f32 %v6750_v6, %v7745_v46  ;;  %v13455_v4 = vmov 0.0  }
 0x135   : > { %753 = vst.msk [vmem:[#allocation3 + $0x3b] sm:$0x1f] %vm752_vm2, %v719_v38  ;;  %v645_v55 = vmax.f32 %v503_v36, 0.0  ;;  %v518_v56 = vadd.f32 %v6864_v48, %v7739_v41  ;;  %v598_v57 = vadd.f32 %v6888_v49, %v7739_v41  ;;  %v735_v58 = vld [vmem:[#allocation2 + $0x88] sm:$0x1f]  ;;  %v661_v7 = vmax.f32 %v583_v37, 0.0 }
 0x136   : > { %678 = vst.msk [vmem:[#allocation2 + $0x28] sm:$0xff] %vm319_vm0, %v646_v34  ;;  %694 = vst.msk [vmem:[#allocation2 + $0xa8] sm:$0xff] %vm319_vm0, %v662_v35  ;;  %v512_v1 = vpop.f32.mrf.mxu0  ;;  %v592_v2 = vpop.f32.mrf.mxu1  ;;  %v7854_v10 = vld [vmem:[#allocation2] sm:$0xff]  ;;  %v7889_v34 = vld [vmem:[#allocation3 + $0x10] sm:$0xff]  ;;  %v7895_v48 = vmul.f32 %v6750_v6, %v7749_v50  ;;  %v7902_v46 = vmul.f32 %v7868_v15, %v1602_v16 }
 0x137   : > { %769 = vst.msk [vmem:[#allocation3 + $0xbb] sm:$0x1f] %vm752_vm2, %v735_v58  ;;  %v513_v8 = vadd.f32 %v7739_v41, %v512_v1  ;;  %v593_v9 = vadd.f32 %v7739_v41, %v592_v2  ;;  %13439 = vst [vmem:[#allocation23_spill] sm:$0xff] %v7862_v12  ;;  %v648_v14 = vmax.f32 %v518_v56, 0.0  ;;  %v664_v20 = vmax.f32 %v598_v57, 0.0  ;;  %v7886_v32 = vld [vmem:[#allocation2 + $0x80] sm:$0xff] }
 0x138   : > { %677 = vst.msk [vmem:[#allocation2 + $0x20] sm:$0xff] %vm319_vm0, %v645_v55  ;;  %13440 = vst [vmem:[#allocation24_spill] sm:$0xff] %v7866_v13  ;;  %v6867_v17 = vpop.f32.mrf.mxu0  ;;  %v6891_v18 = vpop.f32.mrf.mxu1  ;;  %v7891_v35 = vld [vmem:[#allocation3 + $0x18] sm:$0xff]  ;;  %v7904_v49 = vld [vmem:[#allocation3 + $0x20] sm:$0xff]  ;;  %v7912_v58 = vmul.f32 %v7872_v19, %v7749_v50  ;;  %v7916_v1 = vmul.f32 %v7868_v15, %v1603_v22 }
 0x139   : > { %751 = vst.msk [vmem:[#allocation3 + $0x33] sm:$0xff] %vm319_vm0, %v7854_v10  ;;  %693 = vst.msk [vmem:[#allocation2 + $0xa0] sm:$0xff] %vm319_vm0, %v661_v7  ;;  %v647_v21 = vmax.f32 %v513_v8, 0.0  ;;  %v663_v23 = vmax.f32 %v593_v9, 0.0  ;;  %v528_v24 = vadd.f32 %v6867_v17, %v7739_v41  ;;  %v608_v36 = vadd.f32 %v6891_v18, %v7739_v41  ;;  %v721_v45 = vld [vmem:[#allocation2 + $0x18] sm:$0x1f] }
 0x13a   : > { %13441 = vst [vmem:[#allocation25_spill] sm:$0xff] %v7878_v25  ;;  %13442 = vst [vmem:[#allocation26_spill] sm:$0xff] %v7881_v26  ;;  %v522_v37 = vpop.f32.mrf.mxu0  ;;  %v602_v38 = vpop.f32.mrf.mxu1  ;;  %v7906_v55 = vld [vmem:[#allocation3 + $0x28] sm:$0xff]  ;;  %v7925_v50 = vld [vmem:[#allocation9 + $0x11] ss:$0 sm:$0xff] }
 0x13b   : > { %13443 = vst [vmem:[#allocation27_spill] sm:$0xff] %v7884_v31  ;;  %680 = vst.msk [vmem:[#allocation2 + $0x38] sm:$0xff] %vm319_vm0, %v648_v14  ;;  %v650_v56 = vmax.f32 %v528_v24, 0.0  ;;  %v523_v57 = vadd.f32 %v7739_v41, %v522_v37  ;;  %v6716_v2 = vld [vmem:[#allocation9 + $0x9] ss:$0 sm:$0xff]  ;;  %v666_v6 = vmax.f32 %v608_v36, 0.0  ;;  %v603_v7 = vadd.f32 %v7739_v41, %v602_v38 }
 0x13c   : > { %13444 = vst [vmem:[#allocation28_spill] sm:$0xff] %v7895_v48  ;;  %768 = vst.msk [vmem:[#allocation3 + $0xb3] sm:$0xff] %vm319_vm0, %v7886_v32  ;;  %v6870_v8 = vpop.f32.mrf.mxu0  ;;  %v6894_v9 = vpop.f32.mrf.mxu1  ;;  %v737_v14 = vld [vmem:[#allocation2 + $0x98] sm:$0x1f]  ;;  %v7920_v17 = vmul.f32 %v6716_v2, %v7889_v34  ;;  %v7923_v18 = vmul.f32 %v6716_v2, %v7891_v35  ;;  %v7933_v24 = vmul.f32 %v7925_v50, %v7904_v49  ;;  %v6723_v38 = vld [vmem:[#allocation9 + $0xa] ss:$0 sm:$0xff] }
 0x13d   : > { %696 = vst.msk [vmem:[#allocation2 + $0xb8] sm:$0xff] %vm319_vm0, %v664_v20  ;;  %679 = vst.msk [vmem:[#allocation2 + $0x30] sm:$0xff] %vm319_vm0, %v647_v21  ;;  %v6722_v20 = vld [vmem:[#allocation9 + $0x2] ss:$0 sm:$0xff]  ;;  %v538_v21 = vadd.f32 %v6870_v8, %v7739_v41  ;;  %v7937_v36 = vmul.f32 %v7925_v50, %v7906_v55  ;;  %v1520_v8 = vld [vmem:[#allocation2 + $0x8] sm:$0x3f]  ;;  %v7949_v40 = vmul.f32 %v6723_v38, %v7889_v34 }
 0x13e   : > { %695 = vst.msk [vmem:[#allocation2 + $0xb0] sm:$0xff] %vm319_vm0, %v663_v23  ;;  %13445 = vst [vmem:[#allocation29_spill] sm:$0xff] %v7912_v58  ;;  %v618_v23 = vadd.f32 %v6894_v9, %v7739_v41  ;;  %v7939_v37 = vmul.f32 %v6722_v20, %v1602_v16  ;;  %v7944_v9 = vld [vmem:[#allocation9 + $0x18] ss:$0 sm:$0xff]  ;;  %v7952_v58 = vmul.f32 %v6723_v38, %v7891_v35  ;;  %v7958_v26 = vld [vmem:[#allocation2 + $0x10] sm:$0xff] }
 0x13f   : > { %755 = vst.msk [vmem:[#allocation3 + $0x4b] sm:$0x1f] %vm752_vm2, %v721_v45  ;;  %13446 = vst [vmem:[#allocation30_spill] sm:$0xff] %v7923_v18  ;;  %v7941_v45 = vld [vmem:[#allocation9 + $0x12] ss:$0 sm:$0xff]  ;;  %v7991_v52 = vmul.f32 %v6716_v2, %v7904_v49  ;;  %v7994_v47 = vmul.f32 %v6716_v2, %v7906_v55  ;;  %v8009_v2 = vmul.f32 %v6722_v20, %v7889_v34 }
 0x140   : > { %682 = vst.msk [vmem:[#allocation2 + $0x48] sm:$0xff] %vm319_vm0, %v650_v56  ;;  %13447 = vst [vmem:[#allocation31_spill] sm:$0xff] %v7933_v24  ;;  %v649_v56 = vmax.f32 %v523_v57, 0.0  ;;  %v7956_v16 = vmul.f32 %v7941_v45, %v7904_v49  ;;  %v808_v48 = vld [vmem:[#allocation3 + $0x30] sm:$0xff]  ;;  %v809_v31 = vld [vmem:[#allocation3 + $0x38] sm:$0xff]  ;;  %v7962_v57 = vmul.f32 %v7941_v45, %v7906_v55  ;;  %v668_v25 = vmax.f32 %v618_v23, 0.0  ;;  %v532_v23 = vpop.f32.mrf.mxu0 }
 0x141   : > { %771 = vst.msk [vmem:[#allocation3 + $0xcb] sm:$0x1f] %vm752_vm2, %v737_v14  ;;  %13448 = vst [vmem:[#allocation32_spill] sm:$0xff] %v7937_v36  ;;  %v7946_v14 = vmul.f32 %v6722_v20, %v1603_v22  ;;  %v665_v22 = vmax.f32 %v603_v7, 0.0  ;;  %v1536_v13 = vld [vmem:[#allocation2 + $0x88] sm:$0x3f]  ;;  %v945_v12 = vmul.f32 %v7751_v51, %v808_v48  ;;  %v946_v11 = vmul.f32 %v7751_v51, %v809_v31 }
 0x142   : > { %13449 = vst [vmem:[#allocation33_spill] sm:$0xff] %v7939_v37  ;;  %698 = vst.msk [vmem:[#allocation2 + $0xc8] sm:$0xff] %vm319_vm0, %v666_v6  ;;  %v652_v6 = vmax.f32 %v538_v21, 0.0  ;;  %v7976_v7 = vmul.f32 %v7868_v15, %v7889_v34  ;;  %v7980_v21 = vmul.f32 %v7868_v15, %v7891_v35  ;;  %v1046_v62 = vmul.f32 %v7764_v3, %v808_v48  ;;  %v7988_v59 = vld [vmem:[#allocation2 + $0x90] sm:$0xff] }
 0x143   : > { %13450 = vst [vmem:[#allocation34_spill] sm:$0xff] %v7946_v14  ;;  %13451 = vst [vmem:[#allocation35_spill] sm:$0xff] %v7949_v40  ;;  %v7984_v61 = vld [vmem:[#allocation3 + $0xb0] sm:$0xff]  ;;  %v7986_v60 = vld [vmem:[#allocation3 + $0xb8] sm:$0xff]  ;;  %v1146_v15 = vmul.f32 %v7944_v9, %v808_v48  ;;  %v1147_v43 = vmul.f32 %v7944_v9, %v809_v31  ;;  %v977_v34 = vadd.f32 %v945_v12, %v7784_v27 }
 0x144   : > { %13452 = vst [vmem:[#allocation36_spill] sm:$0xff] %v7952_v58  ;;  %13453 = vst [vmem:[#allocation37_spill] sm:$0xff] %v7956_v16  ;;  %v2309_v27 = vld [vmem:[#allocation2 + $0x8] sm:$0x7f]  ;;  %v725_v58 = vld [vmem:[#allocation2 + $0x38] sm:$0x1f] }
 0x145   : > { %13454 = vst [vmem:[#allocation38_spill] sm:$0xff] %v7962_v57  ;;  %681 = vst.msk [vmem:[#allocation2 + $0x40] sm:$0xff] %vm319_vm0, %v649_v56  ;;  %v612_v56 = vpop.f32.mrf.mxu1  ;;  %v8057_v12 = vld [vmem:[#allocation9 + $0x28] ss:$0 sm:$0xff]  ;;  %v6873_v57 = vpop.f32.mrf.mxu0  ;;  %v8305_v36 = vld [vmem:[#allocation2 + $0x30] sm:$0xff] }
 0x146   : > { %1551 = vst.msk [vmem:[#allocation3 + $0x32] sm:$0xff] %vm319_vm0, %v7854_v10  ;;  %754 = vst.msk [vmem:[#allocation3 + $0x43] sm:$0xff] %vm319_vm0, %v7958_v26 }
 0x147   : > { %1553 = vst.msk [vmem:[#allocation3 + $0x3a] sm:$0x3f] %vm1552_vm3, %v1520_v8  ;;  %13456 = vst [vmem:[#allocation39_spill] sm:$0xff] %v7976_v7  ;;  %v1047_v8 = vmul.f32 %v7764_v3, %v809_v31  ;;  %v8024_v7 = vmul.f32 %v7741_v44, %v809_v31  ;;  %v8041_v31 = vmul.f32 %v7741_v44, %v7986_v60 }
 0x148   : > { %1585 = vst.msk [vmem:[#allocation3 + $0x30] sm:$0x3] %vm1584_vm4, %v13455_v4  ;;  %13457 = vst [vmem:[#allocation40_spill] sm:$0xff] %v7980_v21  ;;  %v844_v21 = vmul.f32 %v7741_v44, %v808_v48  ;;  %v739_v48 = vld [vmem:[#allocation2 + $0xa8] sm:$0x1f] }
 0x149   : > { %13458 = vst [vmem:[#allocation41_spill] sm:$0xff] %v7991_v52  ;;  %13459 = vst [vmem:[#allocation42_spill] sm:$0xff] %v7994_v47  ;;  %v8018_v47 = vmul.f32 %v6723_v38, %v7906_v55  ;;  %v613_v52 = vadd.f32 %v7739_v41, %v612_v56  ;;  %v8033_v55 = vadd.f32 %v1047_v8, %v7791_v30 }
 0x14a   : > { %697 = vst.msk [vmem:[#allocation2 + $0xc0] sm:$0xff] %vm319_vm0, %v665_v22  ;;  %684 = vst.msk [vmem:[#allocation2 + $0x58] sm:$0xff] %vm319_vm0, %v652_v6  ;;  %v723_v22 = vld [vmem:[#allocation2 + $0x28] sm:$0x1f]  ;;  %v8015_v6 = vmul.f32 %v6723_v38, %v7904_v49  ;;  %v1078_v49 = vadd.f32 %v1046_v62, %v7789_v29  ;;  %v8049_v29 = vmul.f32 %v7751_v51, %v7984_v61  ;;  %v8055_v62 = vld [vmem:[#allocation9 + $0x20] ss:$0 sm:$0xff] }
 0x14b   : > { %700 = vst.msk [vmem:[#allocation2 + $0xd8] sm:$0xff] %vm319_vm0, %v668_v25  ;;  %1568 = vst.msk [vmem:[#allocation3 + $0xb2] sm:$0xff] %vm319_vm0, %v7886_v32  ;;  %v8012_v25 = vmul.f32 %v6722_v20, %v7891_v35  ;;  %v8028_v35 = vadd.f32 %v946_v11, %v7787_v28  ;;  %v8037_v20 = vmul.f32 %v7741_v44, %v7984_v61 }
 0x14c   : > { %1569 = vst.msk [vmem:[#allocation3 + $0xba] sm:$0x3f] %vm1552_vm3, %v1536_v13  ;;  %13460 = vst [vmem:[#allocation43_spill] sm:$0xff] %v8009_v2  ;;  %v533_v13 = vadd.f32 %v7739_v41, %v532_v23  ;;  %v1178_v28 = vadd.f32 %v1146_v15, %v7799_v39  ;;  %v8045_v11 = vadd.f32 %v1147_v43, %v7801_v42  ;;  %v8072_v23 = vld [vmem:[#allocation9 + $0x30] ss:$0 sm:$0xff]  ;;  %v667_v15 = vmax.f32 %v613_v52, 0.0 }
 0x14d   : > { %1593 = vst.msk [vmem:[#allocation3 + $0xb0] sm:$0x3] %vm1584_vm4, %v13455_v4  ;;  %13461 = vst [vmem:[#allocation44_spill] sm:$0xff] %v8012_v25  ;;  %v8053_v30 = vmul.f32 %v7751_v51, %v7986_v60  ;;  %v8066_v42 = vmul.f32 %v7764_v3, %v7984_v61  ;;  %v8070_v43 = vmul.f32 %v7764_v3, %v7986_v60  ;;  %v810_v56 = vld [vmem:[#allocation3 + $0x40] sm:$0xff] }
 0x14e   : > { %770 = vst.msk [vmem:[#allocation3 + $0xc3] sm:$0xff] %vm319_vm0, %v7988_v59  ;;  %13462 = vst [vmem:[#allocation45_spill] sm:$0xff] %v8015_v6  ;;  %v8062_v39 = vld [vmem:[#allocation3 + $0x38] sm:$0xff]  ;;  %v651_v8 = vmax.f32 %v533_v13, 0.0  ;;  %v1048_v13 = vmul.f32 %v7764_v3, %v810_v56  ;;  %v1148_v52 = vmul.f32 %v7944_v9, %v810_v56  ;;  %v8127_v16 = vmul.f32 %v8055_v62, %v7986_v60 }
 0x14f   : > { %13463 = vst [vmem:[#allocation46_spill] sm:$0xff] %v8018_v47  ;;  %757 = vst.msk [vmem:[#allocation3 + $0x5b] sm:$0x1f] %vm752_vm2, %v723_v22  ;;  %v8060_v38 = vld [vmem:[#allocation3 + $0x30] sm:$0xff]  ;;  %v2325_v22 = vld [vmem:[#allocation2 + $0x88] sm:$0x7f] }
 0x150   : > { %13464 = vst [vmem:[#allocation47_spill] sm:$0xff] %v8049_v29  ;;  %13465 = vst [vmem:[#allocation48_spill] sm:$0xff] %v8053_v30  ;;  %v1522_v30 = vld [vmem:[#allocation2 + $0x18] sm:$0x3f]  ;;  %v8094_v29 = vmul.f32 %v8055_v62, %v7984_v61 }
 0x151   : > { %773 = vst.msk [vmem:[#allocation3 + $0xdb] sm:$0x1f] %vm752_vm2, %v739_v48  ;;  %13466 = vst [vmem:[#allocation49_spill] sm:$0xff] %v8060_v38  ;;  %v8081_v48 = vmul.f32 %v7944_v9, %v7984_v61 }
 0x152   : > { %13467 = vst [vmem:[#allocation50_spill] sm:$0xff] %v8062_v39  ;;  %13468 = vst [vmem:[#allocation51_spill] sm:$0xff] %v8066_v42  ;;  %v947_v42 = vmul.f32 %v7751_v51, %v810_v56 }
 0x153   : > { %13469 = vst [vmem:[#allocation52_spill] sm:$0xff] %v8070_v43  ;;  %2340 = vst.msk [vmem:[#allocation3 + $0x31] sm:$0xff] %vm319_vm0, %v7854_v10  ;;  %v811_v43 = vld [vmem:[#allocation3 + $0x48] sm:$0xff]  ;;  %v8098_v47 = vld [vmem:[#allocation3 + $0xb8] sm:$0xff] }
 0x154   : > { %2342 = vst.msk [vmem:[#allocation3 + $0x39] sm:$0x7f] %vm2341_vm5, %v2309_v27  ;;  %13470 = vst [vmem:[#allocation53_spill] sm:$0xff] %v8081_v48  ;;  %v8090_v27 = vmul.f32 %v7944_v9, %v7986_v60  ;;  %v8096_v48 = vld [vmem:[#allocation3 + $0xb0] sm:$0xff]  ;;  %v948_v6 = vmul.f32 %v7751_v51, %v811_v43  ;;  %v1049_v25 = vmul.f32 %v7764_v3, %v811_v43 }
 0x155   : > { %2374 = vst.msk [vmem:[#allocation3 + $0x30] sm:$0x1] %vm2373_vm6, %v13455_v4  ;;  %13472 = vst [vmem:[#allocation55_spill] sm:$0xff] %v8094_v29  ;;  %v8105_v2 = vld [vmem:[#allocation3 + $0xc0] sm:$0xff]  ;;  %v1538_v29 = vld [vmem:[#allocation2 + $0x98] sm:$0x3f] }
 0x156   : > { %1586 = vst.msk [vmem:[#allocation3 + $0x40] sm:$0x3] %vm1584_vm4, %v13455_v4  ;;  %13471 = vst [vmem:[#allocation54_spill] sm:$0xff] %v8090_v27  ;;  %v8114_v27 = vadd.f32 %v947_v42, %v844_v21  ;;  %v8131_v21 = vmul.f32 %v8057_v12, %v7984_v61  ;;  %v8140_v42 = vld [vmem:[#allocation2 + $0xa0] sm:$0xff] }
 0x157   : > { %13473 = vst [vmem:[#allocation56_spill] sm:$0xff] %v8096_v48  ;;  %13474 = vst [vmem:[#allocation57_spill] sm:$0xff] %v8098_v47  ;;  %v8116_v47 = vadd.f32 %v1048_v13, %v977_v34  ;;  %v1249_v48 = vmul.f32 %v8055_v62, %v810_v56  ;;  %v1149_v34 = vmul.f32 %v7944_v9, %v811_v43 }
 0x158   : > { %1554 = vst.msk [vmem:[#allocation3 + $0x42] sm:$0xff] %vm319_vm0, %v7958_v26  ;;  %683 = vst.msk [vmem:[#allocation2 + $0x50] sm:$0xff] %vm319_vm0, %v651_v8  ;;  %v827_v8 = vld [vmem:[#allocation3 + $0xc8] sm:$0xff]  ;;  %v8148_v13 = vmul.f32 %v8072_v23, %v7984_v61  ;;  %v8165_v61 = vadd.f32 %v6873_v57, %v7739_v41  ;;  %v2311_v41 = vld [vmem:[#allocation2 + $0x18] sm:$0x7f] }
 0x159   : > { %1555 = vst.msk [vmem:[#allocation3 + $0x4a] sm:$0x3f] %vm1552_vm3, %v1522_v30  ;;  %v8118_v30 = vadd.f32 %v1148_v52, %v1078_v49  ;;  %13475 = vst [vmem:[#allocation58_spill] sm:$0xff] %v8127_v16  ;;  %v1250_v49 = vmul.f32 %v8055_v62, %v811_v43  ;;  %v8150_v52 = vadd.f32 %v1249_v48, %v1178_v28 }
 0x15a   : > { %699 = vst.msk [vmem:[#allocation2 + $0xd0] sm:$0xff] %vm319_vm0, %v667_v15  ;;  %2357 = vst.msk [vmem:[#allocation3 + $0xb1] sm:$0xff] %vm319_vm0, %v7886_v32  ;;  %v8123_v15 = vld [vmem:[#allocation2 + $0x20] sm:$0xff]  ;;  %v8161_v16 = vmul.f32 %v7741_v44, %v810_v56  ;;  %v8168_v28 = vmul.f32 %v7741_v44, %v811_v43  ;;  %v8171_v48 = vadd.f32 %v948_v6, %v8024_v7  ;;  %v8180_v56 = vld [vmem:[#allocation9 + $0x19] ss:$0 sm:$0xff] }
 0x15b   : > { %2382 = vst.msk [vmem:[#allocation3 + $0xb0] sm:$0x1] %vm2373_vm6, %v13455_v4  ;;  %13476 = vst [vmem:[#allocation59_spill] sm:$0xff] %v8131_v21  ;;  %v963_v21 = vmul.f32 %v7751_v51, %v8105_v2  ;;  %v8185_v57 = vadd.f32 %v1149_v34, %v8033_v55  ;;  %v8188_v43 = vadd.f32 %v1250_v49, %v8045_v11  ;;  %v741_v6 = vld [vmem:[#allocation2 + $0xb8] sm:$0x1f] }
 0x15c   : > { %2358 = vst.msk [vmem:[#allocation3 + $0xb9] sm:$0x7f] %vm2341_vm5, %v2325_v22  ;;  %v8144_v22 = vmul.f32 %v8057_v12, %v7986_v60  ;;  %13478 = vst [vmem:[#allocation61_spill] sm:$0xff] %v8148_v13  ;;  %v8174_v13 = vadd.f32 %v1049_v25, %v8028_v35  ;;  %v8192_v7 = vmul.f32 %v7741_v44, %v8105_v2 }
 0x15d   : > { %1594 = vst.msk [vmem:[#allocation3 + $0xc0] sm:$0x3] %vm1584_vm4, %v13455_v4  ;;  %13480 = vst [vmem:[#allocation63_spill] sm:$0xff] %v8165_v61  ;;  %v8195_v25 = vmul.f32 %v7741_v44, %v827_v8  ;;  %v8205_v55 = vmul.f32 %v7764_v3, %v8105_v2  ;;  %v8208_v11 = vmul.f32 %v7764_v3, %v827_v8  ;;  %v8239_v61 = vld [vmem:[#allocation9 + $0x1a] ss:$0 sm:$0xff] }
 0x15e   : > { %1570 = vst.msk [vmem:[#allocation3 + $0xc2] sm:$0xff] %vm319_vm0, %v7988_v59  ;;  %756 = vst.msk [vmem:[#allocation3 + $0x53] sm:$0xff] %vm319_vm0, %v8123_v15  ;;  %v8215_v34 = vmul.f32 %v7944_v9, %v827_v8  ;;  %v8259_v40 = vmul.f32 %v8180_v56, %v8060_v38 }
 0x15f   : > { %1571 = vst.msk [vmem:[#allocation3 + $0xca] sm:$0x3f] %vm1552_vm3, %v1538_v29  ;;  %13477 = vst [vmem:[#allocation60_spill] sm:$0xff] %v8144_v22  ;;  %v8158_v29 = vmul.f32 %v8072_v23, %v7986_v60  ;;  %v964_v22 = vmul.f32 %v7751_v51, %v827_v8  ;;  %v8177_v60 = vadd.f32 %v963_v21, %v8037_v20  ;;  %v8199_v35 = vld [vmem:[#allocation3 + $0x40] sm:$0xff] }
 0x160   : > { %772 = vst.msk [vmem:[#allocation3 + $0xd3] sm:$0xff] %vm319_vm0, %v8140_v42  ;;  %13482 = vst [vmem:[#allocation65_spill] sm:$0xff] %v8199_v35  ;;  %v8201_v20 = vld [vmem:[#allocation3 + $0x48] sm:$0xff]  ;;  %v8212_v21 = vmul.f32 %v7944_v9, %v8105_v2 }
 0x161   : > { %13479 = vst [vmem:[#allocation62_spill] sm:$0xff] %v8158_v29  ;;  %759 = vst.msk [vmem:[#allocation3 + $0x6b] sm:$0x1f] %vm752_vm2, %v725_v58  ;;  %v8182_v29 = vld [vmem:[#allocation3 + $0x30] sm:$0xff]  ;;  %v2327_v58 = vld [vmem:[#allocation2 + $0x98] sm:$0x7f]  ;;  %v8226_v49 = vadd.f32 %v964_v22, %v8041_v31  ;;  %v8244_v31 = vmul.f32 %v8057_v12, %v827_v8  ;;  %v8248_v22 = vmul.f32 %v8072_v23, %v8105_v2 }
 0x162   : > { %13481 = vst [vmem:[#allocation64_spill] sm:$0xff] %v8182_v29  ;;  %3129 = vst.msk [vmem:[#allocation3 + $0x30] sm:$0xff] %vm319_vm0, %v7854_v10  ;;  %v8218_v10 = vld [vmem:[#allocation3 + $0xb0] sm:$0xff] }
 0x163   : > { %13483 = vst [vmem:[#allocation66_spill] sm:$0xff] %v8201_v20  ;;  %13484 = vst [vmem:[#allocation67_spill] sm:$0xff] %v8205_v55  ;;  %v1540_v55 = vld [vmem:[#allocation2 + $0xa8] sm:$0x3f] }
 0x164   : > { %13485 = vst [vmem:[#allocation68_spill] sm:$0xff] %v8208_v11  ;;  %13486 = vst [vmem:[#allocation69_spill] sm:$0xff] %v8212_v21  ;;  %v8230_v11 = vmul.f32 %v8055_v62, %v8105_v2  ;;  %v1524_v21 = vld [vmem:[#allocation2 + $0x28] sm:$0x3f] }
 0x165   : > { %13487 = vst [vmem:[#allocation70_spill] sm:$0xff] %v8215_v34  ;;  %775 = vst.msk [vmem:[#allocation3 + $0xeb] sm:$0x1f] %vm752_vm2, %v741_v6  ;;  %v8233_v34 = vmul.f32 %v8055_v62, %v827_v8  ;;  %v8237_v6 = vmul.f32 %v8057_v12, %v8105_v2 }
 0x166   : > { %13488 = vst [vmem:[#allocation71_spill] sm:$0xff] %v8218_v10  ;;  %2343 = vst.msk [vmem:[#allocation3 + $0x41] sm:$0xff] %vm319_vm0, %v7958_v26  ;;  %v6719_v10 = vld [vmem:[#allocation9 + $0x21] ss:$0 sm:$0xff] }
 0x167   : > { %2375 = vst.msk [vmem:[#allocation3 + $0x40] sm:$0x1] %vm2373_vm6, %v13455_v4  ;;  %13489 = vst [vmem:[#allocation72_spill] sm:$0xff] %v8230_v11  ;;  %v812_v11 = vld [vmem:[#allocation3 + $0x50] sm:$0xff]  ;;  %v8290_v14 = vmul.f32 %v6719_v10, %v8199_v35  ;;  %v8293_v37 = vmul.f32 %v6719_v10, %v8201_v20  ;;  %v8312_v10 = vmul.f32 %v8239_v61, %v8182_v29 }
 0x168   : > { %2344 = vst.msk [vmem:[#allocation3 + $0x49] sm:$0x7f] %vm2341_vm5, %v2311_v41  ;;  %13490 = vst [vmem:[#allocation73_spill] sm:$0xff] %v8233_v34  ;;  %v8251_v41 = vmul.f32 %v8072_v23, %v827_v8  ;;  %v8253_v34 = vld [vmem:[#allocation3 + $0xc0] sm:$0xff]  ;;  %v949_v2 = vmul.f32 %v7751_v51, %v812_v11  ;;  %v1050_v8 = vmul.f32 %v7764_v3, %v812_v11 }
 0x169   : > { %13491 = vst [vmem:[#allocation74_spill] sm:$0xff] %v8237_v6  ;;  %3145 = vst.msk [vmem:[#allocation3 + $0xb0] sm:$0xff] %vm319_vm0, %v7886_v32  ;;  %v8255_v6 = vld [vmem:[#allocation3 + $0xc8] sm:$0xff]  ;;  %v813_v32 = vld [vmem:[#allocation3 + $0x58] sm:$0xff] }
 0x16a   : > { %13492 = vst [vmem:[#allocation75_spill] sm:$0xff] %v8244_v31  ;;  %13493 = vst [vmem:[#allocation76_spill] sm:$0xff] %v8248_v22  ;;  %v8271_v22 = vld [vmem:[#allocation3 + $0xd0] sm:$0xff]  ;;  %v8273_v31 = vld [vmem:[#allocation3 + $0xd8] sm:$0xff]  ;;  %v1151_v24 = vmul.f32 %v7944_v9, %v813_v32 }
 0x16b   : > { %13494 = vst [vmem:[#allocation77_spill] sm:$0xff] %v8251_v41  ;;  %13495 = vst [vmem:[#allocation78_spill] sm:$0xff] %v8253_v34  ;;  %v1150_v41 = vmul.f32 %v7944_v9, %v812_v11  ;;  %v1051_v34 = vmul.f32 %v7764_v3, %v813_v32 }
 0x16c   : > { %13496 = vst [vmem:[#allocation79_spill] sm:$0xff] %v8255_v6  ;;  %13497 = vst [vmem:[#allocation80_spill] sm:$0xff] %v8259_v40  ;;  %v8277_v6 = vmul.f32 %v8180_v56, %v8062_v39  ;;  %v8299_v40 = vadd.f32 %v1050_v8, %v8114_v27  ;;  %v8318_v27 = vmul.f32 %v7925_v50, %v8060_v38 }
 0x16d   : > { %2359 = vst.msk [vmem:[#allocation3 + $0xc1] sm:$0xff] %vm319_vm0, %v7988_v59  ;;  %1556 = vst.msk [vmem:[#allocation3 + $0x52] sm:$0xff] %vm319_vm0, %v8123_v15  ;;  %v8336_v38 = vmul.f32 %v8180_v56, %v8201_v20  ;;  %v8356_v20 = vld [vmem:[#allocation9 + $0x1b] ss:$0 sm:$0xff] }
 0x16e   : > { %2383 = vst.msk [vmem:[#allocation3 + $0xc0] sm:$0x1] %vm2373_vm6, %v13455_v4  ;;  %13498 = vst [vmem:[#allocation81_spill] sm:$0xff] %v8277_v6  ;;  %v8296_v6 = vadd.f32 %v949_v2, %v8161_v16  ;;  %v8314_v16 = vld [vmem:[#allocation2 + $0xb0] sm:$0xff]  ;;  %v3868_v2 = vld [vmem:[#allocation2 + $0x1] sm:$0xff] }
 0x16f   : > { %2360 = vst.msk [vmem:[#allocation3 + $0xc9] sm:$0x7f] %vm2341_vm5, %v2327_v58  ;;  %v950_v58 = vmul.f32 %v7751_v51, %v813_v32  ;;  %13499 = vst [vmem:[#allocation82_spill] sm:$0xff] %v8290_v14  ;;  %v4657_v14 = vld [vmem:[#allocation2 + $0x12] sm:$0xff] }
 0x170   : > { %1587 = vst.msk [vmem:[#allocation3 + $0x50] sm:$0x3] %vm1584_vm4, %v13455_v4  ;;  %1595 = vst.msk [vmem:[#allocation3 + $0xd0] sm:$0x3] %vm1584_vm4, %v13455_v4 }
 0x171   : > { %1557 = vst.msk [vmem:[#allocation3 + $0x5a] sm:$0x3f] %vm1552_vm3, %v1524_v21  ;;  %1573 = vst.msk [vmem:[#allocation3 + $0xda] sm:$0x3f] %vm1552_vm3, %v1540_v55  ;;  %v8302_v21 = vadd.f32 %v1150_v41, %v8116_v47  ;;  %v1251_v55 = vmul.f32 %v8055_v62, %v812_v11  ;;  %v8322_v47 = vmul.f32 %v7925_v50, %v8062_v39  ;;  %v3168_v41 = vld [vmem:[#allocation3 + $0x30] sm:$0xff]  ;;  %v8341_v39 = vld [vmem:[#allocation3 + $0x40] sm:$0xff] }
 0x172   : > { %1572 = vst.msk [vmem:[#allocation3 + $0xd2] sm:$0xff] %vm319_vm0, %v8140_v42  ;;  %13500 = vst [vmem:[#allocation83_spill] sm:$0xff] %v8293_v37  ;;  %v1352_v37 = vmul.f32 %v8057_v12, %v812_v11  ;;  %v8338_v50 = vld [vmem:[#allocation9 + $0x13] ss:$0 sm:$0xff] }
 0x173   : > { %758 = vst.msk [vmem:[#allocation3 + $0x63] sm:$0xff] %vm319_vm0, %v8305_v36  ;;  %13501 = vst [vmem:[#allocation84_spill] sm:$0xff] %v8312_v10  ;;  %v8325_v8 = vadd.f32 %v1251_v55, %v8118_v30  ;;  %v8332_v10 = vmul.f32 %v8180_v56, %v8199_v35  ;;  %v8344_v30 = vmul.f32 %v7741_v44, %v812_v11  ;;  %v727_v35 = vld [vmem:[#allocation2 + $0x48] sm:$0x1f] }
 0x174   : > { %13502 = vst [vmem:[#allocation85_spill] sm:$0xff] %v8318_v27  ;;  %13503 = vst [vmem:[#allocation86_spill] sm:$0xff] %v8322_v47  ;;  %v8347_v55 = vmul.f32 %v7741_v44, %v813_v32  ;;  %v8350_v47 = vadd.f32 %v950_v58, %v8168_v28  ;;  %v8354_v56 = vmul.f32 %v7941_v45, %v8182_v29 }
 0x175   : > { %774 = vst.msk [vmem:[#allocation3 + $0xe3] sm:$0xff] %vm319_vm0, %v8314_v16  ;;  %13504 = vst [vmem:[#allocation87_spill] sm:$0xff] %v8332_v10  ;;  %v8363_v11 = vadd.f32 %v1051_v34, %v8171_v48  ;;  %v1252_v10 = vmul.f32 %v8055_v62, %v813_v32  ;;  %v1353_v28 = vmul.f32 %v8057_v12, %v813_v32  ;;  %v8372_v45 = vld [vmem:[#allocation3 + $0xc0] sm:$0xff] }
 0x176   : > { %13505 = vst [vmem:[#allocation88_spill] sm:$0xff] %v8336_v38  ;;  %3900 = vst.msk [vmem:[#allocation3 + $0x30] sm:$0xff] %vm319_vm0, %v3868_v2  ;;  %v8358_v38 = vld [vmem:[#allocation3 + $0xb0] sm:$0xff]  ;;  %v3884_v2 = vld [vmem:[#allocation2 + $0x81] sm:$0xff]  ;;  %v8368_v58 = vadd.f32 %v1352_v37, %v8150_v52  ;;  %v8375_v29 = vadd.f32 %v1151_v24, %v8174_v13  ;;  %v966_v48 = vmul.f32 %v7751_v51, %v8273_v31 }
 0x177   : > { %13506 = vst [vmem:[#allocation89_spill] sm:$0xff] %v8341_v39  ;;  %13507 = vst [vmem:[#allocation90_spill] sm:$0xff] %v8354_v56  ;;  %v1066_v37 = vmul.f32 %v7764_v3, %v8271_v22  ;;  %v8384_v52 = vmul.f32 %v7793_v33, %v3168_v41  ;;  %v8391_v24 = vld [vmem:[#allocation3 + $0x50] sm:$0xff]  ;;  %v8397_v34 = vmul.f32 %v7741_v44, %v8271_v22 }
 0x178   : > { %13508 = vst [vmem:[#allocation91_spill] sm:$0xff] %v8358_v38  ;;  %3131 = vst.msk [vmem:[#allocation3 + $0x40] sm:$0xff] %vm319_vm0, %v7958_v26  ;;  %v2313_v38 = vld [vmem:[#allocation2 + $0x28] sm:$0x7f]  ;;  %v965_v26 = vmul.f32 %v7751_v51, %v8271_v22  ;;  %v8393_v13 = vld [vmem:[#allocation3 + $0x58] sm:$0xff]  ;;  %v1067_v32 = vmul.f32 %v7764_v3, %v8273_v31 }
 0x179   : > { %761 = vst.msk [vmem:[#allocation3 + $0x7b] sm:$0x1f] %vm752_vm2, %v727_v35  ;;  %13509 = vst [vmem:[#allocation92_spill] sm:$0xff] %v8372_v45  ;;  %v8387_v35 = vmul.f32 %v7816_v53, %v3168_v41  ;;  %v8420_v56 = vld [vmem:[#allocation3 + $0xd8] sm:$0xff] }
 0x17a   : > { %3916 = vst.msk [vmem:[#allocation3 + $0xb0] sm:$0xff] %vm319_vm0, %v3884_v2  ;;  %13510 = vst [vmem:[#allocation93_spill] sm:$0xff] %v8384_v52  ;;  %v8401_v2 = vld [vmem:[#allocation3 + $0xd0] sm:$0xff]  ;;  %v8404_v52 = vmul.f32 %v8338_v50, %v3168_v41  ;;  %v8415_v45 = vadd.f32 %v965_v26, %v8192_v7  ;;  %v8441_v7 = vld [vmem:[#allocation3 + $0x60] sm:$0xff]  ;;  %v8454_v26 = vmul.f32 %v8055_v62, %v8271_v22 }
 0x17b   : > { %13511 = vst [vmem:[#allocation94_spill] sm:$0xff] %v8387_v35  ;;  %3147 = vst.msk [vmem:[#allocation3 + $0xc0] sm:$0xff] %vm319_vm0, %v7988_v59  ;;  %v8407_v35 = vmul.f32 %v8356_v20, %v3168_v41  ;;  %v2329_v59 = vld [vmem:[#allocation2 + $0xa8] sm:$0x7f]  ;;  %v1526_v41 = vld [vmem:[#allocation2 + $0x38] sm:$0x3f]  ;;  %v951_v27 = vmul.f32 %v7751_v51, %v8441_v7 }
 0x17c   : > { %13512 = vst [vmem:[#allocation95_spill] sm:$0xff] %v8391_v24  ;;  %13513 = vst [vmem:[#allocation96_spill] sm:$0xff] %v8393_v13 }
 0x17d   : > { %13514 = vst [vmem:[#allocation97_spill] sm:$0xff] %v8397_v34  ;;  %13515 = vst [vmem:[#allocation98_spill] sm:$0xff] %v8401_v2  ;;  %v8418_v2 = vadd.f32 %v1066_v37, %v8177_v60  ;;  %v8436_v60 = vmul.f32 %v7944_v9, %v8271_v22  ;;  %v8458_v37 = vmul.f32 %v8055_v62, %v8273_v31  ;;  %v729_v34 = vld [vmem:[#allocation2 + $0x58] sm:$0x1f] }
 0x17e   : > { %13516 = vst [vmem:[#allocation99_spill] sm:$0xff] %v8404_v52  ;;  %13517 = vst [vmem:[#allocation100_spill] sm:$0xff] %v8407_v35  ;;  %v8425_v35 = vadd.f32 %v1252_v10, %v8185_v57  ;;  %v8428_v52 = vadd.f32 %v1353_v28, %v8188_v43  ;;  %v8443_v57 = vld [vmem:[#allocation3 + $0x68] sm:$0xff]  ;;  %v8446_v43 = vadd.f32 %v966_v48, %v8195_v25  ;;  %v8465_v25 = vld [vmem:[#allocation3 + $0xe0] sm:$0xff] }
 0x17f   : > { %2345 = vst.msk [vmem:[#allocation3 + $0x51] sm:$0xff] %vm319_vm0, %v8123_v15  ;;  %13518 = vst [vmem:[#allocation101_spill] sm:$0xff] %v8415_v45  ;;  %v743_v10 = vld [vmem:[#allocation2 + $0xc8] sm:$0x1f]  ;;  %v8450_v28 = vmul.f32 %v7944_v9, %v8273_v31  ;;  %v8565_v45 = vld [vmem:[#allocation2 + $0xc0] sm:$0xff] }
 0x180   : > { %2376 = vst.msk [vmem:[#allocation3 + $0x50] sm:$0x1] %vm2373_vm6, %v13455_v4  ;;  %13519 = vst [vmem:[#allocation102_spill] sm:$0xff] %v8418_v2  ;;  %v8467_v48 = vld [vmem:[#allocation3 + $0xe8] sm:$0xff] }
 0x181   : > { %2346 = vst.msk [vmem:[#allocation3 + $0x59] sm:$0x7f] %vm2341_vm5, %v2313_v38  ;;  %13520 = vst [vmem:[#allocation103_spill] sm:$0xff] %v8420_v56  ;;  %v8432_v38 = vmul.f32 %v7741_v44, %v8273_v31  ;;  %v8477_v56 = vmul.f32 %v8057_v12, %v8271_v22 }
 0x182   : > { %2384 = vst.msk [vmem:[#allocation3 + $0xd0] sm:$0x1] %vm2373_vm6, %v13455_v4  ;;  %13522 = vst [vmem:[#allocation105_spill] sm:$0xff] %v8436_v60  ;;  %v4655_v60 = vld [vmem:[#allocation2 + $0x2] sm:$0xff] }
 0x183   : > { %13521 = vst [vmem:[#allocation104_spill] sm:$0xff] %v8432_v38  ;;  %2361 = vst.msk [vmem:[#allocation3 + $0xd1] sm:$0xff] %vm319_vm0, %v8140_v42  ;;  %v8512_v38 = vmul.f32 %v7741_v44, %v8441_v7 }
 0x184   : > { %2362 = vst.msk [vmem:[#allocation3 + $0xd9] sm:$0x7f] %vm2341_vm5, %v2329_v59  ;;  %13523 = vst [vmem:[#allocation106_spill] sm:$0xff] %v8446_v43  ;;  %v1542_v59 = vld [vmem:[#allocation2 + $0xb8] sm:$0x3f]  ;;  %v8507_v43 = vld [vmem:[#allocation3 + $0xb0] sm:$0xff] }
 0x185   : > { %13524 = vst [vmem:[#allocation107_spill] sm:$0xff] %v8450_v28  ;;  %13525 = vst [vmem:[#allocation108_spill] sm:$0xff] %v8454_v26  ;;  %v3955_v26 = vld [vmem:[#allocation3 + $0x30] sm:$0xff] }
 0x186   : > { %13526 = vst [vmem:[#allocation109_spill] sm:$0xff] %v8458_v37  ;;  %1558 = vst.msk [vmem:[#allocation3 + $0x62] sm:$0xff] %vm319_vm0, %v8305_v36  ;;  %v8470_v28 = vld [vmem:[#allocation9 + $0x14] ss:$0 sm:$0xff]  ;;  %v8473_v37 = vadd.f32 %v1067_v32, %v8226_v49  ;;  %v8490_v49 = vld [vmem:[#allocation9 + $0x1c] ss:$0 sm:$0xff]  ;;  %v8532_v2 = vmul.f32 %v7840_v63, %v3955_v26 }
 0x187   : > { %1559 = vst.msk [vmem:[#allocation3 + $0x6a] sm:$0x3f] %vm1552_vm3, %v1526_v41  ;;  %13527 = vst [vmem:[#allocation110_spill] sm:$0xff] %v8465_v25  ;;  %v8481_v41 = vmul.f32 %v8057_v12, %v8273_v31  ;;  %v8493_v32 = vld [vmem:[#allocation3 + $0x40] sm:$0xff] }
 0x188   : > { %1588 = vst.msk [vmem:[#allocation3 + $0x60] sm:$0x3] %vm1584_vm4, %v13455_v4  ;;  %13528 = vst [vmem:[#allocation111_spill] sm:$0xff] %v8467_v48 }
 0x189   : > { %777 = vst.msk [vmem:[#allocation3 + $0xfb] sm:$0x1f] %vm752_vm2, %v743_v10  ;;  %13529 = vst [vmem:[#allocation112_spill] sm:$0xff] %v8470_v28  ;;  %v3870_v10 = vld [vmem:[#allocation2 + $0x11] sm:$0xff] }
 0x18a   : > { %13530 = vst [vmem:[#allocation113_spill] sm:$0xff] %v8473_v37  ;;  %13531 = vst [vmem:[#allocation114_spill] sm:$0xff] %v8477_v56  ;;  %v8501_v56 = vmul.f32 %v8072_v23, %v8273_v31  ;;  %v1152_v37 = vmul.f32 %v7944_v9, %v8441_v7  ;;  %v8520_v31 = vmul.f32 %v7751_v51, %v8443_v57  ;;  %v8540_v51 = vld [vmem:[#allocation3 + $0xc0] sm:$0xff] }
 0x18b   : > { %13532 = vst [vmem:[#allocation115_spill] sm:$0xff] %v8481_v41  ;;  %1574 = vst.msk [vmem:[#allocation3 + $0xe2] sm:$0xff] %vm319_vm0, %v8314_v16  ;;  %v8497_v41 = vmul.f32 %v8072_v23, %v8271_v22  ;;  %v8516_v22 = vmul.f32 %v7741_v44, %v8443_v57  ;;  %v8537_v44 = vld [vmem:[#allocation9 + $0x24] ss:$0 sm:$0xff] }
 0x18c   : > { %1575 = vst.msk [vmem:[#allocation3 + $0xea] sm:$0x3f] %vm1552_vm3, %v1542_v59  ;;  %13533 = vst [vmem:[#allocation116_spill] sm:$0xff] %v8490_v49  ;;  %v1052_v59 = vmul.f32 %v7764_v3, %v8441_v7 }
 0x18d   : > { %1596 = vst.msk [vmem:[#allocation3 + $0xe0] sm:$0x3] %vm1584_vm4, %v13455_v4  ;;  %13534 = vst [vmem:[#allocation117_spill] sm:$0xff] %v8497_v41  ;;  %v8526_v41 = vld [vmem:[#allocation2 + $0x40] sm:$0xff] }
 0x18e   : > { %4687 = vst.msk [vmem:[#allocation3 + $0x30] sm:$0xff] %vm319_vm0, %v4655_v60  ;;  %13535 = vst [vmem:[#allocation118_spill] sm:$0xff] %v8501_v56  ;;  %v4671_v60 = vld [vmem:[#allocation2 + $0x82] sm:$0xff]  ;;  %v8524_v56 = vmul.f32 %v7764_v3, %v8443_v57  ;;  %v1153_v3 = vmul.f32 %v7944_v9, %v8443_v57  ;;  %v8563_v9 = vadd.f32 %v951_v27, %v8344_v30  ;;  %v2315_v27 = vld [vmem:[#allocation2 + $0x38] sm:$0x7f] }
 0x18f   : > { %13536 = vst [vmem:[#allocation119_spill] sm:$0xff] %v8507_v43  ;;  %3902 = vst.msk [vmem:[#allocation3 + $0x40] sm:$0xff] %vm319_vm0, %v3870_v10  ;;  %v8529_v10 = vmul.f32 %v7818_v54, %v3955_v26  ;;  %v8584_v30 = vadd.f32 %v1052_v59, %v8296_v6  ;;  %v1253_v6 = vmul.f32 %v8055_v62, %v8441_v7  ;;  %v8605_v59 = vld [vmem:[#allocation3 + $0x60] sm:$0xff] }
 0x190   : > { %13537 = vst [vmem:[#allocation120_spill] sm:$0xff] %v8512_v38  ;;  %13538 = vst [vmem:[#allocation121_spill] sm:$0xff] %v8516_v22  ;;  %v8535_v38 = vmul.f32 %v8470_v28, %v3955_v26  ;;  %v3886_v22 = vld [vmem:[#allocation2 + $0x91] sm:$0xff] }
 0x191   : > { %13539 = vst [vmem:[#allocation122_spill] sm:$0xff] %v8529_v10  ;;  %13540 = vst [vmem:[#allocation123_spill] sm:$0xff] %v8532_v2  ;;  %v8547_v10 = vmul.f32 %v8490_v49, %v3955_v26  ;;  %v8549_v2 = vld [vmem:[#allocation9 + $0x2c] ss:$0 sm:$0xff]  ;;  %v8567_v26 = vld [vmem:[#allocation9 + $0x34] ss:$0 sm:$0xff]  ;;  %v8647_v18 = vadd.f32 %v1253_v6, %v8302_v21 }
 0x192   : > { %13541 = vst [vmem:[#allocation124_spill] sm:$0xff] %v8535_v38  ;;  %4703 = vst.msk [vmem:[#allocation3 + $0xb0] sm:$0xff] %vm319_vm0, %v4671_v60  ;;  %v8553_v38 = vmul.f32 %v7793_v33, %v8493_v32  ;;  %v8557_v60 = vmul.f32 %v7816_v53, %v8493_v32  ;;  %v8575_v33 = vmul.f32 %v8356_v20, %v8493_v32  ;;  %v8577_v53 = vld [vmem:[#allocation9 + $0x23] ss:$0 sm:$0xff]  ;;  %v8663_v21 = vld [vmem:[#allocation9 + $0x35] ss:$0 sm:$0xff] }
 0x193   : > { %13542 = vst [vmem:[#allocation125_spill] sm:$0xff] %v8540_v51  ;;  %760 = vst.msk [vmem:[#allocation3 + $0x73] sm:$0xff] %vm319_vm0, %v8526_v41  ;;  %v8560_v51 = vld [vmem:[#allocation3 + $0x50] sm:$0xff]  ;;  %v8640_v48 = vmul.f32 %v8567_v26, %v8507_v43  ;;  %v8644_v25 = vmul.f32 %v8577_v53, %v8493_v32 }
 0x194   : > { %13543 = vst [vmem:[#allocation126_spill] sm:$0xff] %v8547_v10  ;;  %13544 = vst [vmem:[#allocation127_spill] sm:$0xff] %v8553_v38  ;;  %v8571_v10 = vmul.f32 %v8338_v50, %v8493_v32  ;;  %v8595_v38 = vmul.f32 %v7840_v63, %v8507_v43  ;;  %v8659_v32 = vld [vmem:[#allocation9 + $0x25] ss:$0 sm:$0xff]  ;;  %v4673_v6 = vld [vmem:[#allocation2 + $0x92] sm:$0xff] }
 0x195   : > { %13545 = vst [vmem:[#allocation128_spill] sm:$0xff] %v8557_v60  ;;  %3918 = vst.msk [vmem:[#allocation3 + $0xc0] sm:$0xff] %vm319_vm0, %v3886_v22  ;;  %v8581_v22 = vld [vmem:[#allocation3 + $0xd0] sm:$0xff]  ;;  %v8587_v60 = vadd.f32 %v1152_v37, %v8299_v40  ;;  %v1254_v40 = vmul.f32 %v8055_v62, %v8443_v57  ;;  %v1354_v37 = vmul.f32 %v8057_v12, %v8441_v7 }
 0x196   : > { %13546 = vst [vmem:[#allocation129_spill] sm:$0xff] %v8560_v51  ;;  %13547 = vst [vmem:[#allocation130_spill] sm:$0xff] %v8563_v9  ;;  %v8621_v62 = vmul.f32 %v8537_v44, %v8507_v43  ;;  %v8627_v9 = vld [vmem:[#allocation9 + $0x29] ss:$0 sm:$0xff] }
 0x197   : > { %13548 = vst [vmem:[#allocation131_spill] sm:$0xff] %v8571_v10  ;;  %13549 = vst [vmem:[#allocation132_spill] sm:$0xff] %v8575_v33  ;;  %v8591_v10 = vld [vmem:[#allocation9 + $0x15] ss:$0 sm:$0xff]  ;;  %v5442_v33 = vld [vmem:[#allocation2 + $0x3] sm:$0xff] }
 0x198   : > { %13550 = vst [vmem:[#allocation133_spill] sm:$0xff] %v8577_v53  ;;  %3133 = vst.msk [vmem:[#allocation3 + $0x50] sm:$0xff] %vm319_vm0, %v8123_v15  ;;  %v2331_v15 = vld [vmem:[#allocation2 + $0xb8] sm:$0x7f] }
 0x199   : > { %13551 = vst [vmem:[#allocation134_spill] sm:$0xff] %v8581_v22  ;;  %13552 = vst [vmem:[#allocation135_spill] sm:$0xff] %v8584_v30  ;;  %v8607_v22 = vld [vmem:[#allocation3 + $0x68] sm:$0xff]  ;;  %v8625_v30 = vmul.f32 %v8549_v2, %v8507_v43 }
 0x19a   : > { %13553 = vst [vmem:[#allocation136_spill] sm:$0xff] %v8587_v60  ;;  %776 = vst.msk [vmem:[#allocation3 + $0xf3] sm:$0xff] %vm319_vm0, %v8565_v45  ;;  %v8609_v60 = vld [vmem:[#allocation9 + $0x1d] ss:$0 sm:$0xff] }
 0x19b   : > { %13554 = vst [vmem:[#allocation137_spill] sm:$0xff] %v8595_v38  ;;  %3149 = vst.msk [vmem:[#allocation3 + $0xd0] sm:$0xff] %vm319_vm0, %v8140_v42  ;;  %v8613_v38 = vmul.f32 %v8470_v28, %v8507_v43  ;;  %v8617_v42 = vmul.f32 %v8490_v49, %v8507_v43  ;;  %v8680_v43 = vld [vmem:[#allocation3 + $0xb0] sm:$0xff] }
 0x19c   : > { %13555 = vst [vmem:[#allocation138_spill] sm:$0xff] %v8605_v59  ;;  %13556 = vst [vmem:[#allocation139_spill] sm:$0xff] %v8607_v22 }
 0x19d   : > { %13557 = vst [vmem:[#allocation140_spill] sm:$0xff] %v8613_v38  ;;  %13558 = vst [vmem:[#allocation141_spill] sm:$0xff] %v8617_v42  ;;  %v8634_v38 = vld [vmem:[#allocation3 + $0xe0] sm:$0xff]  ;;  %v8636_v42 = vld [vmem:[#allocation3 + $0xe8] sm:$0xff] }
 0x19e   : > { %13559 = vst [vmem:[#allocation142_spill] sm:$0xff] %v8621_v62  ;;  %13560 = vst [vmem:[#allocation143_spill] sm:$0xff] %v8625_v30  ;;  %v4742_v62 = vld [vmem:[#allocation3 + $0x30] sm:$0xff]  ;;  %v5458_v30 = vld [vmem:[#allocation2 + $0x83] sm:$0xff] }
 0x19f   : > { %13561 = vst [vmem:[#allocation144_spill] sm:$0xff] %v8627_v9  ;;  %2347 = vst.msk [vmem:[#allocation3 + $0x61] sm:$0xff] %vm319_vm0, %v8305_v36 }
 0x1a0   : > { %2377 = vst.msk [vmem:[#allocation3 + $0x60] sm:$0x1] %vm2373_vm6, %v13455_v4  ;;  %13562 = vst [vmem:[#allocation145_spill] sm:$0xff] %v8634_v38  ;;  %v8825_v38 = vld [vmem:[#allocation9 + $0x26] ss:$0 sm:$0xff] }
 0x1a1   : > { %2348 = vst.msk [vmem:[#allocation3 + $0x69] sm:$0x7f] %vm2341_vm5, %v2315_v27  ;;  %13563 = vst [vmem:[#allocation146_spill] sm:$0xff] %v8636_v42  ;;  %v8650_v27 = vadd.f32 %v1354_v37, %v8325_v8  ;;  %v3957_v8 = vld [vmem:[#allocation3 + $0x40] sm:$0xff]  ;;  %v8667_v37 = vadd.f32 %v8520_v31, %v8347_v55  ;;  %v8684_v42 = vadd.f32 %v1254_v40, %v8375_v29 }
 0x1a2   : > { %13564 = vst [vmem:[#allocation147_spill] sm:$0xff] %v8640_v48  ;;  %13565 = vst [vmem:[#allocation148_spill] sm:$0xff] %v8644_v25  ;;  %v8661_v48 = vld [vmem:[#allocation9 + $0x2d] ss:$0 sm:$0xff]  ;;  %v8671_v25 = vadd.f32 %v8524_v56, %v8350_v47  ;;  %v1455_v55 = vmul.f32 %v8072_v23, %v8441_v7  ;;  %v8690_v47 = vmul.f32 %v8072_v23, %v8443_v57  ;;  %v8710_v23 = vld [vmem:[#allocation3 + $0xc0] sm:$0xff] }
 0x1a3   : > { %2363 = vst.msk [vmem:[#allocation3 + $0xe1] sm:$0xff] %vm319_vm0, %v8314_v16  ;;  %5474 = vst.msk [vmem:[#allocation3 + $0x30] sm:$0xff] %vm319_vm0, %v5442_v33  ;;  %v8678_v33 = vmul.f32 %v8057_v12, %v8443_v57  ;;  %v8694_v56 = vmul.f32 %v8627_v9, %v8391_v24  ;;  %v8696_v12 = vld [vmem:[#allocation3 + $0x70] sm:$0xff]  ;;  %v8704_v29 = vmul.f32 %v7849_v5, %v4742_v62  ;;  %v3872_v57 = vld [vmem:[#allocation2 + $0x21] sm:$0xff] }
 0x1a4   : > { %2385 = vst.msk [vmem:[#allocation3 + $0xe0] sm:$0x1] %vm2373_vm6, %v13455_v4  ;;  %13566 = vst [vmem:[#allocation149_spill] sm:$0xff] %v8680_v43  ;;  %v8707_v7 = vmul.f32 %v8591_v10, %v4742_v62  ;;  %v8714_v31 = vmul.f32 %v8627_v9, %v8393_v13  ;;  %v8728_v40 = vmul.f32 %v7840_v63, %v3957_v8  ;;  %v4659_v9 = vld [vmem:[#allocation2 + $0x22] sm:$0xff]  ;;  %v13650_v13 = vld [vmem:[#allocation30_spill] sm:$0xff] }
 0x1a5   : > { %2364 = vst.msk [vmem:[#allocation3 + $0xe9] sm:$0x7f] %vm2341_vm5, %v2331_v15  ;;  %v1528_v15 = vld [vmem:[#allocation2 + $0x48] sm:$0x3f]  ;;  %13568 = vst [vmem:[#allocation151_spill] sm:$0xff] %v8704_v29  ;;  %v3172_v29 = vld [vmem:[#allocation3 + $0x50] sm:$0xff]  ;;  %v8748_v63 = vmul.f32 %v8609_v60, %v8680_v43 }
 0x1a6   : > { %763 = vst.msk [vmem:[#allocation3 + $0x8b] sm:$0x1f] %vm752_vm2, %v729_v34  ;;  %v8674_v34 = vadd.f32 %v1153_v3, %v8363_v11  ;;  %v8698_v11 = vld [vmem:[#allocation3 + $0x78] sm:$0xff]  ;;  %13569 = vst [vmem:[#allocation152_spill] sm:$0xff] %v8707_v7  ;;  %v1544_v3 = vld [vmem:[#allocation2 + $0xc8] sm:$0x3f]  ;;  %v8731_v7 = vmul.f32 %v8470_v28, %v3957_v8 }
 0x1a7   : > { %4689 = vst.msk [vmem:[#allocation3 + $0x40] sm:$0xff] %vm319_vm0, %v4657_v14  ;;  %v8701_v14 = vmul.f32 %v7842_v0, %v4742_v62  ;;  %5490 = vst.msk [vmem:[#allocation3 + $0xb0] sm:$0xff] %vm319_vm0, %v5458_v30  ;;  %v8722_v0 = vmul.f32 %v8609_v60, %v4742_v62  ;;  %v8725_v30 = vmul.f32 %v7818_v54, %v3957_v8 }
 0x1a8   : > { %13570 = vst [vmem:[#allocation153_spill] sm:$0xff] %v8710_v23  ;;  %1560 = vst.msk [vmem:[#allocation3 + $0x72] sm:$0xff] %vm319_vm0, %v8526_v41  ;;  %v8740_v62 = vmul.f32 %v7849_v5, %v8680_v43  ;;  %v8744_v54 = vmul.f32 %v8591_v10, %v8680_v43  ;;  %v745_v5 = vld [vmem:[#allocation2 + $0xd8] sm:$0x1f] }
 0x1a9   : > { %13567 = vst [vmem:[#allocation150_spill] sm:$0xff] %v8701_v14  ;;  %1561 = vst.msk [vmem:[#allocation3 + $0x7a] sm:$0x3f] %vm1552_vm3, %v1528_v15  ;;  %v8734_v14 = vld [vmem:[#allocation3 + $0xf0] sm:$0xff]  ;;  %v8736_v15 = vld [vmem:[#allocation3 + $0xf8] sm:$0xff] }
 0x1aa   : > { %1589 = vst.msk [vmem:[#allocation3 + $0x70] sm:$0x3] %vm1584_vm4, %v13455_v4  ;;  %13571 = vst [vmem:[#allocation154_spill] sm:$0xff] %v8722_v0  ;;  %v8751_v0 = vmul.f32 %v8490_v49, %v3957_v8 }
 0x1ab   : > { %13572 = vst [vmem:[#allocation155_spill] sm:$0xff] %v8725_v30  ;;  %13573 = vst [vmem:[#allocation156_spill] sm:$0xff] %v8728_v40  ;;  %v8781_v40 = vld [vmem:[#allocation3 + $0x60] sm:$0xff]  ;;  %v5444_v30 = vld [vmem:[#allocation2 + $0x13] sm:$0xff] }
 0x1ac   : > { %13574 = vst [vmem:[#allocation157_spill] sm:$0xff] %v8731_v7  ;;  %4705 = vst.msk [vmem:[#allocation3 + $0xc0] sm:$0xff] %vm319_vm0, %v4673_v6  ;;  %v8754_v6 = vld [vmem:[#allocation3 + $0xd0] sm:$0xff]  ;;  %v3888_v7 = vld [vmem:[#allocation2 + $0xa1] sm:$0xff] }
 0x1ad   : > { %13575 = vst [vmem:[#allocation158_spill] sm:$0xff] %v8734_v14  ;;  %13576 = vst [vmem:[#allocation159_spill] sm:$0xff] %v8736_v15  ;;  %v2317_v15 = vld [vmem:[#allocation2 + $0x48] sm:$0x7f] }
 0x1ae   : > { %13577 = vst [vmem:[#allocation160_spill] sm:$0xff] %v8740_v62  ;;  %13578 = vst [vmem:[#allocation161_spill] sm:$0xff] %v8744_v54  ;;  %v8761_v54 = vld [vmem:[#allocation9 + $0x16] ss:$0 sm:$0xff]  ;;  %v8773_v62 = vmul.f32 %v8663_v21, %v8680_v43 }
 0x1af   : > { %13579 = vst [vmem:[#allocation162_spill] sm:$0xff] %v8748_v63  ;;  %13580 = vst [vmem:[#allocation163_spill] sm:$0xff] %v8751_v0  ;;  %v8765_v63 = vmul.f32 %v8659_v32, %v8680_v43  ;;  %v8778_v0 = vld [vmem:[#allocation9 + $0x2b] ss:$0 sm:$0xff]  ;;  %v5644_v14 = vld [vmem:[#allocation3 + $0xb0] sm:$0xff] }
 0x1b0   : > { %3904 = vst.msk [vmem:[#allocation3 + $0x50] sm:$0xff] %vm319_vm0, %v3872_v57  ;;  %13581 = vst [vmem:[#allocation164_spill] sm:$0xff] %v8754_v6  ;;  %v8769_v57 = vmul.f32 %v8661_v48, %v8680_v43  ;;  %v8819_v6 = vld [vmem:[#allocation3 + $0x38] sm:$0xff] }
 0x1b1   : > { %1576 = vst.msk [vmem:[#allocation3 + $0xf2] sm:$0xff] %vm319_vm0, %v8565_v45  ;;  %13582 = vst [vmem:[#allocation165_spill] sm:$0xff] %v8765_v63  ;;  %v8784_v63 = vld [vmem:[#allocation9 + $0x1e] ss:$0 sm:$0xff] }
 0x1b2   : > { %1577 = vst.msk [vmem:[#allocation3 + $0xfa] sm:$0x3f] %vm1552_vm3, %v1544_v3  ;;  %13583 = vst [vmem:[#allocation166_spill] sm:$0xff] %v8769_v57  ;;  %v8776_v3 = vmul.f32 %v8537_v44, %v3957_v8  ;;  %v8788_v57 = vmul.f32 %v8470_v28, %v8710_v23  ;;  %v8796_v8 = vmul.f32 %v8537_v44, %v8710_v23 }
 0x1b3   : > { %1597 = vst.msk [vmem:[#allocation3 + $0xf0] sm:$0x3] %vm1584_vm4, %v13455_v4  ;;  %13584 = vst [vmem:[#allocation167_spill] sm:$0xff] %v8773_v62  ;;  %v8792_v62 = vmul.f32 %v8490_v49, %v8710_v23 }
 0x1b4   : > { %13585 = vst [vmem:[#allocation168_spill] sm:$0xff] %v8776_v3  ;;  %13586 = vst [vmem:[#allocation169_spill] sm:$0xff] %v8778_v0  ;;  %v8801_v3 = vld [vmem:[#allocation9 + $0x31] ss:$0 sm:$0xff] }
 0x1b5   : > { %3920 = vst.msk [vmem:[#allocation3 + $0xd0] sm:$0xff] %vm319_vm0, %v3888_v7  ;;  %13587 = vst [vmem:[#allocation170_spill] sm:$0xff] %v8781_v40  ;;  %v8799_v7 = vadd.f32 %v1455_v55, %v8368_v58  ;;  %v5529_v40 = vld [vmem:[#allocation3 + $0x30] sm:$0xff]  ;;  %v7118_v58 = vld [vmem:[#allocation9 + $0xb] ss:$0 sm:$0xff] }
 0x1b6   : > { %779 = vst.msk [vmem:[#allocation3 + $0x10b] sm:$0x1f] %vm752_vm2, %v745_v5  ;;  %13588 = vst [vmem:[#allocation171_spill] sm:$0xff] %v8788_v57  ;;  %v8805_v5 = vld [vmem:[#allocation3 + $0xe0] sm:$0xff]  ;;  %v8809_v57 = vmul.f32 %v8549_v2, %v8710_v23  ;;  %v8817_v55 = vmul.f32 %v7118_v58, %v3172_v29  ;;  %v8835_v58 = vmul.f32 %v8356_v20, %v3172_v29 }
 0x1b7   : > { %13589 = vst [vmem:[#allocation172_spill] sm:$0xff] %v8792_v62  ;;  %13590 = vst [vmem:[#allocation173_spill] sm:$0xff] %v8796_v8  ;;  %v8813_v62 = vmul.f32 %v8567_v26, %v8710_v23  ;;  %v7117_v8 = vld [vmem:[#allocation9 + $0x3] ss:$0 sm:$0xff]  ;;  %v8829_v23 = vld [vmem:[#allocation9 + $0x36] ss:$0 sm:$0xff] }
 0x1b8   : > { %13591 = vst [vmem:[#allocation174_spill] sm:$0xff] %v8801_v3  ;;  %3135 = vst.msk [vmem:[#allocation3 + $0x60] sm:$0xff] %vm319_vm0, %v8305_v36  ;;  %v8815_v43 = vmul.f32 %v7117_v8, %v3172_v29  ;;  %v8823_v36 = vld [vmem:[#allocation2 + $0x50] sm:$0xff] }
 0x1b9   : > { %13592 = vst [vmem:[#allocation175_spill] sm:$0xff] %v8805_v5  ;;  %13593 = vst [vmem:[#allocation176_spill] sm:$0xff] %v8809_v57  ;;  %v3098_v5 = vld [vmem:[#allocation2 + $0x8] sm:$0xff]  ;;  %v5460_v8 = vld [vmem:[#allocation2 + $0x93] sm:$0xff] }
 0x1ba   : > { %13594 = vst [vmem:[#allocation177_spill] sm:$0xff] %v8813_v62  ;;  %13595 = vst [vmem:[#allocation178_spill] sm:$0xff] %v8815_v43  ;;  %v8827_v57 = vld [vmem:[#allocation9 + $0x2e] ss:$0 sm:$0xff]  ;;  %v4744_v62 = vld [vmem:[#allocation3 + $0x40] sm:$0xff]  ;;  %v8832_v43 = vmul.f32 %v8338_v50, %v3172_v29  ;;  %v8848_v50 = vadd.f32 %v8678_v33, %v8425_v35  ;;  %v8870_v33 = vmul.f32 %v7872_v19, %v5529_v40 }
 0x1bb   : > { %13596 = vst [vmem:[#allocation179_spill] sm:$0xff] %v8817_v55  ;;  %13597 = vst [vmem:[#allocation180_spill] sm:$0xff] %v8819_v6  ;;  %v8838_v55 = vmul.f32 %v8577_v53, %v3172_v29  ;;  %v8886_v19 = vld [vmem:[#allocation3 + $0x38] sm:$0xff] }
 0x1bc   : > { %3151 = vst.msk [vmem:[#allocation3 + $0xe0] sm:$0xff] %vm319_vm0, %v8314_v16  ;;  %13598 = vst [vmem:[#allocation181_spill] sm:$0xff] %v8832_v43  ;;  %v8841_v16 = vmul.f32 %v8778_v0, %v3172_v29  ;;  %v8858_v29 = vmul.f32 %v8801_v3, %v8607_v22  ;;  %v8862_v43 = vld [vmem:[#allocation3 + $0x78] sm:$0xff]  ;;  %v8916_v22 = vmul.f32 %v8761_v54, %v5644_v14 }
 0x1bd   : > { %13599 = vst [vmem:[#allocation182_spill] sm:$0xff] %v8835_v58  ;;  %13600 = vst [vmem:[#allocation183_spill] sm:$0xff] %v8838_v55  ;;  %v1488_v58 = vadd.f32 %v8690_v47, %v8428_v52  ;;  %v8854_v55 = vmul.f32 %v8801_v3, %v8605_v59  ;;  %v8873_v52 = vmul.f32 %v8761_v54, %v5529_v40  ;;  %v8875_v47 = vld [vmem:[#allocation3 + $0xc0] sm:$0xff] }
 0x1be   : > { %13601 = vst [vmem:[#allocation184_spill] sm:$0xff] %v8841_v16  ;;  %762 = vst.msk [vmem:[#allocation3 + $0x83] sm:$0xff] %vm319_vm0, %v8823_v36  ;;  %v8860_v16 = vld [vmem:[#allocation3 + $0x70] sm:$0xff]  ;;  %v8879_v3 = vmul.f32 %v8239_v61, %v8819_v6  ;;  %v8896_v61 = vld [vmem:[#allocation9 + $0xd] ss:$0 sm:$0xff] }
 0x1bf   : > { %5476 = vst.msk [vmem:[#allocation3 + $0x40] sm:$0xff] %vm319_vm0, %v5444_v30  ;;  %13602 = vst [vmem:[#allocation185_spill] sm:$0xff] %v8860_v16  ;;  %v8864_v30 = vld [vmem:[#allocation9 + $0x6] ss:$0 sm:$0xff]  ;;  %v2333_v16 = vld [vmem:[#allocation2 + $0xc8] sm:$0x7f]  ;;  %v8899_v6 = vmul.f32 %v8896_v61, %v4744_v62 }
 0x1c0   : > { %13603 = vst [vmem:[#allocation186_spill] sm:$0xff] %v8862_v43  ;;  %v8867_v35 = vmul.f32 %v8864_v30, %v5529_v40  ;;  %13605 = vst [vmem:[#allocation188_spill] sm:$0xff] %v8870_v33  ;;  %v8889_v33 = vmul.f32 %v8784_v63, %v5529_v40  ;;  %v8902_v43 = vmul.f32 %v8591_v10, %v4744_v62  ;;  %v8907_v40 = vld [vmem:[#allocation3 + $0xf8] sm:$0xff] }
 0x1c1   : > { %13606 = vst [vmem:[#allocation189_spill] sm:$0xff] %v8873_v52  ;;  %13607 = vst [vmem:[#allocation190_spill] sm:$0xff] %v8875_v47  ;;  %v8891_v52 = vld [vmem:[#allocation9 + $0x5] ss:$0 sm:$0xff] }
 0x1c2   : > { %13604 = vst [vmem:[#allocation187_spill] sm:$0xff] %v8867_v35  ;;  %2349 = vst.msk [vmem:[#allocation3 + $0x71] sm:$0xff] %vm319_vm0, %v8526_v41  ;;  %v8894_v35 = vmul.f32 %v8891_v52, %v4744_v62 }
 0x1c3   : > { %2378 = vst.msk [vmem:[#allocation3 + $0x70] sm:$0x1] %vm2373_vm6, %v13455_v4  ;;  %13608 = vst [vmem:[#allocation191_spill] sm:$0xff] %v8886_v19  ;;  %v8905_v19 = vld [vmem:[#allocation3 + $0xf0] sm:$0xff] }
 0x1c4   : > { %2350 = vst.msk [vmem:[#allocation3 + $0x79] sm:$0x7f] %vm2341_vm5, %v2317_v15  ;;  %13609 = vst [vmem:[#allocation192_spill] sm:$0xff] %v8889_v33  ;;  %v3959_v15 = vld [vmem:[#allocation3 + $0x50] sm:$0xff]  ;;  %v8910_v33 = vld [vmem:[#allocation9 + $0xe] ss:$0 sm:$0xff] }
 0x1c5   : > { %13610 = vst [vmem:[#allocation193_spill] sm:$0xff] %v8894_v35  ;;  %13611 = vst [vmem:[#allocation194_spill] sm:$0xff] %v8899_v6  ;;  %v8913_v35 = vmul.f32 %v8910_v33, %v5644_v14  ;;  %v8919_v6 = vmul.f32 %v8784_v63, %v5644_v14 }
 0x1c6   : > { %13612 = vst [vmem:[#allocation195_spill] sm:$0xff] %v8902_v43  ;;  %5492 = vst.msk [vmem:[#allocation3 + $0xc0] sm:$0xff] %vm319_vm0, %v5460_v8  ;;  %v8922_v8 = vmul.f32 %v8609_v60, %v4744_v62  ;;  %v8925_v43 = vld [vmem:[#allocation3 + $0xd0] sm:$0xff]  ;;  %v5531_v59 = vld [vmem:[#allocation3 + $0x40] sm:$0xff] }
 0x1c7   : > { %13613 = vst [vmem:[#allocation196_spill] sm:$0xff] %v8905_v19  ;;  %13614 = vst [vmem:[#allocation197_spill] sm:$0xff] %v8907_v40  ;;  %v4675_v40 = vld [vmem:[#allocation2 + $0xa2] sm:$0xff]  ;;  %v8947_v19 = vld [vmem:[#allocation2 + $0xd0] sm:$0xff] }
 0x1c8   : > { %3130 = vst.msk [vmem:[#allocation3 + $0x38] sm:$0xff] %vm319_vm0, %v3098_v5  ;;  %13615 = vst [vmem:[#allocation198_spill] sm:$0xff] %v8913_v35  ;;  %v8933_v5 = vmul.f32 %v8825_v38, %v5644_v14  ;;  %v8945_v35 = vld [vmem:[#allocation3 + $0x60] sm:$0xff] }
 0x1c9   : > { %13616 = vst [vmem:[#allocation199_spill] sm:$0xff] %v8916_v22  ;;  %13617 = vst [vmem:[#allocation200_spill] sm:$0xff] %v8919_v6  ;;  %v8936_v6 = vmul.f32 %v8827_v57, %v5644_v14  ;;  %v8939_v22 = vmul.f32 %v8829_v23, %v5644_v14  ;;  %v8959_v14 = vmul.f32 %v8659_v32, %v8875_v47 }
 0x1ca   : > { %13618 = vst [vmem:[#allocation201_spill] sm:$0xff] %v8922_v8  ;;  %4691 = vst.msk [vmem:[#allocation3 + $0x50] sm:$0xff] %vm319_vm0, %v4659_v9  ;;  %v8942_v9 = vmul.f32 %v8659_v32, %v4744_v62  ;;  %v3874_v8 = vld [vmem:[#allocation2 + $0x31] sm:$0xff]  ;;  %v8963_v62 = vmul.f32 %v8661_v48, %v8875_v47 }
 0x1cb   : > { %13619 = vst [vmem:[#allocation202_spill] sm:$0xff] %v8925_v43  ;;  %2365 = vst.msk [vmem:[#allocation3 + $0xf1] sm:$0xff] %vm319_vm0, %v8565_v45 }
 0x1cc   : > { %2386 = vst.msk [vmem:[#allocation3 + $0xf0] sm:$0x1] %vm2373_vm6, %v13455_v4  ;;  %13620 = vst [vmem:[#allocation203_spill] sm:$0xff] %v8933_v5  ;;  %v8972_v5 = vmul.f32 %v8663_v21, %v8875_v47 }
 0x1cd   : > { %2366 = vst.msk [vmem:[#allocation3 + $0xf9] sm:$0x7f] %vm2341_vm5, %v2333_v16  ;;  %13621 = vst [vmem:[#allocation204_spill] sm:$0xff] %v8936_v6  ;;  %v8951_v16 = vmul.f32 %v8591_v10, %v8875_v47  ;;  %v8955_v6 = vmul.f32 %v8609_v60, %v8875_v47  ;;  %v8987_v47 = vld [vmem:[#allocation9 + $0xc] ss:$0 sm:$0xff] }
 0x1ce   : > { %13622 = vst [vmem:[#allocation205_spill] sm:$0xff] %v8939_v22  ;;  %13623 = vst [vmem:[#allocation206_spill] sm:$0xff] %v8942_v9  ;;  %v3890_v22 = vld [vmem:[#allocation2 + $0xb1] sm:$0xff]  ;;  %v8974_v9 = vld [vmem:[#allocation9 + $0x4] ss:$0 sm:$0xff] }
 0x1cf   : > { %4707 = vst.msk [vmem:[#allocation3 + $0xd0] sm:$0xff] %vm319_vm0, %v4675_v40  ;;  %13624 = vst [vmem:[#allocation207_spill] sm:$0xff] %v8945_v35  ;;  %v8966_v40 = vld [vmem:[#allocation3 + $0xe0] sm:$0xff] }
 0x1d0   : > { %13625 = vst [vmem:[#allocation208_spill] sm:$0xff] %v8951_v16  ;;  %13626 = vst [vmem:[#allocation209_spill] sm:$0xff] %v8955_v6  ;;  %v1530_v6 = vld [vmem:[#allocation2 + $0x58] sm:$0x3f]  ;;  %v8983_v16 = vld [vmem:[#allocation3 + $0x80] sm:$0xff] }
 0x1d1   : > { %13627 = vst [vmem:[#allocation210_spill] sm:$0xff] %v8959_v14  ;;  %13628 = vst [vmem:[#allocation211_spill] sm:$0xff] %v8963_v62  ;;  %v8977_v14 = vmul.f32 %v8974_v9, %v3959_v15  ;;  %v1670_v62 = vadd.f32 %v7902_v46, %v8799_v7  ;;  %v8996_v46 = vmul.f32 %v8490_v49, %v3959_v15  ;;  %v3869_v7 = vld [vmem:[#allocation2 + $0x9] sm:$0x7f] }
 0x1d2   : > { %3906 = vst.msk [vmem:[#allocation3 + $0x60] sm:$0xff] %vm319_vm0, %v3874_v8  ;;  %13629 = vst [vmem:[#allocation212_spill] sm:$0xff] %v8966_v40  ;;  %v1671_v8 = vadd.f32 %v7916_v1, %v1488_v58  ;;  %v8985_v40 = vld [vmem:[#allocation3 + $0x88] sm:$0xff]  ;;  %v8999_v1 = vmul.f32 %v8537_v44, %v3959_v15  ;;  %v9009_v58 = vmul.f32 %v8549_v2, %v3959_v15 }
 0x1d3   : > { %778 = vst.msk [vmem:[#allocation3 + $0x103] sm:$0xff] %vm319_vm0, %v8947_v19  ;;  %13630 = vst [vmem:[#allocation213_spill] sm:$0xff] %v8972_v5  ;;  %v8990_v5 = vmul.f32 %v8987_v47, %v3959_v15 }
 0x1d4   : > { %13631 = vst [vmem:[#allocation214_spill] sm:$0xff] %v8974_v9  ;;  %13632 = vst [vmem:[#allocation215_spill] sm:$0xff] %v8977_v14  ;;  %v8993_v14 = vmul.f32 %v8470_v28, %v3959_v15  ;;  %v9029_v15 = vmul.f32 %v8567_v26, %v8925_v43 }
 0x1d5   : > { %3922 = vst.msk [vmem:[#allocation3 + $0xe0] sm:$0xff] %vm319_vm0, %v3890_v22  ;;  %13633 = vst [vmem:[#allocation216_spill] sm:$0xff] %v8983_v16  ;;  %v9001_v22 = vld [vmem:[#allocation9 + $0x22] ss:$0 sm:$0xff]  ;;  %v5446_v16 = vld [vmem:[#allocation2 + $0x23] sm:$0xff] }
 0x1d6   : > { %13634 = vst [vmem:[#allocation217_spill] sm:$0xff] %v8985_v40  ;;  %13635 = vst [vmem:[#allocation218_spill] sm:$0xff] %v8987_v47  ;;  %v5745_v40 = vld [vmem:[#allocation3 + $0xc0] sm:$0xff] }
 0x1d7   : > { %13636 = vst [vmem:[#allocation219_spill] sm:$0xff] %v8990_v5  ;;  %13637 = vst [vmem:[#allocation220_spill] sm:$0xff] %v8993_v14  ;;  %v9021_v14 = vmul.f32 %v8549_v2, %v8925_v43  ;;  %v9025_v5 = vld [vmem:[#allocation3 + $0x70] sm:$0xff] }
 0x1d8   : > { %13638 = vst [vmem:[#allocation221_spill] sm:$0xff] %v8996_v46  ;;  %13639 = vst [vmem:[#allocation222_spill] sm:$0xff] %v8999_v1  ;;  %v9013_v46 = vmul.f32 %v8490_v49, %v8925_v43  ;;  %v9017_v1 = vmul.f32 %v8537_v44, %v8925_v43  ;;  %v4746_v43 = vld [vmem:[#allocation3 + $0x50] sm:$0xff] }
 0x1d9   : > { %13640 = vst [vmem:[#allocation223_spill] sm:$0xff] %v9001_v22  ;;  %1562 = vst.msk [vmem:[#allocation3 + $0x82] sm:$0xff] %vm319_vm0, %v8823_v36 }
 0x1da   : > { %1563 = vst.msk [vmem:[#allocation3 + $0x8a] sm:$0x3f] %vm1552_vm3, %v1530_v6  ;;  %13641 = vst [vmem:[#allocation224_spill] sm:$0xff] %v9009_v58  ;;  %v9023_v6 = vld [vmem:[#allocation9 + $0x2a] ss:$0 sm:$0xff]  ;;  %v1771_v58 = vadd.f32 %v7920_v17, %v1670_v62  ;;  %v1772_v17 = vadd.f32 %v13650_v13, %v1671_v8  ;;  %v9050_v62 = vmul.f32 %v8356_v20, %v8945_v35 }
 0x1db   : > { %1590 = vst.msk [vmem:[#allocation3 + $0x80] sm:$0x3] %vm1584_vm4, %v13455_v4  ;;  %13642 = vst [vmem:[#allocation225_spill] sm:$0xff] %v9013_v46  ;;  %v9034_v46 = vmul.f32 %v9001_v22, %v8341_v39  ;;  %v9056_v22 = vld [vmem:[#allocation3 + $0xf0] sm:$0xff]  ;;  %v9065_v13 = vmul.f32 %v8761_v54, %v5531_v59  ;;  %v9068_v20 = vmul.f32 %v8784_v63, %v5531_v59 }
 0x1dc   : > { %13643 = vst [vmem:[#allocation226_spill] sm:$0xff] %v9017_v1  ;;  %13644 = vst [vmem:[#allocation227_spill] sm:$0xff] %v9021_v14  ;;  %v9038_v1 = vmul.f32 %v9023_v6, %v8560_v51  ;;  %v9042_v14 = vld [vmem:[#allocation3 + $0x38] sm:$0xff]  ;;  %v9071_v8 = vmul.f32 %v8825_v38, %v5531_v59 }
 0x1dd   : > { %13645 = vst [vmem:[#allocation228_spill] sm:$0xff] %v9023_v6  ;;  %13646 = vst [vmem:[#allocation229_spill] sm:$0xff] %v9025_v5  ;;  %v9045_v5 = vmul.f32 %v8864_v30, %v5531_v59  ;;  %v9054_v6 = vmul.f32 %v8577_v53, %v8945_v35  ;;  %v5464_v51 = vld [vmem:[#allocation2 + $0xb3] sm:$0xff] }
 0x1de   : > { %13647 = vst [vmem:[#allocation230_spill] sm:$0xff] %v9029_v15  ;;  %3137 = vst.msk [vmem:[#allocation3 + $0x70] sm:$0xff] %vm319_vm0, %v8526_v41  ;;  %v5462_v15 = vld [vmem:[#allocation2 + $0xa3] sm:$0xff]  ;;  %v9062_v41 = vmul.f32 %v8910_v33, %v5531_v59  ;;  %v9090_v59 = vmul.f32 %v8778_v0, %v8945_v35  ;;  %v9225_v0 = vld [vmem:[#allocation9 + $0x18] ss:$0 sm:$0xff] }
 0x1df   : > { %13648 = vst [vmem:[#allocation231_spill] sm:$0xff] %v9042_v14  ;;  %13649 = vst [vmem:[#allocation232_spill] sm:$0xff] %v9045_v5  ;;  %v9074_v5 = vld [vmem:[#allocation3 + $0xd0] sm:$0xff]  ;;  %v9107_v14 = vld [vmem:[#allocation3 + $0xe0] sm:$0xff] }
 0x1e0   : > { %13651 = vst [vmem:[#allocation30_spill] sm:$0xff] %v9050_v62  ;;  %13652 = vst [vmem:[#allocation233_spill] sm:$0xff] %v9054_v6  ;;  %v1546_v6 = vld [vmem:[#allocation2 + $0xd8] sm:$0x3f]  ;;  %v9097_v62 = vmul.f32 %v8827_v57, %v5745_v40 }
 0x1e1   : > { %13653 = vst [vmem:[#allocation234_spill] sm:$0xff] %v9056_v22  ;;  %3901 = vst.msk [vmem:[#allocation3 + $0x38] sm:$0x7f] %vm2341_vm5, %v3869_v7  ;;  %v4661_v7 = vld [vmem:[#allocation2 + $0x32] sm:$0xff]  ;;  %v9130_v22 = vmul.f32 %v8659_v32, %v4746_v43 }
 0x1e2   : > { %3932 = vst.msk [vmem:[#allocation3 + $0x3f] sm:$0x1] %vm2373_vm6, %v13455_v4  ;;  %13654 = vst [vmem:[#allocation235_spill] sm:$0xff] %v9062_v41  ;;  %v9079_v41 = vmul.f32 %v8761_v54, %v5745_v40 }
 0x1e3   : > { %13655 = vst [vmem:[#allocation236_spill] sm:$0xff] %v9065_v13  ;;  %13656 = vst [vmem:[#allocation237_spill] sm:$0xff] %v9068_v20  ;;  %v9082_v13 = vmul.f32 %v8784_v63, %v5745_v40  ;;  %v9085_v20 = vmul.f32 %v8825_v38, %v5745_v40 }
 0x1e4   : > { %13657 = vst [vmem:[#allocation238_spill] sm:$0xff] %v9071_v8  ;;  %5478 = vst.msk [vmem:[#allocation3 + $0x50] sm:$0xff] %vm319_vm0, %v5446_v16  ;;  %v3961_v16 = vld [vmem:[#allocation3 + $0x60] sm:$0xff] }
 0x1e5   : > { %13658 = vst [vmem:[#allocation239_spill] sm:$0xff] %v9074_v5  ;;  %3153 = vst.msk [vmem:[#allocation3 + $0xf0] sm:$0xff] %vm319_vm0, %v8565_v45  ;;  %v9092_v8 = vld [vmem:[#allocation3 + $0x100] sm:$0xff]  ;;  %v9094_v45 = vld [vmem:[#allocation3 + $0x108] sm:$0xff] }
 0x1e6   : > { %13659 = vst [vmem:[#allocation240_spill] sm:$0xff] %v9079_v41  ;;  %13660 = vst [vmem:[#allocation241_spill] sm:$0xff] %v9082_v13  ;;  %v9100_v41 = vmul.f32 %v8829_v23, %v5745_v40  ;;  %v9103_v13 = vmul.f32 %v8891_v52, %v4746_v43  ;;  %v9115_v40 = vmul.f32 %v8896_v61, %v4746_v43 }
 0x1e7   : > { %13661 = vst [vmem:[#allocation242_spill] sm:$0xff] %v9085_v20  ;;  %5494 = vst.msk [vmem:[#allocation3 + $0xd0] sm:$0xff] %vm319_vm0, %v5462_v15  ;;  %v13668_v20 = vld [vmem:[#allocation31_spill] sm:$0xff] }
 0x1e8   : > { %13662 = vst [vmem:[#allocation243_spill] sm:$0xff] %v9090_v59  ;;  %13663 = vst [vmem:[#allocation244_spill] sm:$0xff] %v9092_v8  ;;  %v1872_v15 = vadd.f32 %v13668_v20, %v1771_v58  ;;  %v4677_v59 = vld [vmem:[#allocation2 + $0xb2] sm:$0xff]  ;;  %v9121_v58 = vmul.f32 %v8609_v60, %v4746_v43  ;;  %v13673_v20 = vld [vmem:[#allocation32_spill] sm:$0xff]  ;;  %v9168_v8 = vmul.f32 %v8974_v9, %v3961_v16 }
 0x1e9   : > { %13664 = vst [vmem:[#allocation245_spill] sm:$0xff] %v9094_v45  ;;  %13665 = vst [vmem:[#allocation246_spill] sm:$0xff] %v9097_v62  ;;  %v2319_v62 = vld [vmem:[#allocation2 + $0x58] sm:$0x7f] }
 0x1ea   : > { %13666 = vst [vmem:[#allocation247_spill] sm:$0xff] %v9100_v41  ;;  %13667 = vst [vmem:[#allocation248_spill] sm:$0xff] %v9103_v13  ;;  %v9118_v41 = vmul.f32 %v8591_v10, %v4746_v43  ;;  %v9125_v13 = vld [vmem:[#allocation3 + $0x80] sm:$0xff] }
 0x1eb   : > { %4693 = vst.msk [vmem:[#allocation3 + $0x60] sm:$0xff] %vm319_vm0, %v4661_v7  ;;  %13669 = vst [vmem:[#allocation31_spill] sm:$0xff] %v9107_v14  ;;  %v1873_v7 = vadd.f32 %v13673_v20, %v1772_v17  ;;  %v9147_v17 = vmul.f32 %v8659_v32, %v9074_v5  ;;  %v9158_v20 = vld [vmem:[#allocation9 + $0x33] ss:$0 sm:$0xff] }
 0x1ec   : > { %1578 = vst.msk [vmem:[#allocation3 + $0x102] sm:$0xff] %vm319_vm0, %v8947_v19  ;;  %13670 = vst [vmem:[#allocation249_spill] sm:$0xff] %v9115_v40  ;;  %v9133_v40 = vmul.f32 %v8661_v48, %v4746_v43  ;;  %v9151_v43 = vmul.f32 %v8661_v48, %v9074_v5 }
 0x1ed   : > { %1579 = vst.msk [vmem:[#allocation3 + $0x10a] sm:$0x3f] %vm1552_vm3, %v1546_v6  ;;  %13671 = vst [vmem:[#allocation250_spill] sm:$0xff] %v9118_v41  ;;  %v9127_v6 = vld [vmem:[#allocation3 + $0x88] sm:$0xff]  ;;  %v9137_v41 = vmul.f32 %v8609_v60, %v9074_v5 }
 0x1ee   : > { %1598 = vst.msk [vmem:[#allocation3 + $0x100] sm:$0x3] %vm1584_vm4, %v13455_v4  ;;  %13672 = vst [vmem:[#allocation251_spill] sm:$0xff] %v9121_v58  ;;  %v13679_v58 = vld [vmem:[#allocation80_spill] sm:$0xff] }
 0x1ef   : > { %4709 = vst.msk [vmem:[#allocation3 + $0xe0] sm:$0xff] %vm319_vm0, %v4677_v59  ;;  %13674 = vst [vmem:[#allocation32_spill] sm:$0xff] %v9125_v13  ;;  %v1973_v45 = vadd.f32 %v13679_v58, %v1872_v15  ;;  %v9155_v59 = vmul.f32 %v8663_v21, %v9074_v5  ;;  %v13683_v15 = vld [vmem:[#allocation81_spill] sm:$0xff]  ;;  %v9176_v5 = vmul.f32 %v8470_v28, %v3961_v16 }
 0x1f0   : > { %13675 = vst [vmem:[#allocation252_spill] sm:$0xff] %v9127_v6  ;;  %13676 = vst [vmem:[#allocation253_spill] sm:$0xff] %v9130_v22  ;;  %v1974_v58 = vadd.f32 %v13683_v15, %v1873_v7  ;;  %v3876_v22 = vld [vmem:[#allocation2 + $0x41] sm:$0xff]  ;;  %v5533_v7 = vld [vmem:[#allocation3 + $0x50] sm:$0xff] }
 0x1f1   : > { %13677 = vst [vmem:[#allocation254_spill] sm:$0xff] %v9133_v40  ;;  %13678 = vst [vmem:[#allocation255_spill] sm:$0xff] %v9137_v41  ;;  %v9160_v40 = vld [vmem:[#allocation3 + $0x70] sm:$0xff]  ;;  %v13690_v15 = vld [vmem:[#allocation83_spill] sm:$0xff] }
 0x1f2   : > { %2351 = vst.msk [vmem:[#allocation3 + $0x81] sm:$0xff] %vm319_vm0, %v8823_v36  ;;  %13680 = vst [vmem:[#allocation80_spill] sm:$0xff] %v9147_v17  ;;  %v9165_v17 = vmul.f32 %v9158_v20, %v8945_v35  ;;  %v5846_v35 = vld [vmem:[#allocation3 + $0xd0] sm:$0xff]  ;;  %v4748_v13 = vld [vmem:[#allocation3 + $0x60] sm:$0xff] }
 0x1f3   : > { %2379 = vst.msk [vmem:[#allocation3 + $0x80] sm:$0x1] %vm2373_vm6, %v13455_v4  ;;  %13681 = vst [vmem:[#allocation256_spill] sm:$0xff] %v9151_v43  ;;  %v9171_v43 = vmul.f32 %v8987_v47, %v3961_v16  ;;  %v9220_v47 = vmul.f32 %v8864_v30, %v5533_v7 }
 0x1f4   : > { %2352 = vst.msk [vmem:[#allocation3 + $0x89] sm:$0x7f] %vm2341_vm5, %v2319_v62  ;;  %13682 = vst [vmem:[#allocation257_spill] sm:$0xff] %v9155_v59  ;;  %v13686_v62 = vld [vmem:[#allocation82_spill] sm:$0xff]  ;;  %v2075_v59 = vadd.f32 %v13690_v15, %v1974_v58  ;;  %v9192_v15 = vld [vmem:[#allocation9] ss:$0 sm:$0xff] }
 0x1f5   : > { %13684 = vst [vmem:[#allocation81_spill] sm:$0xff] %v9158_v20  ;;  %13685 = vst [vmem:[#allocation258_spill] sm:$0xff] %v9160_v40  ;;  %v2074_v41 = vadd.f32 %v13686_v62, %v1973_v45  ;;  %v9179_v45 = vmul.f32 %v8490_v49, %v3961_v16  ;;  %v9182_v62 = vmul.f32 %v8537_v44, %v3961_v16  ;;  %v5448_v58 = vld [vmem:[#allocation2 + $0x33] sm:$0xff]  ;;  %v9203_v49 = vld [vmem:[#allocation9 + $0x8] ss:$0 sm:$0xff] }
 0x1f6   : > { %13687 = vst [vmem:[#allocation82_spill] sm:$0xff] %v9165_v17  ;;  %13688 = vst [vmem:[#allocation259_spill] sm:$0xff] %v9168_v8  ;;  %v9184_v17 = vld [vmem:[#allocation3 + $0xf0] sm:$0xff]  ;;  %v3892_v8 = vld [vmem:[#allocation2 + $0xc1] sm:$0xff]  ;;  %v2176_v20 = vadd.f32 %v8714_v31, %v2075_v59  ;;  %v9240_v31 = vmul.f32 %v8761_v54, %v5533_v7  ;;  %v9246_v59 = vmul.f32 %v8825_v38, %v5533_v7 }
 0x1f7   : > { %13689 = vst [vmem:[#allocation260_spill] sm:$0xff] %v9171_v43  ;;  %3908 = vst.msk [vmem:[#allocation3 + $0x70] sm:$0xff] %vm319_vm0, %v3876_v22  ;;  %v9187_v43 = vmul.f32 %v8549_v2, %v3961_v16  ;;  %v9190_v22 = vmul.f32 %v8567_v26, %v3961_v16  ;;  %v9215_v28 = vld [vmem:[#allocation3 + $0x100] sm:$0xff]  ;;  %v2175_v9 = vadd.f32 %v8694_v56, %v2074_v41 }
 0x1f8   : > { %13691 = vst [vmem:[#allocation83_spill] sm:$0xff] %v9176_v5  ;;  %13692 = vst [vmem:[#allocation261_spill] sm:$0xff] %v9179_v45  ;;  %v13698_v5 = vld [vmem:[#allocation110_spill] sm:$0xff]  ;;  %v13700_v45 = vld [vmem:[#allocation111_spill] sm:$0xff]  ;;  %v9237_v56 = vmul.f32 %v8910_v33, %v5533_v7  ;;  %v9243_v41 = vmul.f32 %v8784_v63, %v5533_v7 }
 0x1f9   : > { %13693 = vst [vmem:[#allocation262_spill] sm:$0xff] %v9182_v62  ;;  %13694 = vst [vmem:[#allocation263_spill] sm:$0xff] %v9184_v17  ;;  %v9196_v6 = vmul.f32 %v9192_v15, %v13698_v5  ;;  %v9200_v62 = vmul.f32 %v9192_v15, %v13700_v45  ;;  %v2335_v17 = vld [vmem:[#allocation2 + $0xd8] sm:$0x7f]  ;;  %v967_v16 = vmul.f32 %v9203_v49, %v13698_v5  ;;  %v9229_v40 = vld [vmem:[#allocation3 + $0xe0] sm:$0xff] }
 0x1fa   : > { %13695 = vst [vmem:[#allocation264_spill] sm:$0xff] %v9187_v43  ;;  %13696 = vst [vmem:[#allocation265_spill] sm:$0xff] %v9190_v22  ;;  %v968_v22 = vmul.f32 %v9203_v49, %v13700_v45  ;;  %v9209_v43 = vld [vmem:[#allocation9 + $0x10] ss:$0 sm:$0xff]  ;;  %v1168_v53 = vmul.f32 %v9225_v0, %v13698_v5 }
 0x1fb   : > { %13697 = vst [vmem:[#allocation266_spill] sm:$0xff] %v9192_v15  ;;  %13699 = vst [vmem:[#allocation110_spill] sm:$0xff] %v9196_v6  ;;  %v1068_v6 = vmul.f32 %v9209_v43, %v13698_v5 }
 0x1fc   : > { %13701 = vst [vmem:[#allocation111_spill] sm:$0xff] %v9200_v62  ;;  %3924 = vst.msk [vmem:[#allocation3 + $0xf0] sm:$0xff] %vm319_vm0, %v3892_v8  ;;  %v1069_v62 = vmul.f32 %v9209_v43, %v13700_v45  ;;  %v9217_v8 = vld [vmem:[#allocation3 + $0x108] sm:$0xff] }
 0x1fd   : > { %13702 = vst [vmem:[#allocation267_spill] sm:$0xff] %v9215_v28  ;;  %13703 = vst [vmem:[#allocation268_spill] sm:$0xff] %v9217_v8  ;;  %v13735_v8 = vld [vmem:[#allocation38_spill] sm:$0xff] }
 0x1fe   : > { %13704 = vst [vmem:[#allocation269_spill] sm:$0xff] %v9220_v47  ;;  %5480 = vst.msk [vmem:[#allocation3 + $0x60] sm:$0xff] %vm319_vm0, %v5448_v58  ;;  %v9249_v58 = vld [vmem:[#allocation3 + $0x80] sm:$0xff]  ;;  %v9252_v47 = vmul.f32 %v8827_v57, %v5533_v7  ;;  %v13716_v7 = vld [vmem:[#allocation101_spill] sm:$0xff] }
 0x1ff   : > { %13705 = vst [vmem:[#allocation270_spill] sm:$0xff] %v9229_v40  ;;  %2367 = vst.msk [vmem:[#allocation3 + $0x101] sm:$0xff] %vm319_vm0, %v8947_v19 }
 0x200   : > { %2387 = vst.msk [vmem:[#allocation3 + $0x100] sm:$0x1] %vm2373_vm6, %v13455_v4  ;;  %13706 = vst [vmem:[#allocation271_spill] sm:$0xff] %v9237_v56  ;;  %v2276_v56 = vadd.f32 %v8854_v55, %v2175_v9  ;;  %v4663_v55 = vld [vmem:[#allocation2 + $0x42] sm:$0xff]  ;;  %v13718_v9 = vld [vmem:[#allocation33_spill] sm:$0xff] }
 0x201   : > { %2368 = vst.msk [vmem:[#allocation3 + $0x109] sm:$0x7f] %vm2341_vm5, %v2335_v17  ;;  %13707 = vst [vmem:[#allocation272_spill] sm:$0xff] %v9240_v31  ;;  %v9255_v17 = vmul.f32 %v8784_v63, %v5846_v35  ;;  %v2277_v31 = vadd.f32 %v8858_v29, %v2176_v20  ;;  %v9276_v29 = vmul.f32 %v8829_v23, %v5846_v35  ;;  %v13719_v20 = vld [vmem:[#allocation34_spill] sm:$0xff] }
 0x202   : > { %13708 = vst [vmem:[#allocation273_spill] sm:$0xff] %v9243_v41  ;;  %13709 = vst [vmem:[#allocation274_spill] sm:$0xff] %v9246_v59  ;;  %v9262_v41 = vmul.f32 %v8825_v38, %v5846_v35  ;;  %v13715_v59 = vld [vmem:[#allocation97_spill] sm:$0xff] }
 0x203   : > { %5496 = vst.msk [vmem:[#allocation3 + $0xe0] sm:$0xff] %vm319_vm0, %v5464_v51  ;;  %13710 = vst [vmem:[#allocation275_spill] sm:$0xff] %v9249_v58  ;;  %v9265_v51 = vmul.f32 %v8827_v57, %v5846_v35  ;;  %v9268_v58 = vadd.f32 %v967_v16, %v13715_v59  ;;  %v2460_v4 = vadd.f32 %v13719_v20, %v2277_v31  ;;  %v13723_v35 = vld [vmem:[#allocation102_spill] sm:$0xff]  ;;  %v4679_v31 = vld [vmem:[#allocation2 + $0xc2] sm:$0xff] }
 0x204   : > { %13711 = vst [vmem:[#allocation276_spill] sm:$0xff] %v9252_v47  ;;  %13712 = vst [vmem:[#allocation277_spill] sm:$0xff] %v9255_v17  ;;  %v9271_v47 = vadd.f32 %v1068_v6, %v13716_v7  ;;  %v9273_v17 = vld [vmem:[#allocation3 + $0x70] sm:$0xff]  ;;  %v9285_v16 = vmul.f32 %v8896_v61, %v4748_v13  ;;  %v9288_v6 = vmul.f32 %v8591_v10, %v4748_v13 }
 0x205   : > { %3139 = vst.msk [vmem:[#allocation3 + $0x80] sm:$0xff] %vm319_vm0, %v8823_v36  ;;  %13713 = vst [vmem:[#allocation278_spill] sm:$0xff] %v9262_v41  ;;  %v2459_v36 = vadd.f32 %v13718_v9, %v2276_v56  ;;  %v9281_v41 = vmul.f32 %v8891_v52, %v4748_v13  ;;  %v1169_v59 = vmul.f32 %v9225_v0, %v13700_v45  ;;  %v9295_v56 = vld [vmem:[#allocation3 + $0xf0] sm:$0xff]  ;;  %v13725_v9 = vld [vmem:[#allocation35_spill] sm:$0xff] }
 0x206   : > { %13714 = vst [vmem:[#allocation279_spill] sm:$0xff] %v9265_v51  ;;  %13717 = vst [vmem:[#allocation97_spill] sm:$0xff] %v9276_v29  ;;  %v9293_v7 = vadd.f32 %v1168_v53, %v13723_v35  ;;  %v13726_v29 = vld [vmem:[#allocation36_spill] sm:$0xff]  ;;  %v9310_v53 = vmul.f32 %v8663_v21, %v4748_v13  ;;  %v5535_v28 = vld [vmem:[#allocation3 + $0x60] sm:$0xff] }
 0x207   : > { %13720 = vst [vmem:[#allocation101_spill] sm:$0xff] %v9281_v41  ;;  %4695 = vst.msk [vmem:[#allocation3 + $0x70] sm:$0xff] %vm319_vm0, %v4663_v55  ;;  %v2560_v20 = vadd.f32 %v13725_v9, %v2459_v36  ;;  %v2561_v51 = vadd.f32 %v13726_v29, %v2460_v4  ;;  %v9300_v55 = vmul.f32 %v8609_v60, %v4748_v13  ;;  %v13731_v35 = vld [vmem:[#allocation104_spill] sm:$0xff]  ;;  %v13732_v36 = vld [vmem:[#allocation106_spill] sm:$0xff] }
 0x208   : > { %13721 = vst [vmem:[#allocation33_spill] sm:$0xff] %v9285_v16  ;;  %13722 = vst [vmem:[#allocation34_spill] sm:$0xff] %v9288_v6  ;;  %v9303_v16 = vmul.f32 %v8659_v32, %v4748_v13  ;;  %v9307_v6 = vmul.f32 %v8661_v48, %v4748_v13  ;;  %v9313_v41 = vadd.f32 %v968_v22, %v13731_v35  ;;  %v9318_v4 = vld [vmem:[#allocation3 + $0x100] sm:$0xff]  ;;  %v13734_v29 = vld [vmem:[#allocation37_spill] sm:$0xff] }
 0x209   : > { %13724 = vst [vmem:[#allocation102_spill] sm:$0xff] %v9295_v56  ;;  %13727 = vst [vmem:[#allocation35_spill] sm:$0xff] %v9300_v55  ;;  %v9316_v9 = vadd.f32 %v1069_v62, %v13732_v36  ;;  %v2661_v55 = vadd.f32 %v13734_v29, %v2560_v20  ;;  %v13738_v62 = vld [vmem:[#allocation113_spill] sm:$0xff]  ;;  %v9337_v20 = vld [vmem:[#allocation9 + $0x28] ss:$0 sm:$0xff] }
 0x20a   : > { %13728 = vst [vmem:[#allocation36_spill] sm:$0xff] %v9303_v16  ;;  %4711 = vst.msk [vmem:[#allocation3 + $0xf0] sm:$0xff] %vm319_vm0, %v4679_v31  ;;  %v2662_v16 = vadd.f32 %v13735_v8, %v2561_v51  ;;  %v9322_v31 = vld [vmem:[#allocation9 + $0x20] ss:$0 sm:$0xff]  ;;  %v9335_v22 = vadd.f32 %v1169_v59, %v13738_v62  ;;  %v9341_v8 = vmul.f32 %v9337_v20, %v13698_v5  ;;  %v9347_v35 = vld [vmem:[#allocation9 + $0x30] ss:$0 sm:$0xff] }
 0x20b   : > { %13729 = vst [vmem:[#allocation280_spill] sm:$0xff] %v9307_v6  ;;  %13730 = vst [vmem:[#allocation281_spill] sm:$0xff] %v9310_v53  ;;  %v9326_v6 = vmul.f32 %v9322_v31, %v13698_v5  ;;  %v9330_v13 = vmul.f32 %v9322_v31, %v13700_v45  ;;  %v9345_v51 = vmul.f32 %v9337_v20, %v13700_v45  ;;  %v3878_v59 = vld [vmem:[#allocation2 + $0x51] sm:$0xff] }
 0x20c   : > { %13733 = vst [vmem:[#allocation104_spill] sm:$0xff] %v9318_v4  ;;  %3155 = vst.msk [vmem:[#allocation3 + $0x100] sm:$0xff] %vm319_vm0, %v8947_v19  ;;  %v9351_v36 = vmul.f32 %v9347_v35, %v13698_v5  ;;  %v9353_v19 = vld [vmem:[#allocation3 + $0x80] sm:$0xff]  ;;  %v9356_v29 = vadd.f32 %v8879_v3, %v2662_v16  ;;  %v9360_v62 = vmul.f32 %v9347_v35, %v13700_v45  ;;  %v13747_v5 = vld [vmem:[#allocation84_spill] sm:$0xff] }
 0x20d   : > { %13736 = vst [vmem:[#allocation106_spill] sm:$0xff] %v9326_v6  ;;  %13737 = vst [vmem:[#allocation37_spill] sm:$0xff] %v9330_v13  ;;  %v9364_v53 = vmul.f32 %v8537_v44, %v9107_v14  ;;  %v9373_v13 = vmul.f32 %v8864_v30, %v5535_v28  ;;  %v9376_v3 = vmul.f32 %v8910_v33, %v5535_v28  ;;  %v5947_v16 = vld [vmem:[#allocation3 + $0xe0] sm:$0xff]  ;;  %v13763_v6 = vld [vmem:[#allocation130_spill] sm:$0xff] }
 0x20e   : > { %13739 = vst [vmem:[#allocation38_spill] sm:$0xff] %v9341_v8  ;;  %13740 = vst [vmem:[#allocation113_spill] sm:$0xff] %v9345_v51  ;;  %v9368_v51 = vmul.f32 %v8549_v2, %v9107_v14  ;;  %v9379_v45 = vmul.f32 %v8761_v54, %v5535_v28  ;;  %v1356_v4 = vmul.f32 %v9337_v20, %v8696_v12 }
 0x20f   : > { %13741 = vst [vmem:[#allocation282_spill] sm:$0xff] %v9351_v36  ;;  %13742 = vst [vmem:[#allocation283_spill] sm:$0xff] %v9353_v19  ;;  %v2762_v36 = vadd.f32 %v13747_v5, %v2661_v55  ;;  %v9390_v55 = vmul.f32 %v8827_v57, %v5535_v28  ;;  %v9393_v5 = vmul.f32 %v8829_v23, %v5535_v28 }
 0x210   : > { %13743 = vst [vmem:[#allocation284_spill] sm:$0xff] %v9356_v29  ;;  %13744 = vst [vmem:[#allocation285_spill] sm:$0xff] %v9360_v62  ;;  %v9381_v29 = vld [vmem:[#allocation3 + $0x70] sm:$0xff]  ;;  %v9384_v62 = vmul.f32 %v8784_v63, %v5535_v28 }
 0x211   : > { %13745 = vst [vmem:[#allocation286_spill] sm:$0xff] %v9364_v53  ;;  %13746 = vst [vmem:[#allocation287_spill] sm:$0xff] %v9368_v51  ;;  %v5450_v53 = vld [vmem:[#allocation2 + $0x43] sm:$0xff] }
 0x212   : > { %3910 = vst.msk [vmem:[#allocation3 + $0x80] sm:$0xff] %vm319_vm0, %v3878_v59  ;;  %13748 = vst [vmem:[#allocation84_spill] sm:$0xff] %v9373_v13  ;;  %v9387_v59 = vmul.f32 %v8825_v38, %v5535_v28  ;;  %v5466_v28 = vld [vmem:[#allocation2 + $0xc3] sm:$0xff]  ;;  %v9419_v13 = vmul.f32 %v8825_v38, %v5947_v16 }
 0x213   : > { %13749 = vst [vmem:[#allocation288_spill] sm:$0xff] %v9376_v3  ;;  %13750 = vst [vmem:[#allocation289_spill] sm:$0xff] %v9379_v45  ;;  %v9398_v45 = vmul.f32 %v8567_v26, %v9107_v14  ;;  %v9402_v3 = vmul.f32 %v8659_v32, %v9229_v40  ;;  %v13761_v51 = vld [vmem:[#allocation120_spill] sm:$0xff] }
 0x214   : > { %13751 = vst [vmem:[#allocation290_spill] sm:$0xff] %v9384_v62  ;;  %13752 = vst [vmem:[#allocation291_spill] sm:$0xff] %v9387_v59  ;;  %v953_v62 = vmul.f32 %v9203_v49, %v8696_v12  ;;  %v1054_v59 = vmul.f32 %v9209_v43, %v8696_v12 }
 0x215   : > { %13753 = vst [vmem:[#allocation292_spill] sm:$0xff] %v9390_v55  ;;  %13754 = vst [vmem:[#allocation293_spill] sm:$0xff] %v9393_v5  ;;  %v9408_v55 = vld [vmem:[#allocation3 + $0xf0] sm:$0xff]  ;;  %v9416_v5 = vmul.f32 %v8663_v21, %v9229_v40 }
 0x216   : > { %5482 = vst.msk [vmem:[#allocation3 + $0x70] sm:$0xff] %vm319_vm0, %v5450_v53  ;;  %13755 = vst [vmem:[#allocation294_spill] sm:$0xff] %v9398_v45  ;;  %v9412_v53 = vmul.f32 %v8661_v48, %v9229_v40  ;;  %v2863_v45 = vadd.f32 %v9034_v46, %v2762_v36  ;;  %v9426_v8 = vadd.f32 %v953_v62, %v13761_v51  ;;  %v3894_v40 = vld [vmem:[#allocation2 + $0xd1] sm:$0xff]  ;;  %v13766_v51 = vld [vmem:[#allocation135_spill] sm:$0xff] }
 0x217   : > { %13756 = vst [vmem:[#allocation295_spill] sm:$0xff] %v9402_v3  ;;  %13757 = vst [vmem:[#allocation296_spill] sm:$0xff] %v9408_v55  ;;  %v1154_v3 = vmul.f32 %v9225_v0, %v8696_v12  ;;  %v9429_v14 = vadd.f32 %v1054_v59, %v13763_v6  ;;  %v1155_v46 = vmul.f32 %v9225_v0, %v8698_v11  ;;  %v13768_v62 = vld [vmem:[#allocation136_spill] sm:$0xff] }
 0x218   : > { %13758 = vst [vmem:[#allocation297_spill] sm:$0xff] %v9412_v53  ;;  %13759 = vst [vmem:[#allocation298_spill] sm:$0xff] %v9416_v5  ;;  %v1255_v53 = vmul.f32 %v9322_v31, %v8696_v12  ;;  %v9433_v5 = vld [vmem:[#allocation3 + $0x100] sm:$0xff]  ;;  %v1256_v6 = vmul.f32 %v9322_v31, %v8698_v11 }
 0x219   : > { %13760 = vst [vmem:[#allocation299_spill] sm:$0xff] %v9419_v13  ;;  %5498 = vst.msk [vmem:[#allocation3 + $0xf0] sm:$0xff] %vm319_vm0, %v5466_v28  ;;  %v954_v13 = vmul.f32 %v9203_v49, %v8698_v11  ;;  %v1055_v28 = vmul.f32 %v9209_v43, %v8698_v11  ;;  %v9442_v36 = vadd.f32 %v1154_v3, %v13766_v51  ;;  %v9454_v19 = vld [vmem:[#allocation3 + $0x80] sm:$0xff] }
 0x21a   : > { %13762 = vst [vmem:[#allocation120_spill] sm:$0xff] %v9426_v8  ;;  %13764 = vst [vmem:[#allocation130_spill] sm:$0xff] %v9429_v14  ;;  %v9448_v59 = vadd.f32 %v1255_v53, %v13768_v62  ;;  %v4665_v14 = vld [vmem:[#allocation2 + $0x52] sm:$0xff]  ;;  %v9457_v3 = vmul.f32 %v8827_v57, %v5947_v16  ;;  %v1357_v51 = vmul.f32 %v9337_v20, %v8698_v11 }
 0x21b   : > { %13765 = vst [vmem:[#allocation300_spill] sm:$0xff] %v9433_v5  ;;  %13767 = vst [vmem:[#allocation135_spill] sm:$0xff] %v9442_v36  ;;  %v1457_v5 = vmul.f32 %v9347_v35, %v8696_v12  ;;  %v1458_v53 = vmul.f32 %v9347_v35, %v8698_v11  ;;  %v9469_v62 = vmul.f32 %v9192_v15, %v8696_v12 }
 0x21c   : > { %3926 = vst.msk [vmem:[#allocation3 + $0x100] sm:$0xff] %vm319_vm0, %v3894_v40  ;;  %13769 = vst [vmem:[#allocation136_spill] sm:$0xff] %v9448_v59  ;;  %v9460_v40 = vmul.f32 %v8829_v23, %v5947_v16  ;;  %v13774_v59 = vld [vmem:[#allocation121_spill] sm:$0xff]  ;;  %v9490_v8 = vadd.f32 %v1155_v46, %v8671_v25  ;;  %v13782_v25 = vld [vmem:[#allocation138_spill] sm:$0xff] }
 0x21d   : > { %13770 = vst [vmem:[#allocation301_spill] sm:$0xff] %v9454_v19  ;;  %13771 = vst [vmem:[#allocation302_spill] sm:$0xff] %v9457_v3  ;;  %v9473_v19 = vmul.f32 %v9192_v15, %v8698_v11  ;;  %v9476_v3 = vadd.f32 %v1356_v4, %v8647_v18  ;;  %v1489_v16 = vadd.f32 %v1457_v5, %v8650_v27  ;;  %v13778_v18 = vld [vmem:[#allocation39_spill] sm:$0xff]  ;;  %v13781_v5 = vld [vmem:[#allocation96_spill] sm:$0xff] }
 0x21e   : > { %13772 = vst [vmem:[#allocation303_spill] sm:$0xff] %v9460_v40  ;;  %4697 = vst.msk [vmem:[#allocation3 + $0x80] sm:$0xff] %vm319_vm0, %v4665_v14  ;;  %v9480_v40 = vadd.f32 %v9038_v1, %v2863_v45  ;;  %v9483_v36 = vadd.f32 %v954_v13, %v13774_v59  ;;  %v9486_v14 = vadd.f32 %v1055_v28, %v8667_v37  ;;  %v9496_v27 = vld [vmem:[#allocation9 + $0x21] ss:$0 sm:$0xff]  ;;  %v13780_v37 = vld [vmem:[#allocation40_spill] sm:$0xff] }
 0x21f   : > { %v1490_v12 = vadd.f32 %v1458_v53, %v8848_v50  ;;  %13776 = vst [vmem:[#allocation305_spill] sm:$0xff] %v9490_v8  ;;  %v9493_v11 = vadd.f32 %v1256_v6, %v8674_v34  ;;  %v1672_v4 = vadd.f32 %v13778_v18, %v1489_v16  ;;  %13779 = vst [vmem:[#allocation39_spill] sm:$0xff] %v9496_v27  ;;  %v13783_v28 = vld [vmem:[#allocation144_spill] sm:$0xff]  ;;  %v13784_v34 = vld [vmem:[#allocation41_spill] sm:$0xff] }
 0x220   : > { %13773 = vst [vmem:[#allocation304_spill] sm:$0xff] %v9480_v40  ;;  %13775 = vst [vmem:[#allocation121_spill] sm:$0xff] %v9486_v14  ;;  %v2044_v1 = vmul.f32 %v9496_v27, %v8391_v24  ;;  %v9501_v13 = vadd.f32 %v1357_v51, %v8684_v42  ;;  %v2045_v50 = vmul.f32 %v9496_v27, %v13781_v5  ;;  %v13785_v59 = vld [vmem:[#allocation139_spill] sm:$0xff]  ;;  %v13786_v16 = vld [vmem:[#allocation185_spill] sm:$0xff] }
 0x221   : > { %13777 = vst [vmem:[#allocation306_spill] sm:$0xff] %v9493_v11  ;;  %v1673_v45 = vadd.f32 %v13780_v37, %v1490_v12  ;;  %v2145_v46 = vmul.f32 %v13783_v28, %v13782_v25  ;;  %v1773_v6 = vadd.f32 %v13784_v34, %v1672_v4  ;;  %v2146_v53 = vmul.f32 %v13783_v28, %v13785_v59  ;;  %v13787_v18 = vld [vmem:[#allocation174_spill] sm:$0xff]  ;;  %v9518_v27 = vld [vmem:[#allocation9 + $0x12] ss:$0 sm:$0xff]  ;;  %v13792_v5 = vld [vmem:[#allocation180_spill] sm:$0xff] }
 0x222   : > { %v2246_v40 = vmul.f32 %v13787_v18, %v13786_v16  ;;  %v13788_v24 = vld [vmem:[#allocation186_spill] sm:$0xff]  ;;  %13791 = vst [vmem:[#allocation144_spill] sm:$0xff] %v9518_v27  ;;  %v9522_v25 = vmul.f32 %v9518_v27, %v13792_v5  ;;  %v13794_v34 = vld [vmem:[#allocation129_spill] sm:$0xff]  ;;  %v13795_v16 = vld [vmem:[#allocation223_spill] sm:$0xff] }
 0x223   : > { %v2247_v42 = vmul.f32 %v13787_v18, %v13788_v24  ;;  %v9515_v51 = vld [vmem:[#allocation3 + $0x100] sm:$0xff]  ;;  %v4681_v12 = vld [vmem:[#allocation2 + $0xd2] sm:$0xff]  ;;  %v9524_v4 = vld [vmem:[#allocation9 + $0x1a] ss:$0 sm:$0xff]  ;;  %v9532_v18 = vmul.f32 %v13795_v16, %v13794_v34 }
 0x224   : > { %13789 = vst [vmem:[#allocation40_spill] sm:$0xff] %v9515_v51  ;;  %v13790_v37 = vld [vmem:[#allocation42_spill] sm:$0xff]  ;;  %13793 = vst [vmem:[#allocation41_spill] sm:$0xff] %v9524_v4  ;;  %v9528_v28 = vmul.f32 %v9524_v4, %v8341_v39  ;;  %v13796_v51 = vld [vmem:[#allocation85_spill] sm:$0xff] }
 0x225   : > { %v1774_v11 = vadd.f32 %v13790_v37, %v1673_v45  ;;  %4713 = vst.msk [vmem:[#allocation3 + $0x100] sm:$0xff] %vm319_vm0, %v4681_v12  ;;  %v1874_v45 = vadd.f32 %v13796_v51, %v1773_v6  ;;  %v13797_v37 = vld [vmem:[#allocation258_spill] sm:$0xff]  ;;  %v13798_v24 = vld [vmem:[#allocation133_spill] sm:$0xff]  ;;  %v9548_v39 = vld [vmem:[#allocation3 + $0x80] sm:$0xff] }
 0x226   : > { %v9538_v59 = vmul.f32 %v13798_v24, %v13797_v37  ;;  %v13800_v5 = vld [vmem:[#allocation169_spill] sm:$0xff]  ;;  %13804 = vst [vmem:[#allocation133_spill] sm:$0xff] %v9548_v39  ;;  %v13805_v34 = vld [vmem:[#allocation86_spill] sm:$0xff]  ;;  %v13813_v39 = vld [vmem:[#allocation116_spill] sm:$0xff] }
 0x227   : > { %v9542_v27 = vmul.f32 %v13800_v5, %v13797_v37  ;;  %v13802_v8 = vld [vmem:[#allocation81_spill] sm:$0xff]  ;;  %v1875_v14 = vadd.f32 %v13805_v34, %v1774_v11  ;;  %v13806_v12 = vld [vmem:[#allocation214_spill] sm:$0xff]  ;;  %v9571_v11 = vmul.f32 %v8537_v44, %v9273_v17  ;;  %v9575_v34 = vmul.f32 %v8549_v2, %v9273_v17 }
 0x228   : > { %13799 = vst [vmem:[#allocation42_spill] sm:$0xff] %v9538_v59  ;;  %v9546_v4 = vmul.f32 %v13802_v8, %v13797_v37  ;;  %v5452_v16 = vld [vmem:[#allocation2 + $0x53] sm:$0xff]  ;;  %v9553_v6 = vmul.f32 %v13806_v12, %v9273_v17  ;;  %v13810_v59 = vld [vmem:[#allocation112_spill] sm:$0xff]  ;;  %v9567_v8 = vmul.f32 %v13813_v39, %v9273_v17  ;;  %v9588_v39 = vmul.f32 %v8896_v61, %v9381_v29 }
 0x229   : > { %13801 = vst [vmem:[#allocation180_spill] sm:$0xff] %v9542_v27  ;;  %v13808_v24 = vld [vmem:[#allocation218_spill] sm:$0xff]  ;;  %v9561_v27 = vmul.f32 %v13810_v59, %v9273_v17  ;;  %5484 = vst.msk [vmem:[#allocation3 + $0x80] sm:$0xff] %vm319_vm0, %v5452_v16  ;;  %v9580_v59 = vmul.f32 %v8567_v26, %v9273_v17  ;;  %v9584_v16 = vmul.f32 %v8891_v52, %v9381_v29  ;;  %v5537_v44 = vld [vmem:[#allocation3 + $0x70] sm:$0xff] }
 0x22a   : > { %13803 = vst [vmem:[#allocation85_spill] sm:$0xff] %v9546_v4  ;;  %13807 = vst [vmem:[#allocation169_spill] sm:$0xff] %v9553_v6  ;;  %v9557_v51 = vmul.f32 %v13808_v24, %v9273_v17  ;;  %v13812_v4 = vld [vmem:[#allocation87_spill] sm:$0xff]  ;;  %v9592_v2 = vmul.f32 %v8591_v10, %v9381_v29  ;;  %v9600_v17 = vmul.f32 %v8659_v32, %v9381_v29 }
 0x22b   : > { %13811 = vst [vmem:[#allocation214_spill] sm:$0xff] %v9561_v27  ;;  %v1975_v37 = vadd.f32 %v13812_v4, %v1874_v45  ;;  %13814 = vst [vmem:[#allocation218_spill] sm:$0xff] %v9567_v8 }
 0x22c   : > { %13809 = vst [vmem:[#allocation86_spill] sm:$0xff] %v9557_v51  ;;  %13815 = vst [vmem:[#allocation112_spill] sm:$0xff] %v9571_v11  ;;  %v13817_v51 = vld [vmem:[#allocation88_spill] sm:$0xff]  ;;  %v13858_v11 = vld [vmem:[#allocation217_spill] sm:$0xff] }
 0x22d   : > { %13816 = vst [vmem:[#allocation87_spill] sm:$0xff] %v9575_v34  ;;  %v1976_v6 = vadd.f32 %v13817_v51, %v1875_v14  ;;  %13818 = vst [vmem:[#allocation116_spill] sm:$0xff] %v9580_v59  ;;  %v2076_v4 = vadd.f32 %v2044_v1, %v1975_v37  ;;  %v9596_v14 = vmul.f32 %v8609_v60, %v9381_v29  ;;  %v13826_v37 = vld [vmem:[#allocation158_spill] sm:$0xff]  ;;  %v1607_v34 = vld [vmem:[#allocation3 + $0x28] sm:$0xff] }
 0x22e   : > { %13819 = vst [vmem:[#allocation88_spill] sm:$0xff] %v9584_v16  ;;  %13820 = vst [vmem:[#allocation307_spill] sm:$0xff] %v9588_v39  ;;  %v9604_v51 = vmul.f32 %v8661_v48, %v9381_v29  ;;  %v9608_v1 = vmul.f32 %v8663_v21, %v9381_v29  ;;  %v969_v10 = vmul.f32 %v9203_v49, %v13826_v37 }
 0x22f   : > { %13821 = vst [vmem:[#allocation308_spill] sm:$0xff] %v9592_v2  ;;  %13822 = vst [vmem:[#allocation309_spill] sm:$0xff] %v9596_v14  ;;  %v2077_v45 = vadd.f32 %v2045_v50, %v1976_v6  ;;  %v2177_v2 = vadd.f32 %v2145_v46, %v2076_v4  ;;  %v9613_v60 = vmul.f32 %v8864_v30, %v5537_v44  ;;  %v9620_v50 = vld [vmem:[#allocation3 + $0x100] sm:$0xff]  ;;  %v5468_v6 = vld [vmem:[#allocation2 + $0xd3] sm:$0xff] }
 0x230   : > { %13823 = vst [vmem:[#allocation310_spill] sm:$0xff] %v9600_v17  ;;  %13824 = vst [vmem:[#allocation311_spill] sm:$0xff] %v9604_v51  ;;  %v9616_v14 = vmul.f32 %v8910_v33, %v5537_v44  ;;  %v1070_v32 = vmul.f32 %v9209_v43, %v13826_v37  ;;  %v9623_v29 = vmul.f32 %v8761_v54, %v5537_v44 }
 0x231   : > { %13825 = vst [vmem:[#allocation312_spill] sm:$0xff] %v9608_v1  ;;  %13827 = vst [vmem:[#allocation158_spill] sm:$0xff] %v9613_v60  ;;  %v2178_v51 = vadd.f32 %v2146_v53, %v2077_v45  ;;  %v13831_v1 = vld [vmem:[#allocation110_spill] sm:$0xff]  ;;  %v1170_v46 = vmul.f32 %v9225_v0, %v13826_v37  ;;  %v2278_v4 = vadd.f32 %v2246_v40, %v2177_v2  ;;  %v13833_v40 = vld [vmem:[#allocation43_spill] sm:$0xff] }
 0x232   : > { %13828 = vst [vmem:[#allocation313_spill] sm:$0xff] %v9616_v14  ;;  %13829 = vst [vmem:[#allocation314_spill] sm:$0xff] %v9620_v50  ;;  %v9626_v17 = vadd.f32 %v969_v10, %v13831_v1  ;;  %v13832_v14 = vld [vmem:[#allocation159_spill] sm:$0xff]  ;;  %v9636_v53 = vadd.f32 %v1070_v32, %v9268_v58  ;;  %v9650_v16 = vmul.f32 %v8825_v38, %v5537_v44 }
 0x233   : > { %13830 = vst [vmem:[#allocation315_spill] sm:$0xff] %v9623_v29  ;;  %5500 = vst.msk [vmem:[#allocation3 + $0x100] sm:$0xff] %vm319_vm0, %v5468_v6  ;;  %v970_v60 = vmul.f32 %v9203_v49, %v13832_v14  ;;  %v1071_v39 = vmul.f32 %v9209_v43, %v13832_v14  ;;  %v2279_v45 = vadd.f32 %v2247_v42, %v2178_v51  ;;  %v13837_v42 = vld [vmem:[#allocation44_spill] sm:$0xff] }
 0x234   : > { %v1171_v1 = vmul.f32 %v9225_v0, %v13832_v14  ;;  %v9641_v10 = vadd.f32 %v1170_v46, %v9271_v47  ;;  %v1271_v6 = vmul.f32 %v9322_v31, %v13826_v37  ;;  %v2461_v2 = vadd.f32 %v13833_v40, %v2278_v4  ;;  %13835 = vst [vmem:[#allocation159_spill] sm:$0xff] %v9650_v16  ;;  %v13839_v4 = vld [vmem:[#allocation45_spill] sm:$0xff] }
 0x235   : > { %v9647_v29 = vmul.f32 %v8784_v63, %v5537_v44  ;;  %v9653_v58 = vmul.f32 %v8827_v57, %v5537_v44  ;;  %v2462_v51 = vadd.f32 %v13837_v42, %v2279_v45  ;;  %v9657_v32 = vmul.f32 %v8829_v23, %v5537_v44  ;;  %v13840_v45 = vld [vmem:[#allocation111_spill] sm:$0xff]  ;;  %v13841_v44 = vld [vmem:[#allocation46_spill] sm:$0xff] }
 0x236   : > { %v1272_v47 = vmul.f32 %v9322_v31, %v13832_v14  ;;  %v9662_v46 = vadd.f32 %v1271_v6, %v9293_v7  ;;  %v2562_v40 = vadd.f32 %v13839_v4, %v2461_v2  ;;  %v9674_v42 = vadd.f32 %v970_v60, %v13840_v45  ;;  %v13843_v2 = vld [vmem:[#allocation90_spill] sm:$0xff] }
 0x237   : > { %13834 = vst [vmem:[#allocation110_spill] sm:$0xff] %v9647_v29  ;;  %13836 = vst [vmem:[#allocation43_spill] sm:$0xff] %v9653_v58  ;;  %v9667_v29 = vmul.f32 %v9192_v15, %v13826_v37  ;;  %v9671_v58 = vmul.f32 %v9192_v15, %v13832_v14  ;;  %v9678_v16 = vadd.f32 %v1071_v39, %v9313_v41 }
 0x238   : > { %13838 = vst [vmem:[#allocation44_spill] sm:$0xff] %v9657_v32  ;;  %v2563_v32 = vadd.f32 %v13841_v44, %v2462_v51  ;;  %v9681_v7 = vadd.f32 %v1171_v1, %v9316_v9  ;;  %v9685_v6 = vmul.f32 %v9337_v20, %v13826_v37  ;;  %v2663_v4 = vadd.f32 %v13843_v2, %v2562_v40  ;;  %v6048_v1 = vld [vmem:[#allocation3 + $0xf0] sm:$0xff]  ;;  %v13848_v51 = vld [vmem:[#allocation216_spill] sm:$0xff] }
 0x239   : > { %v9690_v59 = vmul.f32 %v9337_v20, %v13832_v14  ;;  %v9694_v60 = vmul.f32 %v9347_v35, %v13826_v37  ;;  %v9698_v41 = vmul.f32 %v9347_v35, %v13832_v14  ;;  %v9704_v39 = vadd.f32 %v1272_v47, %v9335_v22  ;;  %v9710_v44 = vld [vmem:[#allocation9 + $0x2c] ss:$0 sm:$0xff] }
 0x23a   : > { %13842 = vst [vmem:[#allocation45_spill] sm:$0xff] %v9685_v6  ;;  %v9701_v9 = vadd.f32 %v9522_v25, %v2563_v32  ;;  %v955_v40 = vmul.f32 %v9203_v49, %v13848_v51  ;;  %v1056_v45 = vmul.f32 %v9209_v43, %v13848_v51  ;;  %13849 = vst [vmem:[#allocation216_spill] sm:$0xff] %v9710_v44  ;;  %v13855_v2 = vld [vmem:[#allocation120_spill] sm:$0xff] }
 0x23b   : > { %13844 = vst [vmem:[#allocation111_spill] sm:$0xff] %v9690_v59  ;;  %13845 = vst [vmem:[#allocation46_spill] sm:$0xff] %v9694_v60  ;;  %v9714_v37 = vmul.f32 %v9710_v44, %v9295_v56  ;;  %v9718_v25 = vmul.f32 %v8567_v26, %v9295_v56  ;;  %v9722_v22 = vmul.f32 %v8661_v48, %v9408_v55  ;;  %v13893_v56 = vld [vmem:[#allocation252_spill] sm:$0xff] }
 0x23c   : > { %13846 = vst [vmem:[#allocation90_spill] sm:$0xff] %v9698_v41  ;;  %13847 = vst [vmem:[#allocation316_spill] sm:$0xff] %v9701_v9  ;;  %v1156_v14 = vmul.f32 %v9225_v0, %v13848_v51  ;;  %v9728_v32 = vmul.f32 %v8663_v21, %v9408_v55  ;;  %v9731_v47 = vadd.f32 %v955_v40, %v9469_v62  ;;  %v13864_v41 = vld [vmem:[#allocation136_spill] sm:$0xff] }
 0x23d   : > { %13850 = vst [vmem:[#allocation317_spill] sm:$0xff] %v9714_v37  ;;  %13851 = vst [vmem:[#allocation318_spill] sm:$0xff] %v9718_v25  ;;  %v9734_v37 = vadd.f32 %v1056_v45, %v13855_v2  ;;  %v1257_v26 = vmul.f32 %v9322_v31, %v13848_v51  ;;  %v1606_v25 = vld [vmem:[#allocation3 + $0x20] sm:$0xff]  ;;  %v2764_v48 = vadd.f32 %v9528_v28, %v2663_v4 }
 0x23e   : > { %13852 = vst [vmem:[#allocation319_spill] sm:$0xff] %v9722_v22  ;;  %13853 = vst [vmem:[#allocation320_spill] sm:$0xff] %v9728_v32  ;;  %v9740_v22 = vmul.f32 %v8827_v57, %v6048_v1  ;;  %v956_v21 = vmul.f32 %v9203_v49, %v13858_v11  ;;  %v13859_v32 = vld [vmem:[#allocation130_spill] sm:$0xff]  ;;  %v1057_v62 = vmul.f32 %v9209_v43, %v13858_v11  ;;  %v13861_v45 = vld [vmem:[#allocation135_spill] sm:$0xff] }
 0x23f   : > { %13854 = vst [vmem:[#allocation321_spill] sm:$0xff] %v9731_v47  ;;  %13856 = vst [vmem:[#allocation120_spill] sm:$0xff] %v9734_v37  ;;  %v9745_v8 = vadd.f32 %v1156_v14, %v13859_v32  ;;  %v1157_v40 = vmul.f32 %v9225_v0, %v13858_v11  ;;  %v9752_v2 = vadd.f32 %v1257_v26, %v13861_v45  ;;  %v9760_v14 = vld [vmem:[#allocation9 + $0x1] ss:$0 sm:$0xff]  ;;  %v13891_v47 = vld [vmem:[#allocation32_spill] sm:$0xff] }
 0x240   : > { %13857 = vst [vmem:[#allocation322_spill] sm:$0xff] %v9740_v22  ;;  %v1358_v28 = vmul.f32 %v9337_v20, %v13848_v51  ;;  %v1459_v4 = vmul.f32 %v9347_v35, %v13848_v51  ;;  %v1460_v22 = vmul.f32 %v9347_v35, %v13858_v11  ;;  %v1642_v32 = vmul.f32 %v9760_v14, %v1606_v25 }
 0x241   : > { %13860 = vst [vmem:[#allocation217_spill] sm:$0xff] %v9745_v8  ;;  %13862 = vst [vmem:[#allocation130_spill] sm:$0xff] %v9752_v2  ;;  %v1643_v27 = vmul.f32 %v9760_v14, %v1607_v34  ;;  %v9765_v9 = vmul.f32 %v8829_v23, %v6048_v1  ;;  %v1258_v26 = vmul.f32 %v9322_v31, %v13858_v11 }
 0x242   : > { %v1359_v45 = vmul.f32 %v9337_v20, %v13858_v11  ;;  %v9772_v60 = vadd.f32 %v1358_v28, %v13864_v41  ;;  %v9776_v59 = vmul.f32 %v9192_v15, %v13848_v51  ;;  %v9780_v6 = vmul.f32 %v9192_v15, %v13858_v11  ;;  %v13871_v28 = vld [vmem:[#allocation121_spill] sm:$0xff]  ;;  %v9796_v11 = vld [vmem:[#allocation9 + $0x9] ss:$0 sm:$0xff] }
 0x243   : > { %13863 = vst [vmem:[#allocation135_spill] sm:$0xff] %v9765_v9  ;;  %v1491_v1 = vadd.f32 %v1459_v4, %v9476_v3  ;;  %v1492_v9 = vadd.f32 %v1460_v22, %v9501_v13  ;;  %v9785_v2 = vadd.f32 %v9532_v18, %v2764_v48  ;;  %v9788_v8 = vadd.f32 %v956_v21, %v9473_v19  ;;  %v13874_v13 = vld [vmem:[#allocation50_spill] sm:$0xff]  ;;  %v13875_v22 = vld [vmem:[#allocation305_spill] sm:$0xff] }
 0x244   : > { %13865 = vst [vmem:[#allocation136_spill] sm:$0xff] %v9772_v60  ;;  %13866 = vst [vmem:[#allocation323_spill] sm:$0xff] %v9776_v59  ;;  %v9791_v41 = vadd.f32 %v1057_v62, %v9483_v36  ;;  %v9794_v51 = vadd.f32 %v1157_v40, %v13871_v28  ;;  %v1744_v18 = vmul.f32 %v9796_v11, %v13874_v13  ;;  %v13877_v19 = vld [vmem:[#allocation306_spill] sm:$0xff]  ;;  %v9808_v36 = vld [vmem:[#allocation9 + $0x11] ss:$0 sm:$0xff] }
 0x245   : > { %13867 = vst [vmem:[#allocation324_spill] sm:$0xff] %v9780_v6  ;;  %13868 = vst [vmem:[#allocation325_spill] sm:$0xff] %v9785_v2  ;;  %v1674_v60 = vadd.f32 %v1642_v32, %v1491_v1  ;;  %v1675_v37 = vadd.f32 %v1643_v27, %v1492_v9  ;;  %v13873_v6 = vld [vmem:[#allocation49_spill] sm:$0xff]  ;;  %v9803_v48 = vadd.f32 %v1258_v26, %v13875_v22  ;;  %v13881_v27 = vld [vmem:[#allocation66_spill] sm:$0xff] }
 0x246   : > { %13869 = vst [vmem:[#allocation326_spill] sm:$0xff] %v9788_v8  ;;  %13870 = vst [vmem:[#allocation327_spill] sm:$0xff] %v9791_v41  ;;  %v1743_v3 = vmul.f32 %v9796_v11, %v13873_v6  ;;  %v9806_v21 = vadd.f32 %v1359_v45, %v13877_v19  ;;  %v13880_v62 = vld [vmem:[#allocation65_spill] sm:$0xff]  ;;  %v1845_v9 = vmul.f32 %v9808_v36, %v13881_v27  ;;  %v9814_v1 = vld [vmem:[#allocation9 + $0x19] ss:$0 sm:$0xff] }
 0x247   : > { %13872 = vst [vmem:[#allocation121_spill] sm:$0xff] %v9794_v51  ;;  %13876 = vst [vmem:[#allocation49_spill] sm:$0xff] %v9803_v48  ;;  %v1844_v40 = vmul.f32 %v9808_v36, %v13880_v62  ;;  %v1776_v32 = vadd.f32 %v1744_v18, %v1675_v37  ;;  %v13883_v28 = vld [vmem:[#allocation95_spill] sm:$0xff]  ;;  %v13884_v26 = vld [vmem:[#allocation96_spill] sm:$0xff] }
 0x248   : > { %13878 = vst [vmem:[#allocation50_spill] sm:$0xff] %v9806_v21  ;;  %13879 = vst [vmem:[#allocation305_spill] sm:$0xff] %v9808_v36  ;;  %v1775_v4 = vadd.f32 %v1743_v3, %v1674_v60  ;;  %v1945_v2 = vmul.f32 %v9814_v1, %v13883_v28  ;;  %v1946_v22 = vmul.f32 %v9814_v1, %v13884_v26  ;;  %v13885_v45 = vld [vmem:[#allocation138_spill] sm:$0xff]  ;;  %v13886_v19 = vld [vmem:[#allocation39_spill] sm:$0xff] }
 0x249   : > { %13882 = vst [vmem:[#allocation306_spill] sm:$0xff] %v9814_v1  ;;  %v2046_v48 = vmul.f32 %v13886_v19, %v13885_v45  ;;  %v13887_v51 = vld [vmem:[#allocation139_spill] sm:$0xff]  ;;  %v9824_v8 = vld [vmem:[#allocation9 + $0x29] ss:$0 sm:$0xff]  ;;  %v13889_v21 = vld [vmem:[#allocation185_spill] sm:$0xff]  ;;  %v1877_v15 = vadd.f32 %v1845_v9, %v1776_v32 }
 0x24a   : > { %v2047_v41 = vmul.f32 %v13886_v19, %v13887_v51  ;;  %13888 = vst [vmem:[#allocation65_spill] sm:$0xff] %v9824_v8  ;;  %v2147_v60 = vmul.f32 %v9824_v8, %v13889_v21  ;;  %v13890_v37 = vld [vmem:[#allocation186_spill] sm:$0xff]  ;;  %v1876_v18 = vadd.f32 %v1844_v40, %v1775_v4  ;;  %v9834_v45 = vld [vmem:[#allocation9 + $0x2] ss:$0 sm:$0xff]  ;;  %v9838_v26 = vld [vmem:[#allocation9 + $0xa] ss:$0 sm:$0xff] }
 0x24b   : > { %v2148_v3 = vmul.f32 %v9824_v8, %v13890_v37  ;;  %v13892_v59 = vld [vmem:[#allocation174_spill] sm:$0xff]  ;;  %13894 = vst [vmem:[#allocation66_spill] sm:$0xff] %v9834_v45  ;;  %v2431_v19 = vmul.f32 %v9834_v45, %v1606_v25  ;;  %v2432_v51 = vmul.f32 %v9834_v45, %v1607_v34  ;;  %v13896_v21 = vld [vmem:[#allocation64_spill] sm:$0xff]  ;;  %v13897_v8 = vld [vmem:[#allocation191_spill] sm:$0xff]  ;;  %v1978_v4 = vadd.f32 %v1946_v22, %v1877_v15 }
 0x24c   : > { %v2248_v55 = vmul.f32 %v13892_v59, %v13891_v47  ;;  %v2249_v1 = vmul.f32 %v13892_v59, %v13893_v56  ;;  %13895 = vst [vmem:[#allocation174_spill] sm:$0xff] %v9838_v26  ;;  %v2532_v36 = vmul.f32 %v9838_v26, %v13896_v21  ;;  %v9844_v40 = vmul.f32 %v9838_v26, %v13897_v8  ;;  %v13898_v32 = vld [vmem:[#allocation89_spill] sm:$0xff]  ;;  %v13899_v47 = vld [vmem:[#allocation144_spill] sm:$0xff]  ;;  %v13902_v34 = vld [vmem:[#allocation283_spill] sm:$0xff] }
 0x24d   : > { %v1977_v9 = vadd.f32 %v1945_v2, %v1876_v18  ;;  %v9848_v59 = vmul.f32 %v13899_v47, %v13898_v32  ;;  %v13900_v56 = vld [vmem:[#allocation129_spill] sm:$0xff]  ;;  %v9856_v45 = vmul.f32 %v13800_v5, %v13902_v34  ;;  %v2079_v18 = vadd.f32 %v2047_v41, %v1978_v4 }
 0x24e   : > { %v13901_v37 = vld [vmem:[#allocation41_spill] sm:$0xff] }
 0x24f   : > { %v9852_v25 = vmul.f32 %v13901_v37, %v13900_v56  ;;  %13903 = vst [vmem:[#allocation191_spill] sm:$0xff] %v9856_v45  ;;  %v13904_v21 = vld [vmem:[#allocation81_spill] sm:$0xff]  ;;  %v2078_v22 = vadd.f32 %v2046_v48, %v1977_v9  ;;  %v9876_v45 = vld [vmem:[#allocation9 + $0x1c] ss:$0 sm:$0xff] }
 0x250   : > { %v9860_v28 = vmul.f32 %v13904_v21, %v13902_v34  ;;  %v13906_v26 = vld [vmem:[#allocation301_spill] sm:$0xff]  ;;  %13911 = vst [vmem:[#allocation330_spill] sm:$0xff] %v9876_v45 }
 0x251   : > { %v9864_v2 = vmul.f32 %v13806_v12, %v13906_v26  ;;  %v9868_v15 = vmul.f32 %v13808_v24, %v13906_v26  ;;  %v9870_v37 = vld [vmem:[#allocation9 + $0x14] ss:$0 sm:$0xff]  ;;  %v9882_v12 = vld [vmem:[#allocation9 + $0x24] ss:$0 sm:$0xff]  ;;  %v9890_v41 = vmul.f32 %v9710_v44, %v13906_v26  ;;  %v9906_v34 = vld [vmem:[#allocation9 + $0x15] ss:$0 sm:$0xff] }
 0x252   : > { %13905 = vst [vmem:[#allocation144_spill] sm:$0xff] %v9860_v28  ;;  %13909 = vst [vmem:[#allocation328_spill] sm:$0xff] %v9870_v37  ;;  %v9874_v5 = vmul.f32 %v9870_v37, %v13906_v26  ;;  %v9880_v28 = vmul.f32 %v9876_v45, %v13906_v26  ;;  %v9886_v24 = vmul.f32 %v9882_v12, %v13906_v26  ;;  %v9892_v48 = vld [vmem:[#allocation9 + $0x34] ss:$0 sm:$0xff]  ;;  %v9912_v44 = vld [vmem:[#allocation9 + $0x1d] ss:$0 sm:$0xff] }
 0x253   : > { %13907 = vst [vmem:[#allocation81_spill] sm:$0xff] %v9864_v2  ;;  %13908 = vst [vmem:[#allocation301_spill] sm:$0xff] %v9868_v15  ;;  %v9896_v9 = vmul.f32 %v9892_v48, %v13906_v26  ;;  %v13918_v4 = vld [vmem:[#allocation133_spill] sm:$0xff]  ;;  %v2179_v15 = vadd.f32 %v2147_v60, %v2078_v22  ;;  %v2180_v2 = vadd.f32 %v2148_v3, %v2079_v18 }
 0x254   : > { %13910 = vst [vmem:[#allocation329_spill] sm:$0xff] %v9874_v5  ;;  %13912 = vst [vmem:[#allocation331_spill] sm:$0xff] %v9880_v28  ;;  %v9900_v5 = vmul.f32 %v8891_v52, %v13918_v4  ;;  %v5539_v28 = vld [vmem:[#allocation3 + $0x80] sm:$0xff]  ;;  %v9916_v26 = vmul.f32 %v9912_v44, %v13918_v4  ;;  %v9930_v22 = vld [vmem:[#allocation9 + $0x35] ss:$0 sm:$0xff] }
 0x255   : > { %13913 = vst [vmem:[#allocation332_spill] sm:$0xff] %v9882_v12  ;;  %13914 = vst [vmem:[#allocation333_spill] sm:$0xff] %v9886_v24  ;;  %v9904_v24 = vmul.f32 %v8896_v61, %v13918_v4  ;;  %v9918_v52 = vld [vmem:[#allocation9 + $0x25] ss:$0 sm:$0xff]  ;;  %v9924_v61 = vld [vmem:[#allocation9 + $0x2d] ss:$0 sm:$0xff]  ;;  %v9934_v18 = vmul.f32 %v9930_v22, %v13918_v4 }
 0x256   : > { %13915 = vst [vmem:[#allocation334_spill] sm:$0xff] %v9890_v41  ;;  %13916 = vst [vmem:[#allocation335_spill] sm:$0xff] %v9892_v48  ;;  %v9910_v41 = vmul.f32 %v9906_v34, %v13918_v4  ;;  %v9922_v60 = vmul.f32 %v9918_v52, %v13918_v4  ;;  %v9928_v3 = vmul.f32 %v9924_v61, %v13918_v4 }
 0x257   : > { %13917 = vst [vmem:[#allocation336_spill] sm:$0xff] %v9896_v9  ;;  %13919 = vst [vmem:[#allocation133_spill] sm:$0xff] %v9900_v5  ;;  %v9940_v5 = vmul.f32 %v8910_v33, %v5539_v28  ;;  %v13934_v9 = vld [vmem:[#allocation244_spill] sm:$0xff] }
 0x258   : > { %13920 = vst [vmem:[#allocation337_spill] sm:$0xff] %v9904_v24  ;;  %13921 = vst [vmem:[#allocation338_spill] sm:$0xff] %v9906_v34  ;;  %v9937_v24 = vmul.f32 %v8864_v30, %v5539_v28  ;;  %v1072_v4 = vmul.f32 %v9209_v43, %v13934_v9  ;;  %v1172_v33 = vmul.f32 %v9225_v0, %v13934_v9 }
 0x259   : > { %13922 = vst [vmem:[#allocation339_spill] sm:$0xff] %v9910_v41  ;;  %13923 = vst [vmem:[#allocation340_spill] sm:$0xff] %v9912_v44  ;;  %v2280_v41 = vadd.f32 %v2248_v55, %v2179_v15  ;;  %v9961_v15 = vmul.f32 %v8825_v38, %v5539_v28 }
 0x25a   : > { %13924 = vst [vmem:[#allocation341_spill] sm:$0xff] %v9916_v26  ;;  %13925 = vst [vmem:[#allocation342_spill] sm:$0xff] %v9918_v52  ;;  %v2281_v26 = vadd.f32 %v2249_v1, %v2180_v2  ;;  %v9958_v2 = vmul.f32 %v8784_v63, %v5539_v28 }
 0x25b   : > { %13926 = vst [vmem:[#allocation343_spill] sm:$0xff] %v9922_v60  ;;  %13927 = vst [vmem:[#allocation344_spill] sm:$0xff] %v9924_v61  ;;  %v9943_v60 = vmul.f32 %v8761_v54, %v5539_v28  ;;  %v13935_v61 = vld [vmem:[#allocation245_spill] sm:$0xff]  ;;  %v2463_v55 = vadd.f32 %v2431_v19, %v2280_v41  ;;  %v3100_v19 = vld [vmem:[#allocation2 + $0x18] sm:$0xff] }
 0x25c   : > { %13928 = vst [vmem:[#allocation345_spill] sm:$0xff] %v9928_v3  ;;  %13929 = vst [vmem:[#allocation346_spill] sm:$0xff] %v9930_v22  ;;  %v971_v3 = vmul.f32 %v9203_v49, %v13934_v9  ;;  %v972_v52 = vmul.f32 %v9203_v49, %v13935_v61  ;;  %v1073_v30 = vmul.f32 %v9209_v43, %v13935_v61 }
 0x25d   : > { %13930 = vst [vmem:[#allocation347_spill] sm:$0xff] %v9934_v18  ;;  %13931 = vst [vmem:[#allocation348_spill] sm:$0xff] %v9937_v24  ;;  %v1173_v54 = vmul.f32 %v9225_v0, %v13935_v61  ;;  %v2464_v1 = vadd.f32 %v2432_v51, %v2281_v26  ;;  %v2564_v41 = vadd.f32 %v2532_v36, %v2463_v55  ;;  %v9973_v26 = vld [vmem:[#allocation3 + $0x48] sm:$0xff]  ;;  %v542_v55 = vpop.f32.mrf.mxu0 }
 0x25e   : > { %13932 = vst [vmem:[#allocation349_spill] sm:$0xff] %v9940_v5  ;;  %13933 = vst [vmem:[#allocation350_spill] sm:$0xff] %v9943_v60  ;;  %v1273_v60 = vmul.f32 %v9322_v31, %v13934_v9  ;;  %v9966_v5 = vmul.f32 %v8827_v57, %v5539_v28  ;;  %v9969_v24 = vmul.f32 %v8829_v23, %v5539_v28 }
 0x25f   : > { %13936 = vst [vmem:[#allocation244_spill] sm:$0xff] %v9958_v2  ;;  %13937 = vst [vmem:[#allocation245_spill] sm:$0xff] %v9961_v15  ;;  %v1274_v51 = vmul.f32 %v9322_v31, %v13935_v61  ;;  %v9976_v63 = vadd.f32 %v971_v3, %v9667_v29  ;;  %v9979_v38 = vadd.f32 %v972_v52, %v9671_v58  ;;  %v6897_v52 = vpop.f32.mrf.mxu1  ;;  %v3102_v3 = vld [vmem:[#allocation2 + $0x28] sm:$0xff] }
 0x260   : > { %13938 = vst [vmem:[#allocation351_spill] sm:$0xff] %v9966_v5  ;;  %13939 = vst [vmem:[#allocation352_spill] sm:$0xff] %v9969_v24  ;;  %v1374_v36 = vmul.f32 %v9337_v20, %v13934_v9  ;;  %v1375_v57 = vmul.f32 %v9337_v20, %v13935_v61  ;;  %v9987_v23 = vadd.f32 %v1072_v4, %v9626_v17  ;;  %v13944_v17 = vld [vmem:[#allocation63_spill] sm:$0xff]  ;;  %v10088_v15 = vld [vmem:[#allocation3 + $0x68] sm:$0xff] }
 0x261   : > { %13940 = vst [vmem:[#allocation353_spill] sm:$0xff] %v9973_v26  ;;  %3132 = vst.msk [vmem:[#allocation3 + $0x48] sm:$0xff] %vm319_vm0, %v3100_v19  ;;  %v9990_v28 = vadd.f32 %v1073_v30, %v9674_v42  ;;  %v9993_v29 = vadd.f32 %v1172_v33, %v9636_v53  ;;  %v9996_v58 = vadd.f32 %v1173_v54, %v9678_v16  ;;  %v654_v4 = vmax.f32 %v13944_v17, 0.0  ;;  %v10013_v16 = vld [vmem:[#allocation3 + $0x100] sm:$0xff]  ;;  %v10024_v30 = vld [vmem:[#allocation3 + $0x58] sm:$0xff] }
 0x262   : > { %v9999_v24 = vadd.f32 %v9844_v40, %v2464_v1  ;;  %v2665_v5 = vadd.f32 %v9848_v59, %v2564_v41  ;;  %v10003_v19 = vadd.f32 %v1273_v60, %v9641_v10  ;;  %v10007_v42 = vadd.f32 %v1274_v51, %v9681_v7  ;;  %v10018_v40 = vld [vmem:[%s13112_s2] ss:$0 sm:$0xff]  ;;  %v10022_v60 = vld [vmem:[#allocation3 + $0xb8] sm:$0xff]  ;;  %13948 = vst [vmem:[#allocation359_spill] sm:$0xff] %v10024_v30  ;;  %v13950_v54 = vld [vmem:[#allocation300_spill] sm:$0xff] }
 0x263   : > { %13941 = vst [vmem:[#allocation354_spill] sm:$0xff] %v9990_v28  ;;  %13942 = vst [vmem:[#allocation355_spill] sm:$0xff] %v9996_v58  ;;  %v10011_v53 = vmul.f32 %v9347_v35, %v13934_v9  ;;  %v628_v59 = vadd.f32 %v10018_v40, %v6897_v52  ;;  %v543_v10 = vadd.f32 %v10018_v40, %v542_v55  ;;  %v3114_v41 = vld [vmem:[#allocation2 + $0x88] sm:$0xff]  ;;  %v10050_v55 = vld [vmem:[#allocation3 + $0xb8] sm:$0xff] }
 0x264   : > { %13943 = vst [vmem:[#allocation356_spill] sm:$0xff] %v9999_v24  ;;  %13945 = vst [vmem:[#allocation63_spill] sm:$0xff] %v10007_v42  ;;  %v10027_v7 = vadd.f32 %v1374_v36, %v9662_v46  ;;  %v10030_v9 = vadd.f32 %v1375_v57, %v9704_v39  ;;  %v10034_v33 = vmul.f32 %v9347_v35, %v13935_v61  ;;  %v13952_v51 = vld [vmem:[#allocation40_spill] sm:$0xff]  ;;  %v622_v57 = vpop.f32.mrf.mxu1  ;;  %v10055_v52 = vld [vmem:[#allocation9 + $0x36] ss:$0 sm:$0xff] }
 0x265   : > { %13946 = vst [vmem:[#allocation357_spill] sm:$0xff] %v10011_v53  ;;  %13947 = vst [vmem:[#allocation358_spill] sm:$0xff] %v10022_v60  ;;  %v10038_v1 = vmul.f32 %v13904_v21, %v13950_v54  ;;  %v10044_v46 = vmul.f32 %v9892_v48, %v13952_v51  ;;  %v10048_v39 = vmul.f32 %v9930_v22, %v9620_v50  ;;  %v670_v36 = vmax.f32 %v628_v59, 0.0  ;;  %v3104_v59 = vld [vmem:[#allocation2 + $0x38] sm:$0xff]  ;;  %v13973_v26 = vld [vmem:[#allocation65_spill] sm:$0xff] }
 0x266   : > { %13949 = vst [vmem:[#allocation360_spill] sm:$0xff] %v10034_v33  ;;  %686 = vst.msk [vmem:[#allocation2 + $0x68] sm:$0xff] %vm319_vm0, %v654_v4  ;;  %v653_v61 = vmax.f32 %v543_v10, 0.0  ;;  %v10053_v21 = vadd.f32 %v9852_v25, %v2665_v5  ;;  %v10063_v17 = vmul.f32 %v9760_v14, %v13873_v6  ;;  %v10067_v4 = vmul.f32 %v9760_v14, %v13874_v13  ;;  %v13959_v6 = vld [vmem:[#allocation95_spill] sm:$0xff]  ;;  %v13960_v10 = vld [vmem:[#allocation305_spill] sm:$0xff] }
 0x267   : > { %13951 = vst [vmem:[#allocation361_spill] sm:$0xff] %v10038_v1  ;;  %3134 = vst.msk [vmem:[#allocation3 + $0x58] sm:$0xff] %vm319_vm0, %v3102_v3  ;;  %v10059_v3 = vmul.f32 %v10055_v52, %v10013_v16  ;;  %v10074_v25 = vmul.f32 %v9796_v11, %v13880_v62  ;;  %v10078_v5 = vmul.f32 %v9796_v11, %v13881_v27  ;;  %v13961_v13 = vld [vmem:[#allocation96_spill] sm:$0xff]  ;;  %v13968_v1 = vld [vmem:[#allocation39_spill] sm:$0xff] }
 0x268   : > { %13953 = vst [vmem:[#allocation362_spill] sm:$0xff] %v10044_v46  ;;  %13954 = vst [vmem:[#allocation363_spill] sm:$0xff] %v10048_v39  ;;  %v13965_v39 = vld [vmem:[#allocation139_spill] sm:$0xff]  ;;  %v13967_v46 = vld [vmem:[#allocation185_spill] sm:$0xff]  ;;  %v623_v24 = vadd.f32 %v10018_v40, %v622_v57 }
 0x269   : > { %13955 = vst [vmem:[#allocation364_spill] sm:$0xff] %v10050_v55  ;;  %13956 = vst [vmem:[#allocation365_spill] sm:$0xff] %v10053_v21  ;;  %v10100_v21 = vmul.f32 %v13968_v1, %v13967_v46  ;;  %v13970_v55 = vld [vmem:[#allocation186_spill] sm:$0xff]  ;;  %v13975_v33 = vld [vmem:[#allocation252_spill] sm:$0xff] }
 0x26a   : > { %13957 = vst [vmem:[#allocation366_spill] sm:$0xff] %v10055_v52  ;;  %13958 = vst [vmem:[#allocation367_spill] sm:$0xff] %v10059_v3  ;;  %v10082_v3 = vmul.f32 %v13960_v10, %v13959_v6  ;;  %v10106_v30 = vmul.f32 %v13968_v1, %v13970_v55  ;;  %v10114_v53 = vmul.f32 %v13973_v26, %v13975_v33  ;;  %v13977_v22 = vld [vmem:[#allocation64_spill] sm:$0xff]  ;;  %v13978_v48 = vld [vmem:[#allocation66_spill] sm:$0xff] }
 0x26b   : > { %3146 = vst.msk [vmem:[#allocation3 + $0xb8] sm:$0xff] %vm319_vm0, %v3114_v41  ;;  %702 = vst.msk [vmem:[#allocation2 + $0xe8] sm:$0xff] %vm319_vm0, %v670_v36  ;;  %v10086_v41 = vmul.f32 %v13960_v10, %v13961_v13  ;;  %v13963_v36 = vld [vmem:[#allocation138_spill] sm:$0xff]  ;;  %v10118_v42 = vmul.f32 %v13978_v48, %v13977_v22  ;;  %v10122_v57 = vmul.f32 %v13978_v48, %v13897_v8  ;;  %v13984_v28 = vld [vmem:[#allocation56_spill] sm:$0xff] }
 0x26c   : > { %685 = vst.msk [vmem:[#allocation2 + $0x60] sm:$0xff] %vm319_vm0, %v653_v61  ;;  %13962 = vst [vmem:[#allocation95_spill] sm:$0xff] %v10088_v15  ;;  %v13964_v61 = vld [vmem:[#allocation306_spill] sm:$0xff]  ;;  %v13972_v15 = vld [vmem:[#allocation32_spill] sm:$0xff] }
 0x26d   : > { %v10092_v2 = vmul.f32 %v13964_v61, %v13963_v36  ;;  %v10096_v18 = vmul.f32 %v13964_v61, %v13965_v39  ;;  %13969 = vst [vmem:[#allocation138_spill] sm:$0xff] %v10100_v21  ;;  %3136 = vst.msk [vmem:[#allocation3 + $0x68] sm:$0xff] %vm319_vm0, %v3104_v59  ;;  %v10110_v52 = vmul.f32 %v13973_v26, %v13972_v15  ;;  %v13981_v59 = vld [vmem:[#allocation174_spill] sm:$0xff]  ;;  %v731_v58 = vld [vmem:[#allocation2 + $0x68] sm:$0x1f] }
 0x26e   : > { %13971 = vst [vmem:[#allocation306_spill] sm:$0xff] %v10106_v30  ;;  %13976 = vst [vmem:[#allocation185_spill] sm:$0xff] %v10114_v53  ;;  %v10126_v21 = vmul.f32 %v13981_v59, %v13898_v32  ;;  %v10130_v30 = vmul.f32 %v13899_v47, %v13900_v56  ;;  %v10134_v53 = vmul.f32 %v9760_v14, %v13984_v28  ;;  %v13985_v22 = vld [vmem:[#allocation57_spill] sm:$0xff]  ;;  %v13986_v8 = vld [vmem:[#allocation78_spill] sm:$0xff] }
 0x26f   : > { %13966 = vst [vmem:[#allocation96_spill] sm:$0xff] %v10096_v18  ;;  %13974 = vst [vmem:[#allocation139_spill] sm:$0xff] %v10110_v52  ;;  %v669_v52 = vmax.f32 %v623_v24, 0.0  ;;  %v13988_v32 = vld [vmem:[#allocation79_spill] sm:$0xff]  ;;  %v13990_v24 = vld [vmem:[#allocation98_spill] sm:$0xff] }
 0x270   : > { %13979 = vst [vmem:[#allocation39_spill] sm:$0xff] %v10118_v42  ;;  %13980 = vst [vmem:[#allocation32_spill] sm:$0xff] %v10122_v57  ;;  %v10138_v42 = vmul.f32 %v9760_v14, %v13985_v22  ;;  %v10142_v57 = vmul.f32 %v9796_v11, %v13986_v8  ;;  %v10152_v56 = vmul.f32 %v13960_v10, %v13990_v24  ;;  %v13993_v28 = vld [vmem:[#allocation145_spill] sm:$0xff] }
 0x271   : > { %13982 = vst [vmem:[#allocation65_spill] sm:$0xff] %v10126_v21  ;;  %13983 = vst [vmem:[#allocation252_spill] sm:$0xff] %v10130_v30  ;;  %v10146_v21 = vmul.f32 %v9796_v11, %v13988_v32  ;;  %v13992_v30 = vld [vmem:[#allocation103_spill] sm:$0xff]  ;;  %v10160_v8 = vmul.f32 %v13964_v61, %v13993_v28  ;;  %v13998_v18 = vld [vmem:[#allocation197_spill] sm:$0xff] }
 0x272   : > { %13987 = vst [vmem:[#allocation64_spill] sm:$0xff] %v10142_v57  ;;  %765 = vst.msk [vmem:[#allocation3 + $0x9b] sm:$0x1f] %vm752_vm2, %v731_v58  ;;  %v10156_v22 = vmul.f32 %v13960_v10, %v13992_v30  ;;  %v13995_v57 = vld [vmem:[#allocation146_spill] sm:$0xff]  ;;  %v13997_v58 = vld [vmem:[#allocation196_spill] sm:$0xff]  ;;  %v10172_v24 = vmul.f32 %v13968_v1, %v13998_v18 }
 0x273   : > { %13989 = vst [vmem:[#allocation66_spill] sm:$0xff] %v10146_v21  ;;  %701 = vst.msk [vmem:[#allocation2 + $0xe0] sm:$0xff] %vm319_vm0, %v669_v52  ;;  %v10164_v32 = vmul.f32 %v13964_v61, %v13995_v57  ;;  %v3106_v21 = vld [vmem:[#allocation2 + $0x48] sm:$0xff]  ;;  %v10168_v52 = vmul.f32 %v13968_v1, %v13997_v58  ;;  %v10182_v61 = vld [vmem:[#allocation3 + $0x78] sm:$0xff]  ;;  %v10190_v1 = vmul.f32 %v13978_v48, %v10022_v60 }
 0x274   : > { %13991 = vst [vmem:[#allocation174_spill] sm:$0xff] %v10152_v56  ;;  %13994 = vst [vmem:[#allocation368_spill] sm:$0xff] %v10160_v8  ;;  %v13999_v56 = vld [vmem:[#allocation267_spill] sm:$0xff]  ;;  %v14001_v10 = vld [vmem:[#allocation268_spill] sm:$0xff]  ;;  %v6876_v8 = vpop.f32.mrf.mxu0 }
 0x275   : > { %13996 = vst [vmem:[#allocation369_spill] sm:$0xff] %v10164_v32  ;;  %v10176_v30 = vmul.f32 %v13973_v26, %v13999_v56  ;;  %v10180_v28 = vmul.f32 %v13973_v26, %v14001_v10  ;;  %14003 = vst [vmem:[#allocation372_spill] sm:$0xff] %v10182_v61  ;;  %v747_v57 = vld [vmem:[#allocation2 + $0xe8] sm:$0x1f]  ;;  %v14004_v32 = vld [vmem:[#allocation71_spill] sm:$0xff] }
 0x276   : > { %v10186_v58 = vmul.f32 %v13978_v48, %v14004_v32  ;;  %14006 = vst [vmem:[#allocation374_spill] sm:$0xff] %v10190_v1  ;;  %v14007_v18 = vld [vmem:[#allocation92_spill] sm:$0xff]  ;;  %3138 = vst.msk [vmem:[#allocation3 + $0x78] sm:$0xff] %vm319_vm0, %v3106_v21  ;;  %v14011_v61 = vld [vmem:[#allocation175_spill] sm:$0xff] }
 0x277   : > { %14000 = vst [vmem:[#allocation370_spill] sm:$0xff] %v10176_v30  ;;  %14002 = vst [vmem:[#allocation371_spill] sm:$0xff] %v10180_v28  ;;  %v10194_v56 = vmul.f32 %v13981_v59, %v14007_v18  ;;  %v14009_v30 = vld [vmem:[#allocation134_spill] sm:$0xff]  ;;  %v14012_v10 = vld [vmem:[#allocation41_spill] sm:$0xff] }
 0x278   : > { %14005 = vst [vmem:[#allocation373_spill] sm:$0xff] %v10186_v58  ;;  %v10198_v26 = vmul.f32 %v13899_v47, %v14009_v30  ;;  %781 = vst.msk [vmem:[#allocation3 + $0x11b] sm:$0x1f] %vm752_vm2, %v747_v57  ;;  %v10204_v32 = vmul.f32 %v14012_v10, %v14011_v61  ;;  %v14014_v58 = vld [vmem:[#allocation234_spill] sm:$0xff]  ;;  %v14015_v28 = vld [vmem:[#allocation223_spill] sm:$0xff] }
 0x279   : > { %14008 = vst [vmem:[#allocation375_spill] sm:$0xff] %v10194_v56  ;;  %v10208_v48 = vmul.f32 %v14015_v28, %v14014_v58  ;;  %v14017_v60 = vld [vmem:[#allocation104_spill] sm:$0xff]  ;;  %v7154_v18 = vld [vmem:[#allocation9 + $0x3] ss:$0 sm:$0xff]  ;;  %v14022_v57 = vld [vmem:[#allocation125_spill] sm:$0xff] }
 0x27a   : > { %14010 = vst [vmem:[#allocation376_spill] sm:$0xff] %v10198_v26  ;;  %14013 = vst [vmem:[#allocation41_spill] sm:$0xff] %v10204_v32  ;;  %v14018_v1 = vld [vmem:[#allocation228_spill] sm:$0xff]  ;;  %v14020_v56 = vld [vmem:[#allocation91_spill] sm:$0xff] }
 0x27b   : > { %14016 = vst [vmem:[#allocation223_spill] sm:$0xff] %v10208_v48  ;;  %v10212_v59 = vmul.f32 %v14018_v1, %v14017_v60  ;;  %v10215_v47 = vmul.f32 %v7154_v18, %v14020_v56  ;;  %v10217_v30 = vld [vmem:[#allocation2 + $0x60] sm:$0xff]  ;;  %v7155_v21 = vld [vmem:[#allocation9 + $0xb] ss:$0 sm:$0xff]  ;;  %v7156_v10 = vld [vmem:[#allocation9 + $0x13] ss:$0 sm:$0xff] }
 0x27c   : > { %v10220_v26 = vmul.f32 %v7155_v21, %v14022_v57  ;;  %v14024_v61 = vld [vmem:[#allocation164_spill] sm:$0xff]  ;;  %v7157_v28 = vld [vmem:[#allocation9 + $0x1b] ss:$0 sm:$0xff]  ;;  %v7158_v1 = vld [vmem:[#allocation9 + $0x23] ss:$0 sm:$0xff]  ;;  %764 = vst.msk [vmem:[#allocation3 + $0x93] sm:$0xff] %vm319_vm0, %v10217_v30 }
 0x27d   : > { %14019 = vst [vmem:[#allocation228_spill] sm:$0xff] %v10212_v59  ;;  %14021 = vst [vmem:[#allocation377_spill] sm:$0xff] %v10215_v47  ;;  %v10223_v32 = vmul.f32 %v7156_v10, %v14024_v61  ;;  %v14026_v58 = vld [vmem:[#allocation212_spill] sm:$0xff]  ;;  %v14028_v60 = vld [vmem:[#allocation263_spill] sm:$0xff] }
 0x27e   : > { %14023 = vst [vmem:[#allocation378_spill] sm:$0xff] %v10220_v26  ;;  %v10226_v48 = vmul.f32 %v7157_v28, %v14026_v58  ;;  %v10229_v59 = vmul.f32 %v7158_v1, %v14028_v60  ;;  %v3108_v18 = vld [vmem:[#allocation2 + $0x58] sm:$0xff]  ;;  %v7159_v56 = vld [vmem:[#allocation9 + $0x2b] ss:$0 sm:$0xff]  ;;  %v10236_v57 = vld [vmem:[#allocation9 + $0x4] ss:$0 sm:$0xff] }
 0x27f   : > { %14025 = vst [vmem:[#allocation379_spill] sm:$0xff] %v10223_v32  ;;  %v10234_v21 = vmul.f32 %v7159_v56, %v13950_v54  ;;  %v14031_v10 = vld [vmem:[#allocation119_spill] sm:$0xff]  ;;  %v10242_v28 = vld [vmem:[#allocation9 + $0xc] ss:$0 sm:$0xff]  ;;  %v14034_v58 = vld [vmem:[#allocation153_spill] sm:$0xff]  ;;  %v552_v32 = vpop.f32.mrf.mxu0 }
 0x280   : > { %14027 = vst [vmem:[#allocation380_spill] sm:$0xff] %v10226_v48  ;;  %14029 = vst [vmem:[#allocation381_spill] sm:$0xff] %v10229_v59  ;;  %v10240_v61 = vmul.f32 %v10236_v57, %v14031_v10  ;;  %v10246_v1 = vmul.f32 %v10242_v28, %v14034_v58  ;;  %v14036_v60 = vld [vmem:[#allocation202_spill] sm:$0xff]  ;;  %v5545_v48 = vld [vmem:[#allocation3 + $0xb0] sm:$0xff] }
 0x281   : > { %14030 = vst [vmem:[#allocation382_spill] sm:$0xff] %v10234_v21  ;;  %14033 = vst [vmem:[#allocation383_spill] sm:$0xff] %v10242_v28  ;;  %v10250_v59 = vmul.f32 %v9870_v37, %v14036_v60  ;;  %v14038_v56 = vld [vmem:[#allocation31_spill] sm:$0xff]  ;;  %v14040_v21 = vld [vmem:[#allocation102_spill] sm:$0xff]  ;;  %v6900_v37 = vpop.f32.mrf.mxu1 }
 0x282   : > { %14032 = vst [vmem:[#allocation119_spill] sm:$0xff] %v10240_v61  ;;  %14035 = vst [vmem:[#allocation384_spill] sm:$0xff] %v10246_v1  ;;  %v10254_v54 = vmul.f32 %v9876_v45, %v14038_v56  ;;  %v10258_v10 = vmul.f32 %v9882_v12, %v14040_v21  ;;  %v14042_v61 = vld [vmem:[#allocation216_spill] sm:$0xff]  ;;  %v10264_v58 = vld [vmem:[#allocation9 + $0x5] ss:$0 sm:$0xff] }
 0x283   : > { %14037 = vst [vmem:[#allocation385_spill] sm:$0xff] %v10250_v59  ;;  %v10262_v26 = vmul.f32 %v14042_v61, %v13952_v51  ;;  %14044 = vst [vmem:[#allocation389_spill] sm:$0xff] %v10264_v58  ;;  %v14045_v1 = vld [vmem:[#allocation149_spill] sm:$0xff]  ;;  %v5646_v59 = vld [vmem:[#allocation3 + $0xc0] sm:$0xff] }
 0x284   : > { %14039 = vst [vmem:[#allocation386_spill] sm:$0xff] %v10254_v54  ;;  %14041 = vst [vmem:[#allocation387_spill] sm:$0xff] %v10258_v10  ;;  %v10268_v60 = vmul.f32 %v10264_v58, %v14045_v1  ;;  %v5747_v47 = vld [vmem:[#allocation3 + $0xd0] sm:$0xff]  ;;  %v10270_v28 = vld [vmem:[#allocation3 + $0x88] sm:$0xff]  ;;  %v638_v58 = vadd.f32 %v10018_v40, %v6900_v37 }
 0x285   : > { %14043 = vst [vmem:[#allocation388_spill] sm:$0xff] %v10262_v26  ;;  %14047 = vst [vmem:[#allocation390_spill] sm:$0xff] %v10270_v28  ;;  %v10272_v56 = vld [vmem:[#allocation2 + $0xe0] sm:$0xff]  ;;  %v10274_v54 = vld [vmem:[#allocation9 + $0xd] ss:$0 sm:$0xff] }
 0x286   : > { %14046 = vst [vmem:[#allocation149_spill] sm:$0xff] %v10268_v60  ;;  %14048 = vst [vmem:[#allocation391_spill] sm:$0xff] %v10274_v54  ;;  %v14049_v21 = vld [vmem:[#allocation190_spill] sm:$0xff]  ;;  %v14051_v51 = vld [vmem:[#allocation239_spill] sm:$0xff]  ;;  %v558_v60 = vadd.f32 %v10018_v40, %v6876_v8  ;;  %v553_v8 = vadd.f32 %v10018_v40, %v552_v32 }
 0x287   : > { %v10278_v10 = vmul.f32 %v10274_v54, %v14049_v21  ;;  %v10282_v26 = vmul.f32 %v9906_v34, %v14051_v51  ;;  %v5848_v61 = vld [vmem:[#allocation3 + $0xe0] sm:$0xff]  ;;  %v5949_v1 = vld [vmem:[#allocation3 + $0xf0] sm:$0xff]  ;;  %3140 = vst.msk [vmem:[#allocation3 + $0x88] sm:$0xff] %vm319_vm0, %v3108_v18  ;;  %780 = vst.msk [vmem:[#allocation3 + $0x113] sm:$0xff] %vm319_vm0, %v10272_v56 }
 0x288   : > { %v14053_v28 = vld [vmem:[#allocation270_spill] sm:$0xff]  ;;  %v14055_v21 = vld [vmem:[#allocation296_spill] sm:$0xff]  ;;  %v10302_v37 = vld [vmem:[#allocation9 + $0x6] ss:$0 sm:$0xff] }
 0x289   : > { %14050 = vst [vmem:[#allocation392_spill] sm:$0xff] %v10278_v10  ;;  %14052 = vst [vmem:[#allocation393_spill] sm:$0xff] %v10282_v26  ;;  %v10291_v12 = vmul.f32 %v9912_v44, %v14053_v28  ;;  %v14056_v10 = vld [vmem:[#allocation342_spill] sm:$0xff]  ;;  %v14058_v51 = vld [vmem:[#allocation344_spill] sm:$0xff]  ;;  %v10305_v18 = vmul.f32 %v10302_v37, %v5545_v48  ;;  %v672_v44 = vmax.f32 %v638_v58, 0.0  ;;  %v10337_v58 = vmul.f32 %v9760_v14, %v13880_v62 }
 0x28a   : > { %v10295_v54 = vmul.f32 %v14056_v10, %v14055_v21  ;;  %v10299_v26 = vmul.f32 %v14058_v51, %v9620_v50  ;;  %14060 = vst [vmem:[#allocation397_spill] sm:$0xff] %v10302_v37  ;;  %v10307_v34 = vld [vmem:[#allocation9 + $0xe] ss:$0 sm:$0xff]  ;;  %v10312_v21 = vld [vmem:[#allocation9 + $0x16] ss:$0 sm:$0xff]  ;;  %v10354_v62 = vmul.f32 %v9760_v14, %v13963_v36 }
 0x28b   : > { %14054 = vst [vmem:[#allocation394_spill] sm:$0xff] %v10291_v12  ;;  %14061 = vst [vmem:[#allocation398_spill] sm:$0xff] %v10305_v18  ;;  %v10310_v28 = vmul.f32 %v10307_v34, %v5646_v59  ;;  %v656_v12 = vmax.f32 %v558_v60, 0.0  ;;  %v10317_v50 = vld [vmem:[#allocation9 + $0x1e] ss:$0 sm:$0xff]  ;;  %v655_v18 = vmax.f32 %v553_v8, 0.0 }
 0x28c   : > { %14057 = vst [vmem:[#allocation395_spill] sm:$0xff] %v10295_v54  ;;  %14059 = vst [vmem:[#allocation396_spill] sm:$0xff] %v10299_v26  ;;  %v10315_v54 = vmul.f32 %v10312_v21, %v5747_v47  ;;  %v10320_v32 = vmul.f32 %v10317_v50, %v5848_v61  ;;  %v10322_v40 = vld [vmem:[#allocation9 + $0x26] ss:$0 sm:$0xff]  ;;  %v10327_v59 = vld [vmem:[#allocation9 + $0x2e] ss:$0 sm:$0xff]  ;;  %v10341_v61 = vmul.f32 %v9760_v14, %v13881_v27 }
 0x28d   : > { %14062 = vst [vmem:[#allocation399_spill] sm:$0xff] %v10307_v34  ;;  %14063 = vst [vmem:[#allocation400_spill] sm:$0xff] %v10310_v28  ;;  %v10325_v48 = vmul.f32 %v10322_v40, %v5949_v1  ;;  %v10331_v60 = vmul.f32 %v10327_v59, %v10013_v16  ;;  %v10345_v47 = vmul.f32 %v9760_v14, %v13959_v6  ;;  %v1532_v1 = vld [vmem:[#allocation2 + $0x68] sm:$0x3f]  ;;  %v820_v8 = vld [vmem:[#allocation3 + $0x90] sm:$0xff] }
 0x28e   : > { %14064 = vst [vmem:[#allocation401_spill] sm:$0xff] %v10312_v21  ;;  %14065 = vst [vmem:[#allocation402_spill] sm:$0xff] %v10315_v54  ;;  %v821_v16 = vld [vmem:[#allocation3 + $0x98] sm:$0xff]  ;;  %v10358_v27 = vmul.f32 %v9760_v14, %v13965_v39  ;;  %v10380_v54 = vmul.f32 %v9760_v14, %v13975_v33  ;;  %v1058_v28 = vmul.f32 %v9209_v43, %v820_v8  ;;  %v2321_v34 = vld [vmem:[#allocation2 + $0x68] sm:$0x7f] }
 0x28f   : > { %14066 = vst [vmem:[#allocation403_spill] sm:$0xff] %v10317_v50  ;;  %14067 = vst [vmem:[#allocation404_spill] sm:$0xff] %v10320_v32  ;;  %v10376_v32 = vmul.f32 %v9760_v14, %v13972_v15  ;;  %v1158_v26 = vmul.f32 %v9225_v0, %v820_v8  ;;  %v14096_v51 = vld [vmem:[#allocation136_spill] sm:$0xff] }
 0x290   : > { %14068 = vst [vmem:[#allocation405_spill] sm:$0xff] %v10322_v40  ;;  %14069 = vst [vmem:[#allocation406_spill] sm:$0xff] %v10325_v48  ;;  %v10372_v48 = vmul.f32 %v9760_v14, %v13970_v55 }
 0x291   : > { %14070 = vst [vmem:[#allocation407_spill] sm:$0xff] %v10327_v59  ;;  %14071 = vst [vmem:[#allocation408_spill] sm:$0xff] %v10331_v60  ;;  %v957_v60 = vmul.f32 %v9203_v49, %v820_v8  ;;  %v10433_v59 = vmul.f32 %v9796_v11, %v13970_v55 }
 0x292   : > { %688 = vst.msk [vmem:[#allocation2 + $0x78] sm:$0xff] %vm319_vm0, %v656_v12  ;;  %704 = vst.msk [vmem:[#allocation2 + $0xf8] sm:$0xff] %vm319_vm0, %v672_v44  ;;  %v10350_v44 = vmul.f32 %v9760_v14, %v13961_v13  ;;  %v10362_v12 = vmul.f32 %v9760_v14, %v13967_v46 }
 0x293   : > { %14072 = vst [vmem:[#allocation409_spill] sm:$0xff] %v10337_v58  ;;  %14073 = vst [vmem:[#allocation410_spill] sm:$0xff] %v10341_v61 }
 0x294   : > { %14074 = vst [vmem:[#allocation411_spill] sm:$0xff] %v10345_v47  ;;  %687 = vst.msk [vmem:[#allocation2 + $0x70] sm:$0xff] %vm319_vm0, %v655_v18  ;;  %v14079_v18 = vmov 0.0   ;;  %v10400_v47 = vmul.f32 %v9796_v11, %v13963_v36 }
 0x295   : > { %14075 = vst [vmem:[#allocation412_spill] sm:$0xff] %v10350_v44  ;;  %14076 = vst [vmem:[#allocation413_spill] sm:$0xff] %v10354_v62  ;;  %v1038_v44 = vld [vmem:[#allocation3 + $0x110] sm:$0xff] }
 0x296   : > { %14077 = vst [vmem:[#allocation414_spill] sm:$0xff] %v10358_v27  ;;  %14078 = vst [vmem:[#allocation415_spill] sm:$0xff] %v10362_v12  ;;  %v10390_v12 = vmul.f32 %v9796_v11, %v13961_v13  ;;  %v14085_v27 = vld [vmem:[#allocation323_spill] sm:$0xff]  ;;  %v958_v13 = vmul.f32 %v9203_v49, %v821_v16  ;;  %v1059_v49 = vmul.f32 %v9209_v43, %v821_v16 }
 0x297   : > { %1564 = vst.msk [vmem:[#allocation3 + $0x92] sm:$0xff] %vm319_vm0, %v10217_v30  ;;  %14080 = vst [vmem:[#allocation416_spill] sm:$0xff] %v10372_v48  ;;  %v1548_v48 = vld [vmem:[#allocation2 + $0xe8] sm:$0x3f]  ;;  %v10393_v62 = vadd.f32 %v957_v60, %v14085_v27  ;;  %v1074_v61 = vmul.f32 %v9209_v43, %v1038_v44  ;;  %v1174_v21 = vmul.f32 %v9225_v0, %v1038_v44 }
 0x298   : > { %1565 = vst.msk [vmem:[#allocation3 + $0x9a] sm:$0x3f] %vm1552_vm3, %v1532_v1  ;;  %14081 = vst [vmem:[#allocation417_spill] sm:$0xff] %v10376_v32  ;;  %v10386_v1 = vmul.f32 %v9796_v11, %v13959_v6  ;;  %v1259_v32 = vmul.f32 %v9322_v31, %v820_v8  ;;  %v10404_v6 = vmul.f32 %v9796_v11, %v13965_v39  ;;  %v14089_v60 = vld [vmem:[#allocation120_spill] sm:$0xff] }
 0x299   : > { %1591 = vst.msk [vmem:[#allocation3 + $0x90] sm:$0x3] %vm1584_vm4, %v14079_v18  ;;  %14082 = vst [vmem:[#allocation418_spill] sm:$0xff] %v10380_v54  ;;  %v10396_v54 = vld [vmem:[#allocation3 + $0x118] sm:$0xff]  ;;  %v10411_v27 = vadd.f32 %v1158_v26, %v14089_v60  ;;  %v1360_v26 = vmul.f32 %v9337_v20, %v820_v8  ;;  %v1461_v60 = vmul.f32 %v9347_v35, %v820_v8  ;;  %v14095_v43 = vld [vmem:[#allocation324_spill] sm:$0xff] }
 0x29a   : > { %14083 = vst [vmem:[#allocation419_spill] sm:$0xff] %v10386_v1  ;;  %14084 = vst [vmem:[#allocation420_spill] sm:$0xff] %v10390_v12  ;;  %v14088_v12 = vld [vmem:[#allocation321_spill] sm:$0xff]  ;;  %v733_v58 = vld [vmem:[#allocation2 + $0x78] sm:$0x1f]  ;;  %v10447_v37 = vadd.f32 %v958_v13, %v14095_v43  ;;  %v1260_v13 = vmul.f32 %v9322_v31, %v821_v16 }
 0x29b   : > { %14086 = vst [vmem:[#allocation323_spill] sm:$0xff] %v10400_v47  ;;  %14087 = vst [vmem:[#allocation421_spill] sm:$0xff] %v10404_v6  ;;  %v10408_v1 = vadd.f32 %v1058_v28, %v14088_v12  ;;  %v10420_v47 = vmul.f32 %v9796_v11, %v13967_v46  ;;  %v1159_v28 = vmul.f32 %v9225_v0, %v821_v16  ;;  %v14091_v12 = vld [vmem:[#allocation217_spill] sm:$0xff]  ;;  %v14100_v0 = vld [vmem:[#allocation327_spill] sm:$0xff] }
 0x29c   : > { %1580 = vst.msk [vmem:[#allocation3 + $0x112] sm:$0xff] %vm319_vm0, %v10272_v56  ;;  %v10425_v6 = vadd.f32 %v1259_v32, %v14091_v12  ;;  %14092 = vst [vmem:[#allocation120_spill] sm:$0xff] %v10433_v59  ;;  %v14094_v32 = vld [vmem:[#allocation130_spill] sm:$0xff]  ;;  %v1493_v55 = vadd.f32 %v1461_v60, %v14096_v51  ;;  %v10471_v51 = vadd.f32 %v1174_v21, %v9987_v23  ;;  %v2337_v60 = vld [vmem:[#allocation2 + $0xe8] sm:$0x7f] }
 0x29d   : > { %1581 = vst.msk [vmem:[#allocation3 + $0x11a] sm:$0x3f] %vm1552_vm3, %v1548_v48  ;;  %14090 = vst [vmem:[#allocation321_spill] sm:$0xff] %v10420_v47  ;;  %v1462_v48 = vmul.f32 %v9347_v35, %v821_v16  ;;  %v14093_v47 = vld [vmem:[#allocation266_spill] sm:$0xff]  ;;  %v10442_v12 = vadd.f32 %v1360_v26, %v14094_v32  ;;  %v1376_v23 = vmul.f32 %v9337_v20, %v1038_v44 }
 0x29e   : > { %1599 = vst.msk [vmem:[#allocation3 + $0x110] sm:$0x3] %vm1584_vm4, %v14079_v18  ;;  %v10436_v40 = vmul.f32 %v14093_v47, %v820_v8  ;;  %v10439_v50 = vmul.f32 %v14093_v47, %v821_v16  ;;  %v14097_v59 = vld [vmem:[#allocation50_spill] sm:$0xff]  ;;  %v10456_v47 = vadd.f32 %v1074_v61, %v9976_v63  ;;  %14101 = vst [vmem:[#allocation266_spill] sm:$0xff] %v10471_v51 }
 0x29f   : > { %767 = vst.msk [vmem:[#allocation3 + $0xab] sm:$0x1f] %vm752_vm2, %v733_v58  ;;  %v1494_v10 = vadd.f32 %v1462_v48, %v14097_v59  ;;  %v10453_v45 = vld [vmem:[#allocation3 + $0x98] sm:$0xff]  ;;  %v10462_v58 = vadd.f32 %v1159_v28, %v14100_v0  ;;  %v1361_v59 = vmul.f32 %v9337_v20, %v821_v16  ;;  %v1676_v61 = vadd.f32 %v10063_v17, %v1493_v55  ;;  %v10478_v48 = vld [vmem:[#allocation9 + $0x10] ss:$0 sm:$0xff] }
 0x2a0   : > { %v10451_v8 = vld [vmem:[#allocation3 + $0x90] sm:$0xff]  ;;  %14098 = vst [vmem:[#allocation217_spill] sm:$0xff] %v10456_v47  ;;  %v14099_v26 = vld [vmem:[#allocation326_spill] sm:$0xff]  ;;  %2354 = vst.msk [vmem:[#allocation3 + $0x99] sm:$0x7f] %vm2341_vm5, %v2321_v34  ;;  %v1275_v28 = vmul.f32 %v9322_v31, %v1038_v44  ;;  %v1075_v34 = vmul.f32 %v10478_v48, %v10396_v54  ;;  %v1477_v21 = vmul.f32 %v9347_v35, %v1038_v44 }
 0x2a1   : > { %v10459_v32 = vadd.f32 %v1059_v49, %v14099_v26  ;;  %2353 = vst.msk [vmem:[#allocation3 + $0x91] sm:$0xff] %vm319_vm0, %v10217_v30  ;;  %v749_v63 = vld [vmem:[#allocation2 + $0xf8] sm:$0x1f]  ;;  %v1677_v49 = vadd.f32 %v10067_v4, %v1494_v10  ;;  %v1478_v16 = vmul.f32 %v9347_v35, %v10396_v54  ;;  %v1777_v4 = vadd.f32 %v10074_v25, %v1676_v61  ;;  %v10504_v35 = vld [vmem:[#allocation2 + $0x70] sm:$0xff] }
 0x2a2   : > { %2380 = vst.msk [vmem:[#allocation3 + $0x90] sm:$0x1] %vm2373_vm6, %v14079_v18  ;;  %v10492_v43 = vld [vmem:[#allocation9 + $0x18] ss:$0 sm:$0xff]  ;;  %v10497_v0 = vadd.f32 %v1275_v28, %v9993_v29  ;;  %v1276_v25 = vmul.f32 %v9322_v31, %v10396_v54  ;;  %v1509_v44 = vadd.f32 %v1477_v21, %v10027_v7  ;;  %v1377_v31 = vmul.f32 %v9337_v20, %v10396_v54  ;;  %v3110_v21 = vld [vmem:[#allocation2 + $0x68] sm:$0xff] }
 0x2a3   : > { %783 = vst.msk [vmem:[#allocation3 + $0x12b] sm:$0x1f] %vm752_vm2, %v749_v63  ;;  %v1778_v10 = vadd.f32 %v10078_v5, %v1677_v49  ;;  %v1175_v26 = vmul.f32 %v10492_v43, %v10396_v54  ;;  %v10509_v5 = vadd.f32 %v1376_v23, %v10003_v19  ;;  %v1510_v29 = vadd.f32 %v1478_v16, %v10030_v9  ;;  %v14106_v63 = vld [vmem:[#allocation121_spill] sm:$0xff]  ;;  %v14109_v16 = vld [vmem:[#allocation96_spill] sm:$0xff] }
 0x2a4   : > { %v10488_v17 = vld [vmem:[#allocation3 + $0x118] sm:$0xff]  ;;  %14104 = vst [vmem:[#allocation136_spill] sm:$0xff] %v10497_v0  ;;  %766 = vst.msk [vmem:[#allocation3 + $0xa3] sm:$0xff] %vm319_vm0, %v10504_v35  ;;  %v10516_v61 = vadd.f32 %v1260_v13, %v14106_v63  ;;  %v1878_v49 = vadd.f32 %v10082_v3, %v1777_v4  ;;  %v10526_v7 = vadd.f32 %v1075_v34, %v9979_v38  ;;  %v10532_v4 = vld [vmem:[#allocation9 + $0x31] ss:$0 sm:$0xff] }
 0x2a5   : > { %v10486_v55 = vld [vmem:[#allocation3 + $0x110] sm:$0xff]  ;;  %14103 = vst [vmem:[#allocation324_spill] sm:$0xff] %v10488_v17  ;;  %2370 = vst.msk [vmem:[#allocation3 + $0x119] sm:$0x7f] %vm2341_vm5, %v2337_v60  ;;  %v1879_v28 = vadd.f32 %v10086_v41, %v1778_v10  ;;  %v1692_v9 = vadd.f32 %v10134_v53, %v1509_v44  ;;  %v1693_v23 = vadd.f32 %v10138_v42, %v1510_v29  ;;  %v14113_v42 = vld [vmem:[#allocation354_spill] sm:$0xff] }
 0x2a6   : > { %14102 = vst [vmem:[#allocation130_spill] sm:$0xff] %v10486_v55  ;;  %2369 = vst.msk [vmem:[#allocation3 + $0x111] sm:$0xff] %vm319_vm0, %v10272_v56  ;;  %v14107_v60 = vld [vmem:[#allocation49_spill] sm:$0xff]  ;;  %v1979_v13 = vadd.f32 %v10092_v2, %v1878_v49  ;;  %v2250_v20 = vmul.f32 %v10532_v4, %v10451_v8  ;;  %v10538_v54 = vmul.f32 %v10532_v4, %v10453_v45  ;;  %v14115_v53 = vld [vmem:[#allocation355_spill] sm:$0xff] }
 0x2a7   : > { %2388 = vst.msk [vmem:[#allocation3 + $0x110] sm:$0x1] %vm2373_vm6, %v14079_v18  ;;  %14105 = vst [vmem:[#allocation50_spill] sm:$0xff] %v10509_v5  ;;  %v10523_v19 = vadd.f32 %v1361_v59, %v14107_v60  ;;  %v1980_v3 = vadd.f32 %v14109_v16, %v1879_v28  ;;  %v10547_v2 = vadd.f32 %v1175_v26, %v14113_v42  ;;  %v14117_v34 = vld [vmem:[#allocation64_spill] sm:$0xff]  ;;  %v14118_v44 = vld [vmem:[#allocation66_spill] sm:$0xff] }
 0x2a8   : > { %14108 = vst [vmem:[#allocation326_spill] sm:$0xff] %v10526_v7  ;;  %14110 = vst [vmem:[#allocation327_spill] sm:$0xff] %v10532_v4  ;;  %v10542_v41 = vld [vmem:[#allocation3 + $0x98] sm:$0xff]  ;;  %v10550_v59 = vadd.f32 %v1276_v25, %v14115_v53  ;;  %v1793_v10 = vadd.f32 %v14117_v34, %v1692_v9  ;;  %v1794_v29 = vadd.f32 %v14118_v44, %v1693_v23  ;;  %v14120_v28 = vld [vmem:[#allocation63_spill] sm:$0xff] }
 0x2a9   : > { %v10540_v38 = vld [vmem:[#allocation3 + $0x90] sm:$0xff]  ;;  %14112 = vst [vmem:[#allocation49_spill] sm:$0xff] %v10542_v41  ;;  %14114 = vst [vmem:[#allocation96_spill] sm:$0xff] %v10547_v2  ;;  %v14119_v63 = vld [vmem:[#allocation138_spill] sm:$0xff]  ;;  %v10557_v60 = vadd.f32 %v1377_v31, %v14120_v28  ;;  %v10563_v26 = vmul.f32 %v10532_v4, %v10488_v17  ;;  %v10571_v23 = vmul.f32 %v9760_v14, %v10451_v8 }
 0x2aa   : > { %14111 = vst [vmem:[#allocation121_spill] sm:$0xff] %v10540_v38  ;;  %3141 = vst.msk [vmem:[#allocation3 + $0x90] sm:$0xff] %vm319_vm0, %v10217_v30  ;;  %v2080_v49 = vadd.f32 %v14119_v63, %v1979_v13  ;;  %v2266_v30 = vmul.f32 %v10532_v4, %v10486_v55  ;;  %v14122_v25 = vld [vmem:[#allocation174_spill] sm:$0xff]  ;;  %v1895_v9 = vadd.f32 %v10156_v22, %v1794_v29  ;;  %v14125_v53 = vld [vmem:[#allocation139_spill] sm:$0xff] }
 0x2ab   : > { %14116 = vst [vmem:[#allocation354_spill] sm:$0xff] %v10550_v59  ;;  %3142 = vst.msk [vmem:[#allocation3 + $0x98] sm:$0xff] %vm319_vm0, %v3110_v21  ;;  %v1894_v16 = vadd.f32 %v14122_v25, %v1793_v10  ;;  %v10575_v31 = vmul.f32 %v9760_v14, %v10453_v45  ;;  %v14124_v21 = vld [vmem:[#allocation306_spill] sm:$0xff]  ;;  %v10581_v44 = vld [vmem:[#allocation3 + $0xa0] sm:$0xff]  ;;  %v10587_v29 = vmul.f32 %v9796_v11, %v13972_v15 }
 0x2ac   : > { %14121 = vst [vmem:[#allocation355_spill] sm:$0xff] %v10557_v60  ;;  %v2081_v13 = vadd.f32 %v14124_v21, %v1980_v3  ;;  %v2181_v34 = vadd.f32 %v14125_v53, %v2080_v49  ;;  %v1534_v10 = vld [vmem:[#allocation2 + $0x78] sm:$0x3f]  ;;  %v10583_v22 = vld [vmem:[#allocation3 + $0xa8] sm:$0xff]  ;;  %v10591_v14 = vmul.f32 %v9796_v11, %v13975_v33  ;;  %v14127_v28 = vld [vmem:[#allocation369_spill] sm:$0xff]  ;;  %v10603_v21 = vmul.f32 %v9796_v11, %v10451_v8 }
 0x2ad   : > { %v14126_v63 = vld [vmem:[#allocation368_spill] sm:$0xff]  ;;  %v1996_v49 = vadd.f32 %v14127_v28, %v1895_v9  ;;  %v7173_v25 = vld [vmem:[#allocation9] ss:$0 sm:$0xff]  ;;  %1566 = vst.msk [vmem:[#allocation3 + $0xa2] sm:$0xff] %vm319_vm0, %v10504_v35 }
 0x2ae   : > { %v10567_v42 = vld [vmem:[#allocation3 + $0x110] sm:$0xff]  ;;  %v1995_v3 = vadd.f32 %v14126_v63, %v1894_v16  ;;  %1567 = vst.msk [vmem:[#allocation3 + $0xaa] sm:$0x3f] %vm1552_vm3, %v1534_v10  ;;  %v2282_v53 = vadd.f32 %v2250_v20, %v2181_v34  ;;  %v7174_v60 = vld [vmem:[#allocation9 + $0x8] ss:$0 sm:$0xff]  ;;  %v10609_v63 = vmul.f32 %v9796_v11, %v10453_v45  ;;  %v14128_v5 = vld [vmem:[#allocation47_spill] sm:$0xff] }
 0x2af   : > { %14123 = vst [vmem:[#allocation64_spill] sm:$0xff] %v10567_v42  ;;  %3157 = vst.msk [vmem:[#allocation3 + $0x110] sm:$0xff] %vm319_vm0, %v10272_v56  ;;  %v858_v56 = vmul.f32 %v7173_v25, %v10581_v44  ;;  %v959_v16 = vmul.f32 %v7174_v60, %v10581_v44  ;;  %v960_v9 = vmul.f32 %v7174_v60, %v10583_v22  ;;  %v14129_v0 = vld [vmem:[#allocation56_spill] sm:$0xff]  ;;  %v14130_v20 = vld [vmem:[#allocation185_spill] sm:$0xff] }
 0x2b0   : > { %1592 = vst.msk [vmem:[#allocation3 + $0xa0] sm:$0x3] %vm1584_vm4, %v14079_v18  ;;  %v2096_v28 = vadd.f32 %v10168_v52, %v1995_v3  ;;  %v2097_v10 = vadd.f32 %v10172_v24, %v1996_v49  ;;  %v10616_v2 = vmul.f32 %v9796_v11, %v14129_v0  ;;  %v2182_v34 = vadd.f32 %v14130_v20, %v2081_v13  ;;  %v3880_v7 = vld [vmem:[#allocation2 + $0x61] sm:$0xff]  ;;  %v14133_v24 = vld [vmem:[#allocation370_spill] sm:$0xff] }
 0x2b1   : > { %v993_v59 = vadd.f32 %v14128_v5, %v858_v56  ;;  %v10619_v51 = vld [vmem:[#allocation3 + $0x90] sm:$0xff]  ;;  %v859_v60 = vmul.f32 %v7173_v25, %v10583_v22  ;;  %v991_v47 = vadd.f32 %v959_v16, %v10436_v40  ;;  %v992_v17 = vadd.f32 %v960_v9, %v10439_v50  ;;  %v14132_v52 = vld [vmem:[#allocation39_spill] sm:$0xff] }
 0x2b2   : > { %14131 = vst [vmem:[#allocation66_spill] sm:$0xff] %v10619_v51  ;;  %v2465_v3 = vadd.f32 %v14132_v52, %v2282_v53  ;;  %3912 = vst.msk [vmem:[#allocation3 + $0x90] sm:$0xff] %vm319_vm0, %v3880_v7  ;;  %v2197_v5 = vadd.f32 %v14133_v24, %v2096_v28  ;;  %v1060_v49 = vmul.f32 %v10478_v48, %v10581_v44  ;;  %v14134_v56 = vld [vmem:[#allocation57_spill] sm:$0xff]  ;;  %v14135_v20 = vld [vmem:[#allocation371_spill] sm:$0xff] }
 0x2b3   : > { %v10631_v13 = vmul.f32 %v9796_v11, %v14134_v56  ;;  %v2198_v55 = vadd.f32 %v14135_v20, %v2097_v10  ;;  %v1061_v40 = vmul.f32 %v10478_v48, %v10583_v22  ;;  %v14136_v25 = vld [vmem:[#allocation51_spill] sm:$0xff]  ;;  %v14137_v53 = vld [vmem:[#allocation305_spill] sm:$0xff]  ;;  %v3871_v7 = vld [vmem:[#allocation2 + $0x19] sm:$0x7f] }
 0x2b4   : > { %v1094_v50 = vadd.f32 %v14136_v25, %v991_v47  ;;  %v10639_v16 = vmul.f32 %v14137_v53, %v13963_v36  ;;  %v2298_v9 = vadd.f32 %v2266_v30, %v2197_v5  ;;  %v6728_v28 = vld [vmem:[#allocation9 + $0x32] ss:$0 sm:$0xff]  ;;  %v3896_v24 = vld [vmem:[#allocation2 + $0xe1] sm:$0xff]  ;;  %v1092_v11 = vadd.f32 %v1060_v49, %v10393_v62  ;;  %v3873_v48 = vld [vmem:[#allocation2 + $0x29] sm:$0x7f] }
 0x2b5   : > { %v14140_v41 = vld [vmem:[#allocation67_spill] sm:$0xff]  ;;  %v10647_v10 = vmul.f32 %v14137_v53, %v13965_v39  ;;  %v3875_v47 = vld [vmem:[#allocation2 + $0x39] sm:$0x7f]  ;;  %v3877_v20 = vld [vmem:[#allocation2 + $0x49] sm:$0x7f]  ;;  %v2283_v36 = vadd.f32 %v10538_v54, %v2182_v34  ;;  %v10651_v25 = vmul.f32 %v6728_v28, %v10567_v42  ;;  %v1093_v62 = vadd.f32 %v1061_v40, %v10447_v37 }
 0x2b6   : > { %14138 = vst [vmem:[#allocation138_spill] sm:$0xff] %v10639_v16  ;;  %v10641_v52 = vld [vmem:[#allocation3 + $0x110] sm:$0xff]  ;;  %v1096_v38 = vadd.f32 %v14140_v41, %v993_v59  ;;  %v2323_v30 = vld [vmem:[#allocation2 + $0x78] sm:$0x7f]  ;;  %v14142_v5 = vld [vmem:[#allocation48_spill] sm:$0xff]  ;;  %v1160_v28 = vmul.f32 %v10492_v43, %v10581_v44 }
 0x2b7   : > { %14139 = vst [vmem:[#allocation63_spill] sm:$0xff] %v10641_v52  ;;  %14141 = vst [vmem:[#allocation174_spill] sm:$0xff] %v10647_v10  ;;  %v994_v4 = vadd.f32 %v14142_v5, %v859_v60  ;;  %v10656_v41 = vld [vmem:[#allocation3 + $0xa0] sm:$0xff]  ;;  %v10658_v59 = vld [vmem:[#allocation3 + $0xa8] sm:$0xff]  ;;  %v2299_v60 = vadd.f32 %v10563_v26, %v2198_v55 }
 0x2b8   : > { %3928 = vst.msk [vmem:[#allocation3 + $0x110] sm:$0xff] %vm319_vm0, %v3896_v24  ;;  %v3885_v39 = vld [vmem:[#allocation2 + $0x89] sm:$0x7f]  ;;  %v3879_v49 = vld [vmem:[#allocation2 + $0x59] sm:$0x7f]  ;;  %v14143_v16 = vld [vmem:[#allocation65_spill] sm:$0xff]  ;;  %v1161_v24 = vmul.f32 %v10492_v43, %v10583_v22  ;;  %v1192_v55 = vadd.f32 %v1160_v28, %v10408_v1 }
 0x2b9   : > { %v3881_v10 = vld [vmem:[#allocation2 + $0x69] sm:$0x7f]  ;;  %v2566_v56 = vadd.f32 %v14143_v16, %v2465_v3  ;;  %v14144_v54 = vld [vmem:[#allocation373_spill] sm:$0xff]  ;;  %2355 = vst.msk [vmem:[#allocation3 + $0xa1] sm:$0xff] %vm319_vm0, %v10504_v35  ;;  %v10677_v42 = vld [vmem:[#allocation3 + $0x58] sm:$0xff] }
 0x2ba   : > { %v2481_v34 = vadd.f32 %v14144_v54, %v2298_v9  ;;  %2356 = vst.msk [vmem:[#allocation3 + $0xa9] sm:$0x7f] %vm2341_vm5, %v2323_v30  ;;  %v10671_v37 = vld [vmem:[#allocation3 + $0x48] sm:$0xff]  ;;  %v14147_v16 = vld [vmem:[#allocation53_spill] sm:$0xff]  ;;  %14149 = vst [vmem:[#allocation139_spill] sm:$0xff] %v10677_v42 }
 0x2bb   : > { %2381 = vst.msk [vmem:[#allocation3 + $0xa0] sm:$0x1] %vm2373_vm6, %v14079_v18  ;;  %14145 = vst [vmem:[#allocation306_spill] sm:$0xff] %v10671_v37  ;;  %v14146_v3 = vld [vmem:[#allocation52_spill] sm:$0xff]  ;;  %v1194_v9 = vadd.f32 %v14147_v16, %v1092_v11  ;;  %v14148_v5 = vld [vmem:[#allocation69_spill] sm:$0xff] }
 0x2bc   : > { %v1095_v40 = vadd.f32 %v14146_v3, %v992_v17  ;;  %v1196_v54 = vadd.f32 %v14148_v5, %v1094_v50  ;;  %v10679_v43 = vld [vmem:[#allocation3 + $0x68] sm:$0xff]  ;;  %v10681_v35 = vld [vmem:[#allocation3 + $0x78] sm:$0xff]  ;;  %3903 = vst.msk [vmem:[#allocation3 + $0x48] sm:$0x7f] %vm2341_vm5, %v3871_v7  ;;  %v14152_v30 = vld [vmem:[#allocation375_spill] sm:$0xff]  ;;  %v1193_v17 = vadd.f32 %v1161_v24, %v10459_v32 }
 0x2bd   : > { %14150 = vst [vmem:[#allocation368_spill] sm:$0xff] %v10679_v43  ;;  %14151 = vst [vmem:[#allocation369_spill] sm:$0xff] %v10681_v35  ;;  %v2582_v37 = vadd.f32 %v14152_v30, %v2481_v34  ;;  %v14153_v26 = vld [vmem:[#allocation105_spill] sm:$0xff]  ;;  %v10690_v50 = vld [vmem:[#allocation3 + $0x88] sm:$0xff] }
 0x2be   : > { %3933 = vst.msk [vmem:[#allocation3 + $0x4f] sm:$0x1] %vm2373_vm6, %v14079_v18  ;;  %v1198_v11 = vadd.f32 %v14153_v26, %v1096_v38  ;;  %14154 = vst [vmem:[#allocation47_spill] sm:$0xff] %v10690_v50  ;;  %v10692_v3 = vld [vmem:[#allocation3 + $0x98] sm:$0xff]  ;;  %v3967_v1 = vld [vmem:[#allocation3 + $0x90] sm:$0xff] }
 0x2bf   : > { %14155 = vst [vmem:[#allocation56_spill] sm:$0xff] %v10692_v3  ;;  %v10694_v16 = vld [vmem:[#allocation3 + $0xb8] sm:$0xff]  ;;  %3905 = vst.msk [vmem:[#allocation3 + $0x58] sm:$0x7f] %vm2341_vm5, %v3873_v48  ;;  %v4667_v32 = vld [vmem:[#allocation2 + $0x62] sm:$0xff] }
 0x2c0   : > { %14156 = vst [vmem:[#allocation185_spill] sm:$0xff] %v10694_v16  ;;  %3907 = vst.msk [vmem:[#allocation3 + $0x68] sm:$0x7f] %vm2341_vm5, %v3875_v47  ;;  %v14157_v38 = vld [vmem:[#allocation68_spill] sm:$0xff]  ;;  %v7175_v34 = vld [vmem:[#allocation9 + $0x20] ss:$0 sm:$0xff] }
 0x2c1   : > { %3909 = vst.msk [vmem:[#allocation3 + $0x78] sm:$0x7f] %vm2341_vm5, %v3877_v20  ;;  %v1097_v7 = vadd.f32 %v14157_v38, %v994_v4  ;;  %v1261_v48 = vmul.f32 %v7175_v34, %v10581_v44  ;;  %v1262_v47 = vmul.f32 %v7175_v34, %v10583_v22  ;;  %v14158_v28 = vld [vmem:[#allocation72_spill] sm:$0xff]  ;;  %3911 = vst.msk [vmem:[#allocation3 + $0x88] sm:$0x7f] %vm2341_vm5, %v3879_v49  ;;  %v14163_v30 = vld [vmem:[#allocation374_spill] sm:$0xff] }
 0x2c2   : > { %3934 = vst.msk [vmem:[#allocation3 + $0x5f] sm:$0x1] %vm2373_vm6, %v14079_v18  ;;  %3935 = vst.msk [vmem:[#allocation3 + $0x6f] sm:$0x1] %vm2373_vm6, %v14079_v18  ;;  %v1297_v20 = vadd.f32 %v14158_v28, %v1194_v9  ;;  %v14159_v4 = vld [vmem:[#allocation32_spill] sm:$0xff]  ;;  %v10733_v26 = vadd.f32 %v14163_v30, %v2299_v60  ;;  %v14168_v16 = vld [vmem:[#allocation70_spill] sm:$0xff]  ;;  %v10747_v30 = vmul.f32 %v10236_v57, %v3967_v1 }
 0x2c3   : > { %3936 = vst.msk [vmem:[#allocation3 + $0x7f] sm:$0x1] %vm2373_vm6, %v14079_v18  ;;  %3937 = vst.msk [vmem:[#allocation3 + $0x8f] sm:$0x1] %vm2373_vm6, %v14079_v18  ;;  %v10719_v24 = vadd.f32 %v14159_v4, %v2283_v36  ;;  %v14160_v5 = vld [vmem:[#allocation252_spill] sm:$0xff]  ;;  %v10740_v4 = vld [vmem:[#allocation3 + $0x110] sm:$0xff]  ;;  %v1293_v3 = vadd.f32 %v1261_v48, %v10411_v27 }
 0x2c4   : > { %3913 = vst.msk [vmem:[#allocation3 + $0x98] sm:$0x7f] %vm2341_vm5, %v3881_v10  ;;  %3917 = vst.msk [vmem:[#allocation3 + $0xb8] sm:$0x7f] %vm2341_vm5, %v3885_v39  ;;  %v10722_v9 = vadd.f32 %v14160_v5, %v2566_v56  ;;  %v7176_v49 = vld [vmem:[#allocation9 + $0x33] ss:$0 sm:$0xff]  ;;  %v10730_v39 = vmul.f32 %v14137_v53, %v13967_v46  ;;  %v1294_v53 = vadd.f32 %v1262_v47, %v10462_v58 }
 0x2c5   : > { %3938 = vst.msk [vmem:[#allocation3 + $0x9f] sm:$0x1] %vm2373_vm6, %v14079_v18  ;;  %3940 = vst.msk [vmem:[#allocation3 + $0xbf] sm:$0x1] %vm2373_vm6, %v14079_v18  ;;  %v10725_v10 = vmul.f32 %v7176_v49, %v10619_v51  ;;  %v14165_v38 = vld [vmem:[#allocation376_spill] sm:$0xff]  ;;  %v10737_v36 = vmul.f32 %v7176_v49, %v10641_v52  ;;  %v14166_v56 = vld [vmem:[#allocation54_spill] sm:$0xff] }
 0x2c6   : > { %14161 = vst [vmem:[#allocation39_spill] sm:$0xff] %v10722_v9  ;;  %4699 = vst.msk [vmem:[#allocation3 + $0x90] sm:$0xff] %vm319_vm0, %v4667_v32  ;;  %v2683_v34 = vadd.f32 %v14165_v38, %v2582_v37  ;;  %v1195_v28 = vadd.f32 %v14166_v56, %v1093_v62  ;;  %v4683_v5 = vld [vmem:[#allocation2 + $0xe2] sm:$0xff]  ;;  %v1197_v32 = vadd.f32 %v14168_v16, %v1095_v40  ;;  %v14171_v37 = vld [vmem:[#allocation41_spill] sm:$0xff] }
 0x2c7   : > { %14162 = vst [vmem:[#allocation370_spill] sm:$0xff] %v10725_v10  ;;  %14164 = vst [vmem:[#allocation371_spill] sm:$0xff] %v10733_v26  ;;  %v3112_v10 = vld [vmem:[#allocation2 + $0x78] sm:$0xff]  ;;  %v14169_v51 = vld [vmem:[#allocation55_spill] sm:$0xff] }
 0x2c8   : > { %14167 = vst [vmem:[#allocation51_spill] sm:$0xff] %v10740_v4  ;;  %v1295_v60 = vadd.f32 %v14169_v51, %v1192_v55  ;;  %14170 = vst [vmem:[#allocation305_spill] sm:$0xff] %v10747_v30  ;;  %v2784_v49 = vadd.f32 %v14171_v37, %v2683_v34  ;;  %v14172_v62 = vld [vmem:[#allocation107_spill] sm:$0xff]  ;;  %v14173_v56 = vld [vmem:[#allocation108_spill] sm:$0xff] }
 0x2c9   : > { %4715 = vst.msk [vmem:[#allocation3 + $0x110] sm:$0xff] %vm319_vm0, %v4683_v5  ;;  %v1199_v38 = vadd.f32 %v14172_v62, %v1097_v7  ;;  %v1299_v52 = vadd.f32 %v14173_v56, %v1196_v54  ;;  %v10753_v26 = vld [vmem:[#allocation3 + $0xa0] sm:$0xff]  ;;  %v10755_v40 = vld [vmem:[#allocation3 + $0xa8] sm:$0xff]  ;;  %v3111_v27 = vld [vmem:[#allocation2 + $0x70] sm:$0xff] }
 0x2ca   : > { %v14174_v16 = vld [vmem:[#allocation383_spill] sm:$0xff]  ;;  %v14176_v51 = vld [vmem:[#allocation328_spill] sm:$0xff]  ;;  %v14178_v57 = vld [vmem:[#allocation106_spill] sm:$0xff]  ;;  %3143 = vst.msk [vmem:[#allocation3 + $0xa0] sm:$0xff] %vm319_vm0, %v3111_v27 }
 0x2cb   : > { %v10758_v58 = vmul.f32 %v14174_v16, %v3967_v1  ;;  %v10761_v55 = vmul.f32 %v14176_v51, %v3967_v1  ;;  %v1301_v48 = vadd.f32 %v14178_v57, %v1198_v11  ;;  %v7177_v47 = vld [vmem:[#allocation9 + $0x28] ss:$0 sm:$0xff]  ;;  %3144 = vst.msk [vmem:[#allocation3 + $0xa8] sm:$0xff] %vm319_vm0, %v3112_v10  ;;  %v14179_v54 = vld [vmem:[#allocation223_spill] sm:$0xff]  ;;  %v14180_v5 = vld [vmem:[#allocation58_spill] sm:$0xff] }
 0x2cc   : > { %v1362_v34 = vmul.f32 %v7177_v47, %v10581_v44  ;;  %v2885_v7 = vadd.f32 %v14179_v54, %v2784_v49  ;;  %v1296_v37 = vadd.f32 %v14180_v5, %v1193_v17  ;;  %v1363_v62 = vmul.f32 %v7177_v47, %v10583_v22  ;;  %v14181_v56 = vld [vmem:[#allocation59_spill] sm:$0xff]  ;;  %v14183_v11 = vld [vmem:[#allocation74_spill] sm:$0xff]  ;;  %v14187_v49 = vld [vmem:[#allocation228_spill] sm:$0xff] }
 0x2cd   : > { %14175 = vst [vmem:[#allocation67_spill] sm:$0xff] %v10758_v58  ;;  %14177 = vst [vmem:[#allocation48_spill] sm:$0xff] %v10761_v55  ;;  %v1396_v16 = vadd.f32 %v14181_v56, %v1293_v3  ;;  %v14182_v58 = vld [vmem:[#allocation73_spill] sm:$0xff]  ;;  %v1398_v57 = vadd.f32 %v14183_v11, %v1295_v60  ;;  %v14184_v30 = vld [vmem:[#allocation114_spill] sm:$0xff] }
 0x2ce   : > { %v1298_v51 = vadd.f32 %v14182_v58, %v1195_v28  ;;  %v1394_v55 = vadd.f32 %v1362_v34, %v10425_v6  ;;  %v1400_v50 = vadd.f32 %v14184_v30, %v1297_v20  ;;  %v14185_v35 = vld [vmem:[#allocation330_spill] sm:$0xff]  ;;  %v4754_v10 = vld [vmem:[#allocation3 + $0x90] sm:$0xff]  ;;  %v5454_v43 = vld [vmem:[#allocation2 + $0x63] sm:$0xff]  ;;  %v2986_v54 = vadd.f32 %v14187_v49, %v2885_v7 }
 0x2cf   : > { %v10776_v27 = vmul.f32 %v14185_v35, %v3967_v1  ;;  %v1395_v17 = vadd.f32 %v1363_v62, %v10516_v61  ;;  %v14188_v47 = vld [vmem:[#allocation38_spill] sm:$0xff]  ;;  %v14189_v3 = vld [vmem:[#allocation332_spill] sm:$0xff]  ;;  %v14193_v60 = vld [vmem:[#allocation335_spill] sm:$0xff]  ;;  %5486 = vst.msk [vmem:[#allocation3 + $0x90] sm:$0xff] %vm319_vm0, %v5454_v43 }
 0x2d0   : > { %v1402_v5 = vadd.f32 %v14188_v47, %v1299_v52  ;;  %v10782_v56 = vmul.f32 %v14189_v3, %v3967_v1  ;;  %v14191_v28 = vld [vmem:[#allocation216_spill] sm:$0xff]  ;;  %v10788_v58 = vmul.f32 %v14193_v60, %v3967_v1  ;;  %v10793_v35 = vmul.f32 %v14193_v60, %v10740_v4  ;;  %v14195_v61 = vld [vmem:[#allocation109_spill] sm:$0xff]  ;;  %v14199_v47 = vld [vmem:[#allocation75_spill] sm:$0xff] }
 0x2d1   : > { %14186 = vst [vmem:[#allocation65_spill] sm:$0xff] %v10776_v27  ;;  %v10785_v6 = vmul.f32 %v14191_v28, %v3967_v1  ;;  %v3087_v20 = vadd.f32 %v10651_v25, %v2986_v54  ;;  %v1300_v30 = vadd.f32 %v14195_v61, %v1197_v32  ;;  %v14196_v52 = vld [vmem:[#allocation37_spill] sm:$0xff]  ;;  %v14197_v7 = vld [vmem:[#allocation60_spill] sm:$0xff]  ;;  %v1399_v1 = vadd.f32 %v14199_v47, %v1296_v37  ;;  %v14200_v3 = vld [vmem:[#allocation115_spill] sm:$0xff] }
 0x2d2   : > { %14190 = vst [vmem:[#allocation373_spill] sm:$0xff] %v10782_v56  ;;  %14194 = vst [vmem:[#allocation53_spill] sm:$0xff] %v10788_v58  ;;  %v1302_v34 = vadd.f32 %v14196_v52, %v1199_v38  ;;  %v1397_v62 = vadd.f32 %v14197_v7, %v1294_v53  ;;  %v10799_v11 = vld [vmem:[#allocation3 + $0x110] sm:$0xff]  ;;  %v5470_v49 = vld [vmem:[#allocation2 + $0xe3] sm:$0xff]  ;;  %v1401_v28 = vadd.f32 %v14200_v3, %v1298_v51 }
 0x2d3   : > { %14192 = vst [vmem:[#allocation52_spill] sm:$0xff] %v10785_v6  ;;  %14198 = vst [vmem:[#allocation69_spill] sm:$0xff] %v10799_v11  ;;  %v14201_v43 = vld [vmem:[#allocation45_spill] sm:$0xff]  ;;  %v3883_v53 = vld [vmem:[#allocation2 + $0x79] sm:$0x7f] }
 0x2d4   : > { %v1404_v58 = vadd.f32 %v14201_v43, %v1301_v48  ;;  %v7178_v6 = vld [vmem:[#allocation9 + $0x30] ss:$0 sm:$0xff]  ;;  %5502 = vst.msk [vmem:[#allocation3 + $0x110] sm:$0xff] %vm319_vm0, %v5470_v49  ;;  %v10812_v37 = vld [vmem:[#allocation3 + $0xa8] sm:$0xff]  ;;  %v14207_v51 = vld [vmem:[#allocation391_spill] sm:$0xff] }
 0x2d5   : > { %v1463_v60 = vmul.f32 %v7178_v6, %v10581_v44  ;;  %v14202_v4 = vld [vmem:[#allocation389_spill] sm:$0xff]  ;;  %v1464_v38 = vmul.f32 %v7178_v6, %v10583_v22  ;;  %14206 = vst [vmem:[#allocation105_spill] sm:$0xff] %v10812_v37  ;;  %v10815_v7 = vmul.f32 %v14207_v51, %v4754_v10  ;;  %v14209_v48 = vld [vmem:[#allocation338_spill] sm:$0xff]  ;;  %3915 = vst.msk [vmem:[#allocation3 + $0xa8] sm:$0x7f] %vm2341_vm5, %v3883_v53 }
 0x2d6   : > { %v10806_v25 = vmul.f32 %v14202_v4, %v4754_v10  ;;  %v14204_v32 = vld [vmem:[#allocation377_spill] sm:$0xff]  ;;  %v10818_v47 = vmul.f32 %v14209_v48, %v4754_v10  ;;  %v14211_v4 = vld [vmem:[#allocation76_spill] sm:$0xff]  ;;  %3939 = vst.msk [vmem:[#allocation3 + $0xaf] sm:$0x1] %vm2373_vm6, %v14079_v18  ;;  %v14212_v22 = vld [vmem:[#allocation378_spill] sm:$0xff] }
 0x2d7   : > { %v3252_v54 = vadd.f32 %v14204_v32, %v3087_v20  ;;  %v14205_v61 = vld [vmem:[#allocation61_spill] sm:$0xff]  ;;  %14208 = vst [vmem:[#allocation68_spill] sm:$0xff] %v10815_v7  ;;  %v1495_v44 = vadd.f32 %v1463_v60, %v10442_v12  ;;  %v1499_v3 = vadd.f32 %v14211_v4, %v1396_v16  ;;  %v1496_v49 = vadd.f32 %v1464_v38, %v10523_v19  ;;  %v14217_v48 = vld [vmem:[#allocation111_spill] sm:$0xff]  ;;  %v14218_v60 = vld [vmem:[#allocation282_spill] sm:$0xff] }
 0x2d8   : > { %14203 = vst [vmem:[#allocation375_spill] sm:$0xff] %v10806_v25  ;;  %v1497_v52 = vadd.f32 %v14205_v61, %v1394_v55  ;;  %14210 = vst [vmem:[#allocation72_spill] sm:$0xff] %v10818_v47  ;;  %v14213_v55 = vld [vmem:[#allocation113_spill] sm:$0xff]  ;;  %v14215_v61 = vld [vmem:[#allocation340_spill] sm:$0xff]  ;;  %v1405_v12 = vadd.f32 %v14217_v48, %v1302_v34  ;;  %v1503_v16 = vadd.f32 %v14218_v60, %v1400_v50 }
 0x2d9   : > { %v3353_v6 = vadd.f32 %v14212_v22, %v3252_v54  ;;  %v1403_v20 = vadd.f32 %v14213_v55, %v1300_v30  ;;  %v14214_v43 = vld [vmem:[#allocation117_spill] sm:$0xff]  ;;  %v10830_v51 = vmul.f32 %v14215_v61, %v4754_v10  ;;  %v14219_v4 = vld [vmem:[#allocation46_spill] sm:$0xff]  ;;  %v14222_v25 = vld [vmem:[#allocation344_spill] sm:$0xff] }
 0x2da   : > { %v1501_v32 = vadd.f32 %v14214_v43, %v1398_v57  ;;  %v1505_v53 = vadd.f32 %v14219_v4, %v1402_v5  ;;  %v14220_v47 = vld [vmem:[#allocation342_spill] sm:$0xff]  ;;  %v10839_v54 = vmul.f32 %v14222_v25, %v4754_v10  ;;  %v5541_v19 = vld [vmem:[#allocation3 + $0x90] sm:$0xff]  ;;  %v14226_v57 = vld [vmem:[#allocation379_spill] sm:$0xff] }
 0x2db   : > { %14216 = vst [vmem:[#allocation32_spill] sm:$0xff] %v10830_v51  ;;  %v10836_v7 = vmul.f32 %v14220_v47, %v4754_v10  ;;  %v14224_v30 = vld [vmem:[#allocation346_spill] sm:$0xff]  ;;  %v3454_v38 = vadd.f32 %v14226_v57, %v3353_v6  ;;  %v14228_v43 = vld [vmem:[#allocation77_spill] sm:$0xff]  ;;  %v14230_v48 = vld [vmem:[#allocation380_spill] sm:$0xff] }
 0x2dc   : > { %14223 = vst [vmem:[#allocation374_spill] sm:$0xff] %v10839_v54  ;;  %v10842_v22 = vmul.f32 %v14224_v30, %v4754_v10  ;;  %v10847_v55 = vmul.f32 %v14224_v30, %v10799_v11  ;;  %v14227_v34 = vld [vmem:[#allocation62_spill] sm:$0xff]  ;;  %v1500_v5 = vadd.f32 %v14228_v43, %v1397_v62  ;;  %v14231_v25 = vld [vmem:[#allocation285_spill] sm:$0xff]  ;;  %v14236_v57 = vld [vmem:[#allocation399_spill] sm:$0xff] }
 0x2dd   : > { %14221 = vst [vmem:[#allocation252_spill] sm:$0xff] %v10836_v7  ;;  %v1498_v50 = vadd.f32 %v14227_v34, %v1395_v17  ;;  %v14229_v61 = vld [vmem:[#allocation118_spill] sm:$0xff]  ;;  %v3555_v60 = vadd.f32 %v14230_v48, %v3454_v38  ;;  %v1504_v4 = vadd.f32 %v14231_v25, %v1401_v28  ;;  %v14234_v51 = vld [vmem:[#allocation397_spill] sm:$0xff]  ;;  %v10860_v30 = vmul.f32 %v14236_v57, %v5541_v19  ;;  %v14238_v11 = vld [vmem:[#allocation360_spill] sm:$0xff] }
 0x2de   : > { %14225 = vst [vmem:[#allocation376_spill] sm:$0xff] %v10842_v22  ;;  %v1502_v47 = vadd.f32 %v14229_v61, %v1399_v1  ;;  %v14232_v54 = vld [vmem:[#allocation90_spill] sm:$0xff]  ;;  %v14233_v22 = vld [vmem:[#allocation357_spill] sm:$0xff]  ;;  %v10857_v6 = vmul.f32 %v14234_v51, %v5541_v19  ;;  %v1508_v17 = vadd.f32 %v14238_v11, %v1405_v12  ;;  %v7179_v34 = vld [vmem:[#allocation9 + $0x1] ss:$0 sm:$0xff] }
 0x2df   : > { %v1506_v10 = vadd.f32 %v14232_v54, %v1403_v20  ;;  %v1507_v7 = vadd.f32 %v14233_v22, %v1404_v58  ;;  %14237 = vst [vmem:[#allocation70_spill] sm:$0xff] %v10860_v30  ;;  %v1658_v62 = vmul.f32 %v7179_v34, %v10656_v41  ;;  %v14239_v1 = vld [vmem:[#allocation401_spill] sm:$0xff]  ;;  %v14241_v38 = vld [vmem:[#allocation403_spill] sm:$0xff]  ;;  %v1659_v48 = vmul.f32 %v7179_v34, %v10658_v59  ;;  %v14249_v25 = vld [vmem:[#allocation410_spill] sm:$0xff] }
 0x2e0   : > { %14235 = vst [vmem:[#allocation54_spill] sm:$0xff] %v10857_v6  ;;  %v10865_v43 = vmul.f32 %v14239_v1, %v5541_v19  ;;  %v10868_v28 = vmul.f32 %v14241_v38, %v5541_v19  ;;  %v14243_v20 = vld [vmem:[#allocation405_spill] sm:$0xff]  ;;  %v14246_v22 = vld [vmem:[#allocation407_spill] sm:$0xff]  ;;  %v1679_v57 = vadd.f32 %v14249_v25, %v1496_v49  ;;  %v14250_v30 = vld [vmem:[#allocation382_spill] sm:$0xff] }
 0x2e1   : > { %v10871_v54 = vmul.f32 %v14243_v20, %v5541_v19  ;;  %v14245_v58 = vld [vmem:[#allocation381_spill] sm:$0xff]  ;;  %v10875_v61 = vmul.f32 %v14246_v22, %v5541_v19  ;;  %v14252_v38 = vld [vmem:[#allocation412_spill] sm:$0xff]  ;;  %v1690_v22 = vadd.f32 %v1658_v62, %v1507_v7  ;;  %v14255_v49 = vld [vmem:[#allocation415_spill] sm:$0xff] }
 0x2e2   : > { %14240 = vst [vmem:[#allocation55_spill] sm:$0xff] %v10865_v43  ;;  %14242 = vst [vmem:[#allocation41_spill] sm:$0xff] %v10868_v28  ;;  %v3656_v51 = vadd.f32 %v14245_v58, %v3555_v60  ;;  %v14248_v11 = vld [vmem:[#allocation409_spill] sm:$0xff]  ;;  %v14251_v43 = vld [vmem:[#allocation411_spill] sm:$0xff]  ;;  %v1681_v28 = vadd.f32 %v14252_v38, %v1498_v50  ;;  %v1688_v60 = vadd.f32 %v10571_v23, %v1505_v53 }
 0x2e3   : > { %14244 = vst [vmem:[#allocation107_spill] sm:$0xff] %v10871_v54  ;;  %14247 = vst [vmem:[#allocation108_spill] sm:$0xff] %v10875_v61  ;;  %v1678_v12 = vadd.f32 %v14248_v11, %v1495_v44  ;;  %v1680_v6 = vadd.f32 %v14251_v43, %v1497_v52  ;;  %v14253_v56 = vld [vmem:[#allocation413_spill] sm:$0xff]  ;;  %v1689_v58 = vadd.f32 %v10575_v31, %v1506_v10  ;;  %v14254_v44 = vld [vmem:[#allocation414_spill] sm:$0xff] }
 0x2e4   : > { %v3757_v1 = vadd.f32 %v14250_v30, %v3656_v51  ;;  %v1682_v20 = vadd.f32 %v14253_v56, %v1499_v3  ;;  %v6151_v54 = vld [vmem:[#allocation3 + $0x110] sm:$0xff]  ;;  %v1691_v61 = vadd.f32 %v1659_v48, %v1508_v17  ;;  %v1683_v11 = vadd.f32 %v14254_v44, %v1500_v5  ;;  %v14256_v30 = vld [vmem:[#allocation416_spill] sm:$0xff]  ;;  %v14258_v50 = vld [vmem:[#allocation418_spill] sm:$0xff] }
 0x2e5   : > { %v1684_v25 = vadd.f32 %v14255_v49, %v1501_v32  ;;  %v1685_v51 = vadd.f32 %v14256_v30, %v1502_v47  ;;  %v14257_v52 = vld [vmem:[#allocation417_spill] sm:$0xff]  ;;  %v1687_v38 = vadd.f32 %v14258_v50, %v1504_v4  ;;  %v7180_v56 = vld [vmem:[#allocation9 + $0x9] ss:$0 sm:$0xff]  ;;  %v14259_v31 = vld [vmem:[#allocation366_spill] sm:$0xff] }
 0x2e6   : > { %v3858_v34 = vadd.f32 %v10737_v36, %v3757_v1  ;;  %v1686_v43 = vadd.f32 %v14257_v52, %v1503_v16  ;;  %v1757_v3 = vmul.f32 %v7180_v56, %v10656_v41  ;;  %v1758_v23 = vmul.f32 %v7180_v56, %v10658_v59  ;;  %v14261_v53 = vld [vmem:[#allocation119_spill] sm:$0xff]  ;;  %v14263_v47 = vld [vmem:[#allocation420_spill] sm:$0xff]  ;;  %v14266_v49 = vld [vmem:[#allocation421_spill] sm:$0xff] }
 0x2e7   : > { %v10895_v7 = vmul.f32 %v14259_v31, %v5541_v19  ;;  %v10899_v5 = vmul.f32 %v14259_v31, %v6151_v54  ;;  %v14262_v32 = vld [vmem:[#allocation419_spill] sm:$0xff]  ;;  %v1780_v17 = vadd.f32 %v14263_v47, %v1679_v57  ;;  %v14265_v1 = vld [vmem:[#allocation384_spill] sm:$0xff]  ;;  %v1782_v30 = vadd.f32 %v14266_v49, %v1681_v28  ;;  %v14267_v52 = vld [vmem:[#allocation321_spill] sm:$0xff] }
 0x2e8   : > { %v4039_v36 = vadd.f32 %v14261_v53, %v3858_v34  ;;  %v1779_v10 = vadd.f32 %v14262_v32, %v1678_v12  ;;  %v14264_v16 = vld [vmem:[#allocation323_spill] sm:$0xff]  ;;  %v1789_v4 = vadd.f32 %v1757_v3, %v1688_v60  ;;  %v1790_v48 = vadd.f32 %v1758_v23, %v1689_v58  ;;  %v14268_v50 = vld [vmem:[#allocation120_spill] sm:$0xff]  ;;  %v14269_v31 = vld [vmem:[#allocation385_spill] sm:$0xff] }
 0x2e9   : > { %14260 = vst [vmem:[#allocation383_spill] sm:$0xff] %v10895_v7  ;;  %v1781_v62 = vadd.f32 %v14264_v16, %v1680_v6  ;;  %v1783_v19 = vadd.f32 %v14267_v52, %v1682_v20  ;;  %v1784_v56 = vadd.f32 %v14268_v50, %v1683_v11  ;;  %v1785_v34 = vadd.f32 %v10587_v29, %v1684_v25  ;;  %v7181_v3 = vld [vmem:[#allocation9 + $0x11] ss:$0 sm:$0xff]  ;;  %v14270_v28 = vld [vmem:[#allocation186_spill] sm:$0xff]  ;;  %v14275_v47 = vld [vmem:[#allocation79_spill] sm:$0xff] }
 0x2ea   : > { %v4140_v44 = vadd.f32 %v14265_v1, %v4039_v36  ;;  %v1786_v54 = vadd.f32 %v10591_v14, %v1685_v51  ;;  %v1787_v12 = vadd.f32 %v10603_v21, %v1686_v43  ;;  %v1788_v57 = vadd.f32 %v10609_v63, %v1687_v38  ;;  %v14271_v21 = vld [vmem:[#allocation386_spill] sm:$0xff]  ;;  %v14274_v36 = vld [vmem:[#allocation387_spill] sm:$0xff]  ;;  %v14278_v7 = vld [vmem:[#allocation388_spill] sm:$0xff] }
 0x2eb   : > { %v1791_v60 = vadd.f32 %v10616_v2, %v1690_v22  ;;  %v1792_v58 = vadd.f32 %v10631_v13, %v1691_v61  ;;  %v1851_v23 = vmul.f32 %v7181_v3, %v14270_v28  ;;  %v1852_v20 = vmul.f32 %v7181_v3, %v13972_v15  ;;  %v14272_v13 = vld [vmem:[#allocation57_spill] sm:$0xff]  ;;  %v14273_v22 = vld [vmem:[#allocation78_spill] sm:$0xff] }
 0x2ec   : > { %v4241_v6 = vadd.f32 %v14269_v31, %v4140_v44  ;;  %v1853_v11 = vmul.f32 %v7181_v3, %v13975_v33  ;;  %v1856_v29 = vmul.f32 %v7181_v3, %v10656_v41  ;;  %v1857_v14 = vmul.f32 %v7181_v3, %v10658_v59  ;;  %v14276_v1 = vld [vmem:[#allocation138_spill] sm:$0xff] }
 0x2ed   : > { %v1854_v63 = vmul.f32 %v7181_v3, %v10451_v8  ;;  %v1855_v51 = vmul.f32 %v7181_v3, %v10453_v45  ;;  %v1858_v2 = vmul.f32 %v7181_v3, %v14129_v0  ;;  %v1859_v61 = vmul.f32 %v7181_v3, %v14272_v13  ;;  %v14277_v49 = vld [vmem:[#allocation174_spill] sm:$0xff] }
 0x2ee   : > { %v4342_v25 = vadd.f32 %v14271_v21, %v4241_v6  ;;  %v1860_v43 = vmul.f32 %v7181_v3, %v14273_v22  ;;  %v1888_v38 = vadd.f32 %v1856_v29, %v1787_v12  ;;  %v1889_v53 = vadd.f32 %v1857_v14, %v1788_v57  ;;  %v7182_v14 = vld [vmem:[#allocation9 + $0x19] ss:$0 sm:$0xff] }
 0x2ef   : > { %v1861_v16 = vmul.f32 %v7181_v3, %v14275_v47  ;;  %v1880_v44 = vadd.f32 %v14276_v1, %v1779_v10  ;;  %v1881_v52 = vadd.f32 %v14277_v49, %v1780_v17  ;;  %v1882_v50 = vadd.f32 %v10730_v39, %v1781_v62  ;;  %v14284_v1 = vld [vmem:[#allocation393_spill] sm:$0xff] }
 0x2f0   : > { %v4443_v32 = vadd.f32 %v14274_v36, %v4342_v25  ;;  %v1883_v31 = vadd.f32 %v1851_v23, %v1782_v30  ;;  %v1884_v6 = vadd.f32 %v1852_v20, %v1783_v19  ;;  %v1885_v21 = vadd.f32 %v1853_v11, %v1784_v56  ;;  %v14279_v19 = vld [vmem:[#allocation149_spill] sm:$0xff]  ;;  %v14282_v20 = vld [vmem:[#allocation392_spill] sm:$0xff]  ;;  %v14283_v25 = vld [vmem:[#allocation103_spill] sm:$0xff] }
 0x2f1   : > { %v1886_v37 = vadd.f32 %v1854_v63, %v1785_v34  ;;  %v1887_v42 = vadd.f32 %v1855_v51, %v1786_v54  ;;  %v1890_v9 = vadd.f32 %v1858_v2, %v1789_v4  ;;  %v1891_v12 = vadd.f32 %v1859_v61, %v1790_v48  ;;  %v10945_v34 = vld [vmem:[#allocation3 + $0xa0] sm:$0xff]  ;;  %v3882_v61 = vld [vmem:[#allocation2 + $0x71] sm:$0xff] }
 0x2f2   : > { %v4544_v27 = vadd.f32 %v14278_v7, %v4443_v32  ;;  %v1892_v57 = vadd.f32 %v1860_v43, %v1791_v60  ;;  %v1893_v29 = vadd.f32 %v1861_v16, %v1792_v58  ;;  %v1949_v3 = vmul.f32 %v7182_v14, %v13967_v46  ;;  %14280 = vst [vmem:[#allocation328_spill] sm:$0xff] %v10945_v34  ;;  %v14281_v60 = vld [vmem:[#allocation98_spill] sm:$0xff] }
 0x2f3   : > { %v1950_v17 = vmul.f32 %v7182_v14, %v14270_v28  ;;  %v1951_v39 = vmul.f32 %v7182_v14, %v13972_v15  ;;  %v1952_v62 = vmul.f32 %v7182_v14, %v13975_v33  ;;  %v1953_v30 = vmul.f32 %v7182_v14, %v10451_v8  ;;  %3914 = vst.msk [vmem:[#allocation3 + $0xa0] sm:$0xff] %vm319_vm0, %v3882_v61  ;;  %v4664_v61 = vld [vmem:[#allocation2 + $0x4a] sm:$0x3f] }
 0x2f4   : > { %v4645_v10 = vadd.f32 %v10793_v35, %v4544_v27  ;;  %v1954_v7 = vmul.f32 %v7182_v14, %v10453_v45  ;;  %v1955_v4 = vmul.f32 %v7182_v14, %v10656_v41  ;;  %v1956_v48 = vmul.f32 %v7182_v14, %v10658_v59 }
 0x2f5   : > { %v1957_v46 = vmul.f32 %v7182_v14, %v14129_v0  ;;  %v1958_v27 = vmul.f32 %v7182_v14, %v14272_v13  ;;  %v1959_v35 = vmul.f32 %v7182_v14, %v14273_v22  ;;  %v1960_v54 = vmul.f32 %v7182_v14, %v14275_v47 }
 0x2f6   : > { %v4826_v56 = vadd.f32 %v14279_v19, %v4645_v10  ;;  %v1961_v58 = vmul.f32 %v7182_v14, %v14281_v60  ;;  %v1987_v28 = vadd.f32 %v1955_v4, %v1886_v37  ;;  %v1988_v23 = vadd.f32 %v1956_v48, %v1887_v42  ;;  %v7183_v48 = vld [vmem:[#allocation9 + $0x21] ss:$0 sm:$0xff] }
 0x2f7   : > { %v1962_v63 = vmul.f32 %v7182_v14, %v14283_v25  ;;  %v1981_v51 = vadd.f32 %v1949_v3, %v1880_v44  ;;  %v1982_v2 = vadd.f32 %v1950_v17, %v1881_v52  ;;  %v1983_v43 = vadd.f32 %v1951_v39, %v1882_v50  ;;  %v14285_v44 = vld [vmem:[#allocation394_spill] sm:$0xff] }
 0x2f8   : > { %v4927_v11 = vadd.f32 %v14282_v20, %v4826_v56  ;;  %v1984_v36 = vadd.f32 %v1952_v62, %v1883_v31  ;;  %v1985_v32 = vadd.f32 %v1953_v30, %v1884_v6  ;;  %v1986_v16 = vadd.f32 %v1954_v7, %v1885_v21  ;;  %v14287_v62 = vld [vmem:[#allocation145_spill] sm:$0xff]  ;;  %v4656_v7 = vld [vmem:[#allocation2 + $0xa] sm:$0x3f]  ;;  %v4658_v56 = vld [vmem:[#allocation2 + $0x1a] sm:$0x3f] }
 0x2f9   : > { %v1989_v10 = vadd.f32 %v1957_v46, %v1888_v38  ;;  %v1990_v19 = vadd.f32 %v1958_v27, %v1889_v53  ;;  %v1991_v34 = vadd.f32 %v1959_v35, %v1890_v9  ;;  %v1992_v37 = vadd.f32 %v1960_v54, %v1891_v12  ;;  %v14286_v12 = vld [vmem:[#allocation395_spill] sm:$0xff]  ;;  %v4660_v46 = vld [vmem:[#allocation2 + $0x2a] sm:$0x3f]  ;;  %v14289_v54 = vld [vmem:[#allocation146_spill] sm:$0xff] }
 0x2fa   : > { %v5028_v49 = vadd.f32 %v14284_v1, %v4927_v11  ;;  %v1993_v42 = vadd.f32 %v1961_v58, %v1892_v57  ;;  %v1994_v4 = vadd.f32 %v1962_v63, %v1893_v29  ;;  %v2050_v14 = vmul.f32 %v7183_v48, %v13972_v15  ;;  %v14288_v27 = vld [vmem:[#allocation396_spill] sm:$0xff]  ;;  %v4662_v63 = vld [vmem:[#allocation2 + $0x3a] sm:$0x3f] }
 0x2fb   : > { %v2051_v50 = vmul.f32 %v7183_v48, %v13975_v33  ;;  %v2054_v31 = vmul.f32 %v7183_v48, %v10656_v41  ;;  %v2055_v6 = vmul.f32 %v7183_v48, %v10658_v59  ;;  %v2052_v21 = vmul.f32 %v7183_v48, %v10451_v8 }
 0x2fc   : > { %v5129_v52 = vadd.f32 %v14285_v44, %v5028_v49  ;;  %v2053_v38 = vmul.f32 %v7183_v48, %v10453_v45  ;;  %v2056_v9 = vmul.f32 %v7183_v48, %v14129_v0  ;;  %v2057_v53 = vmul.f32 %v7183_v48, %v14272_v13 }
 0x2fd   : > { %v2058_v15 = vmul.f32 %v7183_v48, %v14273_v22  ;;  %v10964_v29 = vadd.f32 %v2054_v31, %v1985_v32  ;;  %v10966_v3 = vadd.f32 %v2055_v6, %v1986_v16  ;;  %v2059_v33 = vmul.f32 %v7183_v48, %v14275_v47  ;;  %v4666_v32 = vld [vmem:[#allocation2 + $0x5a] sm:$0x3f] }
 0x2fe   : > { %v5230_v57 = vadd.f32 %v14286_v12, %v5129_v52  ;;  %v2060_v17 = vmul.f32 %v7183_v48, %v14281_v60  ;;  %v2061_v39 = vmul.f32 %v7183_v48, %v14283_v25  ;;  %v2062_v30 = vmul.f32 %v7183_v48, %v14287_v62  ;;  %v4668_v52 = vld [vmem:[#allocation2 + $0x6a] sm:$0x3f] }
 0x2ff   : > { %v2063_v58 = vmul.f32 %v7183_v48, %v14289_v54  ;;  %v10974_v20 = vadd.f32 %v2050_v14, %v1981_v51  ;;  %v10976_v11 = vadd.f32 %v2051_v50, %v1982_v2  ;;  %v2084_v16 = vadd.f32 %v2052_v21, %v1983_v43  ;;  %v10983_v48 = vld [vmem:[#allocation3 + $0x38] sm:$0xff]  ;;  %v10985_v51 = vld [vmem:[#allocation3 + $0x48] sm:$0xff] }
 0x300   : > { %v5331_v35 = vadd.f32 %v14288_v27, %v5230_v57  ;;  %v2085_v1 = vadd.f32 %v2053_v38, %v1984_v36  ;;  %v10978_v49 = vadd.f32 %v2056_v9, %v1987_v28  ;;  %v10980_v44 = vadd.f32 %v2057_v53, %v1988_v23  ;;  %14290 = vst [vmem:[#allocation106_spill] sm:$0xff] %v10983_v48  ;;  %v10987_v2 = vld [vmem:[#allocation3 + $0x58] sm:$0xff]  ;;  %v7184_v36 = vld [vmem:[#allocation9 + $0x29] ss:$0 sm:$0xff] }
 0x301   : > { %v2090_v6 = vadd.f32 %v2058_v15, %v1989_v10  ;;  %v2091_v12 = vadd.f32 %v2059_v33, %v1990_v19  ;;  %v2092_v57 = vadd.f32 %v2060_v17, %v1991_v34  ;;  %14291 = vst [vmem:[#allocation223_spill] sm:$0xff] %v10985_v51  ;;  %14292 = vst [vmem:[#allocation58_spill] sm:$0xff] %v10987_v2  ;;  %v10990_v23 = vld [vmem:[#allocation3 + $0x68] sm:$0xff]  ;;  %v10992_v21 = vld [vmem:[#allocation3 + $0x78] sm:$0xff] }
 0x302   : > { %v5432_v31 = vadd.f32 %v10847_v55, %v5331_v35  ;;  %v2093_v14 = vadd.f32 %v2061_v39, %v1992_v37  ;;  %v2094_v50 = vadd.f32 %v2062_v30, %v1993_v42  ;;  %v2095_v43 = vadd.f32 %v2063_v58, %v1994_v4  ;;  %14293 = vst [vmem:[#allocation59_spill] sm:$0xff] %v10990_v23  ;;  %v10994_v55 = vld [vmem:[#allocation3 + $0x88] sm:$0xff]  ;;  %v14296_v34 = vld [vmem:[#allocation398_spill] sm:$0xff] }
 0x303   : > { %v2153_v28 = vmul.f32 %v7184_v36, %v10656_v41  ;;  %14294 = vst [vmem:[#allocation73_spill] sm:$0xff] %v10992_v21  ;;  %14295 = vst [vmem:[#allocation74_spill] sm:$0xff] %v10994_v55  ;;  %v4670_v19 = vld [vmem:[#allocation2 + $0x7a] sm:$0x3f]  ;;  %v2151_v37 = vmul.f32 %v7184_v36, %v10451_v8  ;;  %v2152_v42 = vmul.f32 %v7184_v36, %v10453_v45  ;;  %v11011_v9 = vld [vmem:[#allocation3 + $0xa8] sm:$0xff] }
 0x304   : > { %4688 = vst.msk [vmem:[#allocation3 + $0x38] sm:$0x3f] %vm1552_vm3, %v4656_v7  ;;  %4690 = vst.msk [vmem:[#allocation3 + $0x48] sm:$0x3f] %vm1552_vm3, %v4658_v56  ;;  %v5613_v10 = vadd.f32 %v14296_v34, %v5432_v31  ;;  %v2154_v4 = vmul.f32 %v7184_v36, %v10658_v59  ;;  %v11009_v38 = vld [vmem:[#allocation3 + $0x98] sm:$0xff]  ;;  %v2155_v8 = vmul.f32 %v7184_v36, %v14129_v0  ;;  %v14300_v39 = vld [vmem:[#allocation400_spill] sm:$0xff] }
 0x305   : > { %4692 = vst.msk [vmem:[#allocation3 + $0x58] sm:$0x3f] %vm1552_vm3, %v4660_v46  ;;  %14297 = vst [vmem:[#allocation114_spill] sm:$0xff] %v11009_v38  ;;  %v4672_v45 = vld [vmem:[#allocation2 + $0x8a] sm:$0x3f]  ;;  %v2156_v53 = vmul.f32 %v7184_v36, %v14272_v13  ;;  %v2157_v15 = vmul.f32 %v7184_v36, %v14273_v22  ;;  %v2185_v33 = vadd.f32 %v2153_v28, %v2084_v16  ;;  %v11025_v17 = vld [vmem:[#allocation3 + $0xb8] sm:$0xff] }
 0x306   : > { %4719 = vst.msk [vmem:[#allocation3 + $0x3e] sm:$0x3] %vm1584_vm4, %v14079_v18  ;;  %4720 = vst.msk [vmem:[#allocation3 + $0x4e] sm:$0x3] %vm1584_vm4, %v14079_v18  ;;  %v5714_v30 = vadd.f32 %v14300_v39, %v5613_v10  ;;  %v2158_v7 = vmul.f32 %v7184_v36, %v14275_v47  ;;  %v2159_v56 = vmul.f32 %v7184_v36, %v14281_v60  ;;  %v7186_v55 = vld [vmem:[#allocation9 + $0xa] ss:$0 sm:$0xff] }
 0x307   : > { %4721 = vst.msk [vmem:[#allocation3 + $0x5e] sm:$0x3] %vm1584_vm4, %v14079_v18  ;;  %14298 = vst [vmem:[#allocation330_spill] sm:$0xff] %v11011_v9  ;;  %v2186_v46 = vadd.f32 %v2154_v4, %v2085_v1  ;;  %v2160_v27 = vmul.f32 %v7184_v36, %v14283_v25  ;;  %v2161_v35 = vmul.f32 %v7184_v36, %v14287_v62 }
 0x308   : > { %4694 = vst.msk [vmem:[#allocation3 + $0x68] sm:$0x3f] %vm1552_vm3, %v4662_v63  ;;  %4696 = vst.msk [vmem:[#allocation3 + $0x78] sm:$0x3f] %vm1552_vm3, %v4664_v61  ;;  %v2162_v58 = vmul.f32 %v7184_v36, %v14289_v54  ;;  %v14301_v63 = vld [vmem:[#allocation196_spill] sm:$0xff]  ;;  %v2183_v28 = vadd.f32 %v2151_v37, %v10974_v20  ;;  %v2184_v1 = vadd.f32 %v2152_v42, %v10976_v11 }
 0x309   : > { %4698 = vst.msk [vmem:[#allocation3 + $0x88] sm:$0x3f] %vm1552_vm3, %v4666_v32  ;;  %14299 = vst [vmem:[#allocation228_spill] sm:$0xff] %v11025_v17  ;;  %v2163_v61 = vmul.f32 %v7184_v36, %v14301_v63  ;;  %v14302_v32 = vld [vmem:[#allocation402_spill] sm:$0xff]  ;;  %v2187_v34 = vadd.f32 %v2155_v8, %v10964_v29  ;;  %v2188_v10 = vadd.f32 %v2156_v53, %v10966_v3  ;;  %v14308_v53 = vld [vmem:[#allocation267_spill] sm:$0xff] }
 0x30a   : > { %4722 = vst.msk [vmem:[#allocation3 + $0x6e] sm:$0x3] %vm1584_vm4, %v14079_v18  ;;  %4723 = vst.msk [vmem:[#allocation3 + $0x7e] sm:$0x3] %vm1584_vm4, %v14079_v18  ;;  %v5815_v16 = vadd.f32 %v14302_v32, %v5714_v30  ;;  %v2190_v4 = vadd.f32 %v2158_v7, %v10980_v44  ;;  %v2191_v17 = vadd.f32 %v2159_v56, %v2090_v6  ;;  %v14306_v29 = vld [vmem:[#allocation406_spill] sm:$0xff]  ;;  %v14309_v56 = vld [vmem:[#allocation268_spill] sm:$0xff] }
 0x30b   : > { %4724 = vst.msk [vmem:[#allocation3 + $0x8e] sm:$0x3] %vm1584_vm4, %v14079_v18  ;;  %4725 = vst.msk [vmem:[#allocation3 + $0x9e] sm:$0x3] %vm1584_vm4, %v14079_v18  ;;  %v2192_v9 = vadd.f32 %v2160_v27, %v2091_v12  ;;  %v2193_v38 = vadd.f32 %v2161_v35, %v2092_v57  ;;  %v2194_v30 = vadd.f32 %v2162_v58, %v2093_v14  ;;  %v14307_v14 = vld [vmem:[#allocation408_spill] sm:$0xff] }
 0x30c   : > { %4700 = vst.msk [vmem:[#allocation3 + $0x98] sm:$0x3f] %vm1552_vm3, %v4668_v52  ;;  %4702 = vst.msk [vmem:[#allocation3 + $0xa8] sm:$0x3f] %vm1552_vm3, %v4670_v19  ;;  %v14303_v52 = vld [vmem:[#allocation197_spill] sm:$0xff]  ;;  %v2189_v19 = vadd.f32 %v2157_v15, %v10978_v49  ;;  %v2195_v32 = vadd.f32 %v2163_v61, %v2094_v50 }
 0x30d   : > { %4726 = vst.msk [vmem:[#allocation3 + $0xae] sm:$0x3] %vm1584_vm4, %v14079_v18  ;;  %4727 = vst.msk [vmem:[#allocation3 + $0xbe] sm:$0x3] %vm1584_vm4, %v14079_v18  ;;  %v2164_v31 = vmul.f32 %v7184_v36, %v14303_v52  ;;  %v14305_v36 = vld [vmem:[#allocation327_spill] sm:$0xff] }
 0x30e   : > { %4704 = vst.msk [vmem:[#allocation3 + $0xb8] sm:$0x3f] %vm1552_vm3, %v4672_v45  ;;  %v14304_v45 = vld [vmem:[#allocation404_spill] sm:$0xff]  ;;  %v2252_v20 = vmul.f32 %v14305_v36, %v10656_v41  ;;  %v2253_v11 = vmul.f32 %v14305_v36, %v10658_v59  ;;  %v2254_v49 = vmul.f32 %v14305_v36, %v14129_v0  ;;  %v2255_v44 = vmul.f32 %v14305_v36, %v14272_v13  ;;  %v6757_v61 = vld [vmem:[%s13114_s4] ss:$0 sm:$0xff] }
 0x30f   : > { %v5916_v39 = vadd.f32 %v14304_v45, %v5815_v16  ;;  %v2196_v3 = vadd.f32 %v2164_v31, %v2095_v43  ;;  %v2256_v6 = vmul.f32 %v14305_v36, %v14273_v22  ;;  %v2257_v12 = vmul.f32 %v14305_v36, %v14275_v47 }
 0x310   : > { %v2284_v57 = vadd.f32 %v2252_v20, %v2183_v28  ;;  %v2285_v41 = vadd.f32 %v2253_v11, %v2184_v1  ;;  %v2258_v59 = vmul.f32 %v14305_v36, %v14281_v60  ;;  %v2259_v43 = vmul.f32 %v14305_v36, %v14283_v25 }
 0x311   : > { %v6017_v37 = vadd.f32 %v14306_v29, %v5916_v39  ;;  %v2260_v0 = vmul.f32 %v14305_v36, %v14287_v62  ;;  %v2261_v13 = vmul.f32 %v14305_v36, %v14289_v54  ;;  %v2262_v42 = vmul.f32 %v14305_v36, %v14301_v63 }
 0x312   : > { %v2263_v8 = vmul.f32 %v14305_v36, %v14303_v52  ;;  %v2264_v15 = vmul.f32 %v14305_v36, %v14308_v53  ;;  %v2265_v27 = vmul.f32 %v14305_v36, %v14309_v56  ;;  %v2286_v35 = vadd.f32 %v2254_v49, %v2185_v33  ;;  %v14313_v53 = vld [vmem:[#allocation359_spill] sm:$0xff] }
 0x313   : > { %v6118_v50 = vadd.f32 %v14307_v14, %v6017_v37  ;;  %v2287_v58 = vadd.f32 %v2255_v44, %v2186_v46  ;;  %v2288_v16 = vadd.f32 %v2256_v6, %v2187_v34  ;;  %v2289_v31 = vadd.f32 %v2257_v12, %v2188_v10  ;;  %v7185_v14 = vld [vmem:[#allocation9 + $0x2] ss:$0 sm:$0xff]  ;;  %v14311_v46 = vld [vmem:[#allocation353_spill] sm:$0xff]  ;;  %v14314_v10 = vld [vmem:[#allocation170_spill] sm:$0xff] }
 0x314   : > { %v2290_v28 = vadd.f32 %v2258_v59, %v2189_v19  ;;  %v2291_v1 = vadd.f32 %v2259_v43, %v2190_v4  ;;  %v2292_v39 = vadd.f32 %v2260_v0, %v2191_v17  ;;  %v2293_v20 = vadd.f32 %v2261_v13, %v2192_v9  ;;  %v14312_v44 = vld [vmem:[#allocation129_spill] sm:$0xff]  ;;  %v14315_v4 = vld [vmem:[#allocation95_spill] sm:$0xff]  ;;  %v14319_v12 = vld [vmem:[#allocation390_spill] sm:$0xff] }
 0x315   : > { %v6219_v7 = vadd.f32 %v10899_v5, %v6118_v50  ;;  %v2294_v11 = vadd.f32 %v2262_v42, %v2193_v38  ;;  %v2295_v29 = vadd.f32 %v2263_v8, %v2194_v30  ;;  %v2296_v37 = vadd.f32 %v2264_v15, %v2195_v32  ;;  %v14310_v50 = vld [vmem:[#allocation89_spill] sm:$0xff]  ;;  %v14317_v38 = vld [vmem:[#allocation372_spill] sm:$0xff]  ;;  %v14318_v32 = vld [vmem:[#allocation275_spill] sm:$0xff] }
 0x316   : > { %v2297_v5 = vadd.f32 %v2265_v27, %v2196_v3  ;;  %v2435_v36 = vmul.f32 %v7185_v14, %v14310_v50  ;;  %v2436_v49 = vmul.f32 %v7185_v14, %v14311_v46  ;;  %v2437_v56 = vmul.f32 %v7185_v14, %v14312_v44  ;;  %v14316_v17 = vld [vmem:[#allocation229_spill] sm:$0xff] }
 0x317   : > { %v6258_v45 = vadd.f32 %v6757_v61, %v6219_v7  ;;  %v2438_v34 = vmul.f32 %v7185_v14, %v14313_v53  ;;  %v2439_v19 = vmul.f32 %v7185_v14, %v14314_v10  ;;  %v2440_v6 = vmul.f32 %v7185_v14, %v14315_v4  ;;  %v14320_v43 = vld [vmem:[#allocation121_spill] sm:$0xff] }
 0x318   : > { %v2441_v9 = vmul.f32 %v7185_v14, %v14316_v17  ;;  %v2442_v30 = vmul.f32 %v7185_v14, %v14317_v38  ;;  %v2443_v3 = vmul.f32 %v7185_v14, %v14318_v32  ;;  %v2444_v59 = vmul.f32 %v7185_v14, %v14319_v12  ;;  %v14321_v13 = vld [vmem:[#allocation49_spill] sm:$0xff] }
 0x319   : > { %v6780_v33 = vmul.f32 -1.442695, %v6258_v45  ;;  %v2445_v0 = vmul.f32 %v7185_v14, %v14320_v43  ;;  %v2446_v42 = vmul.f32 %v7185_v14, %v14321_v13  ;;  %v2447_v8 = vmul.f32 %v7185_v14, %v10753_v26 }
 0x31a   : > { %v2448_v15 = vmul.f32 %v7185_v14, %v10755_v40  ;;  %v2467_v7 = vadd.f32 %v2435_v36, %v2284_v57  ;;  %v2468_v27 = vadd.f32 %v2436_v49, %v2285_v41  ;;  %v2469_v61 = vadd.f32 %v2437_v56, %v2286_v35 }
 0x31b   : > { %6989 = vpow2.f32 %v6780_v33  ;;  %v2470_v45 = vadd.f32 %v2438_v34, %v2287_v58  ;;  %v2471_v50 = vadd.f32 %v2439_v19, %v2288_v16  ;;  %v2472_v52 = vadd.f32 %v2440_v6, %v2289_v31  ;;  %v11116_v34 = vld [vmem:[#allocation3 + $0xa0] sm:$0xff] }
 0x31c   : > { %v2473_v63 = vadd.f32 %v2441_v9, %v2290_v28  ;;  %v2474_v33 = vadd.f32 %v2442_v30, %v2291_v1  ;;  %v2475_v54 = vadd.f32 %v2443_v3, %v2292_v39  ;;  %v2476_v62 = vadd.f32 %v2444_v59, %v2293_v20  ;;  %14324 = vst [vmem:[#allocation38_spill] sm:$0xff] %v11116_v34  ;;  %v7188_v34 = vld [vmem:[#allocation9 + $0x1a] ss:$0 sm:$0xff] }
 0x31d   : > { %v2477_v25 = vadd.f32 %v2445_v0, %v2294_v11  ;;  %v2478_v60 = vadd.f32 %v2446_v42, %v2295_v29  ;;  %v2479_v47 = vadd.f32 %v2447_v8, %v2296_v37  ;;  %v2480_v22 = vadd.f32 %v2448_v15, %v2297_v5  ;;  %v14322_v11 = vld [vmem:[#allocation71_spill] sm:$0xff]  ;;  %v14323_v37 = vld [vmem:[#allocation358_spill] sm:$0xff] }
 0x31e   : > { %v2535_v21 = vmul.f32 %v7186_v55, %v14311_v46  ;;  %v2536_v23 = vmul.f32 %v7186_v55, %v14312_v44  ;;  %v2537_v57 = vmul.f32 %v7186_v55, %v14313_v53  ;;  %v2538_v41 = vmul.f32 %v7186_v55, %v14314_v10  ;;  %v4669_v8 = vld [vmem:[#allocation2 + $0x72] sm:$0xff] }
 0x31f   : > { %v2539_v56 = vmul.f32 %v7186_v55, %v14315_v4  ;;  %v2540_v35 = vmul.f32 %v7186_v55, %v14316_v17  ;;  %v2541_v58 = vmul.f32 %v7186_v55, %v14317_v38  ;;  %v2542_v16 = vmul.f32 %v7186_v55, %v14318_v32  ;;  %4701 = vst.msk [vmem:[#allocation3 + $0xa0] sm:$0xff] %vm319_vm0, %v4669_v8 }
 0x320   : > { %v2543_v31 = vmul.f32 %v7186_v55, %v14319_v12  ;;  %v2544_v28 = vmul.f32 %v7186_v55, %v14320_v43  ;;  %v2545_v1 = vmul.f32 %v7186_v55, %v14321_v13  ;;  %v2546_v39 = vmul.f32 %v7186_v55, %v10753_v26 }
 0x321   : > { %v2547_v20 = vmul.f32 %v7186_v55, %v10755_v40  ;;  %v2548_v29 = vmul.f32 %v7186_v55, %v14322_v11  ;;  %v2549_v5 = vmul.f32 %v7186_v55, %v14323_v37  ;;  %v2567_v14 = vadd.f32 %v2535_v21, %v10719_v24  ;;  %v7187_v55 = vld [vmem:[#allocation9 + $0x12] ss:$0 sm:$0xff] }
 0x322   : > { %v2568_v36 = vadd.f32 %v2536_v23, %v2467_v7  ;;  %v2569_v49 = vadd.f32 %v2537_v57, %v2468_v27  ;;  %v2570_v44 = vadd.f32 %v2538_v41, %v2469_v61  ;;  %v2571_v19 = vadd.f32 %v2539_v56, %v2470_v45  ;;  %v14327_v57 = vld [vmem:[#allocation92_spill] sm:$0xff] }
 0x323   : > { %v2572_v6 = vadd.f32 %v2540_v35, %v2471_v50  ;;  %v2573_v9 = vadd.f32 %v2541_v58, %v2472_v52  ;;  %v2574_v30 = vadd.f32 %v2542_v16, %v2473_v63  ;;  %v2575_v3 = vadd.f32 %v2543_v31, %v2474_v33  ;;  %v14326_v50 = vld [vmem:[#allocation364_spill] sm:$0xff] }
 0x324   : > { %v2576_v59 = vadd.f32 %v2544_v28, %v2475_v54  ;;  %v2577_v0 = vadd.f32 %v2545_v1, %v2476_v62  ;;  %v2578_v42 = vadd.f32 %v2546_v39, %v2477_v25  ;;  %v2579_v15 = vadd.f32 %v2547_v20, %v2478_v60  ;;  %v14328_v56 = vld [vmem:[#allocation356_spill] sm:$0xff] }
 0x325   : > { %v2580_v2 = vadd.f32 %v2548_v29, %v2479_v47  ;;  %v11118_v51 = vadd.f32 %v2549_v5, %v2480_v22  ;;  %v2634_v24 = vmul.f32 %v7187_v55, %v14311_v46  ;;  %v2636_v21 = vmul.f32 %v7187_v55, %v14313_v53 }
 0x326   : > { %v2637_v52 = vmul.f32 %v7187_v55, %v14314_v10  ;;  %v2638_v63 = vmul.f32 %v7187_v55, %v14315_v4  ;;  %v2639_v62 = vmul.f32 %v7187_v55, %v14316_v17  ;;  %v2640_v60 = vmul.f32 %v7187_v55, %v14317_v38 }
 0x327   : > { %14325 = vst [vmem:[#allocation332_spill] sm:$0xff] %v11118_v51  ;;  %v2641_v22 = vmul.f32 %v7187_v55, %v14318_v32  ;;  %v2642_v47 = vmul.f32 %v7187_v55, %v14319_v12  ;;  %v2643_v54 = vmul.f32 %v7187_v55, %v14320_v43  ;;  %v2644_v7 = vmul.f32 %v7187_v55, %v14321_v13 }
 0x328   : > { %v6990_v23 = vpop.eup %6989  ;;  %v2645_v27 = vmul.f32 %v7187_v55, %v10753_v26  ;;  %v2646_v61 = vmul.f32 %v7187_v55, %v10755_v40  ;;  %v2647_v45 = vmul.f32 %v7187_v55, %v14322_v11  ;;  %v2648_v33 = vmul.f32 %v7187_v55, %v14326_v50 }
 0x329   : > { %v6386_v25 = vadd.f32 1.0, %v6990_v23  ;;  %v2649_v41 = vmul.f32 %v7187_v55, %v14327_v57  ;;  %v2666_v35 = vadd.f32 %v2634_v24, %v14328_v56  ;;  %v2668_v58 = vadd.f32 %v2636_v21, %v2567_v14  ;;  %v6482_v56 = vld [vmem:[%s7606_s13 + $0xb0] sm:$0xff] }
 0x32a   : > { %v2669_v16 = vadd.f32 %v2637_v52, %v2568_v36  ;;  %v2670_v31 = vadd.f32 %v2638_v63, %v2569_v49  ;;  %v2671_v28 = vadd.f32 %v2639_v62, %v2570_v44  ;;  %v2672_v1 = vadd.f32 %v2640_v60, %v2571_v19  ;;  %v14331_v52 = vld [vmem:[#allocation316_spill] sm:$0xff]  ;;  %v14332_v60 = vld [vmem:[#allocation39_spill] sm:$0xff] }
 0x32b   : > { %6991 = vrcp.f32 %v6386_v25  ;;  %v2673_v39 = vadd.f32 %v2641_v22, %v2572_v6  ;;  %v2674_v20 = vadd.f32 %v2642_v47, %v2573_v9  ;;  %v2675_v29 = vadd.f32 %v2643_v54, %v2574_v30 }
 0x32c   : > { %v2676_v37 = vadd.f32 %v2644_v7, %v2575_v3  ;;  %v2677_v5 = vadd.f32 %v2645_v27, %v2576_v59  ;;  %v2678_v8 = vadd.f32 %v2646_v61, %v2577_v0  ;;  %v2679_v23 = vadd.f32 %v2647_v45, %v2578_v42 }
 0x32d   : > { %v11137_v25 = vadd.f32 %v2648_v33, %v2579_v15  ;;  %v2681_v51 = vadd.f32 %v2649_v41, %v2580_v2  ;;  %v2733_v55 = vmul.f32 %v7188_v34, %v14311_v46  ;;  %v2735_v24 = vmul.f32 %v7188_v34, %v14313_v53  ;;  %v14330_v15 = vld [vmem:[#allocation134_spill] sm:$0xff]  ;;  %v5447_v41 = vld [vmem:[#allocation2 + $0x2b] sm:$0x1f] }
 0x32e   : > { %v2736_v14 = vmul.f32 %v7188_v34, %v14314_v10  ;;  %v2737_v36 = vmul.f32 %v7188_v34, %v14315_v4  ;;  %v2738_v49 = vmul.f32 %v7188_v34, %v14316_v17  ;;  %v2739_v44 = vmul.f32 %v7188_v34, %v14317_v38  ;;  %v5445_v33 = vld [vmem:[#allocation2 + $0x1b] sm:$0x1f] }
 0x32f   : > { %14329 = vst [vmem:[#allocation216_spill] sm:$0xff] %v11137_v25  ;;  %v2740_v19 = vmul.f32 %v7188_v34, %v14318_v32  ;;  %v2741_v6 = vmul.f32 %v7188_v34, %v14319_v12  ;;  %v2742_v9 = vmul.f32 %v7188_v34, %v14320_v43  ;;  %v2743_v2 = vmul.f32 %v7188_v34, %v14321_v13  ;;  %v14344_v25 = vld [vmem:[#allocation284_spill] sm:$0xff] }
 0x330   : > { %v2744_v30 = vmul.f32 %v7188_v34, %v10753_v26  ;;  %v2745_v3 = vmul.f32 %v7188_v34, %v10755_v40  ;;  %v2746_v59 = vmul.f32 %v7188_v34, %v14322_v11  ;;  %v2747_v0 = vmul.f32 %v7188_v34, %v14326_v50 }
 0x331   : > { %v2748_v42 = vmul.f32 %v7188_v34, %v14327_v57  ;;  %v2750_v21 = vmul.f32 %v7188_v34, %v14330_v15  ;;  %v11156_v63 = vadd.f32 %v2733_v55, %v14331_v52  ;;  %v11158_v62 = vadd.f32 %v2735_v24, %v2666_v35  ;;  %v5443_v34 = vld [vmem:[#allocation2 + $0xb] sm:$0x1f] }
 0x332   : > { %v11161_v22 = vadd.f32 %v2736_v14, %v14332_v60  ;;  %v11163_v47 = vadd.f32 %v2737_v36, %v2668_v58  ;;  %v11165_v54 = vadd.f32 %v2738_v49, %v2669_v16  ;;  %v11167_v7 = vadd.f32 %v2739_v44, %v2670_v31  ;;  %v5449_v31 = vld [vmem:[#allocation2 + $0x3b] sm:$0x1f]  ;;  %v5451_v24 = vld [vmem:[#allocation2 + $0x4b] sm:$0x1f]  ;;  %v7189_v36 = vld [vmem:[#allocation9 + $0x22] ss:$0 sm:$0xff] }
 0x333   : > { %v11169_v27 = vadd.f32 %v2740_v19, %v2671_v28  ;;  %v11171_v61 = vadd.f32 %v2741_v6, %v2672_v1  ;;  %v11173_v45 = vadd.f32 %v2742_v9, %v2673_v39  ;;  %v11176_v35 = vadd.f32 %v2743_v2, %v2674_v20  ;;  %v5453_v28 = vld [vmem:[#allocation2 + $0x5b] sm:$0x1f]  ;;  %v5455_v44 = vld [vmem:[#allocation2 + $0x6b] sm:$0x1f] }
 0x334   : > { %v11178_v55 = vadd.f32 %v2744_v30, %v2675_v29  ;;  %v11180_v58 = vadd.f32 %v2745_v3, %v2676_v37  ;;  %v11182_v16 = vadd.f32 %v2746_v59, %v2677_v5  ;;  %v11184_v14 = vadd.f32 %v2747_v0, %v2678_v8  ;;  %v11195_v6 = vld [vmem:[#allocation3 + $0x38] sm:$0xff]  ;;  %v11197_v8 = vld [vmem:[#allocation3 + $0x48] sm:$0xff] }
 0x335   : > { %v11186_v1 = vadd.f32 %v2748_v42, %v2679_v23  ;;  %v11188_v39 = vadd.f32 %v2750_v21, %v2681_v51  ;;  %v2832_v49 = vmul.f32 %v7189_v36, %v14311_v46  ;;  %v2834_v29 = vmul.f32 %v7189_v36, %v14313_v53  ;;  %14334 = vst [vmem:[#allocation109_spill] sm:$0xff] %v11195_v6  ;;  %v11199_v23 = vld [vmem:[#allocation3 + $0x58] sm:$0xff]  ;;  %v11204_v30 = vld [vmem:[#allocation3 + $0x68] sm:$0xff] }
 0x336   : > { %14333 = vst [vmem:[#allocation335_spill] sm:$0xff] %v11184_v14  ;;  %v2835_v37 = vmul.f32 %v7189_v36, %v14314_v10  ;;  %v2836_v5 = vmul.f32 %v7189_v36, %v14315_v4  ;;  %v2837_v19 = vmul.f32 %v7189_v36, %v14316_v17  ;;  %14335 = vst [vmem:[#allocation37_spill] sm:$0xff] %v11197_v8  ;;  %v11206_v3 = vld [vmem:[#allocation3 + $0x78] sm:$0xff]  ;;  %v11208_v59 = vld [vmem:[#allocation3 + $0x88] sm:$0xff] }
 0x337   : > { %14336 = vst [vmem:[#allocation60_spill] sm:$0xff] %v11199_v23  ;;  %v2838_v9 = vmul.f32 %v7189_v36, %v14317_v38  ;;  %v2839_v46 = vmul.f32 %v7189_v36, %v14318_v32  ;;  %v2840_v2 = vmul.f32 %v7189_v36, %v14319_v12  ;;  %14337 = vst [vmem:[#allocation75_spill] sm:$0xff] %v11204_v30  ;;  %v5457_v0 = vld [vmem:[#allocation2 + $0x7b] sm:$0x1f]  ;;  %v11295_v23 = vld [vmem:[#allocation3 + $0xa0] sm:$0xff] }
 0x338   : > { %v6992_v20 = vpop.eup %6991  ;;  %14338 = vst [vmem:[#allocation115_spill] sm:$0xff] %v11206_v3  ;;  %14339 = vst [vmem:[#allocation45_spill] sm:$0xff] %v11208_v59  ;;  %v2841_v42 = vmul.f32 %v7189_v36, %v14320_v43  ;;  %v2842_v21 = vmul.f32 %v7189_v36, %v14321_v13  ;;  %v2843_v52 = vmul.f32 %v7189_v36, %v10753_v26  ;;  %v14345_v59 = vld [vmem:[#allocation365_spill] sm:$0xff] }
 0x339   : > { %v6514_v51 = vmul.f32 %v6992_v20, %v6482_v56  ;;  %5475 = vst.msk [vmem:[#allocation3 + $0x38] sm:$0x1f] %vm752_vm2, %v5443_v34  ;;  %5477 = vst.msk [vmem:[#allocation3 + $0x48] sm:$0x1f] %vm752_vm2, %v5445_v33  ;;  %v2844_v60 = vmul.f32 %v7189_v36, %v10755_v40  ;;  %v11223_v34 = vld [vmem:[#allocation3 + $0x98] sm:$0xff]  ;;  %v11225_v33 = vld [vmem:[#allocation3 + $0xa8] sm:$0xff]  ;;  %v2845_v56 = vmul.f32 %v7189_v36, %v14322_v11 }
 0x33a   : > { %5479 = vst.msk [vmem:[#allocation3 + $0x58] sm:$0x1f] %vm752_vm2, %v5447_v41  ;;  %14340 = vst [vmem:[#allocation389_spill] sm:$0xff] %v11223_v34  ;;  %v5459_v41 = vld [vmem:[#allocation2 + $0x8b] sm:$0x1f]  ;;  %v11246_v20 = vld [vmem:[#allocation3 + $0xb8] sm:$0xff]  ;;  %v2866_v34 = vadd.f32 %v2834_v29, %v11156_v63  ;;  %v2867_v3 = vadd.f32 %v2835_v37, %v14345_v59  ;;  %v2871_v30 = vadd.f32 %v2839_v46, %v11165_v54 }
 0x33b   : > { %5506 = vst.msk [vmem:[#allocation3 + $0x3d] sm:$0x7] %vm784_vm1, %v14079_v18  ;;  %5507 = vst.msk [vmem:[#allocation3 + $0x4d] sm:$0x7] %vm784_vm1, %v14079_v18  ;;  %v2874_v63 = vadd.f32 %v2842_v21, %v11171_v61  ;;  %v2876_v29 = vadd.f32 %v2844_v60, %v11176_v35  ;;  %v2877_v37 = vadd.f32 %v2845_v56, %v11178_v55  ;;  %v14347_v59 = vld [vmem:[#allocation234_spill] sm:$0xff] }
 0x33c   : > { %5508 = vst.msk [vmem:[#allocation3 + $0x5d] sm:$0x7] %vm784_vm1, %v14079_v18  ;;  %14341 = vst [vmem:[#allocation377_spill] sm:$0xff] %v11225_v33  ;;  %v2864_v33 = vadd.f32 %v2832_v49, %v14344_v25  ;;  %v2873_v25 = vadd.f32 %v2841_v42, %v11169_v27  ;;  %v2875_v49 = vadd.f32 %v2843_v52, %v11173_v45  ;;  %v14348_v52 = vld [vmem:[#allocation325_spill] sm:$0xff] }
 0x33d   : > { %5481 = vst.msk [vmem:[#allocation3 + $0x68] sm:$0x1f] %vm752_vm2, %v5449_v31  ;;  %5483 = vst.msk [vmem:[#allocation3 + $0x78] sm:$0x1f] %vm752_vm2, %v5451_v24  ;;  %v2846_v31 = vmul.f32 %v7189_v36, %v14326_v50  ;;  %v2847_v24 = vmul.f32 %v7189_v36, %v14327_v57 }
 0x33e   : > { %5485 = vst.msk [vmem:[#allocation3 + $0x88] sm:$0x1f] %vm752_vm2, %v5453_v28  ;;  %v2849_v28 = vmul.f32 %v7189_v36, %v14330_v15  ;;  %14342 = vst [vmem:[#allocation61_spill] sm:$0xff] %v11246_v20  ;;  %v2870_v20 = vadd.f32 %v2838_v9, %v11163_v47 }
 0x33f   : > { %5509 = vst.msk [vmem:[#allocation3 + $0x6d] sm:$0x7] %vm784_vm1, %v14079_v18  ;;  %5510 = vst.msk [vmem:[#allocation3 + $0x7d] sm:$0x7] %vm784_vm1, %v14079_v18 }
 0x340   : > { %5511 = vst.msk [vmem:[#allocation3 + $0x8d] sm:$0x7] %vm784_vm1, %v14079_v18  ;;  %5512 = vst.msk [vmem:[#allocation3 + $0x9d] sm:$0x7] %vm784_vm1, %v14079_v18  ;;  %v2881_v47 = vadd.f32 %v2849_v28, %v11186_v1 }
 0x341   : > { %6546 = vst.msk [vmem:[%s11238_s6 + $0xb0] sm:$0xff] %vm319_vm0, %v6514_v51  ;;  %v14343_v51 = vld [vmem:[#allocation175_spill] sm:$0xff]  ;;  %14349 = vst [vmem:[#allocation338_spill] sm:$0xff] %v11295_v23 }
 0x342   : > { %5487 = vst.msk [vmem:[#allocation3 + $0x98] sm:$0x1f] %vm752_vm2, %v5455_v44  ;;  %5489 = vst.msk [vmem:[#allocation3 + $0xa8] sm:$0x1f] %vm752_vm2, %v5457_v0  ;;  %v2851_v14 = vmul.f32 %v7189_v36, %v14343_v51  ;;  %v2868_v44 = vadd.f32 %v2836_v5, %v11158_v62  ;;  %v2869_v0 = vadd.f32 %v2837_v19, %v11161_v22 }
 0x343   : > { %5513 = vst.msk [vmem:[#allocation3 + $0xad] sm:$0x7] %vm784_vm1, %v14079_v18  ;;  %5514 = vst.msk [vmem:[#allocation3 + $0xbd] sm:$0x7] %vm784_vm1, %v14079_v18  ;;  %v2872_v36 = vadd.f32 %v2840_v2, %v11167_v7  ;;  %v11272_v62 = vadd.f32 %v2846_v31, %v11180_v58  ;;  %v2879_v22 = vadd.f32 %v2847_v24, %v11182_v16  ;;  %v7190_v7 = vld [vmem:[#allocation9 + $0x2a] ss:$0 sm:$0xff] }
 0x344   : > { %5491 = vst.msk [vmem:[#allocation3 + $0xb8] sm:$0x1f] %vm752_vm2, %v5459_v41  ;;  %v2883_v54 = vadd.f32 %v2851_v14, %v11188_v39  ;;  %v2933_v27 = vmul.f32 %v7190_v7, %v14313_v53  ;;  %v2934_v61 = vmul.f32 %v7190_v7, %v14314_v10  ;;  %v2935_v45 = vmul.f32 %v7190_v7, %v14315_v4 }
 0x345   : > { %14346 = vst [vmem:[#allocation391_spill] sm:$0xff] %v11272_v62  ;;  %v2936_v35 = vmul.f32 %v7190_v7, %v14316_v17  ;;  %v2937_v55 = vmul.f32 %v7190_v7, %v14317_v38  ;;  %v2938_v58 = vmul.f32 %v7190_v7, %v14318_v32  ;;  %v2939_v5 = vmul.f32 %v7190_v7, %v14319_v12 }
 0x346   : > { %v2940_v16 = vmul.f32 %v7190_v7, %v14320_v43  ;;  %v2941_v1 = vmul.f32 %v7190_v7, %v14321_v13  ;;  %v2942_v14 = vmul.f32 %v7190_v7, %v10753_v26  ;;  %v2943_v53 = vmul.f32 %v7190_v7, %v10755_v40 }
 0x347   : > { %v2944_v39 = vmul.f32 %v7190_v7, %v14322_v11  ;;  %v2945_v19 = vmul.f32 %v7190_v7, %v14326_v50  ;;  %v2946_v9 = vmul.f32 %v7190_v7, %v14327_v57  ;;  %v2948_v46 = vmul.f32 %v7190_v7, %v14330_v15 }
 0x348   : > { %v2950_v2 = vmul.f32 %v7190_v7, %v14343_v51  ;;  %v2952_v42 = vmul.f32 %v7190_v7, %v14347_v59  ;;  %v2965_v21 = vadd.f32 %v2933_v27, %v2864_v33  ;;  %v2966_v60 = vadd.f32 %v2934_v61, %v14348_v52  ;;  %v5456_v27 = vld [vmem:[#allocation2 + $0x73] sm:$0xff]  ;;  %v7191_v61 = vld [vmem:[#allocation9 + $0x32] ss:$0 sm:$0xff] }
 0x349   : > { %v2967_v41 = vadd.f32 %v2935_v45, %v2866_v34  ;;  %v2968_v56 = vadd.f32 %v2936_v35, %v2867_v3  ;;  %v2969_v31 = vadd.f32 %v2937_v55, %v2868_v44  ;;  %v2970_v24 = vadd.f32 %v2938_v58, %v2869_v0  ;;  %5488 = vst.msk [vmem:[#allocation3 + $0xa0] sm:$0xff] %vm319_vm0, %v5456_v27 }
 0x34a   : > { %v2971_v28 = vadd.f32 %v2939_v5, %v2870_v20  ;;  %v2972_v62 = vadd.f32 %v2940_v16, %v2871_v30  ;;  %v2973_v18 = vadd.f32 %v2941_v1, %v2872_v36  ;;  %v2974_v8 = vadd.f32 %v2942_v14, %v2873_v25 }
 0x34b   : > { %v2975_v6 = vadd.f32 %v2943_v53, %v2874_v63  ;;  %v2976_v48 = vadd.f32 %v2944_v39, %v2875_v49  ;;  %v11297_v15 = vadd.f32 %v2945_v19, %v2876_v29  ;;  %v2978_v51 = vadd.f32 %v2946_v9, %v2877_v37  ;;  %v14351_v49 = vld [vmem:[#allocation92_spill] sm:$0xff]  ;;  %v14352_v29 = vld [vmem:[#allocation134_spill] sm:$0xff]  ;;  %v11318_v19 = vld [vmem:[#allocation3 + $0x10] sm:$0xff] }
 0x34c   : > { %v2980_v57 = vadd.f32 %v2948_v46, %v2879_v22  ;;  %v2982_v7 = vadd.f32 %v2950_v2, %v2881_v47  ;;  %v2984_v33 = vadd.f32 %v2952_v42, %v2883_v54  ;;  %v3033_v3 = vmul.f32 %v7191_v61, %v14314_v10  ;;  %v14353_v22 = vld [vmem:[#allocation175_spill] sm:$0xff]  ;;  %v14354_v47 = vld [vmem:[#allocation104_spill] sm:$0xff]  ;;  %14356 = vst [vmem:[#allocation378_spill] sm:$0xff] %v11318_v19 }
 0x34d   : > { %14350 = vst [vmem:[#allocation76_spill] sm:$0xff] %v11297_v15  ;;  %v3034_v34 = vmul.f32 %v7191_v61, %v14315_v4  ;;  %v3035_v30 = vmul.f32 %v7191_v61, %v14316_v17  ;;  %v3036_v20 = vmul.f32 %v7191_v61, %v14317_v38  ;;  %v3037_v44 = vmul.f32 %v7191_v61, %v14318_v32  ;;  %v14355_v54 = vld [vmem:[#allocation304_spill] sm:$0xff]  ;;  %v11320_v9 = vld [vmem:[#allocation3 + $0x20] sm:$0xff] }
 0x34e   : > { %v3038_v0 = vmul.f32 %v7191_v61, %v14319_v12  ;;  %v3039_v36 = vmul.f32 %v7191_v61, %v14320_v43  ;;  %v3040_v25 = vmul.f32 %v7191_v61, %v14321_v13  ;;  %v3041_v63 = vmul.f32 %v7191_v61, %v10753_v26  ;;  %14357 = vst [vmem:[#allocation113_spill] sm:$0xff] %v11320_v9  ;;  %v11322_v42 = vld [vmem:[#allocation3 + $0x28] sm:$0xff] }
 0x34f   : > { %v3042_v10 = vmul.f32 %v7191_v61, %v10755_v40  ;;  %v3043_v4 = vmul.f32 %v7191_v61, %v14322_v11  ;;  %v3044_v17 = vmul.f32 %v7191_v61, %v14326_v50  ;;  %v3045_v38 = vmul.f32 %v7191_v61, %v14351_v49  ;;  %14358 = vst [vmem:[#allocation117_spill] sm:$0xff] %v11322_v42  ;;  %v14380_v15 = vld [vmem:[#allocation16_spill] sm:$0xff] }
 0x350   : > { %v3047_v37 = vmul.f32 %v7191_v61, %v14352_v29  ;;  %v3049_v32 = vmul.f32 %v7191_v61, %v14353_v22  ;;  %v3051_v12 = vmul.f32 %v7191_v61, %v14347_v59  ;;  %v3053_v43 = vmul.f32 %v7191_v61, %v14354_v47  ;;  %v14368_v61 = vld [vmem:[#allocation283_spill] sm:$0xff] }
 0x351   : > { %v3065_v13 = vadd.f32 %v3033_v3, %v14355_v54  ;;  %v3066_v45 = vadd.f32 %v3034_v34, %v2965_v21  ;;  %v3067_v26 = vadd.f32 %v3035_v30, %v2966_v60  ;;  %v3068_v35 = vadd.f32 %v3036_v20, %v2967_v41  ;;  %v7192_v21 = vld [vmem:[#allocation9 + $0x3] ss:$0 sm:$0xff]  ;;  %v14371_v20 = vld [vmem:[#allocation66_spill] sm:$0xff] }
 0x352   : > { %v3069_v40 = vadd.f32 %v3037_v44, %v2968_v56  ;;  %v3070_v55 = vadd.f32 %v3038_v0, %v2969_v31  ;;  %v3071_v11 = vadd.f32 %v3039_v36, %v2970_v24  ;;  %v3072_v58 = vadd.f32 %v3040_v25, %v2971_v28  ;;  %v14362_v41 = vld [vmem:[#allocation207_spill] sm:$0xff]  ;;  %v14363_v31 = vld [vmem:[#allocation368_spill] sm:$0xff]  ;;  %v14365_v28 = vld [vmem:[#allocation258_spill] sm:$0xff] }
 0x353   : > { %v3073_v50 = vadd.f32 %v3041_v63, %v2972_v62  ;;  %v3074_v5 = vadd.f32 %v3042_v10, %v2973_v18  ;;  %v3075_v16 = vadd.f32 %v3043_v4, %v2974_v8  ;;  %v3076_v1 = vadd.f32 %v3044_v17, %v2975_v6  ;;  %v14359_v8 = vld [vmem:[#allocation231_spill] sm:$0xff]  ;;  %v14372_v0 = vld [vmem:[#allocation93_spill] sm:$0xff]  ;;  %v14373_v25 = vld [vmem:[#allocation56_spill] sm:$0xff] }
 0x354   : > { %v3077_v14 = vadd.f32 %v3045_v38, %v2976_v48  ;;  %v3079_v53 = vadd.f32 %v3047_v37, %v2978_v51  ;;  %v3081_v39 = vadd.f32 %v3049_v32, %v2980_v57  ;;  %v3083_v46 = vadd.f32 %v3051_v12, %v2982_v7  ;;  %v14360_v48 = vld [vmem:[#allocation306_spill] sm:$0xff]  ;;  %v14361_v57 = vld [vmem:[#allocation139_spill] sm:$0xff]  ;;  %v14375_v10 = vld [vmem:[#allocation328_spill] sm:$0xff] }
 0x355   : > { %v3085_v2 = vadd.f32 %v3053_v43, %v2984_v33  ;;  %v3200_v52 = vmul.f32 %v7192_v21, %v11318_v19  ;;  %v3202_v60 = vmul.f32 %v7192_v21, %v11320_v9  ;;  %v3203_v18 = vmul.f32 %v7192_v21, %v11322_v42  ;;  %v14366_v33 = vld [vmem:[#allocation369_spill] sm:$0xff]  ;;  %v14369_v34 = vld [vmem:[#allocation47_spill] sm:$0xff]  ;;  %v14377_v37 = vld [vmem:[#allocation178_spill] sm:$0xff] }
 0x356   : > { %v3205_v6 = vmul.f32 %v7192_v21, %v14359_v8  ;;  %v3207_v51 = vmul.f32 %v7192_v21, %v14360_v48  ;;  %v3209_v62 = vmul.f32 %v7192_v21, %v14361_v57  ;;  %v3210_v56 = vmul.f32 %v7192_v21, %v14362_v41  ;;  %v14376_v17 = vld [vmem:[#allocation127_spill] sm:$0xff]  ;;  %v14378_v12 = vld [vmem:[#allocation14_spill] sm:$0xff] }
 0x357   : > { %v11332_v24 = vmul.f32 %v7192_v21, %v14363_v31  ;;  %v3212_v7 = vmul.f32 %v7192_v21, %v14365_v28  ;;  %v11336_v27 = vmul.f32 %v7192_v21, %v14366_v33  ;;  %v3214_v3 = vmul.f32 %v7192_v21, %v14368_v61  ;;  %v14379_v54 = vld [vmem:[#allocation15_spill] sm:$0xff] }
 0x358   : > { %v11340_v30 = vmul.f32 %v7192_v21, %v14369_v34  ;;  %v3216_v44 = vmul.f32 %v7192_v21, %v14371_v20  ;;  %v3236_v36 = vadd.f32 %v14372_v0, %v3071_v11  ;;  %v11345_v63 = vmul.f32 %v7192_v21, %v14373_v25 }
 0x359   : > { %14364 = vst [vmem:[#allocation340_spill] sm:$0xff] %v11332_v24  ;;  %14367 = vst [vmem:[#allocation111_spill] sm:$0xff] %v11336_v27  ;;  %v3218_v4 = vmul.f32 %v7192_v21, %v14375_v10  ;;  %v3238_v38 = vadd.f32 %v14376_v17, %v3073_v50  ;;  %v3240_v32 = vadd.f32 %v14377_v37, %v3075_v16  ;;  %v7193_v50 = vld [vmem:[#allocation9 + $0xb] ss:$0 sm:$0xff] }
 0x35a   : > { %14370 = vst [vmem:[#allocation282_spill] sm:$0xff] %v11340_v30  ;;  %14374 = vst [vmem:[#allocation46_spill] sm:$0xff] %v11345_v63  ;;  %v3230_v43 = vadd.f32 %v14378_v12, %v3065_v13  ;;  %v3231_v27 = vadd.f32 %v14379_v54, %v3066_v45  ;;  %v3232_v24 = vadd.f32 %v3200_v52, %v3067_v26 }
 0x35b   : > { %v3233_v30 = vadd.f32 %v14380_v15, %v3068_v35  ;;  %v3234_v47 = vadd.f32 %v3202_v60, %v3069_v40  ;;  %v3235_v59 = vadd.f32 %v3203_v18, %v3070_v55  ;;  %v3237_v22 = vadd.f32 %v3205_v6, %v3072_v58  ;;  %v14385_v60 = vld [vmem:[#allocation128_spill] sm:$0xff]  ;;  %v14386_v6 = vld [vmem:[#allocation179_spill] sm:$0xff] }
 0x35c   : > { %v3239_v11 = vadd.f32 %v3207_v51, %v3074_v5  ;;  %v3241_v0 = vadd.f32 %v3209_v62, %v3076_v1  ;;  %v3242_v29 = vadd.f32 %v3210_v56, %v3077_v14  ;;  %v3244_v63 = vadd.f32 %v3212_v7, %v3079_v53  ;;  %v14387_v62 = vld [vmem:[#allocation105_spill] sm:$0xff]  ;;  %v14389_v7 = vld [vmem:[#allocation91_spill] sm:$0xff] }
 0x35d   : > { %v3246_v49 = vadd.f32 %v3214_v3, %v3081_v39  ;;  %v3248_v21 = vadd.f32 %v3216_v44, %v3083_v46  ;;  %v3250_v23 = vadd.f32 %v3218_v4, %v3085_v2  ;;  %v3299_v16 = vmul.f32 %v7193_v50, %v11318_v19  ;;  %v14383_v39 = vld [vmem:[#allocation94_spill] sm:$0xff]  ;;  %v14390_v4 = vld [vmem:[#allocation17_spill] sm:$0xff] }
 0x35e   : > { %v3301_v13 = vmul.f32 %v7193_v50, %v11320_v9  ;;  %v3302_v45 = vmul.f32 %v7193_v50, %v11322_v42  ;;  %v3304_v26 = vmul.f32 %v7193_v50, %v14359_v8  ;;  %v3306_v15 = vmul.f32 %v7193_v50, %v14360_v48 }
 0x35f   : > { %v3308_v35 = vmul.f32 %v7193_v50, %v14361_v57  ;;  %v3309_v40 = vmul.f32 %v7193_v50, %v14362_v41  ;;  %v3310_v55 = vmul.f32 %v7193_v50, %v14363_v31  ;;  %v3311_v58 = vmul.f32 %v7193_v50, %v14365_v28 }
 0x360   : > { %v11363_v5 = vmul.f32 %v7193_v50, %v14366_v33  ;;  %v3313_v1 = vmul.f32 %v7193_v50, %v14368_v61  ;;  %v11367_v14 = vmul.f32 %v7193_v50, %v14369_v34  ;;  %v3315_v53 = vmul.f32 %v7193_v50, %v14371_v20 }
 0x361   : > { %v3335_v46 = vadd.f32 %v14383_v39, %v3234_v47  ;;  %v11372_v2 = vmul.f32 %v7193_v50, %v14373_v25  ;;  %v3317_v52 = vmul.f32 %v7193_v50, %v14375_v10  ;;  %v3337_v18 = vadd.f32 %v14385_v60, %v3236_v36 }
 0x362   : > { %14381 = vst [vmem:[#allocation342_spill] sm:$0xff] %v11363_v5  ;;  %14382 = vst [vmem:[#allocation344_spill] sm:$0xff] %v11367_v14  ;;  %v3339_v51 = vadd.f32 %v14386_v6, %v3238_v38  ;;  %v11378_v56 = vmul.f32 %v7193_v50, %v14387_v62  ;;  %v3319_v3 = vmul.f32 %v7193_v50, %v14389_v7  ;;  %v7194_v6 = vld [vmem:[#allocation9 + $0x13] ss:$0 sm:$0xff] }
 0x363   : > { %14384 = vst [vmem:[#allocation346_spill] sm:$0xff] %v11372_v2  ;;  %v3331_v44 = vadd.f32 %v3299_v16, %v3230_v43  ;;  %v3332_v17 = vadd.f32 %v14390_v4, %v3231_v27  ;;  %v3333_v37 = vadd.f32 %v3301_v13, %v3232_v24  ;;  %v3334_v12 = vadd.f32 %v3302_v45, %v3233_v30  ;;  %v14395_v16 = vld [vmem:[#allocation181_spill] sm:$0xff] }
 0x364   : > { %14388 = vst [vmem:[#allocation379_spill] sm:$0xff] %v11378_v56  ;;  %v3336_v47 = vadd.f32 %v3304_v26, %v3235_v59  ;;  %v3338_v54 = vadd.f32 %v3306_v15, %v3237_v22  ;;  %v3340_v39 = vadd.f32 %v3308_v35, %v3239_v11  ;;  %v3341_v2 = vadd.f32 %v3309_v40, %v3240_v32  ;;  %v14397_v35 = vld [vmem:[#allocation185_spill] sm:$0xff] }
 0x365   : > { %v3342_v14 = vadd.f32 %v3310_v55, %v3241_v0  ;;  %v3343_v5 = vadd.f32 %v3311_v58, %v3242_v29  ;;  %v3345_v19 = vadd.f32 %v3313_v1, %v3244_v63  ;;  %v3347_v36 = vadd.f32 %v3315_v53, %v3246_v49  ;;  %v14392_v63 = vld [vmem:[#allocation99_spill] sm:$0xff]  ;;  %v14399_v55 = vld [vmem:[#allocation125_spill] sm:$0xff] }
 0x366   : > { %v3349_v60 = vadd.f32 %v3317_v52, %v3248_v21  ;;  %v3351_v38 = vadd.f32 %v3319_v3, %v3250_v23  ;;  %v3400_v56 = vmul.f32 %v7194_v6, %v11320_v9  ;;  %v3401_v50 = vmul.f32 %v7194_v6, %v11322_v42  ;;  %v14394_v21 = vld [vmem:[#allocation131_spill] sm:$0xff]  ;;  %v7195_v42 = vld [vmem:[#allocation9 + $0x1b] ss:$0 sm:$0xff] }
 0x367   : > { %v3403_v43 = vmul.f32 %v7194_v6, %v14359_v8  ;;  %v3405_v24 = vmul.f32 %v7194_v6, %v14360_v48  ;;  %v3407_v59 = vmul.f32 %v7194_v6, %v14361_v57  ;;  %v3408_v22 = vmul.f32 %v7194_v6, %v14362_v41 }
 0x368   : > { %v3409_v27 = vmul.f32 %v7194_v6, %v14363_v31  ;;  %v3410_v29 = vmul.f32 %v7194_v6, %v14365_v28  ;;  %v3411_v49 = vmul.f32 %v7194_v6, %v14366_v33  ;;  %v3412_v23 = vmul.f32 %v7194_v6, %v14368_v61 }
 0x369   : > { %v11393_v30 = vmul.f32 %v7194_v6, %v14369_v34  ;;  %v3434_v32 = vadd.f32 %v14392_v63, %v3333_v37  ;;  %v3414_v11 = vmul.f32 %v7194_v6, %v14371_v20  ;;  %v11398_v0 = vmul.f32 %v7194_v6, %v14373_v25 }
 0x36a   : > { %v3436_v41 = vadd.f32 %v14394_v21, %v3335_v46  ;;  %v3438_v13 = vadd.f32 %v14395_v16, %v3337_v18  ;;  %v3416_v45 = vmul.f32 %v7194_v6, %v14375_v10  ;;  %v11404_v26 = vmul.f32 %v7194_v6, %v14387_v62 }
 0x36b   : > { %14391 = vst [vmem:[#allocation62_spill] sm:$0xff] %v11393_v30  ;;  %14393 = vst [vmem:[#allocation77_spill] sm:$0xff] %v11398_v0  ;;  %v3418_v15 = vmul.f32 %v7194_v6, %v14389_v7  ;;  %v11408_v40 = vmul.f32 %v7194_v6, %v14397_v35  ;;  %v3420_v58 = vmul.f32 %v7194_v6, %v14399_v55 }
 0x36c   : > { %14396 = vst [vmem:[#allocation118_spill] sm:$0xff] %v11404_v26  ;;  %v3432_v1 = vadd.f32 %v3400_v56, %v3331_v44  ;;  %v3433_v53 = vadd.f32 %v3401_v50, %v3332_v17  ;;  %v3435_v52 = vadd.f32 %v3403_v43, %v3334_v12  ;;  %v3437_v3 = vadd.f32 %v3405_v24, %v3336_v47  ;;  %v14402_v47 = vld [vmem:[#allocation132_spill] sm:$0xff] }
 0x36d   : > { %14398 = vst [vmem:[#allocation380_spill] sm:$0xff] %v11408_v40  ;;  %v3439_v4 = vadd.f32 %v3407_v59, %v3338_v54  ;;  %v3440_v46 = vadd.f32 %v3408_v22, %v3339_v51  ;;  %v3441_v37 = vadd.f32 %v3409_v27, %v3340_v39  ;;  %v3442_v18 = vadd.f32 %v3410_v29, %v3341_v2  ;;  %v14403_v39 = vld [vmem:[#allocation182_spill] sm:$0xff]  ;;  %v14406_v43 = vld [vmem:[#allocation164_spill] sm:$0xff] }
 0x36e   : > { %v3443_v63 = vadd.f32 %v3411_v49, %v3342_v14  ;;  %v3444_v21 = vadd.f32 %v3412_v23, %v3343_v5  ;;  %v3446_v16 = vadd.f32 %v3414_v11, %v3345_v19  ;;  %v3448_v0 = vadd.f32 %v3416_v45, %v3347_v36  ;;  %v14400_v5 = vld [vmem:[#allocation100_spill] sm:$0xff]  ;;  %v14407_v29 = vld [vmem:[#allocation30_spill] sm:$0xff] }
 0x36f   : > { %v3450_v26 = vadd.f32 %v3418_v15, %v3349_v60  ;;  %v3452_v30 = vadd.f32 %v3420_v58, %v3351_v38  ;;  %v3502_v9 = vmul.f32 %v7195_v42, %v14359_v8  ;;  %v3504_v40 = vmul.f32 %v7195_v42, %v14360_v48 }
 0x370   : > { %v3506_v56 = vmul.f32 %v7195_v42, %v14361_v57  ;;  %v3508_v44 = vmul.f32 %v7195_v42, %v14363_v31  ;;  %v3509_v17 = vmul.f32 %v7195_v42, %v14365_v28  ;;  %v3510_v51 = vmul.f32 %v7195_v42, %v14366_v33 }
 0x371   : > { %v3511_v14 = vmul.f32 %v7195_v42, %v14368_v61  ;;  %v3512_v19 = vmul.f32 %v7195_v42, %v14369_v34  ;;  %v3533_v2 = vadd.f32 %v14400_v5, %v3432_v1  ;;  %v3513_v12 = vmul.f32 %v7195_v42, %v14371_v20 }
 0x372   : > { %v11422_v8 = vmul.f32 %v7195_v42, %v14373_v25  ;;  %v3535_v54 = vadd.f32 %v14402_v47, %v3434_v32  ;;  %v3537_v36 = vadd.f32 %v14403_v39, %v3436_v41  ;;  %v3515_v60 = vmul.f32 %v7195_v42, %v14375_v10  ;;  %v7196_v39 = vld [vmem:[#allocation9 + $0x23] ss:$0 sm:$0xff] }
 0x373   : > { %v11428_v28 = vmul.f32 %v7195_v42, %v14387_v62  ;;  %v3517_v38 = vmul.f32 %v7195_v42, %v14389_v7  ;;  %v11432_v6 = vmul.f32 %v7195_v42, %v14397_v35  ;;  %v3519_v50 = vmul.f32 %v7195_v42, %v14399_v55 }
 0x374   : > { %14401 = vst [vmem:[#allocation285_spill] sm:$0xff] %v11422_v8  ;;  %v3521_v24 = vmul.f32 %v7195_v42, %v14406_v43  ;;  %v3534_v59 = vadd.f32 %v3502_v9, %v3433_v53  ;;  %v3536_v22 = vadd.f32 %v3504_v40, %v3435_v52  ;;  %v3538_v27 = vadd.f32 %v3506_v56, %v3437_v3  ;;  %v14408_v3 = vld [vmem:[#allocation148_spill] sm:$0xff] }
 0x375   : > { %14404 = vst [vmem:[#allocation90_spill] sm:$0xff] %v11428_v28  ;;  %14405 = vst [vmem:[#allocation357_spill] sm:$0xff] %v11432_v6  ;;  %v3539_v49 = vadd.f32 %v14407_v29, %v3438_v13  ;;  %v3540_v23 = vadd.f32 %v3508_v44, %v3439_v4  ;;  %v3541_v32 = vadd.f32 %v3509_v17, %v3440_v46  ;;  %v14413_v17 = vld [vmem:[#allocation233_spill] sm:$0xff] }
 0x376   : > { %v3542_v11 = vadd.f32 %v3510_v51, %v3441_v37  ;;  %v3543_v41 = vadd.f32 %v3511_v14, %v3442_v18  ;;  %v3544_v45 = vadd.f32 %v3512_v19, %v3443_v63  ;;  %v3545_v15 = vadd.f32 %v3513_v12, %v3444_v21  ;;  %v14412_v21 = vld [vmem:[#allocation212_spill] sm:$0xff]  ;;  %v14414_v19 = vld [vmem:[#allocation42_spill] sm:$0xff] }
 0x377   : > { %v3547_v58 = vadd.f32 %v3515_v60, %v3446_v16  ;;  %v3549_v1 = vadd.f32 %v3517_v38, %v3448_v0  ;;  %v3551_v5 = vadd.f32 %v3519_v50, %v3450_v26  ;;  %v3553_v47 = vadd.f32 %v3521_v24, %v3452_v30  ;;  %v14410_v26 = vld [vmem:[#allocation183_spill] sm:$0xff] }
 0x378   : > { %v3603_v6 = vmul.f32 %v7196_v39, %v14360_v48  ;;  %v3605_v42 = vmul.f32 %v7196_v39, %v14361_v57  ;;  %v3607_v9 = vmul.f32 %v7196_v39, %v14363_v31  ;;  %v3609_v40 = vmul.f32 %v7196_v39, %v14366_v33 }
 0x379   : > { %v3610_v13 = vmul.f32 %v7196_v39, %v14368_v61  ;;  %v3611_v53 = vmul.f32 %v7196_v39, %v14369_v34  ;;  %v3612_v52 = vmul.f32 %v7196_v39, %v14371_v20  ;;  %v3634_v4 = vadd.f32 %v14408_v3, %v3533_v2 }
 0x37a   : > { %v3613_v0 = vmul.f32 %v7196_v39, %v14373_v25  ;;  %v3614_v30 = vmul.f32 %v7196_v39, %v14375_v10  ;;  %v11448_v48 = vmul.f32 %v7196_v39, %v14387_v62  ;;  %v3636_v46 = vadd.f32 %v14410_v26, %v3535_v54 }
 0x37b   : > { %v3616_v37 = vmul.f32 %v7196_v39, %v14389_v7  ;;  %v11453_v18 = vmul.f32 %v7196_v39, %v14397_v35  ;;  %v3618_v61 = vmul.f32 %v7196_v39, %v14399_v55  ;;  %v3620_v63 = vmul.f32 %v7196_v39, %v14406_v43 }
 0x37c   : > { %14409 = vst [vmem:[#allocation397_spill] sm:$0xff] %v11448_v48  ;;  %v3622_v16 = vmul.f32 %v7196_v39, %v14412_v21  ;;  %v3635_v56 = vadd.f32 %v3603_v6, %v3534_v59  ;;  %v3637_v44 = vadd.f32 %v3605_v42, %v3536_v22  ;;  %v3638_v51 = vadd.f32 %v14413_v17, %v3537_v36  ;;  %v7197_v48 = vld [vmem:[#allocation9 + $0x2b] ss:$0 sm:$0xff] }
 0x37d   : > { %14411 = vst [vmem:[#allocation399_spill] sm:$0xff] %v11453_v18  ;;  %v3639_v14 = vadd.f32 %v3607_v9, %v3538_v27  ;;  %v3640_v2 = vadd.f32 %v14414_v19, %v3539_v49  ;;  %v3641_v12 = vadd.f32 %v3609_v40, %v3540_v23  ;;  %v3642_v54 = vadd.f32 %v3610_v13, %v3541_v32  ;;  %v14415_v23 = vld [vmem:[#allocation184_spill] sm:$0xff] }
 0x37e   : > { %v3643_v60 = vadd.f32 %v3611_v53, %v3542_v11  ;;  %v3644_v38 = vadd.f32 %v3612_v52, %v3543_v41  ;;  %v3645_v50 = vadd.f32 %v3613_v0, %v3544_v45  ;;  %v3646_v24 = vadd.f32 %v3614_v30, %v3545_v15  ;;  %v14419_v40 = vld [vmem:[#allocation180_spill] sm:$0xff]  ;;  %v14420_v52 = vld [vmem:[#allocation191_spill] sm:$0xff] }
 0x37f   : > { %v3648_v29 = vadd.f32 %v3616_v37, %v3547_v58  ;;  %v3650_v3 = vadd.f32 %v3618_v61, %v3549_v1  ;;  %v3652_v26 = vadd.f32 %v3620_v63, %v3551_v5  ;;  %v3654_v18 = vadd.f32 %v3622_v16, %v3553_v47  ;;  %v14418_v47 = vld [vmem:[#allocation243_spill] sm:$0xff] }
 0x380   : > { %v3704_v39 = vmul.f32 %v7197_v48, %v14361_v57  ;;  %v3706_v6 = vmul.f32 %v7197_v48, %v14363_v31  ;;  %v3708_v36 = vmul.f32 %v7197_v48, %v14366_v33  ;;  %v3710_v59 = vmul.f32 %v7197_v48, %v14369_v34 }
 0x381   : > { %v3711_v22 = vmul.f32 %v7197_v48, %v14371_v20  ;;  %v3712_v27 = vmul.f32 %v7197_v48, %v14373_v25  ;;  %v3713_v49 = vmul.f32 %v7197_v48, %v14375_v10  ;;  %v3735_v32 = vadd.f32 %v14415_v23, %v3634_v4  ;;  %v14417_v20 = vld [vmem:[#allocation263_spill] sm:$0xff] }
 0x382   : > { %v3714_v11 = vmul.f32 %v7197_v48, %v14387_v62  ;;  %v3715_v41 = vmul.f32 %v7197_v48, %v14389_v7  ;;  %v11471_v57 = vmul.f32 %v7197_v48, %v14397_v35  ;;  %v3717_v45 = vmul.f32 %v7197_v48, %v14399_v55 }
 0x383   : > { %v3719_v15 = vmul.f32 %v7197_v48, %v14406_v43  ;;  %v3721_v58 = vmul.f32 %v7197_v48, %v14412_v21  ;;  %v3723_v1 = vmul.f32 %v7197_v48, %v14417_v20  ;;  %v3736_v5 = vadd.f32 %v3704_v39, %v3635_v56  ;;  %v7198_v48 = vld [vmem:[#allocation9 + $0x33] ss:$0 sm:$0xff] }
 0x384   : > { %14416 = vst [vmem:[#allocation360_spill] sm:$0xff] %v11471_v57  ;;  %v3737_v42 = vadd.f32 %v14418_v47, %v3636_v46  ;;  %v3738_v9 = vadd.f32 %v3706_v6, %v3637_v44  ;;  %v3739_v13 = vadd.f32 %v14419_v40, %v3638_v51  ;;  %v3740_v53 = vadd.f32 %v3708_v36, %v3639_v14  ;;  %v14427_v47 = vld [vmem:[#allocation113_spill] sm:$0xff] }
 0x385   : > { %v3741_v4 = vadd.f32 %v14420_v52, %v3640_v2  ;;  %v3742_v0 = vadd.f32 %v3710_v59, %v3641_v12  ;;  %v3743_v30 = vadd.f32 %v3711_v22, %v3642_v54  ;;  %v3744_v37 = vadd.f32 %v3712_v27, %v3643_v60  ;;  %v14430_v52 = vld [vmem:[#allocation223_spill] sm:$0xff] }
 0x386   : > { %v3745_v61 = vadd.f32 %v3713_v49, %v3644_v38  ;;  %v3746_v63 = vadd.f32 %v3714_v11, %v3645_v50  ;;  %v3747_v16 = vadd.f32 %v3715_v41, %v3646_v24  ;;  %v3749_v17 = vadd.f32 %v3717_v45, %v3648_v29  ;;  %v14421_v38 = vld [vmem:[#allocation82_spill] sm:$0xff]  ;;  %v14423_v29 = vld [vmem:[#allocation144_spill] sm:$0xff] }
 0x387   : > { %v3751_v19 = vadd.f32 %v3719_v15, %v3650_v3  ;;  %v3753_v23 = vadd.f32 %v3721_v58, %v3652_v26  ;;  %v3755_v57 = vadd.f32 %v3723_v1, %v3654_v18  ;;  %v3805_v56 = vmul.f32 %v7198_v48, %v14363_v31  ;;  %v14425_v15 = vld [vmem:[#allocation361_spill] sm:$0xff]  ;;  %v7199_v58 = vld [vmem:[#allocation9 + $0x4] ss:$0 sm:$0xff]  ;;  %v14426_v1 = vld [vmem:[#allocation378_spill] sm:$0xff] }
 0x388   : > { %v3807_v46 = vmul.f32 %v7198_v48, %v14366_v33  ;;  %v3809_v44 = vmul.f32 %v7198_v48, %v14369_v34  ;;  %v3811_v51 = vmul.f32 %v7198_v48, %v14373_v25  ;;  %v3812_v14 = vmul.f32 %v7198_v48, %v14375_v10  ;;  %v14422_v25 = vld [vmem:[#allocation85_spill] sm:$0xff] }
 0x389   : > { %v3813_v2 = vmul.f32 %v7198_v48, %v14387_v62  ;;  %v3814_v12 = vmul.f32 %v7198_v48, %v14389_v7  ;;  %v3815_v54 = vmul.f32 %v7198_v48, %v14397_v35  ;;  %v3816_v60 = vmul.f32 %v7198_v48, %v14399_v55  ;;  %v14424_v7 = vld [vmem:[#allocation370_spill] sm:$0xff] }
 0x38a   : > { %v3818_v18 = vmul.f32 %v7198_v48, %v14406_v43  ;;  %v3820_v31 = vmul.f32 %v7198_v48, %v14412_v21  ;;  %v3822_v33 = vmul.f32 %v7198_v48, %v14417_v20  ;;  %v3836_v34 = vadd.f32 %v14421_v38, %v3735_v32  ;;  %v14440_v48 = vld [vmem:[#allocation38_spill] sm:$0xff]  ;;  %v14553_v21 = vld [vmem:[#allocation339_spill] sm:$0xff] }
 0x38b   : > { %v3837_v50 = vadd.f32 %v3805_v56, %v3736_v5  ;;  %v3838_v24 = vadd.f32 %v14422_v25, %v3737_v42  ;;  %v3839_v10 = vadd.f32 %v3807_v46, %v3738_v9  ;;  %v3840_v3 = vadd.f32 %v14423_v29, %v3739_v13  ;;  %v14428_v9 = vld [vmem:[#allocation117_spill] sm:$0xff]  ;;  %v14429_v13 = vld [vmem:[#allocation106_spill] sm:$0xff] }
 0x38c   : > { %v3841_v26 = vadd.f32 %v3809_v44, %v3740_v53  ;;  %v3842_v39 = vadd.f32 %v14424_v7, %v3741_v4  ;;  %v3843_v6 = vadd.f32 %v3811_v51, %v3742_v0  ;;  %v3844_v36 = vadd.f32 %v3812_v14, %v3743_v30  ;;  %v14431_v0 = vld [vmem:[#allocation58_spill] sm:$0xff]  ;;  %v14449_v25 = vld [vmem:[#allocation169_spill] sm:$0xff] }
 0x38d   : > { %v3845_v59 = vadd.f32 %v3813_v2, %v3744_v37  ;;  %v3846_v22 = vadd.f32 %v3814_v12, %v3745_v61  ;;  %v3847_v27 = vadd.f32 %v3815_v54, %v3746_v63  ;;  %v3848_v49 = vadd.f32 %v3816_v60, %v3747_v16  ;;  %v14432_v37 = vld [vmem:[#allocation59_spill] sm:$0xff]  ;;  %v14434_v63 = vld [vmem:[#allocation73_spill] sm:$0xff]  ;;  %v14441_v46 = vld [vmem:[#allocation122_spill] sm:$0xff] }
 0x38e   : > { %v3850_v11 = vadd.f32 %v3818_v18, %v3749_v17  ;;  %v3852_v41 = vadd.f32 %v3820_v31, %v3751_v19  ;;  %v3854_v45 = vadd.f32 %v3822_v33, %v3753_v23  ;;  %v3856_v32 = vadd.f32 %v14425_v15, %v3755_v57  ;;  %v14436_v57 = vld [vmem:[#allocation74_spill] sm:$0xff]  ;;  %v14444_v2 = vld [vmem:[#allocation228_spill] sm:$0xff]  ;;  %v14446_v54 = vld [vmem:[#allocation155_spill] sm:$0xff] }
 0x38f   : > { %v3987_v5 = vmul.f32 %v7199_v58, %v14426_v1  ;;  %v3989_v42 = vmul.f32 %v7199_v58, %v14427_v47  ;;  %v3990_v40 = vmul.f32 %v7199_v58, %v14428_v9  ;;  %v3992_v53 = vmul.f32 %v7199_v58, %v14429_v13  ;;  %v14438_v19 = vld [vmem:[#allocation114_spill] sm:$0xff]  ;;  %v14447_v18 = vld [vmem:[#allocation215_spill] sm:$0xff]  ;;  %v14450_v7 = vld [vmem:[#allocation81_spill] sm:$0xff] }
 0x390   : > { %v3994_v4 = vmul.f32 %v7199_v58, %v14430_v52  ;;  %v3996_v30 = vmul.f32 %v7199_v58, %v14431_v0  ;;  %v11504_v61 = vmul.f32 %v7199_v58, %v14432_v37  ;;  %v11507_v16 = vmul.f32 %v7199_v58, %v14434_v63  ;;  %v14442_v51 = vld [vmem:[#allocation330_spill] sm:$0xff]  ;;  %v14448_v33 = vld [vmem:[#allocation259_spill] sm:$0xff] }
 0x391   : > { %v11510_v17 = vmul.f32 %v7199_v58, %v14436_v57  ;;  %v11513_v23 = vmul.f32 %v7199_v58, %v14438_v19  ;;  %v4005_v56 = vmul.f32 %v7199_v58, %v14440_v48  ;;  %v4023_v44 = vadd.f32 %v14441_v46, %v3842_v39  ;;  %v14453_v46 = vld [vmem:[#allocation19_spill] sm:$0xff] }
 0x392   : > { %14433 = vst [vmem:[#allocation401_spill] sm:$0xff] %v11504_v61  ;;  %14435 = vst [vmem:[#allocation403_spill] sm:$0xff] %v11507_v16  ;;  %v11518_v14 = vmul.f32 %v7199_v58, %v14442_v51  ;;  %v11521_v12 = vmul.f32 %v7199_v58, %v14444_v2  ;;  %v4025_v60 = vadd.f32 %v14446_v54, %v3844_v36  ;;  %v14452_v16 = vld [vmem:[#allocation18_spill] sm:$0xff]  ;;  %v14454_v58 = vld [vmem:[#allocation20_spill] sm:$0xff] }
 0x393   : > { %14437 = vst [vmem:[#allocation405_spill] sm:$0xff] %v11510_v17  ;;  %14439 = vst [vmem:[#allocation381_spill] sm:$0xff] %v11513_v23  ;;  %v4027_v31 = vadd.f32 %v14447_v18, %v3846_v22  ;;  %v4029_v38 = vadd.f32 %v14448_v33, %v3848_v49  ;;  %v4031_v29 = vadd.f32 %v14449_v25, %v3850_v11  ;;  %v14451_v23 = vld [vmem:[#allocation305_spill] sm:$0xff]  ;;  %v7200_v49 = vld [vmem:[#allocation9 + $0xc] ss:$0 sm:$0xff] }
 0x394   : > { %14443 = vst [vmem:[#allocation407_spill] sm:$0xff] %v11518_v14  ;;  %14445 = vst [vmem:[#allocation409_spill] sm:$0xff] %v11521_v12  ;;  %v4033_v15 = vadd.f32 %v14450_v7, %v3852_v41  ;;  %v4035_v17 = vadd.f32 %v14451_v23, %v3854_v45  ;;  %v4017_v39 = vadd.f32 %v14452_v16, %v3836_v34  ;;  %v14463_v16 = vld [vmem:[#allocation86_spill] sm:$0xff] }
 0x395   : > { %v4018_v61 = vadd.f32 %v14453_v46, %v3837_v50  ;;  %v4019_v14 = vadd.f32 %v3987_v5, %v3838_v24  ;;  %v4021_v28 = vadd.f32 %v3989_v42, %v3840_v3  ;;  %v4020_v12 = vadd.f32 %v14454_v58, %v3839_v10  ;;  %v14460_v42 = vld [vmem:[#allocation219_spill] sm:$0xff] }
 0x396   : > { %v4022_v8 = vadd.f32 %v3990_v40, %v3841_v26  ;;  %v4024_v36 = vadd.f32 %v3992_v53, %v3843_v6  ;;  %v4026_v54 = vadd.f32 %v3994_v4, %v3845_v59  ;;  %v4028_v22 = vadd.f32 %v3996_v30, %v3847_v27  ;;  %v14457_v6 = vld [vmem:[#allocation123_spill] sm:$0xff]  ;;  %v14462_v4 = vld [vmem:[#allocation260_spill] sm:$0xff] }
 0x397   : > { %v4037_v18 = vadd.f32 %v4005_v56, %v3856_v32  ;;  %v4086_v11 = vmul.f32 %v7200_v49, %v14426_v1  ;;  %v4088_v41 = vmul.f32 %v7200_v49, %v14427_v47  ;;  %v4089_v45 = vmul.f32 %v7200_v49, %v14428_v9  ;;  %v14459_v1 = vld [vmem:[#allocation156_spill] sm:$0xff]  ;;  %v14464_v56 = vld [vmem:[#allocation301_spill] sm:$0xff]  ;;  %v14466_v46 = vld [vmem:[#allocation67_spill] sm:$0xff] }
 0x398   : > { %v4091_v34 = vmul.f32 %v7200_v49, %v14429_v13  ;;  %v4093_v50 = vmul.f32 %v7200_v49, %v14430_v52  ;;  %v4095_v24 = vmul.f32 %v7200_v49, %v14431_v0  ;;  %v4097_v10 = vmul.f32 %v7200_v49, %v14432_v37 }
 0x399   : > { %v11540_v3 = vmul.f32 %v7200_v49, %v14434_v63  ;;  %v11543_v26 = vmul.f32 %v7200_v49, %v14436_v57  ;;  %v4122_v59 = vadd.f32 %v14457_v6, %v4021_v28  ;;  %v11547_v27 = vmul.f32 %v7200_v49, %v14438_v19  ;;  %v14467_v6 = vld [vmem:[#allocation21_spill] sm:$0xff] }
 0x39a   : > { %v4104_v32 = vmul.f32 %v7200_v49, %v14440_v48  ;;  %v4124_v5 = vadd.f32 %v14459_v1, %v4023_v44  ;;  %v4126_v40 = vadd.f32 %v14460_v42, %v4025_v60  ;;  %v11553_v53 = vmul.f32 %v7200_v49, %v14442_v51 }
 0x39b   : > { %14455 = vst [vmem:[#allocation410_spill] sm:$0xff] %v11540_v3  ;;  %14456 = vst [vmem:[#allocation382_spill] sm:$0xff] %v11543_v26  ;;  %v4128_v30 = vadd.f32 %v14462_v4, %v4027_v31  ;;  %v4130_v23 = vadd.f32 %v14463_v16, %v4029_v38  ;;  %v4132_v33 = vadd.f32 %v14464_v56, %v4031_v29  ;;  %v7201_v31 = vld [vmem:[#allocation9 + $0x14] ss:$0 sm:$0xff] }
 0x39c   : > { %14458 = vst [vmem:[#allocation411_spill] sm:$0xff] %v11547_v27  ;;  %14461 = vst [vmem:[#allocation412_spill] sm:$0xff] %v11553_v53  ;;  %v11559_v28 = vmul.f32 %v7200_v49, %v14444_v2  ;;  %v4118_v25 = vadd.f32 %v4086_v11, %v4017_v39  ;;  %v4120_v7 = vadd.f32 %v4088_v41, %v4019_v14  ;;  %v14468_v4 = vld [vmem:[#allocation137_spill] sm:$0xff] }
 0x39d   : > { %v4134_v58 = vadd.f32 %v14466_v46, %v4033_v15  ;;  %v4119_v44 = vadd.f32 %v14467_v6, %v4018_v61  ;;  %v4121_v1 = vadd.f32 %v4089_v45, %v4020_v12  ;;  %v4123_v60 = vadd.f32 %v4091_v34, %v4022_v8  ;;  %v14469_v8 = vld [vmem:[#allocation124_spill] sm:$0xff]  ;;  %v14474_v34 = vld [vmem:[#allocation214_spill] sm:$0xff] }
 0x39e   : > { %14465 = vst [vmem:[#allocation413_spill] sm:$0xff] %v11559_v28  ;;  %v4125_v42 = vadd.f32 %v4093_v50, %v4024_v36  ;;  %v4127_v27 = vadd.f32 %v4095_v24, %v4026_v54  ;;  %v4129_v53 = vadd.f32 %v4097_v10, %v4028_v22  ;;  %v4136_v26 = vadd.f32 %v4104_v32, %v4035_v17  ;;  %v14470_v36 = vld [vmem:[#allocation157_spill] sm:$0xff]  ;;  %v14472_v22 = vld [vmem:[#allocation220_spill] sm:$0xff] }
 0x39f   : > { %v4187_v38 = vmul.f32 %v7201_v31, %v14427_v47  ;;  %v4138_v29 = vadd.f32 %v14468_v4, %v4037_v18  ;;  %v4188_v49 = vmul.f32 %v7201_v31, %v14428_v9  ;;  %v4190_v39 = vmul.f32 %v7201_v31, %v14429_v13  ;;  %v14473_v9 = vld [vmem:[#allocation83_spill] sm:$0xff]  ;;  %v14475_v24 = vld [vmem:[#allocation329_spill] sm:$0xff] }
 0x3a0   : > { %v4192_v14 = vmul.f32 %v7201_v31, %v14430_v52  ;;  %v4194_v15 = vmul.f32 %v7201_v31, %v14431_v0  ;;  %v4196_v61 = vmul.f32 %v7201_v31, %v14432_v37  ;;  %v4221_v12 = vadd.f32 %v14469_v8, %v4120_v7 }
 0x3a1   : > { %v4223_v54 = vadd.f32 %v14470_v36, %v4122_v59  ;;  %v4198_v17 = vmul.f32 %v7201_v31, %v14434_v63  ;;  %v11574_v47 = vmul.f32 %v7201_v31, %v14436_v57  ;;  %v4225_v18 = vadd.f32 %v14472_v22, %v4124_v5  ;;  %v14476_v59 = vld [vmem:[#allocation48_spill] sm:$0xff]  ;;  %v14478_v22 = vld [vmem:[#allocation171_spill] sm:$0xff] }
 0x3a2   : > { %v4227_v11 = vadd.f32 %v14473_v9, %v4126_v40  ;;  %v4203_v41 = vmul.f32 %v7201_v31, %v14440_v48  ;;  %v4219_v45 = vadd.f32 %v4187_v38, %v4118_v25  ;;  %v4229_v50 = vadd.f32 %v14474_v34, %v4128_v30  ;;  %v14477_v36 = vld [vmem:[#allocation140_spill] sm:$0xff]  ;;  %v7202_v9 = vld [vmem:[#allocation9 + $0x1c] ss:$0 sm:$0xff]  ;;  %v14485_v34 = vld [vmem:[#allocation65_spill] sm:$0xff] }
 0x3a3   : > { %14471 = vst [vmem:[#allocation414_spill] sm:$0xff] %v11574_v47  ;;  %v4231_v10 = vadd.f32 %v14475_v24, %v4130_v23  ;;  %v4220_v32 = vadd.f32 %v4188_v49, %v4119_v44  ;;  %v4222_v16 = vadd.f32 %v4190_v39, %v4121_v1  ;;  %v4224_v56 = vadd.f32 %v4192_v14, %v4123_v60  ;;  %v14483_v39 = vld [vmem:[#allocation218_spill] sm:$0xff]  ;;  %v14541_v47 = vld [vmem:[#allocation33_spill] sm:$0xff] }
 0x3a4   : > { %v4233_v7 = vadd.f32 %v14476_v59, %v4132_v33  ;;  %v4226_v46 = vadd.f32 %v4194_v15, %v4125_v42  ;;  %v4228_v6 = vadd.f32 %v4196_v61, %v4127_v27  ;;  %v4230_v4 = vadd.f32 %v4198_v17, %v4129_v53  ;;  %v14479_v33 = vld [vmem:[#allocation126_spill] sm:$0xff]  ;;  %v14481_v42 = vld [vmem:[#allocation221_spill] sm:$0xff]  ;;  %v14484_v17 = vld [vmem:[#allocation331_spill] sm:$0xff] }
 0x3a5   : > { %v4235_v8 = vadd.f32 %v4203_v41, %v4134_v58  ;;  %v4237_v5 = vadd.f32 %v14477_v36, %v4136_v26  ;;  %v4239_v40 = vadd.f32 %v14478_v22, %v4138_v29  ;;  %v4289_v25 = vmul.f32 %v7202_v9, %v14429_v13  ;;  %v14480_v26 = vld [vmem:[#allocation163_spill] sm:$0xff]  ;;  %v14482_v29 = vld [vmem:[#allocation261_spill] sm:$0xff] }
 0x3a6   : > { %v4291_v30 = vmul.f32 %v7202_v9, %v14430_v52  ;;  %v4293_v23 = vmul.f32 %v7202_v9, %v14431_v0  ;;  %v4295_v44 = vmul.f32 %v7202_v9, %v14432_v37  ;;  %v4297_v1 = vmul.f32 %v7202_v9, %v14434_v63  ;;  %v14486_v22 = vld [vmem:[#allocation141_spill] sm:$0xff] }
 0x3a7   : > { %v4320_v60 = vadd.f32 %v14479_v33, %v4219_v45  ;;  %v4299_v27 = vmul.f32 %v7202_v9, %v14436_v57  ;;  %v4302_v53 = vmul.f32 %v7202_v9, %v14440_v48  ;;  %v4322_v58 = vadd.f32 %v14480_v26, %v4221_v12  ;;  %v14487_v12 = vld [vmem:[#allocation172_spill] sm:$0xff] }
 0x3a8   : > { %v4324_v31 = vadd.f32 %v14481_v42, %v4223_v54  ;;  %v4321_v38 = vadd.f32 %v4289_v25, %v4220_v32  ;;  %v4323_v13 = vadd.f32 %v4291_v30, %v4222_v16  ;;  %v4326_v49 = vadd.f32 %v14482_v29, %v4225_v18  ;;  %v14488_v54 = vld [vmem:[#allocation225_spill] sm:$0xff]  ;;  %v7203_v16 = vld [vmem:[#allocation9 + $0x24] ss:$0 sm:$0xff]  ;;  %v14491_v30 = vld [vmem:[#allocation262_spill] sm:$0xff] }
 0x3a9   : > { %v4328_v14 = vadd.f32 %v14483_v39, %v4227_v11  ;;  %v4325_v15 = vadd.f32 %v4293_v23, %v4224_v56  ;;  %v4327_v61 = vadd.f32 %v4295_v44, %v4226_v46  ;;  %v4330_v41 = vadd.f32 %v14484_v17, %v4229_v50  ;;  %v14492_v44 = vld [vmem:[#allocation112_spill] sm:$0xff]  ;;  %v14494_v29 = vld [vmem:[#allocation373_spill] sm:$0xff] }
 0x3aa   : > { %v4332_v45 = vadd.f32 %v14485_v34, %v4231_v10  ;;  %v4329_v24 = vadd.f32 %v4297_v1, %v4228_v6  ;;  %v4331_v59 = vadd.f32 %v4299_v27, %v4230_v4  ;;  %v4334_v36 = vadd.f32 %v4302_v53, %v4233_v7  ;;  %v14489_v6 = vld [vmem:[#allocation168_spill] sm:$0xff]  ;;  %v14493_v53 = vld [vmem:[#allocation333_spill] sm:$0xff] }
 0x3ab   : > { %v4336_v9 = vadd.f32 %v14486_v22, %v4235_v8  ;;  %v4338_v33 = vadd.f32 %v14487_v12, %v4237_v5  ;;  %v4340_v32 = vadd.f32 %v14488_v54, %v4239_v40  ;;  %v4390_v18 = vmul.f32 %v7203_v16, %v14430_v52  ;;  %v14490_v5 = vld [vmem:[#allocation222_spill] sm:$0xff] }
 0x3ac   : > { %v4392_v11 = vmul.f32 %v7203_v16, %v14431_v0  ;;  %v4394_v56 = vmul.f32 %v7203_v16, %v14432_v37  ;;  %v4396_v50 = vmul.f32 %v7203_v16, %v14434_v63  ;;  %v4398_v10 = vmul.f32 %v7203_v16, %v14436_v57  ;;  %v14495_v22 = vld [vmem:[#allocation142_spill] sm:$0xff] }
 0x3ad   : > { %v4400_v46 = vmul.f32 %v7203_v16, %v14438_v19  ;;  %v4401_v7 = vmul.f32 %v7203_v16, %v14440_v48  ;;  %v4421_v4 = vadd.f32 %v14489_v6, %v4320_v60  ;;  %v4422_v8 = vadd.f32 %v4390_v18, %v4321_v38  ;;  %v14496_v60 = vld [vmem:[#allocation173_spill] sm:$0xff]  ;;  %v14497_v54 = vld [vmem:[#allocation226_spill] sm:$0xff] }
 0x3ae   : > { %v4423_v40 = vadd.f32 %v14490_v5, %v4322_v58  ;;  %v4424_v25 = vadd.f32 %v4392_v11, %v4323_v13  ;;  %v4425_v52 = vadd.f32 %v14491_v30, %v4324_v31  ;;  %v4426_v23 = vadd.f32 %v4394_v56, %v4325_v15  ;;  %v14498_v13 = vld [vmem:[#allocation286_spill] sm:$0xff]  ;;  %v7204_v31 = vld [vmem:[#allocation9 + $0x2c] ss:$0 sm:$0xff]  ;;  %v14501_v11 = vld [vmem:[#allocation87_spill] sm:$0xff] }
 0x3af   : > { %v4427_v1 = vadd.f32 %v14492_v44, %v4326_v49  ;;  %v4428_v27 = vadd.f32 %v4396_v50, %v4327_v61  ;;  %v4429_v26 = vadd.f32 %v14493_v53, %v4328_v14  ;;  %v4430_v42 = vadd.f32 %v4398_v10, %v4329_v24  ;;  %v14502_v50 = vld [vmem:[#allocation334_spill] sm:$0xff]  ;;  %v14504_v53 = vld [vmem:[#allocation143_spill] sm:$0xff] }
 0x3b0   : > { %v4431_v39 = vadd.f32 %v14494_v29, %v4330_v41  ;;  %v4432_v17 = vadd.f32 %v4400_v46, %v4331_v59  ;;  %v4433_v34 = vadd.f32 %v4401_v7, %v4332_v45  ;;  %v4435_v12 = vadd.f32 %v14495_v22, %v4334_v36  ;;  %v14499_v59 = vld [vmem:[#allocation224_spill] sm:$0xff] }
 0x3b1   : > { %v4437_v38 = vadd.f32 %v14496_v60, %v4336_v9  ;;  %v4439_v58 = vadd.f32 %v14497_v54, %v4338_v33  ;;  %v4441_v16 = vadd.f32 %v14498_v13, %v4340_v32  ;;  %v4491_v15 = vmul.f32 %v7204_v31, %v14431_v0  ;;  %v14500_v33 = vld [vmem:[#allocation264_spill] sm:$0xff]  ;;  %v14507_v54 = vld [vmem:[#allocation287_spill] sm:$0xff] }
 0x3b2   : > { %v4493_v49 = vmul.f32 %v7204_v31, %v14432_v37  ;;  %v4495_v14 = vmul.f32 %v7204_v31, %v14434_v63  ;;  %v4497_v61 = vmul.f32 %v7204_v31, %v14436_v57  ;;  %v4499_v41 = vmul.f32 %v7204_v31, %v14438_v19  ;;  %v14503_v7 = vld [vmem:[#allocation52_spill] sm:$0xff] }
 0x3b3   : > { %v4500_v45 = vmul.f32 %v7204_v31, %v14440_v48  ;;  %v4501_v24 = vmul.f32 %v7204_v31, %v14442_v51  ;;  %v4522_v36 = vadd.f32 %v14499_v59, %v4421_v4  ;;  %v4523_v9 = vadd.f32 %v4491_v15, %v4422_v8  ;;  %v14505_v22 = vld [vmem:[#allocation176_spill] sm:$0xff]  ;;  %v14506_v4 = vld [vmem:[#allocation227_spill] sm:$0xff]  ;;  %v14514_v59 = vld [vmem:[#allocation177_spill] sm:$0xff] }
 0x3b4   : > { %v4524_v32 = vadd.f32 %v14500_v33, %v4423_v40  ;;  %v4525_v18 = vadd.f32 %v4493_v49, %v4424_v25  ;;  %v4526_v0 = vadd.f32 %v14501_v11, %v4425_v52  ;;  %v4527_v56 = vadd.f32 %v4495_v14, %v4426_v23  ;;  %v14508_v25 = vld [vmem:[#allocation317_spill] sm:$0xff]  ;;  %v14511_v15 = vld [vmem:[#allocation336_spill] sm:$0xff]  ;;  %v14515_v11 = vld [vmem:[#allocation230_spill] sm:$0xff] }
 0x3b5   : > { %v4528_v10 = vadd.f32 %v14502_v50, %v4427_v1  ;;  %v4529_v46 = vadd.f32 %v4497_v61, %v4428_v27  ;;  %v4530_v6 = vadd.f32 %v14503_v7, %v4429_v26  ;;  %v4531_v5 = vadd.f32 %v4499_v41, %v4430_v42  ;;  %v7205_v52 = vld [vmem:[#allocation9 + $0x34] ss:$0 sm:$0xff] }
 0x3b6   : > { %v4532_v30 = vadd.f32 %v4500_v45, %v4431_v39  ;;  %v4533_v44 = vadd.f32 %v4501_v24, %v4432_v17  ;;  %v4534_v29 = vadd.f32 %v14504_v53, %v4433_v34  ;;  %v4536_v60 = vadd.f32 %v14505_v22, %v4435_v12  ;;  %v14509_v34 = vld [vmem:[#allocation265_spill] sm:$0xff]  ;;  %v14513_v45 = vld [vmem:[#allocation147_spill] sm:$0xff] }
 0x3b7   : > { %v4538_v8 = vadd.f32 %v14506_v4, %v4437_v38  ;;  %v4540_v40 = vadd.f32 %v14507_v54, %v4439_v58  ;;  %v4542_v13 = vadd.f32 %v14508_v25, %v4441_v16  ;;  %v4592_v23 = vmul.f32 %v7205_v52, %v14432_v37  ;;  %v14510_v58 = vld [vmem:[#allocation116_spill] sm:$0xff]  ;;  %v11650_v7 = vld [vmem:[#allocation3 + $0x10] sm:$0xff] }
 0x3b8   : > { %v4594_v1 = vmul.f32 %v7205_v52, %v14434_v63  ;;  %v4596_v27 = vmul.f32 %v7205_v52, %v14436_v57  ;;  %v4598_v26 = vmul.f32 %v7205_v52, %v14438_v19  ;;  %v4599_v42 = vmul.f32 %v7205_v52, %v14440_v48  ;;  %v14512_v63 = vld [vmem:[#allocation53_spill] sm:$0xff]  ;;  %v11664_v25 = vld [vmem:[#allocation3 + $0xc8] sm:$0xff]  ;;  %v4682_v19 = vld [vmem:[#allocation2 + $0xda] sm:$0x3f] }
 0x3b9   : > { %v4600_v39 = vmul.f32 %v7205_v52, %v14442_v51  ;;  %v4602_v17 = vmul.f32 %v7205_v52, %v14444_v2  ;;  %v4623_v12 = vadd.f32 %v14509_v34, %v4522_v36  ;;  %v4624_v38 = vadd.f32 %v4592_v23, %v4523_v9  ;;  %v14516_v36 = vld [vmem:[#allocation294_spill] sm:$0xff]  ;;  %14522 = vst [vmem:[#allocation415_spill] sm:$0xff] %v11664_v25 }
 0x3ba   : > { %v4625_v16 = vadd.f32 %v14510_v58, %v4524_v32  ;;  %v4626_v31 = vadd.f32 %v4594_v1, %v4525_v18  ;;  %v4627_v37 = vadd.f32 %v14511_v15, %v4526_v0  ;;  %v4628_v49 = vadd.f32 %v4596_v27, %v4527_v56  ;;  %v11652_v32 = vld [vmem:[#allocation3 + $0x20] sm:$0xff]  ;;  %v14517_v18 = vld [vmem:[#allocation318_spill] sm:$0xff] }
 0x3bb   : > { %v4629_v14 = vadd.f32 %v14512_v63, %v4528_v10  ;;  %v4630_v57 = vadd.f32 %v4598_v26, %v4529_v46  ;;  %v4631_v61 = vadd.f32 %v4599_v42, %v4530_v6  ;;  %v4632_v41 = vadd.f32 %v4600_v39, %v4531_v5  ;;  %v14518_v56 = vld [vmem:[#allocation362_spill] sm:$0xff]  ;;  %v11656_v46 = vld [vmem:[#allocation3 + $0x28] sm:$0xff]  ;;  %v7206_v6 = vld [vmem:[#allocation9 + $0x5] ss:$0 sm:$0xff] }
 0x3bc   : > { %v4633_v48 = vadd.f32 %v14513_v45, %v4532_v30  ;;  %v4634_v24 = vadd.f32 %v4602_v17, %v4533_v44  ;;  %v4635_v33 = vadd.f32 %v14514_v59, %v4534_v29  ;;  %v4637_v50 = vadd.f32 %v14515_v11, %v4536_v60  ;;  %v3116_v44 = vld [vmem:[#allocation2 + $0x98] sm:$0xff]  ;;  %v14519_v29 = vld [vmem:[#allocation109_spill] sm:$0xff]  ;;  %v14525_v1 = vld [vmem:[#allocation23_spill] sm:$0xff] }
 0x3bd   : > { %v4639_v9 = vadd.f32 %v14516_v36, %v4538_v8  ;;  %v4641_v0 = vadd.f32 %v14517_v18, %v4540_v40  ;;  %v4643_v10 = vadd.f32 %v14518_v56, %v4542_v13  ;;  %v4774_v5 = vmul.f32 %v7206_v6, %v11650_v7  ;;  %v14520_v60 = vld [vmem:[#allocation37_spill] sm:$0xff]  ;;  %v14521_v8 = vld [vmem:[#allocation60_spill] sm:$0xff]  ;;  %v14523_v40 = vld [vmem:[#allocation338_spill] sm:$0xff]  ;;  %3148 = vst.msk [vmem:[#allocation3 + $0xc8] sm:$0xff] %vm319_vm0, %v3116_v44 }
 0x3be   : > { %v4776_v30 = vmul.f32 %v7206_v6, %v11652_v32  ;;  %v4777_v53 = vmul.f32 %v7206_v6, %v11656_v46  ;;  %v4779_v22 = vmul.f32 %v7206_v6, %v14519_v29  ;;  %v4781_v4 = vmul.f32 %v7206_v6, %v14520_v60  ;;  %v14524_v52 = vld [vmem:[#allocation22_spill] sm:$0xff]  ;;  %v14526_v42 = vld [vmem:[#allocation24_spill] sm:$0xff]  ;;  %v14528_v59 = vld [vmem:[#allocation193_spill] sm:$0xff] }
 0x3bf   : > { %v4783_v54 = vmul.f32 %v7206_v6, %v14521_v8  ;;  %v4792_v13 = vmul.f32 %v7206_v6, %v14523_v40  ;;  %v4804_v23 = vadd.f32 %v14524_v52, %v4623_v12  ;;  %v4805_v27 = vadd.f32 %v14525_v1, %v4624_v38  ;;  %v14527_v58 = vld [vmem:[#allocation150_spill] sm:$0xff]  ;;  %v3118_v63 = vld [vmem:[#allocation2 + $0xa8] sm:$0xff]  ;;  %v14531_v38 = vld [vmem:[#allocation101_spill] sm:$0xff] }
 0x3c0   : > { %v4806_v26 = vadd.f32 %v4774_v5, %v4625_v16  ;;  %v4807_v39 = vadd.f32 %v14526_v42, %v4626_v31  ;;  %v4808_v17 = vadd.f32 %v4776_v30, %v4627_v37  ;;  %v4809_v34 = vadd.f32 %v4777_v53, %v4628_v49  ;;  %v14529_v18 = vld [vmem:[#allocation248_spill] sm:$0xff]  ;;  %v11674_v6 = vld [vmem:[#allocation3 + $0xd8] sm:$0xff]  ;;  %v14533_v52 = vld [vmem:[#allocation133_spill] sm:$0xff] }
 0x3c1   : > { %v4810_v15 = vadd.f32 %v14527_v58, %v4629_v14  ;;  %v4811_v45 = vadd.f32 %v4779_v22, %v4630_v57  ;;  %v4812_v11 = vadd.f32 %v14528_v59, %v4631_v61  ;;  %v4813_v36 = vadd.f32 %v4781_v4, %v4632_v41  ;;  %14530 = vst [vmem:[#allocation416_spill] sm:$0xff] %v11674_v6  ;;  %v14532_v5 = vld [vmem:[#allocation88_spill] sm:$0xff]  ;;  %v14534_v37 = vld [vmem:[#allocation375_spill] sm:$0xff]  ;;  %v3120_v30 = vld [vmem:[#allocation2 + $0xb8] sm:$0xff] }
 0x3c2   : > { %v4814_v56 = vadd.f32 %v14529_v18, %v4633_v48  ;;  %v4815_v12 = vadd.f32 %v4783_v54, %v4634_v24  ;;  %v4816_v16 = vadd.f32 %v14531_v38, %v4635_v33  ;;  %v4818_v44 = vadd.f32 %v14532_v5, %v4637_v50  ;;  %3150 = vst.msk [vmem:[#allocation3 + $0xd8] sm:$0xff] %vm319_vm0, %v3118_v63  ;;  %v7207_v57 = vld [vmem:[#allocation9 + $0xd] ss:$0 sm:$0xff]  ;;  %v14538_v42 = vld [vmem:[#allocation151_spill] sm:$0xff]  ;;  %v14539_v59 = vld [vmem:[#allocation194_spill] sm:$0xff] }
 0x3c3   : > { %v4820_v31 = vadd.f32 %v14533_v52, %v4639_v9  ;;  %v4822_v49 = vadd.f32 %v14534_v37, %v4641_v0  ;;  %v4824_v14 = vadd.f32 %v4792_v13, %v4643_v10  ;;  %v4873_v61 = vmul.f32 %v7207_v57, %v11650_v7  ;;  %v14535_v9 = vld [vmem:[#allocation75_spill] sm:$0xff]  ;;  %v14536_v10 = vld [vmem:[#allocation25_spill] sm:$0xff]  ;;  %v11690_v54 = vld [vmem:[#allocation3 + $0xe8] sm:$0xff] }
 0x3c4   : > { %v4875_v41 = vmul.f32 %v7207_v57, %v11652_v32  ;;  %v4876_v48 = vmul.f32 %v7207_v57, %v11656_v46  ;;  %v4878_v24 = vmul.f32 %v7207_v57, %v14519_v29  ;;  %v4880_v33 = vmul.f32 %v7207_v57, %v14520_v60  ;;  %14537 = vst [vmem:[#allocation417_spill] sm:$0xff] %v11690_v54  ;;  %v14540_v5 = vld [vmem:[#allocation249_spill] sm:$0xff] }
 0x3c5   : > { %v4882_v50 = vmul.f32 %v7207_v57, %v14521_v8  ;;  %v4884_v53 = vmul.f32 %v7207_v57, %v14535_v9  ;;  %v4891_v22 = vmul.f32 %v7207_v57, %v14523_v40  ;;  %v4905_v0 = vadd.f32 %v4873_v61, %v4804_v23  ;;  %3152 = vst.msk [vmem:[#allocation3 + $0xe8] sm:$0xff] %vm319_vm0, %v3120_v30  ;;  %v14542_v61 = vld [vmem:[#allocation307_spill] sm:$0xff] }
 0x3c6   : > { %v4906_v4 = vadd.f32 %v14536_v10, %v4805_v27  ;;  %v4907_v13 = vadd.f32 %v4875_v41, %v4806_v26  ;;  %v4908_v1 = vadd.f32 %v4876_v48, %v4807_v39  ;;  %v4909_v58 = vadd.f32 %v14538_v42, %v4808_v17  ;;  %v14543_v10 = vld [vmem:[#allocation337_spill] sm:$0xff]  ;;  %v3122_v26 = vld [vmem:[#allocation2 + $0xc8] sm:$0xff] }
 0x3c7   : > { %v4910_v63 = vadd.f32 %v4878_v24, %v4809_v34  ;;  %v4911_v18 = vadd.f32 %v14539_v59, %v4810_v15  ;;  %v4912_v38 = vadd.f32 %v4880_v33, %v4811_v45  ;;  %v4913_v52 = vadd.f32 %v14540_v5, %v4812_v11  ;;  %v14544_v39 = vld [vmem:[#allocation68_spill] sm:$0xff]  ;;  %v7208_v24 = vld [vmem:[#allocation9 + $0x15] ss:$0 sm:$0xff]  ;;  %v11702_v45 = vld [vmem:[#allocation3 + $0xf8] sm:$0xff] }
 0x3c8   : > { %v4914_v37 = vadd.f32 %v4882_v50, %v4813_v36  ;;  %v4915_v57 = vadd.f32 %v14541_v47, %v4814_v56  ;;  %v4916_v23 = vadd.f32 %v4884_v53, %v4815_v12  ;;  %v4917_v27 = vadd.f32 %v14542_v61, %v4816_v16  ;;  %v14545_v34 = vld [vmem:[#allocation160_spill] sm:$0xff]  ;;  %14546 = vst [vmem:[#allocation418_spill] sm:$0xff] %v11702_v45  ;;  %v14547_v16 = vld [vmem:[#allocation115_spill] sm:$0xff]  ;;  %v14550_v59 = vld [vmem:[#allocation250_spill] sm:$0xff] }
 0x3c9   : > { %v4919_v28 = vadd.f32 %v14543_v10, %v4818_v44  ;;  %v4921_v41 = vadd.f32 %v14544_v39, %v4820_v31  ;;  %v4923_v17 = vadd.f32 %v4891_v22, %v4822_v49  ;;  %v4925_v48 = vadd.f32 %v14545_v34, %v4824_v14  ;;  %3154 = vst.msk [vmem:[#allocation3 + $0xf8] sm:$0xff] %vm319_vm0, %v3122_v26  ;;  %v14548_v33 = vld [vmem:[#allocation152_spill] sm:$0xff]  ;;  %v14549_v53 = vld [vmem:[#allocation195_spill] sm:$0xff]  ;;  %v14551_v10 = vld [vmem:[#allocation34_spill] sm:$0xff] }
 0x3ca   : > { %v4974_v15 = vmul.f32 %v7208_v24, %v11652_v32  ;;  %v4975_v11 = vmul.f32 %v7208_v24, %v11656_v46  ;;  %v4977_v47 = vmul.f32 %v7208_v24, %v14519_v29  ;;  %v4979_v36 = vmul.f32 %v7208_v24, %v14520_v60  ;;  %v14552_v34 = vld [vmem:[#allocation308_spill] sm:$0xff] }
 0x3cb   : > { %v4981_v56 = vmul.f32 %v7208_v24, %v14521_v8  ;;  %v4983_v12 = vmul.f32 %v7208_v24, %v14535_v9  ;;  %v4985_v44 = vmul.f32 %v7208_v24, %v14547_v16  ;;  %v4990_v31 = vmul.f32 %v7208_v24, %v14523_v40  ;;  %v14554_v24 = vld [vmem:[#allocation72_spill] sm:$0xff] }
 0x3cc   : > { %v5006_v49 = vadd.f32 %v4974_v15, %v4905_v0  ;;  %v5007_v14 = vadd.f32 %v4975_v11, %v4906_v4  ;;  %v5008_v50 = vadd.f32 %v14548_v33, %v4907_v13  ;;  %v5009_v30 = vadd.f32 %v4977_v47, %v4908_v1  ;;  %v14555_v15 = vld [vmem:[#allocation161_spill] sm:$0xff]  ;;  %v14556_v1 = vld [vmem:[#allocation208_spill] sm:$0xff] }
 0x3cd   : > { %v5010_v22 = vadd.f32 %v14549_v53, %v4909_v58  ;;  %v5011_v42 = vadd.f32 %v4979_v36, %v4910_v63  ;;  %v5012_v5 = vadd.f32 %v14550_v59, %v4911_v18  ;;  %v5013_v61 = vadd.f32 %v4981_v56, %v4912_v38  ;;  %v7209_v58 = vld [vmem:[#allocation9 + $0x1d] ss:$0 sm:$0xff]  ;;  %v14560_v36 = vld [vmem:[#allocation251_spill] sm:$0xff]  ;;  %v14562_v33 = vld [vmem:[#allocation309_spill] sm:$0xff] }
 0x3ce   : > { %v5014_v39 = vadd.f32 %v14551_v10, %v4913_v52  ;;  %v5015_v26 = vadd.f32 %v4983_v12, %v4914_v37  ;;  %v5016_v3 = vadd.f32 %v14552_v34, %v4915_v57  ;;  %v5017_v20 = vadd.f32 %v4985_v44, %v4916_v23  ;;  %v14557_v57 = vld [vmem:[#allocation45_spill] sm:$0xff]  ;;  %v14558_v23 = vld [vmem:[#allocation154_spill] sm:$0xff]  ;;  %v14561_v12 = vld [vmem:[#allocation35_spill] sm:$0xff] }
 0x3cf   : > { %v5018_v43 = vadd.f32 %v14553_v21, %v4917_v27  ;;  %v5020_v0 = vadd.f32 %v14554_v24, %v4919_v28  ;;  %v5022_v4 = vadd.f32 %v4990_v31, %v4921_v41  ;;  %v5024_v13 = vadd.f32 %v14555_v15, %v4923_v17  ;;  %v14559_v17 = vld [vmem:[#allocation201_spill] sm:$0xff]  ;;  %v14564_v15 = vld [vmem:[#allocation32_spill] sm:$0xff] }
 0x3d0   : > { %v5026_v11 = vadd.f32 %v14556_v1, %v4925_v48  ;;  %v5076_v63 = vmul.f32 %v7209_v58, %v14519_v29  ;;  %v5078_v18 = vmul.f32 %v7209_v58, %v14520_v60  ;;  %v5080_v38 = vmul.f32 %v7209_v58, %v14521_v8  ;;  %v14563_v10 = vld [vmem:[#allocation341_spill] sm:$0xff] }
 0x3d1   : > { %v5082_v52 = vmul.f32 %v7209_v58, %v14535_v9  ;;  %v5084_v37 = vmul.f32 %v7209_v58, %v14547_v16  ;;  %v5086_v21 = vmul.f32 %v7209_v58, %v14557_v57  ;;  %v5089_v28 = vmul.f32 %v7209_v58, %v14523_v40 }
 0x3d2   : > { %v5107_v27 = vadd.f32 %v14558_v23, %v5006_v49  ;;  %v5108_v41 = vadd.f32 %v5076_v63, %v5007_v14  ;;  %v5109_v48 = vadd.f32 %v14559_v17, %v5008_v50  ;;  %v5110_v47 = vadd.f32 %v5078_v18, %v5009_v30  ;;  %v14565_v49 = vld [vmem:[#allocation162_spill] sm:$0xff]  ;;  %v14566_v63 = vld [vmem:[#allocation209_spill] sm:$0xff]  ;;  %v14567_v30 = vld [vmem:[#allocation255_spill] sm:$0xff] }
 0x3d3   : > { %v5111_v29 = vadd.f32 %v14560_v36, %v5010_v22  ;;  %v5112_v56 = vadd.f32 %v5080_v38, %v5011_v42  ;;  %v5113_v44 = vadd.f32 %v14561_v12, %v5012_v5  ;;  %v5114_v31 = vadd.f32 %v5082_v52, %v5013_v61  ;;  %v3124_v22 = vld [vmem:[#allocation2 + $0xd8] sm:$0xff]  ;;  %v7210_v42 = vld [vmem:[#allocation9 + $0x25] ss:$0 sm:$0xff] }
 0x3d4   : > { %v5115_v53 = vadd.f32 %v14562_v33, %v5014_v39  ;;  %v5116_v59 = vadd.f32 %v5084_v37, %v5015_v26  ;;  %v5117_v34 = vadd.f32 %v14563_v10, %v5016_v3  ;;  %v5118_v24 = vadd.f32 %v5086_v21, %v5017_v20  ;;  %v11742_v20 = vld [vmem:[#allocation3 + $0x108] sm:$0xff]  ;;  %v14569_v26 = vld [vmem:[#allocation389_spill] sm:$0xff]  ;;  %v14573_v17 = vld [vmem:[#allocation310_spill] sm:$0xff] }
 0x3d5   : > { %v5119_v1 = vadd.f32 %v14564_v15, %v5018_v43  ;;  %v5121_v58 = vadd.f32 %v5089_v28, %v5020_v0  ;;  %v5123_v14 = vadd.f32 %v14565_v49, %v5022_v4  ;;  %v5125_v50 = vadd.f32 %v14566_v63, %v5024_v13  ;;  %14568 = vst [vmem:[#allocation366_spill] sm:$0xff] %v11742_v20  ;;  %v14570_v13 = vld [vmem:[#allocation206_spill] sm:$0xff]  ;;  %v14572_v21 = vld [vmem:[#allocation36_spill] sm:$0xff]  ;;  %v14574_v33 = vld [vmem:[#allocation343_spill] sm:$0xff] }
 0x3d6   : > { %v5127_v18 = vadd.f32 %v14567_v30, %v5026_v11  ;;  %v5177_v5 = vmul.f32 %v7210_v42, %v14520_v60  ;;  %v5179_v61 = vmul.f32 %v7210_v42, %v14521_v8  ;;  %v5181_v39 = vmul.f32 %v7210_v42, %v14535_v9  ;;  %3156 = vst.msk [vmem:[#allocation3 + $0x108] sm:$0xff] %vm319_vm0, %v3124_v22  ;;  %v14571_v60 = vld [vmem:[#allocation253_spill] sm:$0xff]  ;;  %v3126_v15 = vld [vmem:[#allocation2 + $0xe8] sm:$0xff] }
 0x3d7   : > { %v5183_v3 = vmul.f32 %v7210_v42, %v14547_v16  ;;  %v5185_v43 = vmul.f32 %v7210_v42, %v14557_v57  ;;  %v5187_v0 = vmul.f32 %v7210_v42, %v14569_v26  ;;  %v5188_v4 = vmul.f32 %v7210_v42, %v14523_v40  ;;  %v14575_v63 = vld [vmem:[#allocation252_spill] sm:$0xff] }
 0x3d8   : > { %v5208_v11 = vadd.f32 %v14570_v13, %v5107_v27  ;;  %v5209_v38 = vadd.f32 %v5177_v5, %v5108_v41  ;;  %v5210_v52 = vadd.f32 %v14571_v60, %v5109_v48  ;;  %v5211_v37 = vadd.f32 %v5179_v61, %v5110_v47  ;;  %v11754_v13 = vld [vmem:[#allocation3 + $0x118] sm:$0xff]  ;;  %v14577_v41 = vld [vmem:[#allocation165_spill] sm:$0xff]  ;;  %v14579_v5 = vld [vmem:[#allocation80_spill] sm:$0xff] }
 0x3d9   : > { %v5212_v28 = vadd.f32 %v14572_v21, %v5111_v29  ;;  %v5213_v23 = vadd.f32 %v5181_v39, %v5112_v56  ;;  %v5214_v36 = vadd.f32 %v14573_v17, %v5113_v44  ;;  %v5215_v12 = vadd.f32 %v5183_v3, %v5114_v31  ;;  %14576 = vst [vmem:[#allocation119_spill] sm:$0xff] %v11754_v13  ;;  %v14578_v48 = vld [vmem:[#allocation210_spill] sm:$0xff]  ;;  %v14580_v56 = vld [vmem:[#allocation295_spill] sm:$0xff]  ;;  %v7211_v44 = vld [vmem:[#allocation9 + $0x2d] ss:$0 sm:$0xff] }
 0x3da   : > { %v5216_v10 = vadd.f32 %v14574_v33, %v5115_v53  ;;  %v5217_v49 = vadd.f32 %v5185_v43, %v5116_v59  ;;  %v5218_v30 = vadd.f32 %v14575_v63, %v5117_v34  ;;  %v5219_v42 = vadd.f32 %v5187_v0, %v5118_v24  ;;  %3158 = vst.msk [vmem:[#allocation3 + $0x118] sm:$0xff] %vm319_vm0, %v3126_v15  ;;  %v14583_v3 = vld [vmem:[#allocation280_spill] sm:$0xff]  ;;  %v14585_v21 = vld [vmem:[#allocation345_spill] sm:$0xff]  ;;  %v14586_v15 = vld [vmem:[#allocation374_spill] sm:$0xff] }
 0x3db   : > { %v5220_v27 = vadd.f32 %v5188_v4, %v5119_v1  ;;  %v5222_v22 = vadd.f32 %v14577_v41, %v5121_v58  ;;  %v5224_v47 = vadd.f32 %v14578_v48, %v5123_v14  ;;  %v5226_v29 = vadd.f32 %v14579_v5, %v5125_v50  ;;  %v14581_v58 = vld [vmem:[#allocation377_spill] sm:$0xff]  ;;  %v14582_v50 = vld [vmem:[#allocation254_spill] sm:$0xff]  ;;  %v14584_v4 = vld [vmem:[#allocation311_spill] sm:$0xff] }
 0x3dc   : > { %v5228_v61 = vadd.f32 %v14580_v56, %v5127_v18  ;;  %v5278_v31 = vmul.f32 %v7211_v44, %v14521_v8  ;;  %v5280_v53 = vmul.f32 %v7211_v44, %v14535_v9  ;;  %v5282_v59 = vmul.f32 %v7211_v44, %v14547_v16  ;;  %v14587_v56 = vld [vmem:[#allocation166_spill] sm:$0xff] }
 0x3dd   : > { %v5284_v34 = vmul.f32 %v7211_v44, %v14557_v57  ;;  %v5286_v24 = vmul.f32 %v7211_v44, %v14569_v26  ;;  %v5287_v1 = vmul.f32 %v7211_v44, %v14523_v40  ;;  %v5288_v14 = vmul.f32 %v7211_v44, %v14581_v58  ;;  %v14588_v44 = vld [vmem:[#allocation211_spill] sm:$0xff] }
 0x3de   : > { %v5309_v39 = vadd.f32 %v14582_v50, %v5208_v11  ;;  %v5310_v18 = vadd.f32 %v5278_v31, %v5209_v38  ;;  %v5311_v43 = vadd.f32 %v14583_v3, %v5210_v52  ;;  %v5312_v0 = vadd.f32 %v5280_v53, %v5211_v37  ;;  %v14589_v11 = vld [vmem:[#allocation256_spill] sm:$0xff]  ;;  %v14590_v31 = vld [vmem:[#allocation297_spill] sm:$0xff]  ;;  %v14591_v37 = vld [vmem:[#allocation319_spill] sm:$0xff] }
 0x3df   : > { %v5313_v8 = vadd.f32 %v14584_v4, %v5212_v28  ;;  %v5314_v60 = vadd.f32 %v5282_v59, %v5213_v23  ;;  %v5315_v17 = vadd.f32 %v14585_v21, %v5214_v36  ;;  %v5316_v33 = vadd.f32 %v5284_v34, %v5215_v12  ;;  %v7212_v28 = vld [vmem:[#allocation9 + $0x35] ss:$0 sm:$0xff]  ;;  %v14594_v59 = vld [vmem:[#allocation312_spill] sm:$0xff] }
 0x3e0   : > { %v5317_v63 = vadd.f32 %v14586_v15, %v5216_v10  ;;  %v5318_v41 = vadd.f32 %v5286_v24, %v5217_v49  ;;  %v5319_v48 = vadd.f32 %v5287_v1, %v5218_v30  ;;  %v5320_v5 = vadd.f32 %v5288_v14, %v5219_v42  ;;  %v14592_v42 = vld [vmem:[#allocation61_spill] sm:$0xff]  ;;  %v14595_v24 = vld [vmem:[#allocation347_spill] sm:$0xff]  ;;  %v14596_v50 = vld [vmem:[#allocation376_spill] sm:$0xff] }
 0x3e1   : > { %v5321_v55 = vadd.f32 %v14587_v56, %v5220_v27  ;;  %v5323_v35 = vadd.f32 %v14588_v44, %v5222_v22  ;;  %v5325_v38 = vadd.f32 %v14589_v11, %v5224_v47  ;;  %v5327_v52 = vadd.f32 %v14590_v31, %v5226_v29  ;;  %v14593_v22 = vld [vmem:[#allocation281_spill] sm:$0xff]  ;;  %v11789_v15 = vld [vmem:[#allocation3 + $0x38] sm:$0xff]  ;;  %v14597_v56 = vld [vmem:[#allocation167_spill] sm:$0xff] }
 0x3e2   : > { %v5329_v53 = vadd.f32 %v14591_v37, %v5228_v61  ;;  %v5379_v23 = vmul.f32 %v7212_v28, %v14535_v9  ;;  %v5381_v36 = vmul.f32 %v7212_v28, %v14547_v16  ;;  %v5383_v12 = vmul.f32 %v7212_v28, %v14557_v57  ;;  %v14598_v31 = vld [vmem:[#allocation213_spill] sm:$0xff]  ;;  %v11817_v57 = vld [vmem:[#allocation3 + $0x68] sm:$0xff] }
 0x3e3   : > { %v5385_v10 = vmul.f32 %v7212_v28, %v14569_v26  ;;  %v5386_v49 = vmul.f32 %v7212_v28, %v14523_v40  ;;  %v5387_v30 = vmul.f32 %v7212_v28, %v14581_v58  ;;  %v5389_v27 = vmul.f32 %v7212_v28, %v14592_v42  ;;  %v14602_v28 = vld [vmem:[#allocation363_spill] sm:$0xff]  ;;  %v14609_v26 = vld [vmem:[#allocation84_spill] sm:$0xff] }
 0x3e4   : > { %v5410_v47 = vadd.f32 %v14593_v22, %v5309_v39  ;;  %v5411_v29 = vadd.f32 %v5379_v23, %v5310_v18  ;;  %v5412_v61 = vadd.f32 %v14594_v59, %v5311_v43  ;;  %v5413_v34 = vadd.f32 %v5381_v36, %v5312_v0  ;;  %v11793_v39 = vld [vmem:[#allocation3 + $0x48] sm:$0xff]  ;;  %v11795_v18 = vld [vmem:[#allocation3 + $0x58] sm:$0xff]  ;;  %v11797_v43 = vld [vmem:[#allocation3 + $0xa0] sm:$0xff] }
 0x3e5   : > { %v5414_v1 = vadd.f32 %v14595_v24, %v5313_v8  ;;  %v5415_v14 = vadd.f32 %v5383_v12, %v5314_v60  ;;  %v5416_v3 = vadd.f32 %v14596_v50, %v5315_v17  ;;  %v5417_v4 = vadd.f32 %v5385_v10, %v5316_v33  ;;  %v14599_v0 = vld [vmem:[#allocation257_spill] sm:$0xff]  ;;  %v14600_v60 = vld [vmem:[#allocation298_spill] sm:$0xff]  ;;  %v14601_v33 = vld [vmem:[#allocation320_spill] sm:$0xff] }
 0x3e6   : > { %v5418_v21 = vadd.f32 %v5386_v49, %v5317_v63  ;;  %v5419_v40 = vadd.f32 %v5387_v30, %v5318_v41  ;;  %v5420_v44 = vadd.f32 %v14597_v56, %v5319_v48  ;;  %v5421_v11 = vadd.f32 %v5389_v27, %v5320_v5  ;;  %v7213_v41 = vld [vmem:[#allocation9 + $0x6] ss:$0 sm:$0xff]  ;;  %v14605_v27 = vld [vmem:[#allocation28_spill] sm:$0xff] }
 0x3e7   : > { %v5422_v37 = vadd.f32 %v14598_v31, %v5321_v55  ;;  %v5424_v8 = vadd.f32 %v14599_v0, %v5323_v35  ;;  %v5426_v17 = vadd.f32 %v14600_v60, %v5325_v38  ;;  %v5428_v63 = vadd.f32 %v14601_v33, %v5327_v52  ;;  %v14603_v38 = vld [vmem:[#allocation26_spill] sm:$0xff]  ;;  %v14604_v52 = vld [vmem:[#allocation27_spill] sm:$0xff]  ;;  %v14607_v0 = vld [vmem:[#allocation232_spill] sm:$0xff] }
 0x3e8   : > { %v5430_v23 = vadd.f32 %v14602_v28, %v5329_v53  ;;  %v5561_v48 = vmul.f32 %v7213_v41, %v11650_v7  ;;  %v5563_v5 = vmul.f32 %v7213_v41, %v11652_v32  ;;  %v5564_v55 = vmul.f32 %v7213_v41, %v11656_v46  ;;  %v14606_v50 = vld [vmem:[#allocation187_spill] sm:$0xff]  ;;  %v14608_v28 = vld [vmem:[#allocation269_spill] sm:$0xff]  ;;  %v14641_v16 = vld [vmem:[#allocation244_spill] sm:$0xff] }
 0x3e9   : > { %v5566_v36 = vmul.f32 %v7213_v41, %v11789_v15  ;;  %v5568_v12 = vmul.f32 %v7213_v41, %v11793_v39  ;;  %v5570_v10 = vmul.f32 %v7213_v41, %v11795_v18  ;;  %v5579_v35 = vmul.f32 %v7213_v41, %v11797_v43 }
 0x3ea   : > { %v5591_v49 = vadd.f32 %v14603_v38, %v5410_v47  ;;  %v5592_v30 = vadd.f32 %v14604_v52, %v5411_v29  ;;  %v5593_v53 = vadd.f32 %v5561_v48, %v5412_v61  ;;  %v5594_v22 = vadd.f32 %v14605_v27, %v5413_v34  ;;  %v14610_v47 = vld [vmem:[#allocation158_spill] sm:$0xff]  ;;  %v14611_v61 = vld [vmem:[#allocation348_spill] sm:$0xff]  ;;  %v14616_v52 = vld [vmem:[#allocation271_spill] sm:$0xff] }
 0x3eb   : > { %v5595_v59 = vadd.f32 %v5563_v5, %v5414_v1  ;;  %v5596_v24 = vadd.f32 %v5564_v55, %v5415_v14  ;;  %v5597_v56 = vadd.f32 %v14606_v50, %v5416_v3  ;;  %v5598_v31 = vadd.f32 %v5566_v36, %v5417_v4  ;;  %v14612_v34 = vld [vmem:[#allocation54_spill] sm:$0xff]  ;;  %v7214_v5 = vld [vmem:[#allocation9 + $0xe] ss:$0 sm:$0xff] }
 0x3ec   : > { %v5599_v60 = vadd.f32 %v14607_v0, %v5418_v21  ;;  %v5600_v33 = vadd.f32 %v5568_v12, %v5419_v40  ;;  %v5601_v42 = vadd.f32 %v14608_v28, %v5420_v44  ;;  %v5602_v58 = vadd.f32 %v5570_v10, %v5421_v11  ;;  %v14615_v10 = vld [vmem:[#allocation235_spill] sm:$0xff]  ;;  %v14617_v0 = vld [vmem:[#allocation288_spill] sm:$0xff] }
 0x3ed   : > { %v5603_v41 = vadd.f32 %v14609_v26, %v5422_v37  ;;  %v5605_v29 = vadd.f32 %v14610_v47, %v5424_v8  ;;  %v5607_v48 = vadd.f32 %v14611_v61, %v5426_v17  ;;  %v5609_v1 = vadd.f32 %v14612_v34, %v5428_v63  ;;  %v14613_v17 = vld [vmem:[#allocation29_spill] sm:$0xff]  ;;  %v11835_v61 = vld [vmem:[#allocation3 + $0x78] sm:$0xff] }
 0x3ee   : > { %v5611_v14 = vadd.f32 %v5579_v35, %v5430_v23  ;;  %v5660_v3 = vmul.f32 %v7214_v5, %v11650_v7  ;;  %v5662_v4 = vmul.f32 %v7214_v5, %v11652_v32  ;;  %v5663_v21 = vmul.f32 %v7214_v5, %v11656_v46  ;;  %v14614_v7 = vld [vmem:[#allocation188_spill] sm:$0xff]  ;;  %v14618_v34 = vld [vmem:[#allocation313_spill] sm:$0xff] }
 0x3ef   : > { %v5665_v40 = vmul.f32 %v7214_v5, %v11789_v15  ;;  %v5667_v26 = vmul.f32 %v7214_v5, %v11793_v39  ;;  %v5669_v44 = vmul.f32 %v7214_v5, %v11795_v18  ;;  %v5671_v11 = vmul.f32 %v7214_v5, %v11817_v57 }
 0x3f0   : > { %v5678_v37 = vmul.f32 %v7214_v5, %v11797_v43  ;;  %v5692_v8 = vadd.f32 %v5660_v3, %v5591_v49  ;;  %v5693_v63 = vadd.f32 %v14613_v17, %v5592_v30  ;;  %v5694_v23 = vadd.f32 %v5662_v4, %v5593_v53  ;;  %v14619_v5 = vld [vmem:[#allocation349_spill] sm:$0xff]  ;;  %v14620_v53 = vld [vmem:[#allocation70_spill] sm:$0xff]  ;;  %v14624_v17 = vld [vmem:[#allocation272_spill] sm:$0xff] }
 0x3f1   : > { %v5695_v55 = vadd.f32 %v5663_v21, %v5594_v22  ;;  %v5696_v36 = vadd.f32 %v14614_v7, %v5595_v59  ;;  %v5697_v12 = vadd.f32 %v5665_v40, %v5596_v24  ;;  %v5698_v35 = vadd.f32 %v14615_v10, %v5597_v56  ;;  %v14621_v59 = vld [vmem:[#allocation198_spill] sm:$0xff]  ;;  %v7215_v4 = vld [vmem:[#allocation9 + $0x16] ss:$0 sm:$0xff]  ;;  %v11852_v10 = vld [vmem:[#allocation3 + $0x88] sm:$0xff] }
 0x3f2   : > { %v5699_v38 = vadd.f32 %v5667_v26, %v5598_v31  ;;  %v5700_v27 = vadd.f32 %v14616_v52, %v5599_v60  ;;  %v5701_v50 = vadd.f32 %v5669_v44, %v5600_v33  ;;  %v5702_v28 = vadd.f32 %v14617_v0, %v5601_v42  ;;  %v14622_v21 = vld [vmem:[#allocation189_spill] sm:$0xff]  ;;  %v3891_v26 = vld [vmem:[#allocation2 + $0xb9] sm:$0x7f]  ;;  %v14623_v44 = vld [vmem:[#allocation236_spill] sm:$0xff] }
 0x3f3   : > { %v5703_v47 = vadd.f32 %v5671_v11, %v5602_v58  ;;  %v5704_v49 = vadd.f32 %v14618_v34, %v5603_v41  ;;  %v5706_v30 = vadd.f32 %v14619_v5, %v5605_v29  ;;  %v5708_v22 = vadd.f32 %v14620_v53, %v5607_v48  ;;  %v3887_v29 = vld [vmem:[#allocation2 + $0x99] sm:$0x7f]  ;;  %v14625_v0 = vld [vmem:[#allocation289_spill] sm:$0xff]  ;;  %v14626_v53 = vld [vmem:[#allocation315_spill] sm:$0xff] }
 0x3f4   : > { %v5710_v3 = vadd.f32 %v5678_v37, %v5609_v1  ;;  %v5712_v24 = vadd.f32 %v14621_v59, %v5611_v14  ;;  %v5761_v56 = vmul.f32 %v7215_v4, %v11652_v32  ;;  %v5762_v31 = vmul.f32 %v7215_v4, %v11656_v46  ;;  %v3889_v32 = vld [vmem:[#allocation2 + $0xa9] sm:$0x7f] }
 0x3f5   : > { %v5764_v60 = vmul.f32 %v7215_v4, %v11789_v15  ;;  %v5766_v58 = vmul.f32 %v7215_v4, %v11793_v39  ;;  %v5768_v42 = vmul.f32 %v7215_v4, %v11795_v18  ;;  %v5770_v33 = vmul.f32 %v7215_v4, %v11817_v57 }
 0x3f6   : > { %v5772_v41 = vmul.f32 %v7215_v4, %v11835_v61  ;;  %v5777_v48 = vmul.f32 %v7215_v4, %v11797_v43  ;;  %v5793_v1 = vadd.f32 %v5761_v56, %v5692_v8  ;;  %v5794_v14 = vadd.f32 %v5762_v31, %v5693_v63  ;;  %v11856_v8 = vld [vmem:[#allocation3 + $0xc8] sm:$0xff]  ;;  %v11858_v63 = vld [vmem:[#allocation3 + $0xd8] sm:$0xff]  ;;  %v14631_v56 = vld [vmem:[#allocation55_spill] sm:$0xff] }
 0x3f7   : > { %v5795_v40 = vadd.f32 %v14622_v21, %v5694_v23  ;;  %v5796_v46 = vadd.f32 %v5764_v60, %v5695_v55  ;;  %v5797_v11 = vadd.f32 %v14623_v44, %v5696_v36  ;;  %v5798_v37 = vadd.f32 %v5766_v58, %v5697_v12  ;;  %14627 = vst [vmem:[#allocation419_spill] sm:$0xff] %v11856_v8  ;;  %v11860_v23 = vld [vmem:[#allocation3 + $0xe8] sm:$0xff]  ;;  %v14630_v36 = vld [vmem:[#allocation350_spill] sm:$0xff] }
 0x3f8   : > { %v5799_v7 = vadd.f32 %v14624_v17, %v5698_v35  ;;  %v5800_v52 = vadd.f32 %v5768_v42, %v5699_v38  ;;  %v5801_v34 = vadd.f32 %v14625_v0, %v5700_v27  ;;  %v5802_v5 = vadd.f32 %v5770_v33, %v5701_v50  ;;  %14628 = vst [vmem:[#allocation420_spill] sm:$0xff] %v11858_v63  ;;  %v3893_v55 = vld [vmem:[#allocation2 + $0xc9] sm:$0x7f]  ;;  %v11864_v60 = vld [vmem:[#allocation3 + $0xf8] sm:$0xff]  ;;  %v14634_v27 = vld [vmem:[#allocation199_spill] sm:$0xff] }
 0x3f9   : > { %v5803_v59 = vadd.f32 %v14626_v53, %v5702_v28  ;;  %14629 = vst [vmem:[#allocation323_spill] sm:$0xff] %v11860_v23  ;;  %v5804_v4 = vadd.f32 %v5772_v41, %v5703_v47  ;;  %v5805_v12 = vadd.f32 %v14630_v36, %v5704_v49  ;;  %v5807_v35 = vadd.f32 %v14631_v56, %v5706_v30  ;;  %v14635_v28 = vld [vmem:[#allocation240_spill] sm:$0xff]  ;;  %v7216_v49 = vld [vmem:[#allocation9 + $0x1e] ss:$0 sm:$0xff]  ;;  %v14692_v63 = vld [vmem:[#allocation267_spill] sm:$0xff] }
 0x3fa   : > { %v5809_v31 = vadd.f32 %v5777_v48, %v5708_v22  ;;  %14632 = vst [vmem:[#allocation384_spill] sm:$0xff] %v11864_v60  ;;  %3919 = vst.msk [vmem:[#allocation3 + $0xc8] sm:$0x7f] %vm2341_vm5, %v3887_v29  ;;  %v14633_v38 = vmov 0.0   ;;  %v5811_v50 = vadd.f32 %v14634_v27, %v5710_v3  ;;  %v5813_v47 = vadd.f32 %v14635_v28, %v5712_v24  ;;  %v14636_v41 = vld [vmem:[#allocation192_spill] sm:$0xff]  ;;  %v14637_v48 = vld [vmem:[#allocation237_spill] sm:$0xff] }
 0x3fb   : > { %3921 = vst.msk [vmem:[#allocation3 + $0xd8] sm:$0x7f] %vm2341_vm5, %v3889_v32  ;;  %3923 = vst.msk [vmem:[#allocation3 + $0xe8] sm:$0x7f] %vm2341_vm5, %v3891_v26  ;;  %v5863_v30 = vmul.f32 %v7216_v49, %v11789_v15  ;;  %v5865_v22 = vmul.f32 %v7216_v49, %v11793_v39  ;;  %v5867_v58 = vmul.f32 %v7216_v49, %v11795_v18  ;;  %v14638_v26 = vld [vmem:[#allocation273_spill] sm:$0xff]  ;;  %v14639_v0 = vld [vmem:[#allocation290_spill] sm:$0xff] }
 0x3fc   : > { %3941 = vst.msk [vmem:[#allocation3 + $0xcf] sm:$0x1] %vm2373_vm6, %v14633_v38  ;;  %3942 = vst.msk [vmem:[#allocation3 + $0xdf] sm:$0x1] %vm2373_vm6, %v14633_v38  ;;  %v5869_v42 = vmul.f32 %v7216_v49, %v11817_v57  ;;  %v5871_v33 = vmul.f32 %v7216_v49, %v11835_v61  ;;  %v5873_v3 = vmul.f32 %v7216_v49, %v11852_v10  ;;  %v14640_v56 = vld [vmem:[#allocation110_spill] sm:$0xff] }
 0x3fd   : > { %3943 = vst.msk [vmem:[#allocation3 + $0xef] sm:$0x1] %vm2373_vm6, %v14633_v38  ;;  %3944 = vst.msk [vmem:[#allocation3 + $0xff] sm:$0x1] %vm2373_vm6, %v14633_v38  ;;  %v5876_v24 = vmul.f32 %v7216_v49, %v11797_v43  ;;  %v5894_v29 = vadd.f32 %v14636_v41, %v5793_v1  ;;  %v5895_v15 = vadd.f32 %v5863_v30, %v5794_v14  ;;  %v11893_v60 = vld [vmem:[#allocation3 + $0x98] sm:$0xff]  ;;  %v11895_v49 = vld [vmem:[#allocation3 + $0x108] sm:$0xff] }
 0x3fe   : > { %3925 = vst.msk [vmem:[#allocation3 + $0xf8] sm:$0x7f] %vm2341_vm5, %v3893_v55  ;;  %v5896_v21 = vadd.f32 %v14637_v48, %v5795_v40  ;;  %v5897_v32 = vadd.f32 %v5865_v22, %v5796_v46  ;;  %v5898_v44 = vadd.f32 %v14638_v26, %v5797_v11  ;;  %v5899_v17 = vadd.f32 %v5867_v58, %v5798_v37  ;;  %v3895_v55 = vld [vmem:[#allocation2 + $0xd9] sm:$0x7f]  ;;  %v14643_v14 = vld [vmem:[#allocation41_spill] sm:$0xff]  ;;  %v14644_v30 = vld [vmem:[#allocation200_spill] sm:$0xff] }
 0x3ff   : > { %v5900_v53 = vadd.f32 %v14639_v0, %v5799_v7  ;;  %v5901_v36 = vadd.f32 %v5869_v42, %v5800_v52  ;;  %v5902_v27 = vadd.f32 %v14640_v56, %v5801_v34  ;;  %v5903_v28 = vadd.f32 %v5871_v33, %v5802_v5  ;;  %14642 = vst [vmem:[#allocation421_spill] sm:$0xff] %v11895_v49  ;;  %v14645_v37 = vld [vmem:[#allocation241_spill] sm:$0xff]  ;;  %v14647_v58 = vld [vmem:[#allocation238_spill] sm:$0xff]  ;;  %v14650_v48 = vld [vmem:[#allocation159_spill] sm:$0xff] }
 0x400   : > { %v5904_v9 = vadd.f32 %v14641_v16, %v5803_v59  ;;  %v5905_v1 = vadd.f32 %v5873_v3, %v5804_v4  ;;  %v5906_v40 = vadd.f32 %v14643_v14, %v5805_v12  ;;  %v5908_v46 = vadd.f32 %v5876_v24, %v5807_v35  ;;  %3927 = vst.msk [vmem:[#allocation3 + $0x108] sm:$0x7f] %vm2341_vm5, %v3895_v55  ;;  %v14646_v52 = vld [vmem:[#allocation277_spill] sm:$0xff]  ;;  %v7217_v16 = vld [vmem:[#allocation9 + $0x26] ss:$0 sm:$0xff]  ;;  %v14648_v33 = vld [vmem:[#allocation274_spill] sm:$0xff] }
 0x401   : > { %v5910_v11 = vadd.f32 %v14644_v30, %v5809_v31  ;;  %3945 = vst.msk [vmem:[#allocation3 + $0x10f] sm:$0x1] %vm2373_vm6, %v14633_v38  ;;  %v5912_v7 = vadd.f32 %v14645_v37, %v5811_v50  ;;  %v5914_v34 = vadd.f32 %v14646_v52, %v5813_v47  ;;  %v5964_v5 = vmul.f32 %v7217_v16, %v11793_v39  ;;  %v14649_v24 = vld [vmem:[#allocation291_spill] sm:$0xff]  ;;  %v3897_v0 = vld [vmem:[#allocation2 + $0xe9] sm:$0x7f]  ;;  %v14651_v56 = vld [vmem:[#allocation245_spill] sm:$0xff] }
 0x402   : > { %v5966_v59 = vmul.f32 %v7217_v16, %v11795_v18  ;;  %v5968_v4 = vmul.f32 %v7217_v16, %v11817_v57  ;;  %v5970_v12 = vmul.f32 %v7217_v16, %v11835_v61  ;;  %v5972_v35 = vmul.f32 %v7217_v16, %v11852_v10  ;;  %v14652_v37 = vld [vmem:[#allocation107_spill] sm:$0xff]  ;;  %v11917_v49 = vld [vmem:[#allocation3 + $0x118] sm:$0xff] }
 0x403   : > { %v5974_v31 = vmul.f32 %v7217_v16, %v11893_v60  ;;  %v5975_v22 = vmul.f32 %v7217_v16, %v11797_v43  ;;  %v5995_v42 = vadd.f32 %v14647_v58, %v5894_v29  ;;  %v5996_v50 = vadd.f32 %v5964_v5, %v5895_v15  ;;  %14653 = vst [vmem:[#allocation321_spill] sm:$0xff] %v11917_v49  ;;  %v14654_v15 = vld [vmem:[#allocation203_spill] sm:$0xff]  ;;  %v12084_v13 = vld [vmem:[#allocation3 + $0xc8] sm:$0xff]  ;;  %v12094_v25 = vld [vmem:[#allocation3 + $0xd8] sm:$0xff] }
 0x404   : > { %v5997_v47 = vadd.f32 %v14648_v33, %v5896_v21  ;;  %v5998_v3 = vadd.f32 %v5966_v59, %v5897_v32  ;;  %v5999_v39 = vadd.f32 %v14649_v24, %v5898_v44  ;;  %v6000_v41 = vadd.f32 %v5968_v4, %v5899_v17  ;;  %v14655_v21 = vld [vmem:[#allocation242_spill] sm:$0xff]  ;;  %v6039_v59 = vld [vmem:[#allocation3 + $0xa8] sm:$0xff]  ;;  %3929 = vst.msk [vmem:[#allocation3 + $0x118] sm:$0x7f] %vm2341_vm5, %v3897_v0  ;;  %v14660_v58 = vld [vmem:[#allocation43_spill] sm:$0xff] }
 0x405   : > { %v6001_v26 = vadd.f32 %v14650_v48, %v5900_v53  ;;  %v6002_v55 = vadd.f32 %v5970_v12, %v5901_v36  ;;  %v6003_v14 = vadd.f32 %v14651_v56, %v5902_v27  ;;  %v6004_v30 = vadd.f32 %v5972_v35, %v5903_v28  ;;  %3946 = vst.msk [vmem:[#allocation3 + $0x11f] sm:$0x1] %vm2373_vm6, %v14633_v38  ;;  %v14656_v44 = vld [vmem:[#allocation278_spill] sm:$0xff]  ;;  %v14657_v53 = vld [vmem:[#allocation299_spill] sm:$0xff]  ;;  %v7218_v27 = vld [vmem:[#allocation9 + $0x2e] ss:$0 sm:$0xff] }
 0x406   : > { %v6005_v52 = vadd.f32 %v14652_v37, %v5904_v9  ;;  %v6006_v16 = vadd.f32 %v5974_v31, %v5905_v1  ;;  %v6007_v29 = vadd.f32 %v5975_v22, %v5906_v40  ;;  %v6009_v5 = vadd.f32 %v14654_v15, %v5908_v46  ;;  %v14658_v12 = vld [vmem:[#allocation276_spill] sm:$0xff]  ;;  %v14661_v24 = vld [vmem:[#allocation351_spill] sm:$0xff]  ;;  %14694 = vst [vmem:[#allocation138_spill] sm:$0xff] %v12084_v13 }
 0x407   : > { %v6011_v32 = vadd.f32 %v14655_v21, %v5910_v11  ;;  %v6013_v17 = vadd.f32 %v14656_v44, %v5912_v7  ;;  %v6015_v36 = vadd.f32 %v14657_v53, %v5914_v34  ;;  %v6065_v9 = vmul.f32 %v7218_v27, %v11795_v18  ;;  %v14659_v7 = vld [vmem:[#allocation292_spill] sm:$0xff]  ;;  %14695 = vst [vmem:[#allocation174_spill] sm:$0xff] %v12094_v25 }
 0x408   : > { %v6067_v28 = vmul.f32 %v7218_v27, %v11817_v57  ;;  %v6069_v1 = vmul.f32 %v7218_v27, %v11835_v61  ;;  %v6071_v40 = vmul.f32 %v7218_v27, %v11852_v10  ;;  %v6073_v46 = vmul.f32 %v7218_v27, %v11893_v60  ;;  %v14662_v56 = vld [vmem:[#allocation108_spill] sm:$0xff]  ;;  %4728 = vst.msk [vmem:[#allocation3 + $0xce] sm:$0x3] %vm1584_vm4, %v14633_v38 }
 0x409   : > { %v6074_v11 = vmul.f32 %v7218_v27, %v11797_v43  ;;  %v6075_v4 = vmul.f32 %v7218_v27, %v6039_v59  ;;  %v6096_v35 = vadd.f32 %v14658_v12, %v5995_v42  ;;  %v6097_v31 = vadd.f32 %v6065_v9, %v5996_v50  ;;  %v14663_v53 = vld [vmem:[#allocation204_spill] sm:$0xff]  ;;  %v14664_v27 = vld [vmem:[#allocation246_spill] sm:$0xff]  ;;  %v14665_v42 = vld [vmem:[#allocation279_spill] sm:$0xff]  ;;  %4729 = vst.msk [vmem:[#allocation3 + $0xde] sm:$0x3] %vm1584_vm4, %v14633_v38 }
 0x40a   : > { %v6098_v22 = vadd.f32 %v14659_v7, %v5997_v47  ;;  %v6099_v34 = vadd.f32 %v6067_v28, %v5998_v3  ;;  %v6100_v33 = vadd.f32 %v14660_v58, %v5999_v39  ;;  %v6101_v18 = vadd.f32 %v6069_v1, %v6000_v41  ;;  %v6140_v9 = vld [vmem:[#allocation3 + $0xb8] sm:$0xff]  ;;  %v7219_v41 = vld [vmem:[#allocation9 + $0x36] ss:$0 sm:$0xff]  ;;  %v12096_v2 = vld [vmem:[#allocation3 + $0xe8] sm:$0xff] }
 0x40b   : > { %v6102_v48 = vadd.f32 %v14661_v24, %v6001_v26  ;;  %v6103_v0 = vadd.f32 %v6071_v40, %v6002_v55  ;;  %v6104_v37 = vadd.f32 %v14662_v56, %v6003_v14  ;;  %v6105_v15 = vadd.f32 %v6073_v46, %v6004_v30  ;;  %v14666_v47 = vld [vmem:[#allocation302_spill] sm:$0xff]  ;;  %v14669_v40 = vld [vmem:[#allocation44_spill] sm:$0xff]  ;;  %v14672_v58 = vld [vmem:[#allocation205_spill] sm:$0xff]  ;;  %14696 = vst [vmem:[#allocation388_spill] sm:$0xff] %v12096_v2 }
 0x40c   : > { %v6106_v21 = vadd.f32 %v6074_v11, %v6005_v52  ;;  %v6107_v44 = vadd.f32 %v6075_v4, %v6006_v16  ;;  %v6108_v49 = vadd.f32 %v14663_v53, %v6007_v29  ;;  %v6110_v23 = vadd.f32 %v14664_v27, %v6009_v5  ;;  %v14667_v28 = vld [vmem:[#allocation322_spill] sm:$0xff]  ;;  %v14668_v5 = vld [vmem:[#allocation293_spill] sm:$0xff]  ;;  %v14676_v27 = vld [vmem:[#allocation135_spill] sm:$0xff]  ;;  %4730 = vst.msk [vmem:[#allocation3 + $0xee] sm:$0x3] %vm1584_vm4, %v14633_v38 }
 0x40d   : > { %v6112_v50 = vadd.f32 %v14665_v42, %v6011_v32  ;;  %v6114_v3 = vadd.f32 %v14666_v47, %v6013_v17  ;;  %v6116_v39 = vadd.f32 %v14667_v28, %v6015_v36  ;;  %v6166_v26 = vmul.f32 %v7219_v41, %v11817_v57  ;;  %v14670_v36 = vld [vmem:[#allocation352_spill] sm:$0xff]  ;;  %v14671_v57 = vld [vmem:[#allocation383_spill] sm:$0xff]  ;;  %v14674_v56 = vld [vmem:[#allocation97_spill] sm:$0xff]  ;;  %v632_v47 = vpop.f32.mrf.mxu1 }
 0x40e   : > { %v6168_v55 = vmul.f32 %v7219_v41, %v11835_v61  ;;  %v6170_v14 = vmul.f32 %v7219_v41, %v11852_v10  ;;  %v6172_v30 = vmul.f32 %v7219_v41, %v11893_v60  ;;  %v6173_v52 = vmul.f32 %v7219_v41, %v11797_v43  ;;  %v14673_v43 = vld [vmem:[#allocation247_spill] sm:$0xff]  ;;  %v14699_v25 = vld [vmem:[#allocation324_spill] sm:$0xff] }
 0x40f   : > { %v6174_v16 = vmul.f32 %v7219_v41, %v6039_v59  ;;  %v6176_v29 = vmul.f32 %v7219_v41, %v6140_v9  ;;  %v6197_v32 = vadd.f32 %v14668_v5, %v6096_v35  ;;  %v6198_v1 = vadd.f32 %v6166_v26, %v6097_v31  ;;  %v14675_v35 = vld [vmem:[#allocation303_spill] sm:$0xff] }
 0x410   : > { %v6199_v17 = vadd.f32 %v14669_v40, %v6098_v22  ;;  %v6200_v46 = vadd.f32 %v6168_v55, %v6099_v34  ;;  %v6201_v11 = vadd.f32 %v14670_v36, %v6100_v33  ;;  %v6202_v4 = vadd.f32 %v6170_v14, %v6101_v18  ;;  %v14677_v34 = vld [vmem:[#allocation367_spill] sm:$0xff] }
 0x411   : > { %v6203_v12 = vadd.f32 %v14671_v57, %v6102_v48  ;;  %v6204_v61 = vadd.f32 %v6172_v30, %v6103_v0  ;;  %v6205_v7 = vadd.f32 %v6173_v52, %v6104_v37  ;;  %v6206_v10 = vadd.f32 %v6174_v16, %v6105_v15  ;;  %v7220_v33 = vld [vmem:[%s13114_s4] ss:$0 sm:$0xff] }
 0x412   : > { %v6207_v60 = vadd.f32 %v14672_v58, %v6106_v21  ;;  %v6208_v24 = vadd.f32 %v6176_v29, %v6107_v44  ;;  %v6209_v59 = vadd.f32 %v14673_v43, %v6108_v49  ;;  %v6211_v53 = vadd.f32 %v14674_v56, %v6110_v23  ;;  %v7221_v29 = vld [vmem:[%s13112_s2] ss:$0 sm:$0xff] }
 0x413   : > { %v6213_v31 = vadd.f32 %v14675_v35, %v6112_v50  ;;  %v6215_v22 = vadd.f32 %v14676_v27, %v6114_v3  ;;  %v6217_v42 = vadd.f32 %v14677_v34, %v6116_v39  ;;  %v6236_v18 = vadd.f32 %v7220_v33, %v6197_v32  ;;  %v11963_v32 = vld [vmem:[#allocation3 + $0x130] sm:$0xff]  ;;  %v11967_v57 = vld [vmem:[#allocation3 + $0x140] sm:$0xff] }
 0x414   : > { %v6237_v48 = vadd.f32 %v7220_v33, %v6198_v1  ;;  %v6238_v0 = vadd.f32 %v7220_v33, %v6199_v17  ;;  %v6239_v37 = vadd.f32 %v7220_v33, %v6200_v46  ;;  %v6240_v15 = vadd.f32 %v7220_v33, %v6201_v11  ;;  %14678 = vst [vmem:[#allocation120_spill] sm:$0xff] %v11963_v32  ;;  %v11965_v46 = vld [vmem:[#allocation3 + $0x138] sm:$0xff]  ;;  %v11975_v56 = vld [vmem:[#allocation9 + $0x20] ss:$0 sm:$0xff]  ;;  %v11995_v34 = vld [vmem:[#allocation3 + $0x150] sm:$0xff] }
 0x415   : > { %v6241_v21 = vadd.f32 %v7220_v33, %v6202_v4  ;;  %v6242_v44 = vadd.f32 %v7220_v33, %v6203_v12  ;;  %v6243_v49 = vadd.f32 %v7220_v33, %v6204_v61  ;;  %v6244_v9 = vadd.f32 %v7220_v33, %v6205_v7  ;;  %14679 = vst [vmem:[#allocation385_spill] sm:$0xff] %v11965_v46  ;;  %v11969_v12 = vld [vmem:[#allocation3 + $0x148] sm:$0xff] }
 0x416   : > { %v6245_v23 = vadd.f32 %v7220_v33, %v6206_v10  ;;  %v6246_v50 = vadd.f32 %v7220_v33, %v6207_v60  ;;  %v6247_v28 = vadd.f32 %v7220_v33, %v6208_v24  ;;  %v6248_v3 = vadd.f32 %v7220_v33, %v6209_v59  ;;  %14680 = vst [vmem:[#allocation186_spill] sm:$0xff] %v11967_v57 }
 0x417   : > { %v6250_v41 = vadd.f32 %v7220_v33, %v6211_v53  ;;  %v6252_v39 = vadd.f32 %v7220_v33, %v6213_v31  ;;  %v6254_v26 = vadd.f32 %v7220_v33, %v6215_v22  ;;  %v6256_v55 = vadd.f32 %v7220_v33, %v6217_v42  ;;  %14681 = vst [vmem:[#allocation386_spill] sm:$0xff] %v11969_v12  ;;  %v11985_v31 = vld [vmem:[#allocation9 + $0x28] ss:$0 sm:$0xff]  ;;  %v11997_v42 = vld [vmem:[#allocation3 + $0x158] sm:$0xff] }
 0x418   : > { %v6758_v14 = vmul.f32 -1.442695, %v6236_v18  ;;  %v6759_v30 = vmul.f32 -1.442695, %v6237_v48  ;;  %v6760_v52 = vmul.f32 -1.442695, %v6238_v0  ;;  %v633_v5 = vadd.f32 %v7221_v29, %v632_v47 }
 0x419   : > { %v6761_v16 = vmul.f32 -1.442695, %v6239_v37  ;;  %v6762_v1 = vmul.f32 -1.442695, %v6240_v15  ;;  %v6763_v40 = vmul.f32 -1.442695, %v6241_v21  ;;  %v11979_v53 = vmul.f32 %v11975_v56, %v11963_v32 }
 0x41a   : > { %6993 = vpow2.f32 %v6758_v14  ;;  %v6764_v17 = vmul.f32 -1.442695, %v6242_v44  ;;  %v6765_v36 = vmul.f32 -1.442695, %v6243_v49  ;;  %v6766_v11 = vmul.f32 -1.442695, %v6244_v9 }
 0x41b   : > { %6995 = vpow2.f32 %v6759_v30  ;;  %v6767_v4 = vmul.f32 -1.442695, %v6245_v23  ;;  %v6768_v61 = vmul.f32 -1.442695, %v6246_v50  ;;  %v6769_v7 = vmul.f32 -1.442695, %v6247_v28 }
 0x41c   : > { %6997 = vpow2.f32 %v6760_v52  ;;  %v6770_v10 = vmul.f32 -1.442695, %v6248_v3  ;;  %v6772_v58 = vmul.f32 -1.442695, %v6250_v41  ;;  %v6774_v60 = vmul.f32 -1.442695, %v6252_v39 }
 0x41d   : > { %6999 = vpow2.f32 %v6761_v16  ;;  %v11971_v24 = vmul.f32 -1.442695, %v6254_v26  ;;  %v11973_v43 = vmul.f32 -1.442695, %v6256_v55  ;;  %v671_v59 = vmax.f32 %v633_v5, 0.0  ;;  %14682 = vst [vmem:[#allocation57_spill] sm:$0xff] %v11995_v34 }
 0x41e   : > { %7001 = vpow2.f32 %v6762_v1  ;;  %v11983_v35 = vmul.f32 %v11975_v56, %v11965_v46  ;;  %v11989_v27 = vmul.f32 %v11985_v31, %v11963_v32  ;;  %v11993_v22 = vmul.f32 %v11985_v31, %v11965_v46  ;;  %14683 = vst [vmem:[#allocation387_spill] sm:$0xff] %v11997_v42  ;;  %v12008_v48 = vld [vmem:[#allocation9 + $0x30] ss:$0 sm:$0xff]  ;;  %v7225_v9 = vld [vmem:[#allocation9 + $0x1] ss:$0 sm:$0xff]  ;;  %v14684_v23 = vld [vmem:[#allocation78_spill] sm:$0xff] }
 0x41f   : > { %7003 = vpow2.f32 %v6763_v40  ;;  %703 = vst.msk [vmem:[#allocation2 + $0xf0] sm:$0xff] %vm319_vm0, %v671_v59  ;;  %v12002_v33 = vmul.f32 %v11985_v31, %v11967_v57  ;;  %v12006_v18 = vmul.f32 %v11985_v31, %v11969_v12  ;;  %v12012_v0 = vmul.f32 %v12008_v48, %v11963_v32  ;;  %v14685_v50 = vld [vmem:[#allocation79_spill] sm:$0xff]  ;;  %v14686_v3 = vld [vmem:[#allocation98_spill] sm:$0xff]  ;;  %v14688_v55 = vld [vmem:[#allocation145_spill] sm:$0xff] }
 0x420   : > { %7005 = vpow2.f32 %v6764_v17  ;;  %v12016_v37 = vmul.f32 %v12008_v48, %v11965_v46  ;;  %v12020_v15 = vmul.f32 %v12008_v48, %v11967_v57  ;;  %v12024_v21 = vmul.f32 %v12008_v48, %v11969_v12  ;;  %v14687_v39 = vld [vmem:[#allocation103_spill] sm:$0xff]  ;;  %v14689_v30 = vld [vmem:[#allocation146_spill] sm:$0xff]  ;;  %v14690_v16 = vld [vmem:[#allocation196_spill] sm:$0xff] }
 0x421   : > { %7007 = vpow2.f32 %v6765_v36  ;;  %v12028_v44 = vmul.f32 %v12008_v48, %v11995_v34  ;;  %v12032_v49 = vmul.f32 %v12008_v48, %v11997_v42  ;;  %v12035_v47 = vmul.f32 %v7225_v9, %v14684_v23  ;;  %v14691_v5 = vld [vmem:[#allocation197_spill] sm:$0xff]  ;;  %v7226_v40 = vld [vmem:[#allocation9 + $0x9] ss:$0 sm:$0xff]  ;;  %v12167_v32 = vld [vmem:[#allocation9 + $0x21] ss:$0 sm:$0xff] }
 0x422   : > { %7009 = vpow2.f32 %v6766_v11  ;;  %v12038_v28 = vmul.f32 %v7225_v9, %v14685_v50  ;;  %v12041_v41 = vmul.f32 %v7225_v9, %v14686_v3  ;;  %v12044_v26 = vmul.f32 %v7225_v9, %v14687_v39  ;;  %v4674_v11 = vld [vmem:[#allocation2 + $0x9a] sm:$0x3f]  ;;  %v4680_v50 = vld [vmem:[#allocation2 + $0xca] sm:$0x3f]  ;;  %14709 = vst [vmem:[#allocation327_spill] sm:$0xff] %v12167_v32 }
 0x423   : > { %7011 = vpow2.f32 %v6767_v4  ;;  %v12047_v14 = vmul.f32 %v7225_v9, %v14688_v55  ;;  %v12050_v52 = vmul.f32 %v7225_v9, %v14689_v30  ;;  %v12053_v29 = vmul.f32 %v7225_v9, %v14690_v16  ;;  %v4676_v4 = vld [vmem:[#allocation2 + $0xaa] sm:$0x3f]  ;;  %4706 = vst.msk [vmem:[#allocation3 + $0xc8] sm:$0x3f] %vm1552_vm3, %v4674_v11 }
 0x424   : > { %7013 = vpow2.f32 %v6768_v61  ;;  %v12056_v1 = vmul.f32 %v7225_v9, %v14691_v5  ;;  %v12059_v17 = vmul.f32 %v7226_v40, %v14686_v3  ;;  %v12062_v36 = vmul.f32 %v7226_v40, %v14687_v39  ;;  %v4678_v61 = vld [vmem:[#allocation2 + $0xba] sm:$0x3f]  ;;  %4708 = vst.msk [vmem:[#allocation3 + $0xd8] sm:$0x3f] %vm1552_vm3, %v4676_v4 }
 0x425   : > { %7015 = vpow2.f32 %v6769_v7  ;;  %v12065_v59 = vmul.f32 %v7226_v40, %v14688_v55  ;;  %v12068_v23 = vmul.f32 %v7226_v40, %v14689_v30  ;;  %v12071_v7 = vmul.f32 %v7226_v40, %v14690_v16  ;;  %4710 = vst.msk [vmem:[#allocation3 + $0xe8] sm:$0x3f] %vm1552_vm3, %v4678_v61 }
 0x426   : > { %7017 = vpow2.f32 %v6770_v10  ;;  %v12073_v3 = vld [vmem:[#allocation2 + $0xf0] sm:$0xff]  ;;  %v12076_v39 = vmul.f32 %v7226_v40, %v14691_v5  ;;  %v12079_v8 = vmul.f32 %v7226_v40, %v14692_v63  ;;  %v14693_v10 = vld [vmem:[#allocation268_spill] sm:$0xff] }
 0x427   : > { %v6994_v9 = vpop.eup %6993  ;;  %7019 = vpow2.f32 %v6772_v58  ;;  %v12082_v62 = vmul.f32 %v7226_v40, %v14693_v10  ;;  %782 = vst.msk [vmem:[#allocation3 + $0x123] sm:$0xff] %vm319_vm0, %v12073_v3  ;;  %v7227_v58 = vld [vmem:[#allocation9 + $0x11] ss:$0 sm:$0xff]  ;;  %v12098_v40 = vld [vmem:[#allocation3 + $0xf8] sm:$0xff] }
 0x428   : > { %v6996_v20 = vpop.eup %6995  ;;  %7021 = vpow2.f32 %v6774_v60  ;;  %v6364_v45 = vadd.f32 1.0, %v6994_v9  ;;  %v12089_v54 = vmul.f32 %v7227_v58, %v14688_v55  ;;  %v12092_v6 = vmul.f32 %v7227_v58, %v14689_v30  ;;  %14697 = vst [vmem:[#allocation149_spill] sm:$0xff] %v12098_v40  ;;  %4712 = vst.msk [vmem:[#allocation3 + $0xf8] sm:$0x3f] %vm1552_vm3, %v4680_v50  ;;  %v14698_v40 = vld [vmem:[#allocation130_spill] sm:$0xff] }
 0x429   : > { %v6998_v60 = vpop.eup %6997  ;;  %7023 = vpow2.f32 %v11971_v24  ;;  %v6365_v9 = vadd.f32 1.0, %v6996_v20  ;;  %v12105_v55 = vmul.f32 %v7227_v58, %v14690_v16  ;;  %v12108_v30 = vmul.f32 %v7227_v58, %v14691_v5  ;;  %4731 = vst.msk [vmem:[#allocation3 + $0xfe] sm:$0x3] %vm1584_vm4, %v14633_v38 }
 0x42a   : > { %v7000_v20 = vpop.eup %6999  ;;  %7025 = vpow2.f32 %v11973_v43  ;;  %v6366_v24 = vadd.f32 1.0, %v6998_v60  ;;  %v12121_v11 = vmul.f32 %v7227_v58, %v14692_v63  ;;  %v12124_v4 = vmul.f32 %v7227_v58, %v14693_v10  ;;  %v12132_v43 = vld [vmem:[#allocation9 + $0x19] ss:$0 sm:$0xff] }
 0x42b   : > { %v7002_v61 = vpop.eup %7001  ;;  %v6367_v50 = vadd.f32 1.0, %v7000_v20  ;;  %7027 = vrcp.f32 %v6364_v45  ;;  %v12127_v2 = vmul.f32 %v7227_v58, %v14698_v40  ;;  %v12130_v13 = vmul.f32 %v7227_v58, %v14699_v25  ;;  %14701 = vst [vmem:[#allocation393_spill] sm:$0xff] %v12132_v43  ;;  %v12142_v45 = vld [vmem:[#allocation3 + $0x108] sm:$0xff] }
 0x42c   : > { %v7004_v51 = vpop.eup %7003  ;;  %v6368_v42 = vadd.f32 1.0, %v7002_v61  ;;  %7029 = vrcp.f32 %v6365_v9  ;;  %v12136_v60 = vmul.f32 %v12132_v43, %v14690_v16  ;;  %v12140_v20 = vmul.f32 %v12132_v43, %v14691_v5  ;;  %14704 = vst [vmem:[#allocation396_spill] sm:$0xff] %v12142_v45  ;;  %4714 = vst.msk [vmem:[#allocation3 + $0x108] sm:$0x3f] %vm1552_vm3, %v4682_v19  ;;  %v1550_v45 = vld [vmem:[#allocation2 + $0xf8] sm:$0x3f] }
 0x42d   : > { %14700 = vst [vmem:[#allocation392_spill] sm:$0xff] %v12130_v13  ;;  %v7006_v34 = vpop.eup %7005  ;;  %v6369_v12 = vadd.f32 1.0, %v7004_v51  ;;  %7031 = vrcp.f32 %v6366_v24  ;;  %v12146_v58 = vmul.f32 %v12132_v43, %v14692_v63  ;;  %v12150_v9 = vmul.f32 %v12132_v43, %v14693_v10  ;;  %4732 = vst.msk [vmem:[#allocation3 + $0x10e] sm:$0x3] %vm1584_vm4, %v14633_v38 }
 0x42e   : > { %14702 = vst [vmem:[#allocation394_spill] sm:$0xff] %v12136_v60  ;;  %14703 = vst [vmem:[#allocation395_spill] sm:$0xff] %v12140_v20  ;;  %v7008_v16 = vpop.eup %7007  ;;  %v6370_v5 = vadd.f32 1.0, %v7006_v34  ;;  %7033 = vrcp.f32 %v6367_v50  ;;  %v12157_v51 = vmul.f32 %v12132_v43, %v14698_v40  ;;  %v12161_v24 = vmul.f32 %v12132_v43, %v14699_v25  ;;  %v12163_v46 = vld [vmem:[#allocation3 + $0x120] sm:$0xff]  ;;  %v12165_v19 = vld [vmem:[#allocation3 + $0x128] sm:$0xff] }
 0x42f   : > { %14705 = vst [vmem:[#allocation398_spill] sm:$0xff] %v12146_v58  ;;  %14706 = vst [vmem:[#allocation400_spill] sm:$0xff] %v12150_v9  ;;  %v7010_v61 = vpop.eup %7009  ;;  %v6371_v57 = vadd.f32 1.0, %v7008_v16  ;;  %7035 = vrcp.f32 %v6368_v42  ;;  %v12171_v34 = vmul.f32 %v12167_v32, %v14692_v63  ;;  %v12175_v50 = vmul.f32 %v12167_v32, %v14693_v10  ;;  %v14712_v32 = vld [vmem:[#allocation217_spill] sm:$0xff]  ;;  %v14713_v9 = vld [vmem:[#allocation326_spill] sm:$0xff] }
 0x430   : > { %14707 = vst [vmem:[#allocation402_spill] sm:$0xff] %v12157_v51  ;;  %14708 = vst [vmem:[#allocation404_spill] sm:$0xff] %v12161_v24  ;;  %v7012_v25 = vpop.eup %7011  ;;  %v6372_v40 = vadd.f32 1.0, %v7010_v61  ;;  %7037 = vrcp.f32 %v6369_v12  ;;  %v7230_v24 = vld [vmem:[#allocation9 + $0x18] ss:$0 sm:$0xff]  ;;  %v1277_v10 = vmul.f32 %v11975_v56, %v12163_v46  ;;  %v1278_v12 = vmul.f32 %v11975_v56, %v12165_v19  ;;  %v14715_v43 = vld [vmem:[#allocation96_spill] sm:$0xff] }
 0x431   : > { %14710 = vst [vmem:[#allocation406_spill] sm:$0xff] %v12171_v34  ;;  %14711 = vst [vmem:[#allocation408_spill] sm:$0xff] %v12175_v50  ;;  %v1176_v42 = vmul.f32 %v7230_v24, %v12163_v46  ;;  %v1177_v16 = vmul.f32 %v7230_v24, %v12165_v19  ;;  %v7014_v63 = vpop.eup %7013  ;;  %v6373_v34 = vadd.f32 1.0, %v7012_v25  ;;  %7039 = vrcp.f32 %v6370_v5  ;;  %v4684_v50 = vld [vmem:[#allocation2 + $0xea] sm:$0x3f]  ;;  %v12190_v58 = vld [vmem:[#allocation3 + $0x118] sm:$0xff] }
 0x432   : > { %1582 = vst.msk [vmem:[#allocation3 + $0x122] sm:$0xff] %vm319_vm0, %v12073_v3  ;;  %v7016_v61 = vpop.eup %7015  ;;  %v6374_v24 = vadd.f32 1.0, %v7014_v63  ;;  %7041 = vrcp.f32 %v6371_v57  ;;  %v14714_v25 = vld [vmem:[#allocation266_spill] sm:$0xff]  ;;  %v1310_v13 = vadd.f32 %v1278_v12, %v14715_v43  ;;  %v1378_v43 = vmul.f32 %v11985_v31, %v12163_v46  ;;  %v6461_v12 = vld [vmem:[%s7606_s13 + $0x8] sm:$0xff] }
 0x433   : > { %1583 = vst.msk [vmem:[#allocation3 + $0x12a] sm:$0x3f] %vm1552_vm3, %v1550_v45  ;;  %v1208_v51 = vadd.f32 %v1176_v42, %v14712_v32  ;;  %v1209_v45 = vadd.f32 %v1177_v16, %v14713_v9  ;;  %v7018_v20 = vpop.eup %7017  ;;  %v6375_v60 = vadd.f32 1.0, %v7016_v61  ;;  %7043 = vrcp.f32 %v6372_v40  ;;  %4716 = vst.msk [vmem:[#allocation3 + $0x118] sm:$0x3f] %vm1552_vm3, %v4684_v50  ;;  %v14716_v61 = vld [vmem:[#allocation136_spill] sm:$0xff] }
 0x434   : > { %1600 = vst.msk [vmem:[#allocation3 + $0x120] sm:$0x3] %vm1584_vm4, %v14633_v38  ;;  %v1309_v5 = vadd.f32 %v1277_v10, %v14714_v25  ;;  %4733 = vst.msk [vmem:[#allocation3 + $0x11e] sm:$0x3] %vm1584_vm4, %v14633_v38  ;;  %v7020_v57 = vpop.eup %7019  ;;  %v6376_v56 = vadd.f32 1.0, %v7018_v20  ;;  %7045 = vrcp.f32 %v6373_v34  ;;  %v1379_v50 = vmul.f32 %v11985_v31, %v12165_v19  ;;  %v6460_v20 = vld [vmem:[%s7606_s13] sm:$0xff] }
 0x435   : > { %v1311_v32 = vadd.f32 %v11979_v53, %v1208_v51  ;;  %v1312_v9 = vadd.f32 %v11983_v35, %v1209_v45  ;;  %v7022_v42 = vpop.eup %7021  ;;  %v6378_v40 = vadd.f32 1.0, %v7020_v57  ;;  %7047 = vrcp.f32 %v6374_v24  ;;  %v2339_v63 = vld [vmem:[#allocation2 + $0xf8] sm:$0x7f] }
 0x436   : > { %v7024_v16 = vpop.eup %7023  ;;  %v6380_v10 = vadd.f32 1.0, %v7022_v42  ;;  %7049 = vrcp.f32 %v6375_v60  ;;  %v1412_v53 = vadd.f32 %v11989_v27, %v1309_v5  ;;  %v1413_v35 = vadd.f32 %v11993_v22, %v1310_v13  ;;  %v14717_v45 = vld [vmem:[#allocation354_spill] sm:$0xff]  ;;  %v6462_v27 = vld [vmem:[%s7606_s13 + $0x10] sm:$0xff] }
 0x437   : > { %v7026_v51 = vpop.eup %7025  ;;  %v6382_v34 = vadd.f32 1.0, %v7024_v16  ;;  %7051 = vrcp.f32 %v6376_v56  ;;  %v1410_v24 = vadd.f32 %v1378_v43, %v14716_v61  ;;  %v1411_v25 = vadd.f32 %v1379_v50, %v14717_v45  ;;  %v6463_v56 = vld [vmem:[%s7606_s13 + $0x18] sm:$0xff] }
 0x438   : > { %v7028_v42 = vpop.eup %7027  ;;  %v6384_v60 = vadd.f32 1.0, %v7026_v51  ;;  %7053 = vrcp.f32 %v6378_v40  ;;  %v1414_v13 = vadd.f32 %v12002_v33, %v1311_v32  ;;  %v1415_v22 = vadd.f32 %v12006_v18, %v1312_v9  ;;  %v6464_v32 = vld [vmem:[%s7606_s13 + $0x20] sm:$0xff] }
 0x439   : > { %v7030_v5 = vpop.eup %7029  ;;  %7055 = vrcp.f32 %v6380_v10  ;;  %v6492_v43 = vmul.f32 %v7028_v42, %v6460_v20  ;;  %v1479_v40 = vmul.f32 %v12008_v48, %v12163_v46  ;;  %v1480_v33 = vmul.f32 %v12008_v48, %v12165_v19  ;;  %v6465_v10 = vld [vmem:[%s7606_s13 + $0x28] sm:$0xff]  ;;  %v14718_v46 = vld [vmem:[#allocation50_spill] sm:$0xff]  ;;  %v14719_v48 = vld [vmem:[#allocation355_spill] sm:$0xff] }
 0x43a   : > { %v12211_v57 = vld [vmem:[#allocation3 + $0x128] sm:$0xff]  ;;  %v7032_v18 = vpop.eup %7031  ;;  %7057 = vrcp.f32 %v6382_v34  ;;  %v6493_v9 = vmul.f32 %v7030_v5, %v6461_v12  ;;  %v1513_v50 = vadd.f32 %v12012_v0, %v1410_v24  ;;  %v1514_v16 = vadd.f32 %v12016_v37, %v1411_v25  ;;  %v6466_v34 = vld [vmem:[%s7606_s13 + $0x30] sm:$0xff]  ;;  %v6467_v25 = vld [vmem:[%s7606_s13 + $0x38] sm:$0xff] }
 0x43b   : > { %v12209_v31 = vld [vmem:[#allocation3 + $0x120] sm:$0xff]  ;;  %2372 = vst.msk [vmem:[#allocation3 + $0x129] sm:$0x7f] %vm2341_vm5, %v2339_v63  ;;  %v7034_v63 = vpop.eup %7033  ;;  %7059 = vrcp.f32 %v6384_v60  ;;  %v6494_v20 = vmul.f32 %v7032_v18, %v6462_v27  ;;  %v1511_v51 = vadd.f32 %v1479_v40, %v14718_v46  ;;  %v1512_v19 = vadd.f32 %v1480_v33, %v14719_v48  ;;  %v6470_v18 = vld [vmem:[%s7606_s13 + $0x50] sm:$0xff] }
 0x43c   : > { %2371 = vst.msk [vmem:[#allocation3 + $0x121] sm:$0xff] %vm319_vm0, %v12073_v3  ;;  %6524 = vst.msk [vmem:[%s11238_s6] sm:$0xff] %vm319_vm0, %v6492_v43  ;;  %v7036_v61 = vpop.eup %7035  ;;  %v6495_v12 = vmul.f32 %v7034_v63, %v6463_v56  ;;  %v1515_v0 = vadd.f32 %v12020_v15, %v1412_v53  ;;  %v1516_v37 = vadd.f32 %v12024_v21, %v1413_v35  ;;  %v3128_v43 = vld [vmem:[#allocation2 + $0xf8] sm:$0xff]  ;;  %v6468_v15 = vld [vmem:[%s7606_s13 + $0x40] sm:$0xff] }
 0x43d   : > { %2389 = vst.msk [vmem:[#allocation3 + $0x120] sm:$0x1] %vm2373_vm6, %v14633_v38  ;;  %v1517_v24 = vadd.f32 %v12028_v44, %v1414_v13  ;;  %v7038_v45 = vpop.eup %7037  ;;  %v6496_v42 = vmul.f32 %v7036_v61, %v6464_v32  ;;  %v1518_v60 = vadd.f32 %v12032_v49, %v1415_v22  ;;  %v1694_v27 = vadd.f32 %v12035_v47, %v1511_v51  ;;  %v6469_v49 = vld [vmem:[%s7606_s13 + $0x48] sm:$0xff]  ;;  %v6472_v63 = vld [vmem:[%s7606_s13 + $0x60] sm:$0xff] }
 0x43e   : > { %6525 = vst.msk [vmem:[%s11238_s6 + $0x8] sm:$0xff] %vm319_vm0, %v6493_v9  ;;  %6526 = vst.msk [vmem:[%s11238_s6 + $0x10] sm:$0xff] %vm319_vm0, %v6494_v20  ;;  %v1695_v5 = vadd.f32 %v12038_v28, %v1512_v19  ;;  %v7040_v56 = vpop.eup %7039  ;;  %v6497_v21 = vmul.f32 %v7038_v45, %v6465_v10  ;;  %v1696_v44 = vadd.f32 %v12041_v41, %v1513_v50  ;;  %v6471_v9 = vld [vmem:[%s7606_s13 + $0x58] sm:$0xff] }
 0x43f   : > { %6527 = vst.msk [vmem:[%s11238_s6 + $0x18] sm:$0xff] %vm319_vm0, %v6495_v12  ;;  %v1697_v53 = vadd.f32 %v12044_v26, %v1514_v16  ;;  %v1698_v35 = vadd.f32 %v12047_v14, %v1515_v0  ;;  %v7042_v13 = vpop.eup %7041  ;;  %v6498_v22 = vmul.f32 %v7040_v56, %v6466_v34  ;;  %6528 = vst.msk [vmem:[%s11238_s6 + $0x20] sm:$0xff] %vm319_vm0, %v6496_v42 }
 0x440   : > { %v1699_v47 = vadd.f32 %v12050_v52, %v1516_v37  ;;  %v1700_v28 = vadd.f32 %v12053_v29, %v1517_v24  ;;  %v1701_v40 = vadd.f32 %v12056_v1, %v1518_v60  ;;  %v7044_v26 = vpop.eup %7043  ;;  %v6499_v14 = vmul.f32 %v7042_v13, %v6467_v25  ;;  %6529 = vst.msk [vmem:[%s11238_s6 + $0x28] sm:$0xff] %vm319_vm0, %v6497_v21  ;;  %v6478_v37 = vld [vmem:[%s7606_s13 + $0x90] sm:$0xff]  ;;  %v6480_v60 = vld [vmem:[%s7606_s13 + $0xa0] sm:$0xff]  ;;  %v14726_v13 = vld [vmem:[#allocation402_spill] sm:$0xff] }
 0x441   : > { %v1795_v32 = vadd.f32 %v12059_v17, %v1694_v27  ;;  %v1796_v52 = vadd.f32 %v12062_v36, %v1695_v5  ;;  %v1797_v29 = vadd.f32 %v12065_v59, %v1696_v44  ;;  %v7046_v1 = vpop.eup %7045  ;;  %v6500_v50 = vmul.f32 %v7044_v26, %v6468_v15  ;;  %6530 = vst.msk [vmem:[%s11238_s6 + $0x30] sm:$0xff] %vm319_vm0, %v6498_v22  ;;  %v14721_v24 = vld [vmem:[#allocation393_spill] sm:$0xff]  ;;  %v14723_v5 = vld [vmem:[#allocation395_spill] sm:$0xff]  ;;  %v14727_v22 = vld [vmem:[#allocation404_spill] sm:$0xff] }
 0x442   : > { %v1798_v16 = vadd.f32 %v12068_v23, %v1697_v53  ;;  %v1799_v17 = vadd.f32 %v12071_v7, %v1698_v35  ;;  %v1800_v36 = vadd.f32 %v12076_v39, %v1699_v47  ;;  %v7048_v59 = vpop.eup %7047  ;;  %6531 = vst.msk [vmem:[%s11238_s6 + $0x38] sm:$0xff] %vm319_vm0, %v6499_v14  ;;  %v1801_v10 = vadd.f32 %v12079_v8, %v1700_v28  ;;  %v6474_v23 = vld [vmem:[%s7606_s13 + $0x70] sm:$0xff]  ;;  %v6476_v8 = vld [vmem:[%s7606_s13 + $0x80] sm:$0xff]  ;;  %v14725_v53 = vld [vmem:[#allocation400_spill] sm:$0xff] }
 0x443   : > { %v12260_v41 = vld [vmem:[#allocation3 + $0x128] sm:$0xff]  ;;  %v1802_v20 = vadd.f32 %v12082_v62, %v1701_v40  ;;  %v1896_v46 = vadd.f32 %v12089_v54, %v1795_v32  ;;  %v7050_v51 = vpop.eup %7049  ;;  %v6502_v7 = vmul.f32 %v7048_v59, %v6470_v18  ;;  %6532 = vst.msk [vmem:[%s11238_s6 + $0x40] sm:$0xff] %vm319_vm0, %v6500_v50  ;;  %v1897_v39 = vadd.f32 %v12092_v6, %v1796_v52  ;;  %v3898_v26 = vld [vmem:[#allocation2 + $0xf1] sm:$0xff] }
 0x444   : > { %v12258_v33 = vld [vmem:[#allocation3 + $0x120] sm:$0xff]  ;;  %3160 = vst.msk [vmem:[#allocation3 + $0x128] sm:$0xff] %vm319_vm0, %v3128_v43  ;;  %v1898_v48 = vadd.f32 %v12105_v55, %v1797_v29  ;;  %v1899_v19 = vadd.f32 %v12108_v30, %v1798_v16  ;;  %v7052_v61 = vpop.eup %7051  ;;  %v6503_v34 = vmul.f32 %v7050_v51, %v6471_v9  ;;  %v1900_v62 = vadd.f32 %v12121_v11, %v1799_v17  ;;  %v14720_v55 = vld [vmem:[#allocation392_spill] sm:$0xff]  ;;  %v3899_v11 = vld [vmem:[#allocation2 + $0xf9] sm:$0x7f] }
 0x445   : > { %3159 = vst.msk [vmem:[#allocation3 + $0x120] sm:$0xff] %vm319_vm0, %v12073_v3  ;;  %v6501_v3 = vmul.f32 %v7046_v1, %v6469_v49  ;;  %v1901_v54 = vadd.f32 %v12124_v4, %v1800_v36  ;;  %v1902_v12 = vadd.f32 %v12127_v2, %v1801_v10  ;;  %v7054_v0 = vpop.eup %7053  ;;  %v6504_v6 = vmul.f32 %v7052_v61, %v6472_v63  ;;  %v14722_v2 = vld [vmem:[#allocation394_spill] sm:$0xff]  ;;  %v14729_v1 = vld [vmem:[#allocation327_spill] sm:$0xff]  ;;  %v14730_v16 = vld [vmem:[#allocation324_spill] sm:$0xff] }
 0x446   : > { %6534 = vst.msk [vmem:[%s11238_s6 + $0x50] sm:$0xff] %vm319_vm0, %v6502_v7  ;;  %v1903_v30 = vadd.f32 %v14720_v55, %v1802_v20  ;;  %v1971_v45 = vmul.f32 %v14721_v24, %v12209_v31  ;;  %v1972_v25 = vmul.f32 %v14721_v24, %v12211_v57  ;;  %v7056_v42 = vpop.eup %7055  ;;  %v6506_v4 = vmul.f32 %v7054_v0, %v6474_v23  ;;  %v14724_v43 = vld [vmem:[#allocation398_spill] sm:$0xff]  ;;  %v14731_v63 = vld [vmem:[#allocation120_spill] sm:$0xff]  ;;  %v14732_v10 = vld [vmem:[#allocation385_spill] sm:$0xff] }
 0x447   : > { %6533 = vst.msk [vmem:[%s11238_s6 + $0x48] sm:$0xff] %vm319_vm0, %v6501_v3  ;;  %6535 = vst.msk [vmem:[%s11238_s6 + $0x58] sm:$0xff] %vm319_vm0, %v6503_v34  ;;  %v1997_v27 = vadd.f32 %v14722_v2, %v1896_v46  ;;  %v1998_v56 = vadd.f32 %v14723_v5, %v1897_v39  ;;  %v1999_v15 = vadd.f32 %v14724_v43, %v1898_v48  ;;  %v7058_v21 = vpop.eup %7057  ;;  %v14728_v29 = vld [vmem:[#allocation130_spill] sm:$0xff]  ;;  %v14734_v23 = vld [vmem:[#allocation408_spill] sm:$0xff] }
 0x448   : > { %v6508_v44 = vmul.f32 %v7056_v42, %v6476_v8  ;;  %6536 = vst.msk [vmem:[%s11238_s6 + $0x60] sm:$0xff] %vm319_vm0, %v6504_v6  ;;  %v2000_v35 = vadd.f32 %v14725_v53, %v1899_v19  ;;  %v2001_v49 = vadd.f32 %v14726_v13, %v1900_v62  ;;  %v2002_v47 = vadd.f32 %v14727_v22, %v1901_v54  ;;  %v7060_v18 = vpop.eup %7059  ;;  %v14733_v46 = vld [vmem:[#allocation406_spill] sm:$0xff]  ;;  %v7231_v62 = vld [vmem:[#allocation9 + $0x29] ss:$0 sm:$0xff]  ;;  %v7232_v53 = vld [vmem:[#allocation9 + $0x31] ss:$0 sm:$0xff] }
 0x449   : > { %v6510_v14 = vmul.f32 %v7058_v21, %v6478_v37  ;;  %6538 = vst.msk [vmem:[%s11238_s6 + $0x70] sm:$0xff] %vm319_vm0, %v6506_v4  ;;  %v2003_v32 = vadd.f32 %v1971_v45, %v1902_v12  ;;  %v2004_v52 = vadd.f32 %v1972_v25, %v1903_v30  ;;  %v2068_v9 = vmul.f32 %v14729_v1, %v14728_v29  ;;  %v4686_v30 = vld [vmem:[#allocation2 + $0xfa] sm:$0x3f] }
 0x44a   : > { %v6512_v50 = vmul.f32 %v7060_v18, %v6480_v60  ;;  %6540 = vst.msk [vmem:[%s11238_s6 + $0x80] sm:$0xff] %vm319_vm0, %v6508_v44  ;;  %v2069_v17 = vmul.f32 %v14729_v1, %v14730_v16  ;;  %v2070_v36 = vmul.f32 %v14729_v1, %v12209_v31  ;;  %v2071_v59 = vmul.f32 %v14729_v1, %v12211_v57  ;;  %v14735_v24 = vld [vmem:[#allocation186_spill] sm:$0xff] }
 0x44b   : > { %v12316_v40 = vld [vmem:[#allocation3 + $0x128] sm:$0xff]  ;;  %6542 = vst.msk [vmem:[%s11238_s6 + $0x90] sm:$0xff] %vm319_vm0, %v6510_v14  ;;  %v2072_v3 = vmul.f32 %v14729_v1, %v14731_v63  ;;  %v2073_v20 = vmul.f32 %v14729_v1, %v14732_v10  ;;  %v2098_v51 = vadd.f32 %v14733_v46, %v1997_v27  ;;  %v2099_v7 = vadd.f32 %v14734_v23, %v1998_v56  ;;  %v14736_v25 = vld [vmem:[#allocation386_spill] sm:$0xff] }
 0x44c   : > { %v12314_v28 = vld [vmem:[#allocation3 + $0x120] sm:$0xff]  ;;  %3931 = vst.msk [vmem:[#allocation3 + $0x128] sm:$0x7f] %vm2341_vm5, %v3899_v11  ;;  %v2100_v39 = vadd.f32 %v2068_v9, %v1999_v15  ;;  %v2101_v48 = vadd.f32 %v2069_v17, %v2000_v35  ;;  %v2102_v19 = vadd.f32 %v2070_v36, %v2001_v49  ;;  %v2103_v61 = vadd.f32 %v2071_v59, %v2002_v47  ;;  %v4685_v15 = vld [vmem:[#allocation2 + $0xf2] sm:$0xff]  ;;  %v5461_v18 = vld [vmem:[#allocation2 + $0x9b] sm:$0x1f] }
 0x44d   : > { %3930 = vst.msk [vmem:[#allocation3 + $0x120] sm:$0xff] %vm319_vm0, %v3898_v26  ;;  %6544 = vst.msk [vmem:[%s11238_s6 + $0xa0] sm:$0xff] %vm319_vm0, %v6512_v50  ;;  %v2104_v8 = vadd.f32 %v2072_v3, %v2003_v32  ;;  %v2105_v34 = vadd.f32 %v2073_v20, %v2004_v52  ;;  %v2167_v54 = vmul.f32 %v7231_v62, %v14728_v29  ;;  %v5463_v14 = vld [vmem:[#allocation2 + $0xab] sm:$0x1f]  ;;  %v14739_v32 = vld [vmem:[#allocation57_spill] sm:$0xff] }
 0x44e   : > { %3947 = vst.msk [vmem:[#allocation3 + $0x12f] sm:$0x1] %vm2373_vm6, %v14633_v38  ;;  %v2168_v12 = vmul.f32 %v7231_v62, %v14730_v16  ;;  %v2169_v0 = vmul.f32 %v7231_v62, %v12209_v31  ;;  %v2170_v37 = vmul.f32 %v7231_v62, %v12211_v57  ;;  %v2171_v6 = vmul.f32 %v7231_v62, %v14731_v63  ;;  %v14740_v52 = vld [vmem:[#allocation387_spill] sm:$0xff]  ;;  %v12368_v50 = vld [vmem:[#allocation9 + $0x14] ss:$0 sm:$0xff]  ;;  %v14741_v16 = vld [vmem:[#allocation114_spill] sm:$0xff] }
 0x44f   : > { %v2172_v55 = vmul.f32 %v7231_v62, %v14732_v10  ;;  %v2173_v45 = vmul.f32 %v7231_v62, %v14735_v24  ;;  %v2174_v42 = vmul.f32 %v7231_v62, %v14736_v25  ;;  %v2199_v11 = vadd.f32 %v2167_v54, %v2098_v51  ;;  %v14742_v36 = vld [vmem:[#allocation330_spill] sm:$0xff]  ;;  %v14743_v3 = vld [vmem:[#allocation228_spill] sm:$0xff] }
 0x450   : > { %v2200_v60 = vadd.f32 %v2168_v12, %v2099_v7  ;;  %v2201_v4 = vadd.f32 %v2169_v0, %v2100_v39  ;;  %v2202_v2 = vadd.f32 %v2170_v37, %v2101_v48  ;;  %v2203_v27 = vadd.f32 %v2171_v6, %v2102_v19  ;;  %v12382_v46 = vld [vmem:[#allocation9 + $0x1c] ss:$0 sm:$0xff]  ;;  %v12388_v23 = vld [vmem:[#allocation3 + $0xc8] sm:$0xff] }
 0x451   : > { %v2204_v5 = vadd.f32 %v2172_v55, %v2103_v61  ;;  %v2205_v21 = vadd.f32 %v2173_v45, %v2104_v8  ;;  %v2206_v44 = vadd.f32 %v2174_v42, %v2105_v34  ;;  %v2268_v35 = vmul.f32 %v7232_v53, %v12209_v31  ;;  %v5465_v31 = vld [vmem:[#allocation2 + $0xbb] sm:$0x1f]  ;;  %14745 = vst [vmem:[#allocation359_spill] sm:$0xff] %v12388_v23  ;;  %v12392_v39 = vld [vmem:[#allocation3 + $0xe8] sm:$0xff]  ;;  %v12402_v8 = vld [vmem:[#allocation9 + $0x24] ss:$0 sm:$0xff] }
 0x452   : > { %v2269_v13 = vmul.f32 %v7232_v53, %v12211_v57  ;;  %v2270_v49 = vmul.f32 %v7232_v53, %v14731_v63  ;;  %v2271_v22 = vmul.f32 %v7232_v53, %v14732_v10  ;;  %v2272_v47 = vmul.f32 %v7232_v53, %v14735_v24  ;;  %v12390_v7 = vld [vmem:[#allocation3 + $0xd8] sm:$0xff]  ;;  %14747 = vst [vmem:[#allocation95_spill] sm:$0xff] %v12392_v39  ;;  %v5467_v48 = vld [vmem:[#allocation2 + $0xcb] sm:$0x1f] }
 0x453   : > { %v2273_v26 = vmul.f32 %v7232_v53, %v14736_v25  ;;  %v2274_v57 = vmul.f32 %v7232_v53, %v14739_v32  ;;  %v2275_v29 = vmul.f32 %v7232_v53, %v14740_v52  ;;  %v2300_v1 = vadd.f32 %v2268_v35, %v2199_v11  ;;  %14746 = vst [vmem:[#allocation170_spill] sm:$0xff] %v12390_v7  ;;  %v12408_v54 = vld [vmem:[#allocation3 + $0xf8] sm:$0xff]  ;;  %v14752_v45 = vld [vmem:[#allocation92_spill] sm:$0xff]  ;;  %v14753_v11 = vld [vmem:[#allocation415_spill] sm:$0xff] }
 0x454   : > { %v12352_v56 = vld [vmem:[#allocation3 + $0x120] sm:$0xff]  ;;  %v2301_v9 = vadd.f32 %v2269_v13, %v2200_v60  ;;  %v12372_v17 = vmul.f32 %v12368_v50, %v14741_v16  ;;  %v12376_v59 = vmul.f32 %v12368_v50, %v14742_v36  ;;  %v12380_v20 = vmul.f32 %v12368_v50, %v14743_v3  ;;  %14751 = vst [vmem:[#allocation390_spill] sm:$0xff] %v12408_v54  ;;  %v14755_v53 = vld [vmem:[#allocation416_spill] sm:$0xff]  ;;  %v5469_v52 = vld [vmem:[#allocation2 + $0xdb] sm:$0x1f] }
 0x455   : > { %14737 = vst [vmem:[#allocation89_spill] sm:$0xff] %v12352_v56  ;;  %v12354_v43 = vld [vmem:[#allocation3 + $0x128] sm:$0xff]  ;;  %4717 = vst.msk [vmem:[#allocation3 + $0x120] sm:$0xff] %vm319_vm0, %v4685_v15  ;;  %v12386_v51 = vmul.f32 %v12382_v46, %v14741_v16  ;;  %v12396_v19 = vmul.f32 %v12382_v46, %v14742_v36  ;;  %v12400_v61 = vmul.f32 %v12382_v46, %v14743_v3  ;;  %v14756_v13 = vld [vmem:[#allocation175_spill] sm:$0xff] }
 0x456   : > { %14738 = vst [vmem:[#allocation353_spill] sm:$0xff] %v12354_v43  ;;  %4718 = vst.msk [vmem:[#allocation3 + $0x128] sm:$0x3f] %vm1552_vm3, %v4686_v30  ;;  %v12406_v34 = vmul.f32 %v12402_v8, %v14742_v36  ;;  %v2302_v62 = vadd.f32 %v2270_v49, %v2201_v4  ;;  %v2303_v12 = vadd.f32 %v2271_v22, %v2202_v2  ;;  %v7236_v30 = vld [vmem:[#allocation9 + $0x2] ss:$0 sm:$0xff]  ;;  %v14754_v4 = vld [vmem:[#allocation134_spill] sm:$0xff] }
 0x457   : > { %4734 = vst.msk [vmem:[#allocation3 + $0x12e] sm:$0x3] %vm1584_vm4, %v14633_v38  ;;  %14744 = vst [vmem:[#allocation129_spill] sm:$0xff] %v12386_v51  ;;  %v2304_v0 = vadd.f32 %v2272_v47, %v2203_v27  ;;  %v2305_v37 = vadd.f32 %v2273_v26, %v2204_v5  ;;  %v2306_v6 = vadd.f32 %v2274_v57, %v2205_v21  ;;  %v14757_v27 = vld [vmem:[#allocation417_spill] sm:$0xff]  ;;  %v14758_v21 = vld [vmem:[#allocation234_spill] sm:$0xff] }
 0x458   : > { %14748 = vst [vmem:[#allocation229_spill] sm:$0xff] %v12396_v19  ;;  %14749 = vst [vmem:[#allocation372_spill] sm:$0xff] %v12400_v61  ;;  %v2307_v55 = vadd.f32 %v2275_v29, %v2206_v44  ;;  %v2451_v42 = vmul.f32 %v7236_v30, %v14752_v45  ;;  %v2452_v60 = vmul.f32 %v7236_v30, %v14753_v11  ;;  %v14759_v22 = vld [vmem:[#allocation418_spill] sm:$0xff]  ;;  %v7237_v16 = vld [vmem:[#allocation9 + $0xa] ss:$0 sm:$0xff] }
 0x459   : > { %14750 = vst [vmem:[#allocation275_spill] sm:$0xff] %v12406_v34  ;;  %5493 = vst.msk [vmem:[#allocation3 + $0xc8] sm:$0x1f] %vm752_vm2, %v5461_v18  ;;  %v2453_v15 = vmul.f32 %v7236_v30, %v14754_v4  ;;  %v2454_v35 = vmul.f32 %v7236_v30, %v14755_v53  ;;  %v2455_v2 = vmul.f32 %v7236_v30, %v14756_v13  ;;  %v12433_v54 = vld [vmem:[#allocation3 + $0x108] sm:$0xff]  ;;  %v7239_v61 = vld [vmem:[#allocation9 + $0x1a] ss:$0 sm:$0xff] }
 0x45a   : > { %5495 = vst.msk [vmem:[#allocation3 + $0xd8] sm:$0x1f] %vm752_vm2, %v5463_v14  ;;  %5497 = vst.msk [vmem:[#allocation3 + $0xe8] sm:$0x1f] %vm752_vm2, %v5465_v31  ;;  %v2456_v5 = vmul.f32 %v7236_v30, %v14757_v27  ;;  %v2457_v49 = vmul.f32 %v7236_v30, %v14758_v21  ;;  %v2458_v47 = vmul.f32 %v7236_v30, %v14759_v22  ;;  %v5472_v51 = vld [vmem:[#allocation2 + $0xf3] sm:$0xff] }
 0x45b   : > { %5515 = vst.msk [vmem:[#allocation3 + $0xcd] sm:$0x7] %vm784_vm1, %v14633_v38  ;;  %5516 = vst.msk [vmem:[#allocation3 + $0xdd] sm:$0x7] %vm784_vm1, %v14633_v38  ;;  %v2483_v26 = vadd.f32 %v2451_v42, %v2300_v1  ;;  %v2484_v18 = vadd.f32 %v2452_v60, %v2301_v9  ;;  %v2485_v44 = vadd.f32 %v2453_v15, %v2302_v62  ;;  %v7240_v56 = vld [vmem:[#allocation9 + $0x22] ss:$0 sm:$0xff] }
 0x45c   : > { %5517 = vst.msk [vmem:[#allocation3 + $0xed] sm:$0x7] %vm784_vm1, %v14633_v38  ;;  %5518 = vst.msk [vmem:[#allocation3 + $0xfd] sm:$0x7] %vm784_vm1, %v14633_v38  ;;  %v2486_v14 = vadd.f32 %v2454_v35, %v2303_v12  ;;  %v2487_v31 = vadd.f32 %v2455_v2, %v2304_v0  ;;  %v2488_v32 = vadd.f32 %v2456_v5, %v2305_v37  ;;  %v14761_v12 = vld [vmem:[#allocation104_spill] sm:$0xff]  ;;  %v14762_v37 = vld [vmem:[#allocation366_spill] sm:$0xff] }
 0x45d   : > { %5499 = vst.msk [vmem:[#allocation3 + $0xf8] sm:$0x1f] %vm752_vm2, %v5467_v48  ;;  %v2489_v57 = vadd.f32 %v2457_v49, %v2306_v6  ;;  %v2490_v29 = vadd.f32 %v2458_v47, %v2307_v55  ;;  %v2551_v36 = vmul.f32 %v7237_v16, %v14753_v11  ;;  %v2552_v48 = vmul.f32 %v7237_v16, %v14754_v4  ;;  %v14763_v55 = vld [vmem:[#allocation371_spill] sm:$0xff] }
 0x45e   : > { %v2553_v45 = vmul.f32 %v7237_v16, %v14755_v53  ;;  %14760 = vst [vmem:[#allocation121_spill] sm:$0xff] %v12433_v54  ;;  %v2554_v30 = vmul.f32 %v7237_v16, %v14756_v13  ;;  %v2555_v1 = vmul.f32 %v7237_v16, %v14757_v27  ;;  %v2556_v9 = vmul.f32 %v7237_v16, %v14758_v21  ;;  %v7238_v54 = vld [vmem:[#allocation9 + $0x12] ss:$0 sm:$0xff]  ;;  %v12475_v19 = vld [vmem:[#allocation3 + $0x128] sm:$0xff] }
 0x45f   : > { %v2557_v62 = vmul.f32 %v7237_v16, %v14759_v22  ;;  %5501 = vst.msk [vmem:[#allocation3 + $0x108] sm:$0x1f] %vm752_vm2, %v5469_v52  ;;  %v2558_v0 = vmul.f32 %v7237_v16, %v14761_v12  ;;  %v2559_v6 = vmul.f32 %v7237_v16, %v14762_v37  ;;  %v2583_v42 = vadd.f32 %v2551_v36, %v14763_v55  ;;  %v14766_v36 = vld [vmem:[#allocation332_spill] sm:$0xff] }
 0x460   : > { %5519 = vst.msk [vmem:[#allocation3 + $0x10d] sm:$0x7] %vm784_vm1, %v14633_v38  ;;  %v2584_v60 = vadd.f32 %v2552_v48, %v2483_v26  ;;  %v2585_v4 = vadd.f32 %v2553_v45, %v2484_v18  ;;  %v2586_v15 = vadd.f32 %v2554_v30, %v2485_v44  ;;  %v2587_v35 = vadd.f32 %v2555_v1, %v2486_v14  ;;  %v14764_v14 = vld [vmem:[#allocation64_spill] sm:$0xff] }
 0x461   : > { %v2588_v2 = vadd.f32 %v2556_v9, %v2487_v31  ;;  %v2589_v5 = vadd.f32 %v2557_v62, %v2488_v32  ;;  %v2590_v49 = vadd.f32 %v2558_v0, %v2489_v57  ;;  %v2591_v47 = vadd.f32 %v2559_v6, %v2490_v29  ;;  %v5471_v32 = vld [vmem:[#allocation2 + $0xeb] sm:$0x1f]  ;;  %v14765_v57 = vld [vmem:[#allocation119_spill] sm:$0xff]  ;;  %14770 = vst [vmem:[#allocation358_spill] sm:$0xff] %v12475_v19 }
 0x462   : > { %v2650_v52 = vmul.f32 %v7238_v54, %v14753_v11  ;;  %v2652_v39 = vmul.f32 %v7238_v54, %v14755_v53  ;;  %v2653_v7 = vmul.f32 %v7238_v54, %v14756_v13  ;;  %v2654_v23 = vmul.f32 %v7238_v54, %v14757_v27  ;;  %v12456_v13 = vld [vmem:[#allocation3 + $0x118] sm:$0xff]  ;;  %5521 = vst.msk [vmem:[#allocation3 + $0x12d] sm:$0x7] %vm784_vm1, %v14633_v38 }
 0x463   : > { %v2655_v16 = vmul.f32 %v7238_v54, %v14758_v21  ;;  %v2656_v26 = vmul.f32 %v7238_v54, %v14759_v22  ;;  %v2657_v18 = vmul.f32 %v7238_v54, %v14761_v12  ;;  %v2658_v44 = vmul.f32 %v7238_v54, %v14762_v37  ;;  %14767 = vst [vmem:[#allocation49_spill] sm:$0xff] %v12456_v13  ;;  %v12473_v13 = vld [vmem:[#allocation3 + $0x120] sm:$0xff] }
 0x464   : > { %v2659_v31 = vmul.f32 %v7238_v54, %v14764_v14  ;;  %v2660_v29 = vmul.f32 %v7238_v54, %v14765_v57  ;;  %v2682_v48 = vadd.f32 %v2650_v52, %v14766_v36  ;;  %v2684_v45 = vadd.f32 %v2652_v39, %v2583_v42  ;;  %5503 = vst.msk [vmem:[#allocation3 + $0x118] sm:$0x1f] %vm752_vm2, %v5471_v32 }
 0x465   : > { %v2685_v30 = vadd.f32 %v2653_v7, %v2584_v60  ;;  %v2686_v1 = vadd.f32 %v2654_v23, %v2585_v4  ;;  %v2687_v9 = vadd.f32 %v2655_v16, %v2586_v15  ;;  %v2688_v62 = vadd.f32 %v2656_v26, %v2587_v35  ;;  %5520 = vst.msk [vmem:[#allocation3 + $0x11d] sm:$0x7] %vm784_vm1, %v14633_v38  ;;  %v5473_v16 = vld [vmem:[#allocation2 + $0xfb] sm:$0x1f] }
 0x466   : > { %v2689_v0 = vadd.f32 %v2657_v18, %v2588_v2  ;;  %v2690_v6 = vadd.f32 %v2658_v44, %v2589_v5  ;;  %v2691_v55 = vadd.f32 %v2659_v31, %v2590_v49  ;;  %v2692_v34 = vadd.f32 %v2660_v29, %v2591_v47  ;;  %v14768_v49 = vld [vmem:[#allocation216_spill] sm:$0xff]  ;;  %14769 = vst [vmem:[#allocation71_spill] sm:$0xff] %v12473_v13 }
 0x467   : > { %v2749_v54 = vmul.f32 %v7239_v61, %v14753_v11  ;;  %v2751_v39 = vmul.f32 %v7239_v61, %v14755_v53  ;;  %v2753_v7 = vmul.f32 %v7239_v61, %v14757_v27  ;;  %v2754_v23 = vmul.f32 %v7239_v61, %v14758_v21  ;;  %5504 = vst.msk [vmem:[#allocation3 + $0x120] sm:$0xff] %vm319_vm0, %v5472_v51  ;;  %v7251_v13 = vld [vmem:[#allocation9 + $0xb] ss:$0 sm:$0xff] }
 0x468   : > { %v2755_v42 = vmul.f32 %v7239_v61, %v14759_v22  ;;  %v2756_v60 = vmul.f32 %v7239_v61, %v14761_v12  ;;  %v2757_v4 = vmul.f32 %v7239_v61, %v14762_v37  ;;  %v2760_v15 = vmul.f32 %v7239_v61, %v12258_v33  ;;  %5505 = vst.msk [vmem:[#allocation3 + $0x128] sm:$0x1f] %vm752_vm2, %v5473_v16 }
 0x469   : > { %v2761_v35 = vmul.f32 %v7239_v61, %v12260_v41  ;;  %v2758_v2 = vmul.f32 %v7239_v61, %v14764_v14  ;;  %v2759_v5 = vmul.f32 %v7239_v61, %v14765_v57  ;;  %v2781_v47 = vadd.f32 %v2749_v54, %v14768_v49  ;;  %v14771_v54 = vld [vmem:[#allocation335_spill] sm:$0xff]  ;;  %v7241_v49 = vld [vmem:[#allocation9 + $0x2a] ss:$0 sm:$0xff] }
 0x46a   : > { %v2783_v52 = vadd.f32 %v2751_v39, %v2682_v48  ;;  %v2785_v26 = vadd.f32 %v2753_v7, %v2684_v45  ;;  %v2786_v21 = vadd.f32 %v2754_v23, %v2685_v30  ;;  %v2792_v18 = vadd.f32 %v2760_v15, %v2691_v55 }
 0x46b   : > { %v2793_v44 = vadd.f32 %v2761_v35, %v2692_v34  ;;  %v2787_v31 = vadd.f32 %v2755_v42, %v2686_v1  ;;  %v2788_v32 = vadd.f32 %v2756_v60, %v2687_v9  ;;  %v2790_v29 = vadd.f32 %v2758_v2, %v2689_v0 }
 0x46c   : > { %v2791_v36 = vadd.f32 %v2759_v5, %v2690_v6  ;;  %v2789_v43 = vadd.f32 %v2757_v4, %v2688_v62  ;;  %v2848_v61 = vmul.f32 %v7240_v56, %v14753_v11  ;;  %v2850_v48 = vmul.f32 %v7240_v56, %v14755_v53 }
 0x46d   : > { %v2852_v45 = vmul.f32 %v7240_v56, %v14757_v27  ;;  %v2854_v34 = vmul.f32 %v7240_v56, %v14759_v22  ;;  %v2859_v30 = vmul.f32 %v7240_v56, %v12258_v33  ;;  %v2860_v1 = vmul.f32 %v7240_v56, %v12260_v41 }
 0x46e   : > { %v2861_v9 = vmul.f32 %v7240_v56, %v14731_v63  ;;  %v2855_v62 = vmul.f32 %v7240_v56, %v14761_v12  ;;  %v2856_v0 = vmul.f32 %v7240_v56, %v14762_v37  ;;  %v2857_v6 = vmul.f32 %v7240_v56, %v14764_v14 }
 0x46f   : > { %v2862_v51 = vmul.f32 %v7240_v56, %v14732_v10  ;;  %v2858_v55 = vmul.f32 %v7240_v56, %v14765_v57  ;;  %v2880_v38 = vadd.f32 %v2848_v61, %v14771_v54  ;;  %v2891_v39 = vadd.f32 %v2859_v30, %v2790_v29 }
 0x470   : > { %v2892_v7 = vadd.f32 %v2860_v1, %v2791_v36  ;;  %v2882_v23 = vadd.f32 %v2850_v48, %v2781_v47  ;;  %v2884_v42 = vadd.f32 %v2852_v45, %v2783_v52  ;;  %v2886_v60 = vadd.f32 %v2854_v34, %v2785_v26  ;;  %v14773_v45 = vld [vmem:[#allocation391_spill] sm:$0xff] }
 0x471   : > { %v2887_v4 = vadd.f32 %v2855_v62, %v2786_v21  ;;  %v2888_v15 = vadd.f32 %v2856_v0, %v2787_v31  ;;  %v2889_v35 = vadd.f32 %v2857_v6, %v2788_v32  ;;  %v2890_v2 = vadd.f32 %v2858_v55, %v2789_v43  ;;  %v7242_v6 = vld [vmem:[#allocation9 + $0x32] ss:$0 sm:$0xff] }
 0x472   : > { %v2893_v12 = vadd.f32 %v2861_v9, %v2792_v18  ;;  %v2894_v5 = vadd.f32 %v2862_v51, %v2793_v44  ;;  %v2947_v16 = vmul.f32 %v7241_v49, %v14753_v11  ;;  %v2949_v19 = vmul.f32 %v7241_v49, %v14755_v53 }
 0x473   : > { %v2951_v56 = vmul.f32 %v7241_v49, %v14757_v27  ;;  %v2953_v61 = vmul.f32 %v7241_v49, %v14759_v22  ;;  %v2955_v29 = vmul.f32 %v7241_v49, %v14762_v37  ;;  %v2958_v47 = vmul.f32 %v7241_v49, %v12258_v33 }
 0x474   : > { %v2959_v52 = vmul.f32 %v7241_v49, %v12260_v41  ;;  %v2960_v26 = vmul.f32 %v7241_v49, %v14731_v63  ;;  %v2961_v43 = vmul.f32 %v7241_v49, %v14732_v10  ;;  %v2962_v21 = vmul.f32 %v7241_v49, %v14735_v24 }
 0x475   : > { %v2963_v18 = vmul.f32 %v7241_v49, %v14736_v25  ;;  %v2956_v44 = vmul.f32 %v7241_v49, %v14764_v14  ;;  %v2957_v31 = vmul.f32 %v7241_v49, %v14765_v57  ;;  %v2990_v32 = vadd.f32 %v2958_v47, %v2889_v35 }
 0x476   : > { %v2991_v36 = vadd.f32 %v2959_v52, %v2890_v2  ;;  %v12509_v48 = vmul.f32 %v12402_v8, %v14743_v3  ;;  %v2979_v34 = vadd.f32 %v2947_v16, %v14773_v45  ;;  %v2981_v30 = vadd.f32 %v2949_v19, %v2880_v38  ;;  %v7246_v2 = vld [vmem:[#allocation3 + $0x148] sm:$0xff]  ;;  %v7250_v45 = vld [vmem:[#allocation9 + $0x3] ss:$0 sm:$0xff] }
 0x477   : > { %v2983_v63 = vadd.f32 %v2951_v56, %v2882_v23  ;;  %v2985_v1 = vadd.f32 %v2953_v61, %v2884_v42  ;;  %v2987_v10 = vadd.f32 %v2955_v29, %v2886_v60  ;;  %v2988_v9 = vadd.f32 %v2956_v44, %v2887_v4  ;;  %v7243_v42 = vld [vmem:[#allocation3 + $0x130] sm:$0xff]  ;;  %v7245_v4 = vld [vmem:[#allocation3 + $0x140] sm:$0xff]  ;;  %v12520_v16 = vld [vmem:[#allocation9 + $0x2c] ss:$0 sm:$0xff] }
 0x478   : > { %14772 = vst [vmem:[#allocation364_spill] sm:$0xff] %v12509_v48  ;;  %v2989_v24 = vadd.f32 %v2957_v31, %v2888_v15  ;;  %v2992_v62 = vadd.f32 %v2960_v26, %v2891_v39  ;;  %v2993_v25 = vadd.f32 %v2961_v43, %v2892_v7  ;;  %v2994_v0 = vadd.f32 %v2962_v21, %v2893_v12  ;;  %v7244_v7 = vld [vmem:[#allocation3 + $0x138] sm:$0xff]  ;;  %v7247_v12 = vld [vmem:[#allocation3 + $0x150] sm:$0xff] }
 0x479   : > { %v2995_v14 = vadd.f32 %v2963_v18, %v2894_v5  ;;  %v3046_v51 = vmul.f32 %v7242_v6, %v14753_v11  ;;  %v3048_v55 = vmul.f32 %v7242_v6, %v14755_v53  ;;  %v3050_v54 = vmul.f32 %v7242_v6, %v14757_v27  ;;  %v7248_v5 = vld [vmem:[#allocation3 + $0x158] sm:$0xff]  ;;  %14774 = vst [vmem:[#allocation356_spill] sm:$0xff] %v12520_v16 }
 0x47a   : > { %v3052_v35 = vmul.f32 %v7242_v6, %v14759_v22  ;;  %v3054_v19 = vmul.f32 %v7242_v6, %v14762_v37  ;;  %v3057_v38 = vmul.f32 %v7242_v6, %v12258_v33  ;;  %v3058_v23 = vmul.f32 %v7242_v6, %v12260_v41  ;;  %v14776_v41 = vld [vmem:[#allocation76_spill] sm:$0xff]  ;;  %v12621_v48 = vld [vmem:[#allocation3 + $0x158] sm:$0xff] }
 0x47b   : > { %v3059_v39 = vmul.f32 %v7243_v42, %v7242_v6  ;;  %v3060_v60 = vmul.f32 %v7244_v7, %v7242_v6  ;;  %v3061_v15 = vmul.f32 %v7245_v4, %v7242_v6  ;;  %v3062_v11 = vmul.f32 %v7246_v2, %v7242_v6  ;;  %v14780_v42 = vld [vmem:[#allocation419_spill] sm:$0xff]  ;;  %v14789_v7 = vld [vmem:[#allocation282_spill] sm:$0xff] }
 0x47c   : > { %v3063_v53 = vmul.f32 %v7247_v12, %v7242_v6  ;;  %v3056_v27 = vmul.f32 %v7242_v6, %v14765_v57  ;;  %v3064_v22 = vmul.f32 %v7248_v5, %v7242_v6  ;;  %v3089_v49 = vadd.f32 %v3057_v38, %v2988_v9  ;;  %v14777_v9 = vld [vmem:[#allocation105_spill] sm:$0xff]  ;;  %v14790_v4 = vld [vmem:[#allocation46_spill] sm:$0xff] }
 0x47d   : > { %v3090_v37 = vadd.f32 %v3058_v23, %v2989_v24  ;;  %v12524_v33 = vmul.f32 %v12520_v16, %v14743_v3  ;;  %v3078_v56 = vadd.f32 %v3046_v51, %v14776_v41  ;;  %v3080_v61 = vadd.f32 %v3048_v55, %v2979_v34  ;;  %v14778_v6 = vld [vmem:[#allocation185_spill] sm:$0xff]  ;;  %v14781_v34 = vld [vmem:[#allocation164_spill] sm:$0xff] }
 0x47e   : > { %v3082_v29 = vadd.f32 %v3050_v54, %v2981_v30  ;;  %v3084_v47 = vadd.f32 %v3052_v35, %v2983_v63  ;;  %v3086_v52 = vadd.f32 %v3054_v19, %v2985_v1  ;;  %v3088_v26 = vadd.f32 %v3056_v27, %v2987_v10  ;;  %v14779_v3 = vld [vmem:[#allocation125_spill] sm:$0xff]  ;;  %v14782_v63 = vld [vmem:[#allocation420_spill] sm:$0xff]  ;;  %v14788_v19 = vld [vmem:[#allocation111_spill] sm:$0xff] }
 0x47f   : > { %14775 = vst [vmem:[#allocation316_spill] sm:$0xff] %v12524_v33  ;;  %v3091_v43 = vadd.f32 %v3059_v39, %v2990_v32  ;;  %v3092_v21 = vadd.f32 %v3060_v60, %v2991_v36  ;;  %v3093_v57 = vadd.f32 %v3061_v15, %v2992_v62  ;;  %v3094_v18 = vadd.f32 %v3062_v11, %v2993_v25  ;;  %v14783_v10 = vld [vmem:[#allocation212_spill] sm:$0xff]  ;;  %v14784_v36 = vld [vmem:[#allocation323_spill] sm:$0xff]  ;;  %v7253_v33 = vld [vmem:[#allocation9 + $0x1b] ss:$0 sm:$0xff] }
 0x480   : > { %v3095_v44 = vadd.f32 %v3063_v53, %v2994_v0  ;;  %v3096_v31 = vadd.f32 %v3064_v22, %v2995_v14  ;;  %v3219_v24 = vmul.f32 %v7250_v45, %v14777_v9  ;;  %v3221_v38 = vmul.f32 %v7250_v45, %v14778_v6  ;;  %v14785_v25 = vld [vmem:[#allocation263_spill] sm:$0xff]  ;;  %v14786_v14 = vld [vmem:[#allocation384_spill] sm:$0xff] }
 0x481   : > { %v3222_v23 = vmul.f32 %v7250_v45, %v14779_v3  ;;  %v3223_v51 = vmul.f32 %v7250_v45, %v14780_v42  ;;  %v3224_v30 = vmul.f32 %v7250_v45, %v14781_v34  ;;  %v3225_v1 = vmul.f32 %v7250_v45, %v14782_v63  ;;  %v14787_v54 = vld [vmem:[#allocation340_spill] sm:$0xff] }
 0x482   : > { %v3226_v32 = vmul.f32 %v7250_v45, %v14783_v10  ;;  %v3227_v62 = vmul.f32 %v7250_v45, %v14784_v36  ;;  %v3228_v0 = vmul.f32 %v7250_v45, %v14785_v25  ;;  %v3229_v55 = vmul.f32 %v7250_v45, %v14786_v14  ;;  %v12603_v16 = vld [vmem:[#allocation3 + $0x148] sm:$0xff] }
 0x483   : > { %v3243_v35 = vadd.f32 %v14787_v54, %v3078_v56  ;;  %v3245_v39 = vadd.f32 %v14788_v19, %v3080_v61  ;;  %v3247_v60 = vadd.f32 %v14789_v7, %v3082_v29  ;;  %v3249_v15 = vadd.f32 %v14790_v4, %v3084_v47  ;;  %v7252_v4 = vld [vmem:[#allocation9 + $0x13] ss:$0 sm:$0xff] }
 0x484   : > { %v3251_v2 = vadd.f32 %v3219_v24, %v3086_v52  ;;  %v3253_v11 = vadd.f32 %v3221_v38, %v3088_v26  ;;  %v3254_v12 = vadd.f32 %v3222_v23, %v3089_v49  ;;  %v3255_v53 = vadd.f32 %v3223_v51, %v3090_v37  ;;  %v14791_v26 = vld [vmem:[#allocation300_spill] sm:$0xff]  ;;  %v14796_v23 = vld [vmem:[#allocation379_spill] sm:$0xff] }
 0x485   : > { %v3256_v27 = vadd.f32 %v3224_v30, %v3091_v43  ;;  %v3257_v5 = vadd.f32 %v3225_v1, %v3092_v21  ;;  %v3258_v22 = vadd.f32 %v3226_v32, %v3093_v57  ;;  %v3259_v41 = vadd.f32 %v3227_v62, %v3094_v18  ;;  %v14792_v21 = vld [vmem:[#allocation421_spill] sm:$0xff]  ;;  %v14793_v18 = vld [vmem:[#allocation342_spill] sm:$0xff] }
 0x486   : > { %v3260_v9 = vadd.f32 %v3228_v0, %v3095_v44  ;;  %v3261_v3 = vadd.f32 %v3229_v55, %v3096_v31  ;;  %v3320_v45 = vmul.f32 %v7251_v13, %v14778_v6  ;;  %v3322_v56 = vmul.f32 %v7251_v13, %v14780_v42  ;;  %v14794_v31 = vld [vmem:[#allocation344_spill] sm:$0xff]  ;;  %v14795_v6 = vld [vmem:[#allocation346_spill] sm:$0xff] }
 0x487   : > { %v3323_v61 = vmul.f32 %v7251_v13, %v14781_v34  ;;  %v3324_v29 = vmul.f32 %v7251_v13, %v14782_v63  ;;  %v3325_v47 = vmul.f32 %v7251_v13, %v14783_v10  ;;  %v3326_v49 = vmul.f32 %v7251_v13, %v14784_v36 }
 0x488   : > { %v3327_v37 = vmul.f32 %v7251_v13, %v14785_v25  ;;  %v3328_v52 = vmul.f32 %v7251_v13, %v14786_v14  ;;  %v3329_v43 = vmul.f32 %v7251_v13, %v14791_v26  ;;  %v3330_v57 = vmul.f32 %v7251_v13, %v14792_v21 }
 0x489   : > { %v3344_v44 = vadd.f32 %v14793_v18, %v3243_v35  ;;  %v3346_v24 = vadd.f32 %v14794_v31, %v3245_v39  ;;  %v3348_v38 = vadd.f32 %v14795_v6, %v3247_v60  ;;  %v3350_v51 = vadd.f32 %v14796_v23, %v3249_v15 }
 0x48a   : > { %v3352_v34 = vadd.f32 %v3320_v45, %v3251_v2  ;;  %v3354_v30 = vadd.f32 %v3322_v56, %v3253_v11  ;;  %v3355_v1 = vadd.f32 %v3323_v61, %v3254_v12  ;;  %v3356_v32 = vadd.f32 %v3324_v29, %v3255_v53  ;;  %v14797_v53 = vld [vmem:[#allocation63_spill] sm:$0xff]  ;;  %v14801_v56 = vld [vmem:[#allocation118_spill] sm:$0xff]  ;;  %v14802_v61 = vld [vmem:[#allocation380_spill] sm:$0xff] }
 0x48b   : > { %v3357_v62 = vadd.f32 %v3325_v47, %v3256_v27  ;;  %v3358_v0 = vadd.f32 %v3326_v49, %v3257_v5  ;;  %v3359_v55 = vadd.f32 %v3327_v37, %v3258_v22  ;;  %v3360_v54 = vadd.f32 %v3328_v52, %v3259_v41  ;;  %v14798_v5 = vld [vmem:[#allocation321_spill] sm:$0xff]  ;;  %v14799_v41 = vld [vmem:[#allocation62_spill] sm:$0xff] }
 0x48c   : > { %v3361_v19 = vadd.f32 %v3329_v43, %v3260_v9  ;;  %v3362_v7 = vadd.f32 %v3330_v57, %v3261_v3  ;;  %v3421_v13 = vmul.f32 %v7252_v4, %v14780_v42  ;;  %v3423_v35 = vmul.f32 %v7252_v4, %v14782_v63  ;;  %v14800_v3 = vld [vmem:[#allocation77_spill] sm:$0xff] }
 0x48d   : > { %v3424_v39 = vmul.f32 %v7252_v4, %v14783_v10  ;;  %v3425_v60 = vmul.f32 %v7252_v4, %v14784_v36  ;;  %v3426_v15 = vmul.f32 %v7252_v4, %v14785_v25  ;;  %v3427_v2 = vmul.f32 %v7252_v4, %v14786_v14 }
 0x48e   : > { %v3428_v11 = vmul.f32 %v7252_v4, %v14791_v26  ;;  %v3429_v12 = vmul.f32 %v7252_v4, %v14792_v21  ;;  %v3430_v27 = vmul.f32 %v7252_v4, %v14797_v53  ;;  %v3431_v22 = vmul.f32 %v7252_v4, %v14798_v5 }
 0x48f   : > { %v3445_v9 = vadd.f32 %v14799_v41, %v3344_v44  ;;  %v3447_v45 = vadd.f32 %v14800_v3, %v3346_v24  ;;  %v3449_v10 = vadd.f32 %v14801_v56, %v3348_v38  ;;  %v3451_v29 = vadd.f32 %v14802_v61, %v3350_v51  ;;  %v12583_v41 = vld [vmem:[#allocation3 + $0x130] sm:$0xff]  ;;  %v12585_v3 = vld [vmem:[#allocation3 + $0x138] sm:$0xff] }
 0x490   : > { %v3453_v47 = vadd.f32 %v3421_v13, %v3352_v34  ;;  %v3455_v49 = vadd.f32 %v3423_v35, %v3354_v30  ;;  %v3456_v37 = vadd.f32 %v3424_v39, %v3355_v1  ;;  %v3457_v52 = vadd.f32 %v3425_v60, %v3356_v32  ;;  %v14805_v13 = vld [vmem:[#allocation357_spill] sm:$0xff] }
 0x491   : > { %v3458_v43 = vadd.f32 %v3426_v15, %v3357_v62  ;;  %v3459_v57 = vadd.f32 %v3427_v2, %v3358_v0  ;;  %v3460_v18 = vadd.f32 %v3428_v11, %v3359_v55  ;;  %v3461_v31 = vadd.f32 %v3429_v12, %v3360_v54  ;;  %v14803_v55 = vld [vmem:[#allocation285_spill] sm:$0xff] }
 0x492   : > { %v3462_v6 = vadd.f32 %v3430_v27, %v3361_v19  ;;  %v3463_v23 = vadd.f32 %v3431_v22, %v3362_v7  ;;  %v3520_v4 = vmul.f32 %v7253_v33, %v14780_v42  ;;  %v3522_v44 = vmul.f32 %v7253_v33, %v14782_v63  ;;  %v14804_v19 = vld [vmem:[#allocation90_spill] sm:$0xff] }
 0x493   : > { %v3524_v24 = vmul.f32 %v7253_v33, %v14784_v36  ;;  %v3525_v38 = vmul.f32 %v7253_v33, %v14785_v25  ;;  %v3526_v51 = vmul.f32 %v7253_v33, %v14786_v14  ;;  %v3527_v34 = vmul.f32 %v7253_v33, %v14791_v26 }
 0x494   : > { %v3528_v30 = vmul.f32 %v7253_v33, %v14792_v21  ;;  %v3529_v1 = vmul.f32 %v7253_v33, %v14797_v53  ;;  %v3530_v32 = vmul.f32 %v7253_v33, %v14798_v5  ;;  %v3531_v62 = vmul.f32 %v7253_v33, %v12314_v28 }
 0x495   : > { %v3532_v0 = vmul.f32 %v7253_v33, %v12316_v40  ;;  %v3546_v54 = vadd.f32 %v14803_v55, %v3445_v9  ;;  %v3548_v7 = vadd.f32 %v14804_v19, %v3447_v45  ;;  %v3550_v25 = vadd.f32 %v14805_v13, %v3449_v10  ;;  %v7254_v9 = vld [vmem:[#allocation9 + $0x23] ss:$0 sm:$0xff] }
 0x496   : > { %v3552_v35 = vadd.f32 %v3520_v4, %v3451_v29  ;;  %v3554_v39 = vadd.f32 %v3522_v44, %v3453_v47  ;;  %v3556_v60 = vadd.f32 %v3524_v24, %v3455_v49  ;;  %v3557_v15 = vadd.f32 %v3525_v38, %v3456_v37  ;;  %v14807_v4 = vld [vmem:[#allocation399_spill] sm:$0xff] }
 0x497   : > { %v3558_v2 = vadd.f32 %v3526_v51, %v3457_v52  ;;  %v3559_v11 = vadd.f32 %v3527_v34, %v3458_v43  ;;  %v3560_v12 = vadd.f32 %v3528_v30, %v3459_v57  ;;  %v3561_v27 = vadd.f32 %v3529_v1, %v3460_v18  ;;  %v12601_v13 = vld [vmem:[#allocation3 + $0x140] sm:$0xff] }
 0x498   : > { %v3562_v22 = vadd.f32 %v3530_v32, %v3461_v31  ;;  %v3563_v33 = vadd.f32 %v3531_v62, %v3462_v6  ;;  %v3564_v56 = vadd.f32 %v3532_v0, %v3463_v23  ;;  %v3619_v45 = vmul.f32 %v7254_v9, %v14780_v42  ;;  %v14806_v6 = vld [vmem:[#allocation397_spill] sm:$0xff] }
 0x499   : > { %v3621_v10 = vmul.f32 %v7254_v9, %v14782_v63  ;;  %v3623_v61 = vmul.f32 %v7254_v9, %v14784_v36  ;;  %v3625_v29 = vmul.f32 %v7254_v9, %v14786_v14  ;;  %v3626_v47 = vmul.f32 %v7254_v9, %v14791_v26 }
 0x49a   : > { %v3627_v49 = vmul.f32 %v7254_v9, %v14792_v21  ;;  %v3628_v37 = vmul.f32 %v7254_v9, %v14797_v53  ;;  %v3629_v52 = vmul.f32 %v7254_v9, %v14798_v5  ;;  %v3632_v43 = vmul.f32 %v7254_v9, %v12583_v41 }
 0x49b   : > { %v3633_v57 = vmul.f32 %v7254_v9, %v12585_v3  ;;  %v3630_v18 = vmul.f32 %v7254_v9, %v12314_v28  ;;  %v3631_v31 = vmul.f32 %v7254_v9, %v12316_v40  ;;  %v3647_v23 = vadd.f32 %v14806_v6, %v3546_v54  ;;  %v7255_v9 = vld [vmem:[#allocation9 + $0x2b] ss:$0 sm:$0xff] }
 0x49c   : > { %v3649_v44 = vadd.f32 %v14807_v4, %v3548_v7  ;;  %v3651_v24 = vadd.f32 %v3619_v45, %v3550_v25  ;;  %v3653_v26 = vadd.f32 %v3621_v10, %v3552_v35  ;;  %v3655_v38 = vadd.f32 %v3623_v61, %v3554_v39  ;;  %v12619_v4 = vld [vmem:[#allocation3 + $0x150] sm:$0xff] }
 0x49d   : > { %v3657_v51 = vadd.f32 %v3625_v29, %v3556_v60  ;;  %v3658_v34 = vadd.f32 %v3626_v47, %v3557_v15  ;;  %v3659_v30 = vadd.f32 %v3627_v49, %v3558_v2  ;;  %v3660_v1 = vadd.f32 %v3628_v37, %v3559_v11 }
 0x49e   : > { %v3661_v32 = vadd.f32 %v3629_v52, %v3560_v12  ;;  %v3662_v62 = vadd.f32 %v3630_v18, %v3561_v27  ;;  %v3663_v0 = vadd.f32 %v3631_v31, %v3562_v22  ;;  %v3664_v55 = vadd.f32 %v3632_v43, %v3563_v33 }
 0x49f   : > { %v3665_v19 = vadd.f32 %v3633_v57, %v3564_v56  ;;  %v3718_v54 = vmul.f32 %v7255_v9, %v14780_v42  ;;  %v3720_v7 = vmul.f32 %v7255_v9, %v14782_v63  ;;  %v3722_v25 = vmul.f32 %v7255_v9, %v14784_v36  ;;  %v14808_v56 = vld [vmem:[#allocation360_spill] sm:$0xff] }
 0x4a0   : > { %v3724_v35 = vmul.f32 %v7255_v9, %v14786_v14  ;;  %v3726_v39 = vmul.f32 %v7255_v9, %v14792_v21  ;;  %v3727_v60 = vmul.f32 %v7255_v9, %v14797_v53  ;;  %v3728_v15 = vmul.f32 %v7255_v9, %v14798_v5 }
 0x4a1   : > { %v3731_v2 = vmul.f32 %v7255_v9, %v12583_v41  ;;  %v3729_v11 = vmul.f32 %v7255_v9, %v12314_v28  ;;  %v3732_v12 = vmul.f32 %v7255_v9, %v12585_v3  ;;  %v3733_v27 = vmul.f32 %v7255_v9, %v12601_v13 }
 0x4a2   : > { %v3734_v22 = vmul.f32 %v7255_v9, %v12603_v16  ;;  %v3730_v33 = vmul.f32 %v7255_v9, %v12316_v40  ;;  %v3748_v45 = vadd.f32 %v14808_v56, %v3647_v23  ;;  %v3750_v10 = vadd.f32 %v3718_v54, %v3649_v44  ;;  %v7256_v9 = vld [vmem:[#allocation9 + $0x33] ss:$0 sm:$0xff]  ;;  %v14812_v56 = vld [vmem:[#allocation174_spill] sm:$0xff] }
 0x4a3   : > { %v3752_v61 = vadd.f32 %v3720_v7, %v3651_v24  ;;  %v3754_v29 = vadd.f32 %v3722_v25, %v3653_v26  ;;  %v3756_v53 = vadd.f32 %v3724_v35, %v3655_v38  ;;  %v3758_v47 = vadd.f32 %v3726_v39, %v3657_v51 }
 0x4a4   : > { %v3759_v49 = vadd.f32 %v3727_v60, %v3658_v34  ;;  %v3760_v37 = vadd.f32 %v3728_v15, %v3659_v30  ;;  %v3761_v52 = vadd.f32 %v3729_v11, %v3660_v1  ;;  %v3762_v43 = vadd.f32 %v3730_v33, %v3661_v32  ;;  %v14809_v11 = vld [vmem:[#allocation153_spill] sm:$0xff] }
 0x4a5   : > { %v3763_v57 = vadd.f32 %v3731_v2, %v3662_v62  ;;  %v3764_v18 = vadd.f32 %v3732_v12, %v3663_v0  ;;  %v3765_v31 = vadd.f32 %v3733_v27, %v3664_v55  ;;  %v3766_v6 = vadd.f32 %v3734_v22, %v3665_v19  ;;  %v7257_v2 = vld [vmem:[#allocation9 + $0x4] ss:$0 sm:$0xff]  ;;  %v14810_v27 = vld [vmem:[#allocation138_spill] sm:$0xff] }
 0x4a6   : > { %v3817_v23 = vmul.f32 %v7256_v9, %v14780_v42  ;;  %v3819_v44 = vmul.f32 %v7256_v9, %v14782_v63  ;;  %v3821_v24 = vmul.f32 %v7256_v9, %v14784_v36  ;;  %v3823_v26 = vmul.f32 %v7256_v9, %v14786_v14 }
 0x4a7   : > { %v3825_v38 = vmul.f32 %v7256_v9, %v14792_v21  ;;  %v3827_v51 = vmul.f32 %v7256_v9, %v14798_v5  ;;  %v3830_v34 = vmul.f32 %v7256_v9, %v12583_v41  ;;  %v3831_v30 = vmul.f32 %v7256_v9, %v12585_v3 }
 0x4a8   : > { %v3832_v1 = vmul.f32 %v7256_v9, %v12601_v13  ;;  %v3828_v32 = vmul.f32 %v7256_v9, %v12314_v28  ;;  %v3833_v42 = vmul.f32 %v7256_v9, %v12603_v16  ;;  %v3834_v63 = vmul.f32 %v7256_v9, %v12619_v4 }
 0x4a9   : > { %v3835_v36 = vmul.f32 %v7256_v9, %v12621_v48  ;;  %v3829_v14 = vmul.f32 %v7256_v9, %v12316_v40  ;;  %v3849_v62 = vadd.f32 %v3817_v23, %v3748_v45  ;;  %v3851_v21 = vadd.f32 %v3819_v44, %v3750_v10  ;;  %v14811_v40 = vld [vmem:[#allocation202_spill] sm:$0xff]  ;;  %v14813_v10 = vld [vmem:[#allocation31_spill] sm:$0xff]  ;;  %v14820_v23 = vld [vmem:[#allocation381_spill] sm:$0xff] }
 0x4aa   : > { %v3853_v0 = vadd.f32 %v3821_v24, %v3752_v61  ;;  %v3855_v5 = vadd.f32 %v3823_v26, %v3754_v29  ;;  %v3857_v55 = vadd.f32 %v3825_v38, %v3756_v53  ;;  %v3859_v19 = vadd.f32 %v3827_v51, %v3758_v47  ;;  %v14814_v29 = vld [vmem:[#allocation388_spill] sm:$0xff]  ;;  %v14815_v47 = vld [vmem:[#allocation102_spill] sm:$0xff]  ;;  %v14821_v24 = vld [vmem:[#allocation407_spill] sm:$0xff] }
 0x4ab   : > { %v3860_v54 = vadd.f32 %v3828_v32, %v3759_v49  ;;  %v3861_v7 = vadd.f32 %v3829_v14, %v3760_v37  ;;  %v3862_v25 = vadd.f32 %v3830_v34, %v3761_v52  ;;  %v3863_v35 = vadd.f32 %v3831_v30, %v3762_v43  ;;  %v14816_v37 = vld [vmem:[#allocation149_spill] sm:$0xff] }
 0x4ac   : > { %v3864_v39 = vadd.f32 %v3832_v1, %v3763_v57  ;;  %v3865_v28 = vadd.f32 %v3833_v42, %v3764_v18  ;;  %v3866_v60 = vadd.f32 %v3834_v63, %v3765_v31  ;;  %v3867_v15 = vadd.f32 %v3835_v36, %v3766_v6  ;;  %v14817_v43 = vld [vmem:[#allocation401_spill] sm:$0xff]  ;;  %v14818_v18 = vld [vmem:[#allocation403_spill] sm:$0xff] }
 0x4ad   : > { %v4009_v12 = vmul.f32 %v7257_v2, %v14809_v11  ;;  %v4010_v22 = vmul.f32 %v7257_v2, %v14810_v27  ;;  %v4011_v33 = vmul.f32 %v7257_v2, %v14811_v40  ;;  %v4012_v45 = vmul.f32 %v7257_v2, %v14812_v56  ;;  %v14819_v6 = vld [vmem:[#allocation405_spill] sm:$0xff] }
 0x4ae   : > { %v4013_v61 = vmul.f32 %v7257_v2, %v14813_v10  ;;  %v4014_v53 = vmul.f32 %v7257_v2, %v14814_v29  ;;  %v4015_v49 = vmul.f32 %v7257_v2, %v14815_v47  ;;  %v4016_v52 = vmul.f32 %v7257_v2, %v14816_v37  ;;  %v14822_v38 = vld [vmem:[#allocation409_spill] sm:$0xff]  ;;  %v7258_v2 = vld [vmem:[#allocation9 + $0xc] ss:$0 sm:$0xff] }
 0x4af   : > { %v4030_v57 = vadd.f32 %v14817_v43, %v3849_v62  ;;  %v4032_v31 = vadd.f32 %v14818_v18, %v3851_v21  ;;  %v4034_v9 = vadd.f32 %v14819_v6, %v3853_v0  ;;  %v4036_v44 = vadd.f32 %v14820_v23, %v3855_v5 }
 0x4b0   : > { %v4038_v26 = vadd.f32 %v14821_v24, %v3857_v55  ;;  %v4040_v51 = vadd.f32 %v14822_v38, %v3859_v19  ;;  %v4041_v34 = vadd.f32 %v4009_v12, %v3860_v54  ;;  %v4042_v30 = vadd.f32 %v4010_v22, %v3861_v7  ;;  %v14823_v7 = vld [vmem:[#allocation40_spill] sm:$0xff]  ;;  %v14827_v12 = vld [vmem:[#allocation411_spill] sm:$0xff] }
 0x4b1   : > { %v4043_v1 = vadd.f32 %v4011_v33, %v3862_v25  ;;  %v4044_v32 = vadd.f32 %v4012_v45, %v3863_v35  ;;  %v4045_v42 = vadd.f32 %v4013_v61, %v3864_v39  ;;  %v4046_v63 = vadd.f32 %v4014_v53, %v3865_v28  ;;  %v14824_v35 = vld [vmem:[#allocation396_spill] sm:$0xff]  ;;  %v14825_v28 = vld [vmem:[#allocation410_spill] sm:$0xff]  ;;  %v14829_v45 = vld [vmem:[#allocation413_spill] sm:$0xff] }
 0x4b2   : > { %v4047_v36 = vadd.f32 %v4015_v49, %v3866_v60  ;;  %v4048_v14 = vadd.f32 %v4016_v52, %v3867_v15  ;;  %v4109_v62 = vmul.f32 %v7258_v2, %v14810_v27  ;;  %v4110_v21 = vmul.f32 %v7258_v2, %v14811_v40  ;;  %v14826_v15 = vld [vmem:[#allocation382_spill] sm:$0xff]  ;;  %v14828_v40 = vld [vmem:[#allocation412_spill] sm:$0xff] }
 0x4b3   : > { %v4111_v0 = vmul.f32 %v7258_v2, %v14812_v56  ;;  %v4112_v5 = vmul.f32 %v7258_v2, %v14813_v10  ;;  %v4113_v55 = vmul.f32 %v7258_v2, %v14814_v29  ;;  %v4114_v19 = vmul.f32 %v7258_v2, %v14815_v47 }
 0x4b4   : > { %v4115_v54 = vmul.f32 %v7258_v2, %v14816_v37  ;;  %v4116_v25 = vmul.f32 %v7258_v2, %v14823_v7  ;;  %v4117_v39 = vmul.f32 %v7258_v2, %v14824_v35  ;;  %v4131_v60 = vadd.f32 %v14825_v28, %v4030_v57 }
 0x4b5   : > { %v4133_v11 = vadd.f32 %v14826_v15, %v4032_v31  ;;  %v4135_v22 = vadd.f32 %v14827_v12, %v4034_v9  ;;  %v4137_v33 = vadd.f32 %v14828_v40, %v4036_v44  ;;  %v4139_v61 = vadd.f32 %v14829_v45, %v4038_v26  ;;  %v14832_v40 = vld [vmem:[#allocation89_spill] sm:$0xff] }
 0x4b6   : > { %v4141_v53 = vadd.f32 %v4109_v62, %v4040_v51  ;;  %v4142_v49 = vadd.f32 %v4110_v21, %v4041_v34  ;;  %v4143_v52 = vadd.f32 %v4111_v0, %v4042_v30  ;;  %v4144_v43 = vadd.f32 %v4112_v5, %v4043_v1  ;;  %v14830_v1 = vld [vmem:[#allocation51_spill] sm:$0xff]  ;;  %v14833_v45 = vld [vmem:[#allocation353_spill] sm:$0xff] }
 0x4b7   : > { %v4145_v18 = vadd.f32 %v4113_v55, %v4044_v32  ;;  %v4146_v6 = vadd.f32 %v4114_v19, %v4045_v42  ;;  %v4147_v23 = vadd.f32 %v4115_v54, %v4046_v63  ;;  %v4148_v24 = vadd.f32 %v4116_v25, %v4047_v36  ;;  %v14831_v42 = vld [vmem:[#allocation414_spill] sm:$0xff] }
 0x4b8   : > { %v4149_v38 = vadd.f32 %v4117_v39, %v4048_v14  ;;  %v4208_v57 = vmul.f32 %v12368_v50, %v14810_v27  ;;  %v4210_v31 = vmul.f32 %v12368_v50, %v14812_v56  ;;  %v4211_v9 = vmul.f32 %v12368_v50, %v14813_v10 }
 0x4b9   : > { %v4212_v44 = vmul.f32 %v12368_v50, %v14814_v29  ;;  %v4213_v26 = vmul.f32 %v12368_v50, %v14815_v47  ;;  %v4214_v51 = vmul.f32 %v12368_v50, %v14816_v37  ;;  %v4215_v34 = vmul.f32 %v12368_v50, %v14823_v7 }
 0x4ba   : > { %v4216_v30 = vmul.f32 %v12368_v50, %v14824_v35  ;;  %v4217_v32 = vmul.f32 %v12368_v50, %v14830_v1  ;;  %v4218_v10 = vmul.f32 %v12368_v50, %v12190_v58  ;;  %v4232_v63 = vadd.f32 %v14831_v42, %v4131_v60 }
 0x4bb   : > { %v4234_v36 = vadd.f32 %v12372_v17, %v4133_v11  ;;  %v4236_v14 = vadd.f32 %v12376_v59, %v4135_v22  ;;  %v4238_v2 = vadd.f32 %v12380_v20, %v4137_v33  ;;  %v4240_v62 = vadd.f32 %v4208_v57, %v4139_v61  ;;  %v14834_v61 = vld [vmem:[#allocation129_spill] sm:$0xff] }
 0x4bc   : > { %v4242_v21 = vadd.f32 %v4210_v31, %v4141_v53  ;;  %v4243_v0 = vadd.f32 %v4211_v9, %v4142_v49  ;;  %v4244_v5 = vadd.f32 %v4212_v44, %v4143_v52  ;;  %v4245_v55 = vadd.f32 %v4213_v26, %v4144_v43  ;;  %v14835_v49 = vld [vmem:[#allocation229_spill] sm:$0xff]  ;;  %v14836_v43 = vld [vmem:[#allocation372_spill] sm:$0xff] }
 0x4bd   : > { %v4246_v19 = vadd.f32 %v4214_v51, %v4145_v18  ;;  %v4247_v54 = vadd.f32 %v4215_v34, %v4146_v6  ;;  %v4248_v25 = vadd.f32 %v4216_v30, %v4147_v23  ;;  %v4249_v39 = vadd.f32 %v4217_v32, %v4148_v24 }
 0x4be   : > { %v4250_v28 = vadd.f32 %v4218_v10, %v4149_v38  ;;  %v4307_v50 = vmul.f32 %v12382_v46, %v14810_v27  ;;  %v4309_v17 = vmul.f32 %v12382_v46, %v14812_v56  ;;  %v4311_v59 = vmul.f32 %v12382_v46, %v14814_v29 }
 0x4bf   : > { %v4312_v20 = vmul.f32 %v12382_v46, %v14815_v47  ;;  %v4313_v60 = vmul.f32 %v12382_v46, %v14816_v37  ;;  %v4314_v15 = vmul.f32 %v12382_v46, %v14823_v7  ;;  %v4315_v11 = vmul.f32 %v12382_v46, %v14824_v35 }
 0x4c0   : > { %v4316_v12 = vmul.f32 %v12382_v46, %v14830_v1  ;;  %v4317_v22 = vmul.f32 %v12382_v46, %v12190_v58  ;;  %v4318_v33 = vmul.f32 %v12382_v46, %v14832_v40  ;;  %v4319_v47 = vmul.f32 %v12382_v46, %v14833_v45 }
 0x4c1   : > { %v4333_v53 = vadd.f32 %v14834_v61, %v4232_v63  ;;  %v4335_v52 = vadd.f32 %v14835_v49, %v4234_v36  ;;  %v4337_v18 = vadd.f32 %v14836_v43, %v4236_v14  ;;  %v4339_v6 = vadd.f32 %v4307_v50, %v4238_v2 }
 0x4c2   : > { %v4341_v23 = vadd.f32 %v4309_v17, %v4240_v62  ;;  %v4343_v24 = vadd.f32 %v4311_v59, %v4242_v21  ;;  %v4344_v38 = vadd.f32 %v4312_v20, %v4243_v0  ;;  %v4345_v57 = vadd.f32 %v4313_v60, %v4244_v5  ;;  %v14837_v0 = vld [vmem:[#allocation275_spill] sm:$0xff] }
 0x4c3   : > { %v4346_v31 = vadd.f32 %v4314_v15, %v4245_v55  ;;  %v4347_v9 = vadd.f32 %v4315_v11, %v4246_v19  ;;  %v4348_v44 = vadd.f32 %v4316_v12, %v4247_v54  ;;  %v4349_v26 = vadd.f32 %v4317_v22, %v4248_v25  ;;  %v14838_v55 = vld [vmem:[#allocation364_spill] sm:$0xff] }
 0x4c4   : > { %v4350_v51 = vadd.f32 %v4318_v33, %v4249_v39  ;;  %v4351_v34 = vadd.f32 %v4319_v47, %v4250_v28  ;;  %v4406_v46 = vmul.f32 %v12402_v8, %v14810_v27  ;;  %v4408_v30 = vmul.f32 %v12402_v8, %v14812_v56  ;;  %v14839_v22 = vld [vmem:[#allocation356_spill] sm:$0xff] }
 0x4c5   : > { %v4410_v32 = vmul.f32 %v12402_v8, %v14814_v29  ;;  %v4412_v10 = vmul.f32 %v12402_v8, %v14816_v37  ;;  %v4413_v42 = vmul.f32 %v12402_v8, %v14823_v7  ;;  %v4414_v63 = vmul.f32 %v12402_v8, %v14824_v35 }
 0x4c6   : > { %v4415_v36 = vmul.f32 %v12402_v8, %v14830_v1  ;;  %v4416_v14 = vmul.f32 %v12402_v8, %v12190_v58  ;;  %v4417_v2 = vmul.f32 %v12402_v8, %v14832_v40  ;;  %v4419_v62 = vmul.f32 %v12402_v8, %v12583_v41 }
 0x4c7   : > { %v4420_v21 = vmul.f32 %v12402_v8, %v12585_v3  ;;  %v4418_v7 = vmul.f32 %v12402_v8, %v14833_v45  ;;  %v4434_v5 = vadd.f32 %v14837_v0, %v4333_v53  ;;  %v4436_v19 = vadd.f32 %v14838_v55, %v4335_v52 }
 0x4c8   : > { %v4438_v54 = vadd.f32 %v4406_v46, %v4337_v18  ;;  %v4440_v25 = vadd.f32 %v4408_v30, %v4339_v6  ;;  %v4442_v39 = vadd.f32 %v4410_v32, %v4341_v23  ;;  %v4444_v28 = vadd.f32 %v4412_v10, %v4343_v24 }
 0x4c9   : > { %v4445_v50 = vadd.f32 %v4413_v42, %v4344_v38  ;;  %v4446_v17 = vadd.f32 %v4414_v63, %v4345_v57  ;;  %v4447_v59 = vadd.f32 %v4415_v36, %v4346_v31  ;;  %v4448_v20 = vadd.f32 %v4416_v14, %v4347_v9  ;;  %v14840_v38 = vld [vmem:[#allocation316_spill] sm:$0xff]  ;;  %v7259_v14 = vld [vmem:[#allocation9 + $0x34] ss:$0 sm:$0xff] }
 0x4ca   : > { %v4449_v60 = vadd.f32 %v4417_v2, %v4348_v44  ;;  %v4450_v15 = vadd.f32 %v4418_v7, %v4349_v26  ;;  %v4451_v11 = vadd.f32 %v4419_v62, %v4350_v51  ;;  %v4452_v12 = vadd.f32 %v4420_v21, %v4351_v34 }
 0x4cb   : > { %v4505_v33 = vmul.f32 %v14839_v22, %v14810_v27  ;;  %v4507_v8 = vmul.f32 %v14839_v22, %v14812_v56  ;;  %v4509_v47 = vmul.f32 %v14839_v22, %v14814_v29  ;;  %v4511_v61 = vmul.f32 %v14839_v22, %v14816_v37 }
 0x4cc   : > { %v4513_v53 = vmul.f32 %v14839_v22, %v14824_v35  ;;  %v4514_v49 = vmul.f32 %v14839_v22, %v14830_v1  ;;  %v4515_v52 = vmul.f32 %v14839_v22, %v12190_v58  ;;  %v4518_v43 = vmul.f32 %v14839_v22, %v12583_v41 }
 0x4cd   : > { %v4519_v18 = vmul.f32 %v14839_v22, %v12585_v3  ;;  %v4516_v6 = vmul.f32 %v14839_v22, %v14832_v40  ;;  %v4517_v23 = vmul.f32 %v14839_v22, %v14833_v45  ;;  %v4520_v24 = vmul.f32 %v14839_v22, %v12601_v13 }
 0x4ce   : > { %v4521_v1 = vmul.f32 %v14839_v22, %v12603_v16  ;;  %v4535_v57 = vadd.f32 %v14840_v38, %v4434_v5  ;;  %v4537_v31 = vadd.f32 %v4505_v33, %v4436_v19  ;;  %v4539_v9 = vadd.f32 %v4507_v8, %v4438_v54  ;;  %v14844_v33 = vld [vmem:[#allocation389_spill] sm:$0xff] }
 0x4cf   : > { %v4541_v44 = vadd.f32 %v4509_v47, %v4440_v25  ;;  %v4543_v26 = vadd.f32 %v4511_v61, %v4442_v39  ;;  %v4545_v51 = vadd.f32 %v4513_v53, %v4444_v28  ;;  %v4546_v34 = vadd.f32 %v4514_v49, %v4445_v50  ;;  %v14845_v47 = vld [vmem:[#allocation377_spill] sm:$0xff] }
 0x4d0   : > { %v4547_v46 = vadd.f32 %v4515_v52, %v4446_v17  ;;  %v4548_v30 = vadd.f32 %v4516_v6, %v4447_v59  ;;  %v4549_v32 = vadd.f32 %v4517_v23, %v4448_v20  ;;  %v4550_v10 = vadd.f32 %v4518_v43, %v4449_v60  ;;  %v14846_v53 = vld [vmem:[#allocation61_spill] sm:$0xff]  ;;  %v14847_v52 = vld [vmem:[#allocation190_spill] sm:$0xff]  ;;  %v14849_v23 = vld [vmem:[#allocation239_spill] sm:$0xff] }
 0x4d1   : > { %v4551_v42 = vadd.f32 %v4519_v18, %v4450_v15  ;;  %v4552_v63 = vadd.f32 %v4520_v24, %v4451_v11  ;;  %v4553_v36 = vadd.f32 %v4521_v1, %v4452_v12  ;;  %v4604_v2 = vmul.f32 %v7259_v14, %v14810_v27  ;;  %v7260_v15 = vld [vmem:[#allocation9 + $0x5] ss:$0 sm:$0xff]  ;;  %v14850_v1 = vld [vmem:[#allocation170_spill] sm:$0xff] }
 0x4d2   : > { %v4606_v62 = vmul.f32 %v7259_v14, %v14812_v56  ;;  %v4608_v21 = vmul.f32 %v7259_v14, %v14814_v29  ;;  %v4610_v7 = vmul.f32 %v7259_v14, %v14816_v37  ;;  %v4612_v0 = vmul.f32 %v7259_v14, %v14824_v35  ;;  %v14848_v18 = vld [vmem:[#allocation359_spill] sm:$0xff] }
 0x4d3   : > { %v4614_v5 = vmul.f32 %v7259_v14, %v12190_v58  ;;  %v4617_v55 = vmul.f32 %v7259_v14, %v12583_v41  ;;  %v4618_v19 = vmul.f32 %v7259_v14, %v12585_v3  ;;  %v4619_v54 = vmul.f32 %v7259_v14, %v12601_v13 }
 0x4d4   : > { %v4620_v25 = vmul.f32 %v7259_v14, %v12603_v16  ;;  %v4615_v27 = vmul.f32 %v7259_v14, %v14832_v40  ;;  %v4616_v56 = vmul.f32 %v7259_v14, %v14833_v45  ;;  %v4621_v29 = vmul.f32 %v7259_v14, %v12619_v4  ;;  %v14841_v45 = vld [vmem:[#allocation75_spill] sm:$0xff] }
 0x4d5   : > { %v4622_v37 = vmul.f32 %v7259_v14, %v12621_v48  ;;  %v4636_v39 = vadd.f32 %v4604_v2, %v4535_v57  ;;  %v4638_v35 = vadd.f32 %v4606_v62, %v4537_v31  ;;  %v4640_v28 = vadd.f32 %v4608_v21, %v4539_v9  ;;  %v14842_v4 = vld [vmem:[#allocation115_spill] sm:$0xff]  ;;  %v14843_v48 = vld [vmem:[#allocation45_spill] sm:$0xff]  ;;  %v14851_v57 = vld [vmem:[#allocation270_spill] sm:$0xff] }
 0x4d6   : > { %v4642_v58 = vadd.f32 %v4610_v7, %v4541_v44  ;;  %v4644_v50 = vadd.f32 %v4612_v0, %v4543_v26  ;;  %v4646_v41 = vadd.f32 %v4614_v5, %v4545_v51  ;;  %v4647_v17 = vadd.f32 %v4615_v27, %v4546_v34  ;;  %v14852_v9 = vld [vmem:[#allocation95_spill] sm:$0xff]  ;;  %v14853_v26 = vld [vmem:[#allocation296_spill] sm:$0xff]  ;;  %v14854_v34 = vld [vmem:[#allocation390_spill] sm:$0xff] }
 0x4d7   : > { %v4648_v3 = vadd.f32 %v4616_v56, %v4547_v46  ;;  %v4649_v59 = vadd.f32 %v4617_v55, %v4548_v30  ;;  %v4650_v13 = vadd.f32 %v4618_v19, %v4549_v32  ;;  %v4651_v20 = vadd.f32 %v4619_v54, %v4550_v10  ;;  %v7261_v19 = vld [vmem:[#allocation9 + $0xd] ss:$0 sm:$0xff] }
 0x4d8   : > { %v4652_v16 = vadd.f32 %v4620_v25, %v4551_v42  ;;  %v4653_v60 = vadd.f32 %v4621_v29, %v4552_v63  ;;  %v4654_v40 = vadd.f32 %v4622_v37, %v4553_v36  ;;  %v4785_v11 = vmul.f32 %v7260_v15, %v14841_v45 }
 0x4d9   : > { %v4787_v12 = vmul.f32 %v7260_v15, %v14842_v4  ;;  %v4789_v22 = vmul.f32 %v7260_v15, %v14843_v48  ;;  %v4791_v8 = vmul.f32 %v7260_v15, %v14844_v33  ;;  %v4793_v61 = vmul.f32 %v7260_v15, %v14845_v47 }
 0x4da   : > { %v4795_v49 = vmul.f32 %v7260_v15, %v14846_v53  ;;  %v4796_v43 = vmul.f32 %v7260_v15, %v14847_v52  ;;  %v4797_v6 = vmul.f32 %v7260_v15, %v14848_v18  ;;  %v4798_v24 = vmul.f32 %v7260_v15, %v14849_v23 }
 0x4db   : > { %v4799_v38 = vmul.f32 %v7260_v15, %v14850_v1  ;;  %v4800_v31 = vmul.f32 %v7260_v15, %v14851_v57  ;;  %v4801_v44 = vmul.f32 %v7260_v15, %v14852_v9  ;;  %v4802_v51 = vmul.f32 %v7260_v15, %v14853_v26 }
 0x4dc   : > { %v4803_v46 = vmul.f32 %v7260_v15, %v14854_v34  ;;  %v4817_v30 = vadd.f32 %v4785_v11, %v4636_v39  ;;  %v4819_v32 = vadd.f32 %v4787_v12, %v4638_v35  ;;  %v4821_v10 = vadd.f32 %v4789_v22, %v4640_v28 }
 0x4dd   : > { %v4823_v42 = vadd.f32 %v4791_v8, %v4642_v58  ;;  %v4825_v63 = vadd.f32 %v4793_v61, %v4644_v50  ;;  %v4827_v36 = vadd.f32 %v4795_v49, %v4646_v41  ;;  %v4828_v14 = vadd.f32 %v4796_v43, %v4647_v17  ;;  %v14855_v17 = vld [vmem:[#allocation314_spill] sm:$0xff]  ;;  %v7262_v43 = vld [vmem:[#allocation9 + $0x15] ss:$0 sm:$0xff] }
 0x4de   : > { %v4829_v2 = vadd.f32 %v4797_v6, %v4648_v3  ;;  %v4830_v62 = vadd.f32 %v4798_v24, %v4649_v59  ;;  %v4831_v21 = vadd.f32 %v4799_v38, %v4650_v13  ;;  %v4832_v7 = vadd.f32 %v4800_v31, %v4651_v20  ;;  %v14856_v59 = vld [vmem:[#allocation121_spill] sm:$0xff] }
 0x4df   : > { %v4833_v0 = vadd.f32 %v4801_v44, %v4652_v16  ;;  %v4834_v5 = vadd.f32 %v4802_v51, %v4653_v60  ;;  %v4835_v55 = vadd.f32 %v4803_v46, %v4654_v40  ;;  %v4886_v54 = vmul.f32 %v7261_v19, %v14842_v4 }
 0x4e0   : > { %v4888_v25 = vmul.f32 %v7261_v19, %v14843_v48  ;;  %v4890_v27 = vmul.f32 %v7261_v19, %v14844_v33  ;;  %v4892_v56 = vmul.f32 %v7261_v19, %v14845_v47  ;;  %v4894_v29 = vmul.f32 %v7261_v19, %v14846_v53 }
 0x4e1   : > { %v4896_v37 = vmul.f32 %v7261_v19, %v14848_v18  ;;  %v4897_v39 = vmul.f32 %v7261_v19, %v14849_v23  ;;  %v4898_v35 = vmul.f32 %v7261_v19, %v14850_v1  ;;  %v4899_v28 = vmul.f32 %v7261_v19, %v14851_v57 }
 0x4e2   : > { %v4900_v58 = vmul.f32 %v7261_v19, %v14852_v9  ;;  %v4901_v50 = vmul.f32 %v7261_v19, %v14853_v26  ;;  %v4902_v41 = vmul.f32 %v7261_v19, %v14854_v34  ;;  %v4903_v3 = vmul.f32 %v7261_v19, %v14855_v17 }
 0x4e3   : > { %v4904_v13 = vmul.f32 %v7261_v19, %v14856_v59  ;;  %v4918_v20 = vadd.f32 %v4886_v54, %v4817_v30  ;;  %v4920_v16 = vadd.f32 %v4888_v25, %v4819_v32  ;;  %v4922_v60 = vadd.f32 %v4890_v27, %v4821_v10 }
 0x4e4   : > { %v4924_v40 = vadd.f32 %v4892_v56, %v4823_v42  ;;  %v4926_v15 = vadd.f32 %v4894_v29, %v4825_v63  ;;  %v4928_v45 = vadd.f32 %v4896_v37, %v4827_v36  ;;  %v4929_v11 = vadd.f32 %v4897_v39, %v4828_v14  ;;  %v14857_v42 = vld [vmem:[#allocation69_spill] sm:$0xff]  ;;  %v7263_v37 = vld [vmem:[#allocation9 + $0x1d] ss:$0 sm:$0xff] }
 0x4e5   : > { %v4930_v4 = vadd.f32 %v4898_v35, %v4829_v2  ;;  %v4931_v12 = vadd.f32 %v4899_v28, %v4830_v62  ;;  %v4932_v22 = vadd.f32 %v4900_v58, %v4831_v21  ;;  %v4933_v8 = vadd.f32 %v4901_v50, %v4832_v7  ;;  %v14858_v36 = vld [vmem:[#allocation49_spill] sm:$0xff] }
 0x4e6   : > { %v4934_v61 = vadd.f32 %v4902_v41, %v4833_v0  ;;  %v4935_v49 = vadd.f32 %v4903_v3, %v4834_v5  ;;  %v4936_v52 = vadd.f32 %v4904_v13, %v4835_v55  ;;  %v4987_v6 = vmul.f32 %v7262_v43, %v14843_v48 }
 0x4e7   : > { %v4989_v23 = vmul.f32 %v7262_v43, %v14844_v33  ;;  %v4991_v24 = vmul.f32 %v7262_v43, %v14845_v47  ;;  %v4993_v38 = vmul.f32 %v7262_v43, %v14846_v53  ;;  %v4995_v31 = vmul.f32 %v7262_v43, %v14848_v18 }
 0x4e8   : > { %v4997_v44 = vmul.f32 %v7262_v43, %v14850_v1  ;;  %v4998_v51 = vmul.f32 %v7262_v43, %v14851_v57  ;;  %v4999_v46 = vmul.f32 %v7262_v43, %v14852_v9  ;;  %v5000_v30 = vmul.f32 %v7262_v43, %v14853_v26 }
 0x4e9   : > { %v5001_v32 = vmul.f32 %v7262_v43, %v14854_v34  ;;  %v5002_v48 = vmul.f32 %v7262_v43, %v14855_v17  ;;  %v5003_v10 = vmul.f32 %v7262_v43, %v14856_v59  ;;  %v5004_v63 = vmul.f32 %v7262_v43, %v14857_v42 }
 0x4ea   : > { %v5005_v14 = vmul.f32 %v7262_v43, %v14858_v36  ;;  %v5019_v2 = vadd.f32 %v4987_v6, %v4918_v20  ;;  %v5021_v62 = vadd.f32 %v4989_v23, %v4920_v16  ;;  %v5023_v21 = vadd.f32 %v4991_v24, %v4922_v60 }
 0x4eb   : > { %v5025_v7 = vadd.f32 %v4993_v38, %v4924_v40  ;;  %v5027_v0 = vadd.f32 %v4995_v31, %v4926_v15  ;;  %v5029_v57 = vadd.f32 %v4997_v44, %v4928_v45  ;;  %v5030_v5 = vadd.f32 %v4998_v51, %v4929_v11  ;;  %v14859_v40 = vld [vmem:[#allocation71_spill] sm:$0xff]  ;;  %v14860_v45 = vld [vmem:[#allocation358_spill] sm:$0xff]  ;;  %v12837_v44 = vld [vmem:[#allocation3 + $0x130] sm:$0xff] }
 0x4ec   : > { %v5031_v55 = vadd.f32 %v4999_v46, %v4930_v4  ;;  %v5032_v19 = vadd.f32 %v5000_v30, %v4931_v12  ;;  %v5033_v54 = vadd.f32 %v5001_v32, %v4932_v22  ;;  %v5034_v25 = vadd.f32 %v5002_v48, %v4933_v8  ;;  %v12839_v51 = vld [vmem:[#allocation3 + $0x138] sm:$0xff]  ;;  %v7264_v46 = vld [vmem:[#allocation9 + $0x25] ss:$0 sm:$0xff] }
 0x4ed   : > { %v5035_v27 = vadd.f32 %v5003_v10, %v4934_v61  ;;  %v5036_v56 = vadd.f32 %v5004_v63, %v4935_v49  ;;  %v5037_v29 = vadd.f32 %v5005_v14, %v4936_v52  ;;  %v5088_v39 = vmul.f32 %v7263_v37, %v14844_v33 }
 0x4ee   : > { %v5090_v35 = vmul.f32 %v7263_v37, %v14845_v47  ;;  %v5092_v28 = vmul.f32 %v7263_v37, %v14846_v53  ;;  %v5094_v58 = vmul.f32 %v7263_v37, %v14848_v18  ;;  %v5096_v50 = vmul.f32 %v7263_v37, %v14850_v1 }
 0x4ef   : > { %v5098_v41 = vmul.f32 %v7263_v37, %v14852_v9  ;;  %v5099_v3 = vmul.f32 %v7263_v37, %v14853_v26  ;;  %v5100_v13 = vmul.f32 %v7263_v37, %v14854_v34  ;;  %v5101_v20 = vmul.f32 %v7263_v37, %v14855_v17 }
 0x4f0   : > { %v5102_v16 = vmul.f32 %v7263_v37, %v14856_v59  ;;  %v5103_v33 = vmul.f32 %v7263_v37, %v14857_v42  ;;  %v5104_v60 = vmul.f32 %v7263_v37, %v14858_v36  ;;  %v5105_v15 = vmul.f32 %v7263_v37, %v14859_v40 }
 0x4f1   : > { %v5106_v11 = vmul.f32 %v7263_v37, %v14860_v45  ;;  %v5120_v4 = vadd.f32 %v5088_v39, %v5019_v2  ;;  %v5122_v12 = vadd.f32 %v5090_v35, %v5021_v62  ;;  %v5124_v22 = vadd.f32 %v5092_v28, %v5023_v21 }
 0x4f2   : > { %v5126_v8 = vadd.f32 %v5094_v58, %v5025_v7  ;;  %v5128_v61 = vadd.f32 %v5096_v50, %v5027_v0  ;;  %v5130_v26 = vadd.f32 %v5098_v41, %v5029_v57  ;;  %v5131_v49 = vadd.f32 %v5099_v3, %v5030_v5  ;;  %v12855_v41 = vld [vmem:[#allocation3 + $0x140] sm:$0xff]  ;;  %v12857_v3 = vld [vmem:[#allocation3 + $0x148] sm:$0xff] }
 0x4f3   : > { %v5132_v52 = vadd.f32 %v5100_v13, %v5031_v55  ;;  %v5133_v43 = vadd.f32 %v5101_v20, %v5032_v19  ;;  %v5134_v6 = vadd.f32 %v5102_v16, %v5033_v54  ;;  %v5135_v23 = vadd.f32 %v5103_v33, %v5034_v25  ;;  %v7265_v13 = vld [vmem:[#allocation9 + $0x2d] ss:$0 sm:$0xff] }
 0x4f4   : > { %v5136_v24 = vadd.f32 %v5104_v60, %v5035_v27  ;;  %v5137_v38 = vadd.f32 %v5105_v15, %v5036_v56  ;;  %v5138_v31 = vadd.f32 %v5106_v11, %v5037_v29  ;;  %v5189_v30 = vmul.f32 %v7264_v46, %v14845_v47 }
 0x4f5   : > { %v5191_v32 = vmul.f32 %v7264_v46, %v14846_v53  ;;  %v5193_v48 = vmul.f32 %v7264_v46, %v14848_v18  ;;  %v5195_v10 = vmul.f32 %v7264_v46, %v14850_v1  ;;  %v5197_v63 = vmul.f32 %v7264_v46, %v14852_v9 }
 0x4f6   : > { %v5199_v14 = vmul.f32 %v7264_v46, %v14854_v34  ;;  %v5200_v2 = vmul.f32 %v7264_v46, %v14855_v17  ;;  %v5201_v62 = vmul.f32 %v7264_v46, %v14856_v59  ;;  %v5202_v21 = vmul.f32 %v7264_v46, %v14857_v42 }
 0x4f7   : > { %v5203_v7 = vmul.f32 %v7264_v46, %v14858_v36  ;;  %v5204_v47 = vmul.f32 %v7264_v46, %v14859_v40  ;;  %v5205_v0 = vmul.f32 %v7264_v46, %v14860_v45  ;;  %v5206_v57 = vmul.f32 %v7264_v46, %v12837_v44 }
 0x4f8   : > { %v5207_v5 = vmul.f32 %v7264_v46, %v12839_v51  ;;  %v5221_v55 = vadd.f32 %v5189_v30, %v5120_v4  ;;  %v5223_v19 = vadd.f32 %v5191_v32, %v5122_v12  ;;  %v5225_v54 = vadd.f32 %v5193_v48, %v5124_v22 }
 0x4f9   : > { %v5227_v25 = vadd.f32 %v5195_v10, %v5126_v8  ;;  %v5229_v27 = vadd.f32 %v5197_v63, %v5128_v61  ;;  %v5231_v17 = vadd.f32 %v5199_v14, %v5130_v26  ;;  %v5232_v56 = vadd.f32 %v5200_v2, %v5131_v49  ;;  %v12873_v14 = vld [vmem:[#allocation3 + $0x150] sm:$0xff]  ;;  %v12875_v2 = vld [vmem:[#allocation3 + $0x158] sm:$0xff] }
 0x4fa   : > { %v5233_v29 = vadd.f32 %v5201_v62, %v5132_v52  ;;  %v5234_v37 = vadd.f32 %v5202_v21, %v5133_v43  ;;  %v5235_v39 = vadd.f32 %v5203_v7, %v5134_v6  ;;  %v5236_v35 = vadd.f32 %v5204_v47, %v5135_v23  ;;  %v7266_v62 = vld [vmem:[#allocation9 + $0x35] ss:$0 sm:$0xff] }
 0x4fb   : > { %v5237_v28 = vadd.f32 %v5205_v0, %v5136_v24  ;;  %v5238_v58 = vadd.f32 %v5206_v57, %v5137_v38  ;;  %v5239_v50 = vadd.f32 %v5207_v5, %v5138_v31  ;;  %v5290_v20 = vmul.f32 %v7265_v13, %v14846_v53 }
 0x4fc   : > { %v5292_v16 = vmul.f32 %v7265_v13, %v14848_v18  ;;  %v5294_v33 = vmul.f32 %v7265_v13, %v14850_v1  ;;  %v5296_v60 = vmul.f32 %v7265_v13, %v14852_v9  ;;  %v5298_v15 = vmul.f32 %v7265_v13, %v14854_v34 }
 0x4fd   : > { %v5300_v11 = vmul.f32 %v7265_v13, %v14856_v59  ;;  %v5301_v4 = vmul.f32 %v7265_v13, %v14857_v42  ;;  %v5302_v12 = vmul.f32 %v7265_v13, %v14858_v36  ;;  %v5305_v22 = vmul.f32 %v7265_v13, %v12837_v44 }
 0x4fe   : > { %v5306_v8 = vmul.f32 %v7265_v13, %v12839_v51  ;;  %v5303_v53 = vmul.f32 %v7265_v13, %v14859_v40  ;;  %v5304_v61 = vmul.f32 %v7265_v13, %v14860_v45  ;;  %v5307_v26 = vmul.f32 %v7265_v13, %v12855_v41 }
 0x4ff   : > { %v5308_v49 = vmul.f32 %v7265_v13, %v12857_v3  ;;  %v5322_v52 = vadd.f32 %v5290_v20, %v5221_v55  ;;  %v5324_v43 = vadd.f32 %v5292_v16, %v5223_v19  ;;  %v5326_v6 = vadd.f32 %v5294_v33, %v5225_v54  ;;  %v5547_v13 = vld [vmem:[#allocation3 + $0xc0] sm:$0xff]  ;;  %v12899_v20 = vld [vmem:[#allocation3 + $0xc8] sm:$0xff] }
 0x500   : > { %v5328_v23 = vadd.f32 %v5296_v60, %v5227_v25  ;;  %v5330_v24 = vadd.f32 %v5298_v15, %v5229_v27  ;;  %v5332_v42 = vadd.f32 %v5300_v11, %v5231_v17  ;;  %v5333_v38 = vadd.f32 %v5301_v4, %v5232_v56  ;;  %v5536_v27 = vld [vmem:[#allocation3 + $0x68] sm:$0xff]  ;;  %v5549_v11 = vld [vmem:[#allocation3 + $0xd0] sm:$0xff]  ;;  %v12901_v4 = vld [vmem:[#allocation3 + $0xd8] sm:$0xff] }
 0x501   : > { %v5334_v31 = vadd.f32 %v5302_v12, %v5233_v29  ;;  %v5335_v46 = vadd.f32 %v5303_v53, %v5234_v37  ;;  %v5336_v30 = vadd.f32 %v5304_v61, %v5235_v39  ;;  %v5337_v32 = vadd.f32 %v5305_v22, %v5236_v35  ;;  %v5538_v37 = vld [vmem:[#allocation3 + $0x78] sm:$0xff]  ;;  %v12893_v39 = vld [vmem:[#allocation3 + $0x88] sm:$0xff]  ;;  %v12903_v12 = vld [vmem:[#allocation3 + $0xe0] sm:$0xff] }
 0x502   : > { %v5338_v48 = vadd.f32 %v5306_v8, %v5237_v28  ;;  %v5339_v10 = vadd.f32 %v5307_v26, %v5238_v58  ;;  %v5340_v63 = vadd.f32 %v5308_v49, %v5239_v50  ;;  %v5391_v21 = vmul.f32 %v7266_v62, %v14848_v18  ;;  %v12895_v35 = vld [vmem:[#allocation3 + $0x98] sm:$0xff]  ;;  %v12897_v50 = vld [vmem:[#allocation3 + $0xa8] sm:$0xff]  ;;  %v12907_v61 = vld [vmem:[#allocation3 + $0xf0] sm:$0xff] }
 0x503   : > { %v5393_v7 = vmul.f32 %v7266_v62, %v14850_v1  ;;  %v5395_v47 = vmul.f32 %v7266_v62, %v14852_v9  ;;  %v5397_v0 = vmul.f32 %v7266_v62, %v14854_v34  ;;  %v5399_v57 = vmul.f32 %v7266_v62, %v14856_v59  ;;  %v12891_v59 = vld [vmem:[#allocation3 + $0xb8] sm:$0xff]  ;;  %v12905_v53 = vld [vmem:[#allocation3 + $0xe8] sm:$0xff]  ;;  %v7267_v49 = vld [vmem:[#allocation9 + $0x6] ss:$0 sm:$0xff] }
 0x504   : > { %v5401_v5 = vmul.f32 %v7266_v62, %v14858_v36  ;;  %v5404_v55 = vmul.f32 %v7266_v62, %v12837_v44  ;;  %v5405_v19 = vmul.f32 %v7266_v62, %v12839_v51  ;;  %v5406_v54 = vmul.f32 %v7266_v62, %v12855_v41  ;;  %v12909_v26 = vld [vmem:[#allocation3 + $0xf8] sm:$0xff] }
 0x505   : > { %v5407_v25 = vmul.f32 %v7266_v62, %v12857_v3  ;;  %v5402_v18 = vmul.f32 %v7266_v62, %v14859_v40  ;;  %v5403_v1 = vmul.f32 %v7266_v62, %v14860_v45  ;;  %v5408_v9 = vmul.f32 %v7266_v62, %v12873_v14 }
 0x506   : > { %v5409_v34 = vmul.f32 %v7266_v62, %v12875_v2  ;;  %v5423_v36 = vadd.f32 %v5391_v21, %v5322_v52  ;;  %v5425_v17 = vadd.f32 %v5393_v7, %v5324_v43  ;;  %v5427_v56 = vadd.f32 %v5395_v47, %v5326_v6 }
 0x507   : > { %v5429_v29 = vadd.f32 %v5397_v0, %v5328_v23  ;;  %v5431_v28 = vadd.f32 %v5399_v57, %v5330_v24  ;;  %v5433_v40 = vadd.f32 %v5401_v5, %v5332_v42  ;;  %v5434_v58 = vadd.f32 %v5402_v18, %v5333_v38 }
 0x508   : > { %v5435_v45 = vadd.f32 %v5403_v1, %v5334_v31  ;;  %v5436_v16 = vadd.f32 %v5404_v55, %v5335_v46  ;;  %v5437_v33 = vadd.f32 %v5405_v19, %v5336_v30  ;;  %v5438_v60 = vadd.f32 %v5406_v54, %v5337_v32 }
 0x509   : > { %v5439_v15 = vadd.f32 %v5407_v25, %v5338_v48  ;;  %v5440_v22 = vadd.f32 %v5408_v9, %v5339_v10  ;;  %v5441_v8 = vadd.f32 %v5409_v34, %v5340_v63  ;;  %v5572_v52 = vmul.f32 %v7267_v49, %v5536_v27  ;;  %v12921_v34 = vld [vmem:[#allocation3 + $0x100] sm:$0xff]  ;;  %v12923_v27 = vld [vmem:[#allocation3 + $0x108] sm:$0xff] }
 0x50a   : > { %v5574_v43 = vmul.f32 %v7267_v49, %v5538_v37  ;;  %v5576_v6 = vmul.f32 %v7267_v49, %v12893_v39  ;;  %v5578_v23 = vmul.f32 %v7267_v49, %v12895_v35  ;;  %v5580_v24 = vmul.f32 %v7267_v49, %v12897_v50 }
 0x50b   : > { %v5582_v42 = vmul.f32 %v7267_v49, %v12891_v59  ;;  %v5583_v38 = vmul.f32 %v7267_v49, %v5547_v13  ;;  %v5584_v31 = vmul.f32 %v7267_v49, %v12899_v20  ;;  %v5585_v46 = vmul.f32 %v7267_v49, %v5549_v11  ;;  %v7268_v13 = vld [vmem:[#allocation9 + $0xe] ss:$0 sm:$0xff] }
 0x50c   : > { %v5586_v30 = vmul.f32 %v7267_v49, %v12901_v4  ;;  %v5587_v32 = vmul.f32 %v7267_v49, %v12903_v12  ;;  %v5588_v48 = vmul.f32 %v7267_v49, %v12905_v53  ;;  %v5589_v10 = vmul.f32 %v7267_v49, %v12907_v61 }
 0x50d   : > { %v5590_v63 = vmul.f32 %v7267_v49, %v12909_v26  ;;  %v5604_v62 = vadd.f32 %v5572_v52, %v5423_v36  ;;  %v5606_v21 = vadd.f32 %v5574_v43, %v5425_v17  ;;  %v5608_v7 = vadd.f32 %v5576_v6, %v5427_v56 }
 0x50e   : > { %v5610_v47 = vadd.f32 %v5578_v23, %v5429_v29  ;;  %v5612_v0 = vadd.f32 %v5580_v24, %v5431_v28  ;;  %v5614_v57 = vadd.f32 %v5582_v42, %v5433_v40  ;;  %v5615_v5 = vadd.f32 %v5583_v38, %v5434_v58 }
 0x50f   : > { %v5616_v55 = vadd.f32 %v5584_v31, %v5435_v45  ;;  %v5617_v19 = vadd.f32 %v5585_v46, %v5436_v16  ;;  %v5618_v54 = vadd.f32 %v5586_v30, %v5437_v33  ;;  %v5619_v25 = vadd.f32 %v5587_v32, %v5438_v60 }
 0x510   : > { %v5620_v18 = vadd.f32 %v5588_v48, %v5439_v15  ;;  %v5621_v1 = vadd.f32 %v5589_v10, %v5440_v22  ;;  %v5622_v9 = vadd.f32 %v5590_v63, %v5441_v8  ;;  %v5673_v49 = vmul.f32 %v7268_v13, %v5538_v37  ;;  %v12937_v48 = vld [vmem:[#allocation3 + $0x110] sm:$0xff]  ;;  %v12939_v10 = vld [vmem:[#allocation3 + $0x118] sm:$0xff] }
 0x511   : > { %v5675_v36 = vmul.f32 %v7268_v13, %v12893_v39  ;;  %v5677_v17 = vmul.f32 %v7268_v13, %v12895_v35  ;;  %v5679_v56 = vmul.f32 %v7268_v13, %v12897_v50  ;;  %v5681_v29 = vmul.f32 %v7268_v13, %v12891_v59  ;;  %v7269_v63 = vld [vmem:[#allocation9 + $0x16] ss:$0 sm:$0xff] }
 0x512   : > { %v5683_v28 = vmul.f32 %v7268_v13, %v12899_v20  ;;  %v5684_v40 = vmul.f32 %v7268_v13, %v5549_v11  ;;  %v5685_v58 = vmul.f32 %v7268_v13, %v12901_v4  ;;  %v5686_v45 = vmul.f32 %v7268_v13, %v12903_v12 }
 0x513   : > { %v5687_v16 = vmul.f32 %v7268_v13, %v12905_v53  ;;  %v5688_v33 = vmul.f32 %v7268_v13, %v12907_v61  ;;  %v5689_v37 = vmul.f32 %v7268_v13, %v12909_v26  ;;  %v5690_v60 = vmul.f32 %v7268_v13, %v12921_v34 }
 0x514   : > { %v5691_v15 = vmul.f32 %v7268_v13, %v12923_v27  ;;  %v5705_v22 = vadd.f32 %v5673_v49, %v5604_v62  ;;  %v5707_v8 = vadd.f32 %v5675_v36, %v5606_v21  ;;  %v5709_v52 = vadd.f32 %v5677_v17, %v5608_v7 }
 0x515   : > { %v5711_v43 = vadd.f32 %v5679_v56, %v5610_v47  ;;  %v5713_v6 = vadd.f32 %v5681_v29, %v5612_v0  ;;  %v5715_v11 = vadd.f32 %v5683_v28, %v5614_v57  ;;  %v5716_v23 = vadd.f32 %v5684_v40, %v5615_v5 }
 0x516   : > { %v5717_v24 = vadd.f32 %v5685_v58, %v5616_v55  ;;  %v5718_v42 = vadd.f32 %v5686_v45, %v5617_v19  ;;  %v5719_v38 = vadd.f32 %v5687_v16, %v5618_v54  ;;  %v5720_v31 = vadd.f32 %v5688_v33, %v5619_v25 }
 0x517   : > { %v5721_v46 = vadd.f32 %v5689_v37, %v5620_v18  ;;  %v5722_v30 = vadd.f32 %v5690_v60, %v5621_v1  ;;  %v5723_v32 = vadd.f32 %v5691_v15, %v5622_v9  ;;  %v5774_v62 = vmul.f32 %v7269_v63, %v12893_v39  ;;  %v12955_v37 = vld [vmem:[#allocation3 + $0x120] sm:$0xff]  ;;  %v12957_v60 = vld [vmem:[#allocation3 + $0x128] sm:$0xff]  ;;  %v7270_v15 = vld [vmem:[#allocation9 + $0x1e] ss:$0 sm:$0xff] }
 0x518   : > { %v5776_v21 = vmul.f32 %v7269_v63, %v12895_v35  ;;  %v5778_v7 = vmul.f32 %v7269_v63, %v12897_v50  ;;  %v5780_v47 = vmul.f32 %v7269_v63, %v12891_v59  ;;  %v5782_v0 = vmul.f32 %v7269_v63, %v12899_v20 }
 0x519   : > { %v5784_v57 = vmul.f32 %v7269_v63, %v12901_v4  ;;  %v5785_v5 = vmul.f32 %v7269_v63, %v12903_v12  ;;  %v5786_v55 = vmul.f32 %v7269_v63, %v12905_v53  ;;  %v5787_v19 = vmul.f32 %v7269_v63, %v12907_v61 }
 0x51a   : > { %v5788_v54 = vmul.f32 %v7269_v63, %v12909_v26  ;;  %v5789_v39 = vmul.f32 %v7269_v63, %v12921_v34  ;;  %v5790_v25 = vmul.f32 %v7269_v63, %v12923_v27  ;;  %v5791_v18 = vmul.f32 %v7269_v63, %v12937_v48 }
 0x51b   : > { %v5792_v1 = vmul.f32 %v7269_v63, %v12939_v10  ;;  %v5806_v9 = vadd.f32 %v5774_v62, %v5705_v22  ;;  %v5808_v13 = vadd.f32 %v5776_v21, %v5707_v8  ;;  %v5810_v49 = vadd.f32 %v5778_v7, %v5709_v52 }
 0x51c   : > { %v5812_v36 = vadd.f32 %v5780_v47, %v5711_v43  ;;  %v5814_v17 = vadd.f32 %v5782_v0, %v5713_v6  ;;  %v5816_v12 = vadd.f32 %v5784_v57, %v5715_v11  ;;  %v5817_v56 = vadd.f32 %v5785_v5, %v5716_v23 }
 0x51d   : > { %v5818_v29 = vadd.f32 %v5786_v55, %v5717_v24  ;;  %v5819_v28 = vadd.f32 %v5787_v19, %v5718_v42  ;;  %v5820_v40 = vadd.f32 %v5788_v54, %v5719_v38  ;;  %v5821_v58 = vadd.f32 %v5789_v39, %v5720_v31 }
 0x51e   : > { %v5822_v45 = vadd.f32 %v5790_v25, %v5721_v46  ;;  %v5823_v16 = vadd.f32 %v5791_v18, %v5722_v30  ;;  %v5824_v33 = vadd.f32 %v5792_v1, %v5723_v32  ;;  %v5875_v22 = vmul.f32 %v7270_v15, %v12895_v35  ;;  %v7271_v25 = vld [vmem:[#allocation9 + $0x26] ss:$0 sm:$0xff] }
 0x51f   : > { %v5877_v8 = vmul.f32 %v7270_v15, %v12897_v50  ;;  %v5879_v52 = vmul.f32 %v7270_v15, %v12891_v59  ;;  %v5881_v43 = vmul.f32 %v7270_v15, %v12899_v20  ;;  %v5883_v6 = vmul.f32 %v7270_v15, %v12901_v4 }
 0x520   : > { %v5885_v11 = vmul.f32 %v7270_v15, %v12905_v53  ;;  %v5886_v23 = vmul.f32 %v7270_v15, %v12907_v61  ;;  %v5887_v24 = vmul.f32 %v7270_v15, %v12909_v26  ;;  %v5888_v42 = vmul.f32 %v7270_v15, %v12921_v34 }
 0x521   : > { %v5889_v38 = vmul.f32 %v7270_v15, %v12923_v27  ;;  %v5890_v35 = vmul.f32 %v7270_v15, %v12937_v48  ;;  %v5891_v31 = vmul.f32 %v7270_v15, %v12939_v10  ;;  %v5892_v46 = vmul.f32 %v7270_v15, %v12955_v37 }
 0x522   : > { %v5893_v30 = vmul.f32 %v7270_v15, %v12957_v60  ;;  %v5907_v32 = vadd.f32 %v5875_v22, %v5806_v9  ;;  %v5909_v63 = vadd.f32 %v5877_v8, %v5808_v13  ;;  %v5911_v62 = vadd.f32 %v5879_v52, %v5810_v49 }
 0x523   : > { %v5913_v21 = vadd.f32 %v5881_v43, %v5812_v36  ;;  %v5915_v7 = vadd.f32 %v5883_v6, %v5814_v17  ;;  %v5917_v61 = vadd.f32 %v5885_v11, %v5816_v12  ;;  %v5918_v47 = vadd.f32 %v5886_v23, %v5817_v56 }
 0x524   : > { %v5919_v0 = vadd.f32 %v5887_v24, %v5818_v29  ;;  %v5920_v57 = vadd.f32 %v5888_v42, %v5819_v28  ;;  %v5921_v5 = vadd.f32 %v5889_v38, %v5820_v40  ;;  %v5922_v55 = vadd.f32 %v5890_v35, %v5821_v58  ;;  %v7272_v38 = vld [vmem:[#allocation9 + $0x2e] ss:$0 sm:$0xff] }
 0x525   : > { %v5923_v19 = vadd.f32 %v5891_v31, %v5822_v45  ;;  %v5924_v54 = vadd.f32 %v5892_v46, %v5823_v16  ;;  %v5925_v39 = vadd.f32 %v5893_v30, %v5824_v33  ;;  %v5976_v18 = vmul.f32 %v7271_v25, %v12897_v50 }
 0x526   : > { %v5978_v1 = vmul.f32 %v7271_v25, %v12891_v59  ;;  %v5980_v9 = vmul.f32 %v7271_v25, %v12899_v20  ;;  %v5982_v13 = vmul.f32 %v7271_v25, %v12901_v4  ;;  %v5984_v49 = vmul.f32 %v7271_v25, %v12905_v53 }
 0x527   : > { %v5986_v36 = vmul.f32 %v7271_v25, %v12909_v26  ;;  %v5987_v17 = vmul.f32 %v7271_v25, %v12921_v34  ;;  %v5988_v12 = vmul.f32 %v7271_v25, %v12923_v27  ;;  %v5989_v56 = vmul.f32 %v7271_v25, %v12937_v48 }
 0x528   : > { %v5990_v29 = vmul.f32 %v7271_v25, %v12939_v10  ;;  %v5991_v50 = vmul.f32 %v7271_v25, %v12955_v37  ;;  %v5992_v28 = vmul.f32 %v7271_v25, %v12957_v60  ;;  %v5993_v40 = vmul.f32 %v7271_v25, %v12837_v44 }
 0x529   : > { %v5994_v58 = vmul.f32 %v7271_v25, %v12839_v51  ;;  %v6008_v45 = vadd.f32 %v5976_v18, %v5907_v32  ;;  %v6010_v16 = vadd.f32 %v5978_v1, %v5909_v63  ;;  %v6012_v33 = vadd.f32 %v5980_v9, %v5911_v62 }
 0x52a   : > { %v6014_v15 = vadd.f32 %v5982_v13, %v5913_v21  ;;  %v6016_v22 = vadd.f32 %v5984_v49, %v5915_v7  ;;  %v6018_v34 = vadd.f32 %v5986_v36, %v5917_v61  ;;  %v6019_v8 = vadd.f32 %v5987_v17, %v5918_v47  ;;  %v7273_v49 = vld [vmem:[#allocation9 + $0x36] ss:$0 sm:$0xff] }
 0x52b   : > { %v6020_v52 = vadd.f32 %v5988_v12, %v5919_v0  ;;  %v6021_v43 = vadd.f32 %v5989_v56, %v5920_v57  ;;  %v6022_v6 = vadd.f32 %v5990_v29, %v5921_v5  ;;  %v6023_v11 = vadd.f32 %v5991_v50, %v5922_v55 }
 0x52c   : > { %v6024_v23 = vadd.f32 %v5992_v28, %v5923_v19  ;;  %v6025_v24 = vadd.f32 %v5993_v40, %v5924_v54  ;;  %v6026_v42 = vadd.f32 %v5994_v58, %v5925_v39  ;;  %v6077_v35 = vmul.f32 %v7272_v38, %v12891_v59 }
 0x52d   : > { %v6079_v31 = vmul.f32 %v7272_v38, %v12899_v20  ;;  %v6081_v46 = vmul.f32 %v7272_v38, %v12901_v4  ;;  %v6083_v30 = vmul.f32 %v7272_v38, %v12905_v53  ;;  %v6085_v32 = vmul.f32 %v7272_v38, %v12909_v26 }
 0x52e   : > { %v6087_v63 = vmul.f32 %v7272_v38, %v12923_v27  ;;  %v6088_v62 = vmul.f32 %v7272_v38, %v12937_v48  ;;  %v6089_v21 = vmul.f32 %v7272_v38, %v12939_v10  ;;  %v6090_v7 = vmul.f32 %v7272_v38, %v12955_v37 }
 0x52f   : > { %v6092_v61 = vmul.f32 %v7272_v38, %v12837_v44  ;;  %v6091_v59 = vmul.f32 %v7272_v38, %v12957_v60  ;;  %v6093_v47 = vmul.f32 %v7272_v38, %v12839_v51  ;;  %v6094_v0 = vmul.f32 %v7272_v38, %v12855_v41 }
 0x530   : > { %v6095_v57 = vmul.f32 %v7272_v38, %v12857_v3  ;;  %v6109_v5 = vadd.f32 %v6077_v35, %v6008_v45  ;;  %v6111_v55 = vadd.f32 %v6079_v31, %v6010_v16  ;;  %v6113_v19 = vadd.f32 %v6081_v46, %v6012_v33 }
 0x531   : > { %v6115_v54 = vadd.f32 %v6083_v30, %v6014_v15  ;;  %v6117_v39 = vadd.f32 %v6085_v32, %v6016_v22  ;;  %v6119_v48 = vadd.f32 %v6087_v63, %v6018_v34  ;;  %v6120_v25 = vadd.f32 %v6088_v62, %v6019_v8 }
 0x532   : > { %v6121_v18 = vadd.f32 %v6089_v21, %v6020_v52  ;;  %v6122_v1 = vadd.f32 %v6090_v7, %v6021_v43  ;;  %v6123_v9 = vadd.f32 %v6091_v59, %v6022_v6  ;;  %v6124_v13 = vadd.f32 %v6092_v61, %v6023_v11 }
 0x533   : > { %v6178_v36 = vmul.f32 %v7273_v49, %v12899_v20  ;;  %v6180_v17 = vmul.f32 %v7273_v49, %v12901_v4  ;;  %v6182_v12 = vmul.f32 %v7273_v49, %v12905_v53  ;;  %v6184_v56 = vmul.f32 %v7273_v49, %v12909_v26 }
 0x534   : > { %v6186_v29 = vmul.f32 %v7273_v49, %v12923_v27  ;;  %v6188_v50 = vmul.f32 %v7273_v49, %v12939_v10  ;;  %v6189_v28 = vmul.f32 %v7273_v49, %v12955_v37  ;;  %v6191_v40 = vmul.f32 %v7273_v49, %v12837_v44  ;;  %v7274_v44 = vld [vmem:[%s13114_s4] ss:$0 sm:$0xff] }
 0x535   : > { %v6210_v58 = vadd.f32 %v6178_v36, %v6109_v5  ;;  %v6212_v45 = vadd.f32 %v6180_v17, %v6111_v55  ;;  %v6214_v16 = vadd.f32 %v6182_v12, %v6113_v19  ;;  %v6216_v33 = vadd.f32 %v6184_v56, %v6115_v54 }
 0x536   : > { %v6218_v15 = vadd.f32 %v6186_v29, %v6117_v39  ;;  %v6125_v20 = vadd.f32 %v6093_v47, %v6024_v23  ;;  %v6190_v4 = vmul.f32 %v7273_v49, %v12957_v60  ;;  %v6192_v53 = vmul.f32 %v7273_v49, %v12839_v51 }
 0x537   : > { %v6220_v22 = vadd.f32 %v6188_v50, %v6119_v48  ;;  %v6126_v26 = vadd.f32 %v6094_v0, %v6025_v24  ;;  %v6193_v27 = vmul.f32 %v7273_v49, %v12855_v41  ;;  %v6194_v10 = vmul.f32 %v7273_v49, %v12857_v3 }
 0x538   : > { %v6221_v34 = vadd.f32 %v6189_v28, %v6120_v25  ;;  %v6222_v37 = vadd.f32 %v6190_v4, %v6121_v18  ;;  %v6249_v8 = vadd.f32 %v7274_v44, %v6210_v58  ;;  %v6251_v52 = vadd.f32 %v7274_v44, %v6212_v45 }
 0x539   : > { %v6253_v43 = vadd.f32 %v7274_v44, %v6214_v16  ;;  %v6195_v6 = vmul.f32 %v7273_v49, %v12873_v14  ;;  %v6223_v60 = vadd.f32 %v6191_v40, %v6122_v1  ;;  %v6255_v11 = vadd.f32 %v7274_v44, %v6216_v33 }
 0x53a   : > { %v6257_v51 = vadd.f32 %v7274_v44, %v6218_v15  ;;  %v6127_v23 = vadd.f32 %v6095_v57, %v6026_v42  ;;  %v6196_v24 = vmul.f32 %v7273_v49, %v12875_v2  ;;  %v6224_v41 = vadd.f32 %v6192_v53, %v6123_v9 }
 0x53b   : > { %v6259_v38 = vadd.f32 %v7274_v44, %v6220_v22  ;;  %v6225_v3 = vadd.f32 %v6193_v27, %v6124_v13  ;;  %v6226_v35 = vadd.f32 %v6194_v10, %v6125_v20  ;;  %v6260_v31 = vadd.f32 %v7274_v44, %v6221_v34 }
 0x53c   : > { %v6771_v46 = vmul.f32 -1.442695, %v6249_v8  ;;  %v6261_v30 = vadd.f32 %v7274_v44, %v6222_v37  ;;  %v6773_v32 = vmul.f32 -1.442695, %v6251_v52  ;;  %v6775_v63 = vmul.f32 -1.442695, %v6253_v43 }
 0x53d   : > { %v6777_v62 = vmul.f32 -1.442695, %v6255_v11  ;;  %v6227_v21 = vadd.f32 %v6195_v6, %v6126_v26  ;;  %v6262_v7 = vadd.f32 %v7274_v44, %v6223_v60  ;;  %v6779_v14 = vmul.f32 -1.442695, %v6257_v51  ;;  %v6473_v52 = vld [vmem:[%s7606_s13 + $0x68] sm:$0xff]  ;;  %v6475_v43 = vld [vmem:[%s7606_s13 + $0x78] sm:$0xff] }
 0x53e   : > { %7061 = vpow2.f32 %v6771_v46  ;;  %v6228_v61 = vadd.f32 %v6196_v24, %v6127_v23  ;;  %v6263_v59 = vadd.f32 %v7274_v44, %v6224_v41  ;;  %v6781_v42 = vmul.f32 -1.442695, %v6259_v38  ;;  %v6477_v60 = vld [vmem:[%s7606_s13 + $0x88] sm:$0xff]  ;;  %v6479_v51 = vld [vmem:[%s7606_s13 + $0x98] sm:$0xff] }
 0x53f   : > { %7063 = vpow2.f32 %v6773_v32  ;;  %v6264_v47 = vadd.f32 %v7274_v44, %v6225_v3  ;;  %v6782_v2 = vmul.f32 -1.442695, %v6260_v31  ;;  %v6265_v0 = vadd.f32 %v7274_v44, %v6226_v35  ;;  %v6481_v41 = vld [vmem:[%s7606_s13 + $0xa8] sm:$0xff]  ;;  %v6483_v35 = vld [vmem:[%s7606_s13 + $0xb8] sm:$0xff] }
 0x540   : > { %7065 = vpow2.f32 %v6775_v63  ;;  %v6783_v57 = vmul.f32 -1.442695, %v6261_v30  ;;  %v6266_v5 = vadd.f32 %v7274_v44, %v6227_v21  ;;  %v6784_v55 = vmul.f32 -1.442695, %v6262_v7  ;;  %v6484_v30 = vld [vmem:[%s7606_s13 + $0xc0] sm:$0xff] }
 0x541   : > { %7067 = vpow2.f32 %v6777_v62  ;;  %v6267_v19 = vadd.f32 %v7274_v44, %v6228_v61  ;;  %v6785_v54 = vmul.f32 -1.442695, %v6263_v59  ;;  %v6786_v39 = vmul.f32 -1.442695, %v6264_v47  ;;  %v6485_v62 = vld [vmem:[%s7606_s13 + $0xc8] sm:$0xff] }
 0x542   : > { %7069 = vpow2.f32 %v6779_v14  ;;  %v6787_v48 = vmul.f32 -1.442695, %v6265_v0  ;;  %v6788_v25 = vmul.f32 -1.442695, %v6266_v5  ;;  %v6486_v14 = vld [vmem:[%s7606_s13 + $0xd0] sm:$0xff]  ;;  %v6488_v0 = vld [vmem:[%s7606_s13 + $0xe0] sm:$0xff] }
 0x543   : > { %7071 = vpow2.f32 %v6781_v42  ;;  %v6789_v18 = vmul.f32 -1.442695, %v6267_v19  ;;  %v6487_v42 = vld [vmem:[%s7606_s13 + $0xd8] sm:$0xff] }
 0x544   : > { %7073 = vpow2.f32 %v6782_v2 }
 0x545   : > { %7075 = vpow2.f32 %v6783_v57 }
 0x546   : > { %7077 = vpow2.f32 %v6784_v55  ;;  %v6489_v55 = vld [vmem:[%s7606_s13 + $0xe8] sm:$0xff] }
 0x547   : > { %7079 = vpow2.f32 %v6785_v54 }
 0x548   : > { %7081 = vpow2.f32 %v6786_v39  ;;  %v6490_v39 = vld [vmem:[%s7606_s13 + $0xf0] sm:$0xff] }
 0x549   : > { %7083 = vpow2.f32 %v6787_v48 }
 0x54a   : > { %7085 = vpow2.f32 %v6788_v25 }
 0x54b   : > { %v7062_v1 = vpop.eup %7061  ;;  %7087 = vpow2.f32 %v6789_v18  ;;  %v6491_v18 = vld [vmem:[%s7606_s13 + $0xf8] sm:$0xff]  ;;  %s6557_s13 = scalar_lea.sflag [#allocation6], %s7600_s30 }
 0x54c   : > { %v7064_v9 = vpop.eup %7063  ;;  %v6377_v13 = vadd.f32 1.0, %v7062_v1 }
 0x54d   : > { %v7066_v49 = vpop.eup %7065  ;;  %v6379_v36 = vadd.f32 1.0, %v7064_v9 }
 0x54e   : > { %v7068_v17 = vpop.eup %7067  ;;  %v6381_v12 = vadd.f32 1.0, %v7066_v49  ;;  %7089 = vrcp.f32 %v6377_v13 }
 0x54f   : > { %v7070_v56 = vpop.eup %7069  ;;  %v6383_v29 = vadd.f32 1.0, %v7068_v17  ;;  %7091 = vrcp.f32 %v6379_v36 }
 0x550   : > { %v7072_v50 = vpop.eup %7071  ;;  %v6385_v28 = vadd.f32 1.0, %v7070_v56  ;;  %7093 = vrcp.f32 %v6381_v12 }
 0x551   : > { %v7074_v40 = vpop.eup %7073  ;;  %v6387_v58 = vadd.f32 1.0, %v7072_v50  ;;  %7095 = vrcp.f32 %v6383_v29 }
 0x552   : > { %v7076_v45 = vpop.eup %7075  ;;  %v6388_v16 = vadd.f32 1.0, %v7074_v40  ;;  %7097 = vrcp.f32 %v6385_v28 }
 0x553   : > { %v7078_v33 = vpop.eup %7077  ;;  %v6389_v15 = vadd.f32 1.0, %v7076_v45  ;;  %7099 = vrcp.f32 %v6387_v58 }
 0x554   : > { %v7080_v20 = vpop.eup %7079  ;;  %v6390_v4 = vadd.f32 1.0, %v7078_v33  ;;  %7101 = vrcp.f32 %v6388_v16 }
 0x555   : > { %v7082_v53 = vpop.eup %7081  ;;  %v6391_v22 = vadd.f32 1.0, %v7080_v20  ;;  %7103 = vrcp.f32 %v6389_v15 }
 0x556   : > { %v7084_v26 = vpop.eup %7083  ;;  %v6392_v27 = vadd.f32 1.0, %v7082_v53  ;;  %7105 = vrcp.f32 %v6390_v4 }
 0x557   : > { %v7086_v10 = vpop.eup %7085  ;;  %v6393_v34 = vadd.f32 1.0, %v7084_v26  ;;  %7107 = vrcp.f32 %v6391_v22 }
 0x558   : > { %v7088_v37 = vpop.eup %7087  ;;  %v6394_v44 = vadd.f32 1.0, %v7086_v10  ;;  %7109 = vrcp.f32 %v6392_v27 }
 0x559   : > { %v6395_v8 = vadd.f32 1.0, %v7088_v37  ;;  %7111 = vrcp.f32 %v6393_v34 }
 0x55a   : > { %7113 = vrcp.f32 %v6394_v44 }
 0x55b   : > { %v7090_v6 = vpop.eup %7089  ;;  %7115 = vrcp.f32 %v6395_v8 }
 0x55c   : > { %v7092_v11 = vpop.eup %7091  ;;  %v6505_v23 = vmul.f32 %v7090_v6, %v6473_v52 }
 0x55d   : > { %v7094_v24 = vpop.eup %7093  ;;  %v6507_v38 = vmul.f32 %v7092_v11, %v6475_v43 }
 0x55e   : > { %v7096_v3 = vpop.eup %7095  ;;  %v6509_v31 = vmul.f32 %v7094_v24, %v6477_v60  ;;  %6537 = vst.msk [vmem:[%s11238_s6 + $0x68] sm:$0xff] %vm319_vm0, %v6505_v23 }
 0x55f   : > { %v7098_v46 = vpop.eup %7097  ;;  %v6511_v32 = vmul.f32 %v7096_v3, %v6479_v51  ;;  %6539 = vst.msk [vmem:[%s11238_s6 + $0x78] sm:$0xff] %vm319_vm0, %v6507_v38 }
 0x560   : > { %v7100_v63 = vpop.eup %7099  ;;  %v6513_v21 = vmul.f32 %v7098_v46, %v6481_v41  ;;  %6541 = vst.msk [vmem:[%s11238_s6 + $0x88] sm:$0xff] %vm319_vm0, %v6509_v31 }
 0x561   : > { %v7102_v7 = vpop.eup %7101  ;;  %v6515_v61 = vmul.f32 %v7100_v63, %v6483_v35  ;;  %6543 = vst.msk [vmem:[%s11238_s6 + $0x98] sm:$0xff] %vm319_vm0, %v6511_v32 }
 0x562   : > { %v7104_v59 = vpop.eup %7103  ;;  %v6516_v47 = vmul.f32 %v7102_v7, %v6484_v30  ;;  %6545 = vst.msk [vmem:[%s11238_s6 + $0xa8] sm:$0xff] %vm319_vm0, %v6513_v21 }
 0x563   : > { %v7106_v2 = vpop.eup %7105  ;;  %v6517_v57 = vmul.f32 %v7104_v59, %v6485_v62  ;;  %6547 = vst.msk [vmem:[%s11238_s6 + $0xb8] sm:$0xff] %vm319_vm0, %v6515_v61 }
 0x564   : > { %v7108_v5 = vpop.eup %7107  ;;  %v6518_v19 = vmul.f32 %v7106_v2, %v6486_v14  ;;  %6548 = vst.msk [vmem:[%s11238_s6 + $0xc0] sm:$0xff] %vm319_vm0, %v6516_v47 }
 0x565   : > { %v7110_v54 = vpop.eup %7109  ;;  %v6519_v48 = vmul.f32 %v7108_v5, %v6487_v42  ;;  %6549 = vst.msk [vmem:[%s11238_s6 + $0xc8] sm:$0xff] %vm319_vm0, %v6517_v57 }
 0x566   : > { %v7112_v25 = vpop.eup %7111  ;;  %v6520_v1 = vmul.f32 %v7110_v54, %v6488_v0  ;;  %6550 = vst.msk [vmem:[%s11238_s6 + $0xd0] sm:$0xff] %vm319_vm0, %v6518_v19 }
 0x567   : > { %v7114_v9 = vpop.eup %7113  ;;  %v6521_v13 = vmul.f32 %v7112_v25, %v6489_v55  ;;  %6551 = vst.msk [vmem:[%s11238_s6 + $0xd8] sm:$0xff] %vm319_vm0, %v6519_v48 }
 0x568   : > { %v7116_v49 = vpop.eup %7115  ;;  %v6522_v36 = vmul.f32 %v7114_v9, %v6490_v39  ;;  %6552 = vst.msk [vmem:[%s11238_s6 + $0xe0] sm:$0xff] %vm319_vm0, %v6520_v1 }
 0x569   : > { %v6523_v17 = vmul.f32 %v7116_v49, %v6491_v18  ;;  %6553 = vst.msk [vmem:[%s11238_s6 + $0xe8] sm:$0xff] %vm319_vm0, %v6521_v13 }
 0x56a   : > { %6554 = vst.msk [vmem:[%s11238_s6 + $0xf0] sm:$0xff] %vm319_vm0, %v6522_v36 }
 0x56b   : > { %6555 = vst.msk [vmem:[%s11238_s6 + $0xf8] sm:$0xff] %vm319_vm0, %v6523_v17 }
 0x56c   : > { %7368 = shalt.err (!%p7365_p3)
}
 0x56d   : > { %s7369_s6 = scalar_lea.hbm %s13059_s9, 4096  ;;  %s7373_s17 = scalar_lea.hbm %s13115_s5, 8192 }
 0x56e   : > { %p7370_p11 = scmp.ne.s32.totalorder %s13059_s9, %s7369_s6  ;;  %p7374_p4 = scmp.lt.s32.totalorder %s13059_s9, %s13115_s5 }
 0x56f   : > { %p7375_p6 = scmp.lt.s32.totalorder %s7373_s17, %s7369_s6 }
 0x570   : > { %p7371_p9 = pnand %p7370_p11, %p14861_p2 }
 0x571   : > { %p7376_p8 = por %p7375_p6, %p7374_p4 }
 0x572   : > { %p7372_p1 = pneg %p7371_p9 }
 0x574   : > { %p7377_p5 = pnand %p7376_p8, %p7372_p1 }
 0x576   : > { %7380 = shalt.err (!%p7377_p5)
}
 0x577   : > { %s7432_s29 = smov 128   ;;  %s7433_s26 = smov 8  }
 0x578   : > { %6927 = dma.vmem_to_hbm [thread:$0]  (%p14861_p2), %s13061_s24, 4096, %s13059_s9, %s6557_s13, %s7432_s29, %s7432_s29, %s7433_s26  }
 0x579 PF: > { %s6585_s22 = sand.u32 1, %s7411_s18   ;;  %p14862_p7 = scmp.ne.s32.totalorder %s13420_s25, 0 }
 0x57a   : > { %p14863_p12 = scmp.ge.s32.totalorder %s7423_s21, 2  ;;  %s6586_s10 = scalar_lea.sflag [#allocation6], %s6585_s22 }
 0x57c   : > { %p6941_p13 = pnand %p14863_p12, %p14862_p7 }
 0x57e   : > { %p6942_p0 = pneg %p6941_p13 }
 0x580   : > { %7406 = dma.done.wait (%p6942_p0), %s6586_s10, 4096  }
 0x581   : > { %7408 = vsyncadd (%p6942_p0), %s6586_s10, 4294963200  ;;  %p19_p10 = scmp.ge.s32.totalorder %s7542_s15, 4   ;;  %s14864_s18 = smov %s7415_s19 }
 0x582   : > { %s14865_s19 = smov %s7419_s20  ;;  %s14866_s20 = smov %s7558_s27 }
 0x583   : > { %s14867_s21 = smov %s7542_s15  ;;  %21 = sbr.rel (!%p19_p10) target bundleno = 6 (0x6), region = 106 }
 0x588   :  { %6591 = vsyncpa [#allocation5], 1 }
 0x589   :  { %6593 = vsyncpa [#allocation5 + $0x1], 1 }
 0x58a   :  { %6594 = vsyncpa [#allocation8], 1 }
 0x58b   :  { %6595 = vsyncpa [#allocation6], 1 }
 0x58c   :  { %6597 = vsyncpa [#allocation6 + $0x1], 1 }

</bundles_post_ra>
